<compile_context>
chip_gen: v7x
topology: tpu7x:2x2x1
jax: 0.10.0
libtpu: 0.0.40
codegen_flags: <defaults>
</compile_context>

<pallas_src>
import functools

import jax
import jax.numpy as jnp
from jax import lax
from jax.experimental import pallas as pl
from jax.experimental.pallas import tpu as pltpu


def _round_up(x, m):
    return ((x + m - 1) // m) * m


def _pick_vmem_limit():
    # Generation-aware scoped-VMEM budget: ~3/4 of physical, capped at 96 MiB
    # (v5e/v6e: 128 MiB physical -> 96 MiB; v7x: 64 MiB -> 48 MiB).
    try:
        cap = int(pltpu.get_tpu_info().vmem_capacity_bytes)
        return min(cap * 3 // 4, 96 * 1024 * 1024)
    except Exception:
        return 32 * 1024 * 1024


_VMEM_LIMIT = _pick_vmem_limit()


# ----------------------------------------------------------------------------
# Fused bidirectional GRU kernel: grid over batch chunks, both directions inside
# ----------------------------------------------------------------------------

def _bigru_kernel(x_ref, wih_ref, bih_ref, whh_ref, bhh_ref, m_ref,
                  out_ref, gx_ref, h_ref, *, unroll):
    """One batch chunk per grid step.

    x_ref   : (T, Bc, Ep)   bf16 time-major input chunk
    wih_ref : (Ep_in, 6Hp)  bf16  W_ih^T, cols [0:3Hp]=fwd r|z|n, [3Hp:6Hp]=bwd
    bih_ref : (1, 6Hp)      f32
    whh_ref : (2, Hp, 3Hp)  bf16  per-direction W_hh^T
    bhh_ref : (2, 1, 3Hp)   f32
    m_ref   : (T, Bc, 1)    f32   1.0 where the timestep is valid
    out_ref : (T, Bc, 2Hp)  bf16  lanes [0:Hp]=fwd, [Hp:2Hp]=bwd, zeros at pads
    gx_ref  : VMEM (T*Bc, 6Hp) f32 scratch -- precomputed input gates (both dirs)
    h_ref   : VMEM (Bc, Hp)    f32 scratch -- hidden state
    """
    T, Bc, Ep = x_ref.shape
    Hp = whh_ref.shape[1]

    # Input-gate projections for BOTH directions in ONE MXU matmul; x is read
    # once, the result never leaves VMEM.  (Bc is a multiple of 16 so the
    # leading-dim merge is layout-preserving for bf16.)
    x2 = x_ref[...].reshape(T * Bc, Ep)
    gx_ref[...] = (
        jnp.dot(x2, wih_ref[...], preferred_element_type=jnp.float32)
        + bih_ref[...])

    def run_direction(d):                      # d is a Python int (0=fwd, 1=bwd)
        w_hh = whh_ref[d]                      # (Hp, 3Hp) bf16, hoisted
        b_hh = bhh_ref[d]                      # (1, 3Hp)  f32
        col = d * 3 * Hp                       # 128-aligned gate-group offset
        lane = d * Hp                          # 128-aligned output lane half
        h_ref[...] = jnp.zeros_like(h_ref)

        def step(i, carry):
            t = i if d == 0 else (T - 1 - i)
            row = pl.multiple_of(t * Bc, Bc)
            gx = gx_ref[pl.ds(row, Bc), pl.ds(col, 3 * Hp)]          # (Bc, 3Hp)
            h = h_ref[...]
            # Single fused recurrent matmul (bf16 operands, f32 accumulate),
            # then static 128-aligned lane slices for the gates.
            gh = jnp.dot(h.astype(jnp.bfloat16), w_hh,
                         preferred_element_type=jnp.float32) + b_hh
            r = jax.nn.sigmoid(gx[:, 0:Hp] + gh[:, 0:Hp])
            z = jax.nn.sigmoid(gx[:, Hp:2 * Hp] + gh[:, Hp:2 * Hp])
            n = jnp.tanh(gx[:, 2 * Hp:3 * Hp] + r * gh[:, 2 * Hp:3 * Hp])
            h_new = (1.0 - z) * n + z * h
            m = m_ref[t] > 0.0                                       # (Bc, 1)
            h_ref[...] = jnp.where(m, h_new, h)                      # hold at pads
            out_ref[t, :, pl.ds(lane, Hp)] = jnp.where(
                m, h_new, 0.0).astype(out_ref.dtype)                 # zeros at pads
            return carry

        lax.fori_loop(0, T, step, 0, unroll=unroll)

    run_direction(0)
    run_direction(1)


def bi_gru(x_tm, mask_tm, p, *, block_b=16):
    """Bidirectional single-layer GRU on padded, time-major input.

    x_tm: (T, B, Ep) bf16, mask_tm: (T, B, 1) f32  ->  (T, B, 2Hp) bf16.
    B must be a multiple of block_b (block_b a multiple of 8; 16 keeps bf16
    sublane tiles full).
    """
    T, B, Ep = x_tm.shape
    Hp = p["whh"].shape[1]
    assert block_b % 8 == 0 and B % block_b == 0
    assert p["wih"].shape[0] == Ep
    # Partial unroll of the recurrent loop (divides T -> no remainder handling).
    unroll = True if T <= 16 else (4 if T % 4 == 0 else (2 if T % 2 == 0 else 1))

    return pl.pallas_call(
        functools.partial(_bigru_kernel, unroll=unroll),
        out_shape=jax.ShapeDtypeStruct((T, B, 2 * Hp), jnp.bfloat16),
        grid=(B // block_b,),
        in_specs=[
            pl.BlockSpec((T, block_b, Ep), lambda i: (0, i, 0)),
            pl.BlockSpec(p["wih"].shape, lambda i: (0, 0)),
            pl.BlockSpec(p["bih"].shape, lambda i: (0, 0)),
            pl.BlockSpec(p["whh"].shape, lambda i: (0, 0, 0)),
            pl.BlockSpec(p["bhh"].shape, lambda i: (0, 0, 0)),
            pl.BlockSpec((T, block_b, 1), lambda i: (0, i, 0)),
        ],
        out_specs=pl.BlockSpec((T, block_b, 2 * Hp), lambda i: (0, i, 0)),
        scratch_shapes=[
            pltpu.VMEM((T * block_b, 6 * Hp), jnp.float32),
            pltpu.VMEM((block_b, Hp), jnp.float32),
        ],
        compiler_params=pltpu.CompilerParams(
            dimension_semantics=("parallel",),
            vmem_limit_bytes=_VMEM_LIMIT),
    )(x_tm, p["wih"], p["bih"], p["whh"], p["bhh"], mask_tm)


# ----------------------------------------------------------------------------
# Fused attention: projection + context score + masked softmax + weighted sum,
# R rows per grid step, time-major values straight from the GRU kernel.
# ----------------------------------------------------------------------------

def _attention_kernel(attn_flag, v_ref, m_ref, w_ref, b_ref, u_ref,
                      alpha_ref, out_ref):
    """v_ref: (T, R, D) bf16, m_ref: (T, R, 1) f32, w: (D, A) bf16,
    b: (1, A) f32, u: (1, A) f32, alpha_ref: (T, R, 1) f32, out_ref: (R, D) f32.
    """
    T, R, D = v_ref.shape
    A = w_ref.shape[1]
    v = v_ref[...]                                                    # bf16
    # Tall (T*R, D) x (D, A) MXU matmul (R % 8 == 0, D % 128 == 0 -> free reshape).
    proj = jnp.tanh(
        jnp.dot(v.reshape(T * R, D), w_ref[...],
                preferred_element_type=jnp.float32)
        + b_ref[...]).reshape(T, R, A)
    # Context-vector score: VPU multiply + lane reduce instead of an N=1 MXU pass.
    s = jnp.sum(proj * u_ref[...], axis=-1, keepdims=True)           # (T, R, 1)

    m = m_ref[...] > 0.0                                              # (T, R, 1)
    neg = jnp.float32(-1e30)
    # Per-row max: the softmax shift cancels analytically, so forward values
    # match the reference's global-max formulation (and are more stable).
    mx = jnp.max(jnp.where(m, s, neg), axis=0, keepdims=True)         # (1, R, 1)
    e = jnp.exp(jnp.where(m, s - mx, neg))                            # masked pre-exp
    denom = jnp.sum(e, axis=0, keepdims=True)                         # (1, R, 1)
    denom = jnp.where(denom > 0.0, denom, 1.0)                        # fully-masked guard
    inv = pl.reciprocal(denom, approx=True)                           # EUP slot
    inv = inv * (2.0 - denom * inv)                                   # one Newton step
    alphas = e * inv                                                  # (T, R, 1)
    alpha_ref[...] = alphas

    vf = v.astype(jnp.float32)
    if attn_flag:
        out_ref[...] = jnp.sum(alphas * vf, axis=0)                   # (R, D)
    else:
        # reference's non-attention branch: plain sum over (zero-padded) steps
        out_ref[...] = jnp.sum(vf, axis=0)


def attention_pool(values_tm, mask_tm, w, b, u, attn, *, block_b=16):
    """values_tm: (T, B, D) bf16, mask_tm: (T, B, 1) f32
    -> (alphas (T, B, 1) f32, pooled (B, D) f32)."""
    T, B, D = values_tm.shape
    A = w.shape[1]
    assert block_b % 8 == 0 and B % block_b == 0
    alphas, pooled = pl.pallas_call(
        functools.partial(_attention_kernel, attn),
        out_shape=(
            jax.ShapeDtypeStruct((T, B, 1), jnp.float32),
            jax.ShapeDtypeStruct((B, D), jnp.float32),
        ),
        grid=(B // block_b,),
        in_specs=[
            pl.BlockSpec((T, block_b, D), lambda i: (0, i, 0)),
            pl.BlockSpec((T, block_b, 1), lambda i: (0, i, 0)),
            pl.BlockSpec((D, A), lambda i: (0, 0)),
            pl.BlockSpec((1, A), lambda i: (0, 0)),
            pl.BlockSpec((1, A), lambda i: (0, 0)),
        ],
        out_specs=(
            pl.BlockSpec((T, block_b, 1), lambda i: (0, i, 0)),
            pl.BlockSpec((block_b, D), lambda i: (i, 0)),
        ),
        compiler_params=pltpu.CompilerParams(
            dimension_semantics=("parallel",),
            vmem_limit_bytes=_VMEM_LIMIT),
    )(values_tm, mask_tm, w, b, u)
    return alphas, pooled


# ----------------------------------------------------------------------------
# Weight packing: torch layouts -> padded, lane-aligned, pre-transposed layouts
# ----------------------------------------------------------------------------

def _pad_gate_rows(w, H, Hp):
    """(3H, ...) torch gate-major (r|z|n) -> (3Hp, ...), each gate padded to Hp rows."""
    out = jnp.zeros((3 * Hp,) + w.shape[1:], w.dtype)
    for g in range(3):
        out = out.at[g * Hp:g * Hp + H].set(w[g * H:(g + 1) * H])
    return out


def _scatter_rows(w, segments, rows_out):
    """w: (rows_in, C); segments: [(src_start, length, dst_start)] -> (rows_out, C)."""
    out = jnp.zeros((rows_out, w.shape[1]), w.dtype)
    for src, length, dst in segments:
        out = out.at[dst:dst + length].set(w[src:src + length])
    return out


def pack_bigru(raw_fwd, raw_bwd, H, Hp, in_segments, in_pad):
    """raw_*: (w_ih (3H,In), w_hh (3H,H), b_ih (3H,), b_hh (3H,)) torch layout."""
    def one(raw):
        w_ih, w_hh, b_ih, b_hh = raw
        wih = _scatter_rows(_pad_gate_rows(w_ih, H, Hp).T, in_segments, in_pad)
        whh = jnp.zeros((Hp, 3 * Hp), w_hh.dtype).at[:H].set(
            _pad_gate_rows(w_hh, H, Hp).T)
        bih = _pad_gate_rows(b_ih.reshape(3 * H, 1), H, Hp).reshape(1, 3 * Hp)
        bhh = _pad_gate_rows(b_hh.reshape(3 * H, 1), H, Hp).reshape(1, 3 * Hp)
        return wih, whh, bih, bhh

    f, b = one(raw_fwd), one(raw_bwd)
    return {
        "wih": jnp.concatenate([f[0], b[0]], axis=1).astype(jnp.bfloat16),  # (in_pad, 6Hp)
        "bih": jnp.concatenate([f[2], b[2]], axis=1).astype(jnp.float32),   # (1, 6Hp)
        "whh": jnp.stack([f[1], b[1]]).astype(jnp.bfloat16),                # (2, Hp, 3Hp)
        "bhh": jnp.stack([f[3], b[3]]).astype(jnp.float32),                 # (2, 1, 3Hp)
    }


def pack_att(w, b, u, H, Hp, Ap):
    """w: (2H, A) 'x @ w + b' orientation, b: (A,), u: (A, 1)."""
    A = w.shape[1]
    wp = jnp.zeros((2 * Hp, Ap), w.dtype)
    wp = wp.at[0:H, 0:A].set(w[0:H])                 # forward half of the concat
    wp = wp.at[Hp:Hp + H, 0:A].set(w[H:2 * H])       # backward half
    bp = jnp.zeros((1, Ap), jnp.float32).at[0, 0:A].set(b)
    up = jnp.zeros((1, Ap), jnp.float32).at[0, 0:A].set(u.reshape(-1))
    return wp.astype(jnp.bfloat16), bp, up


# ----------------------------------------------------------------------------
# Model glue (plain JAX around the kernels)
# ----------------------------------------------------------------------------

def forward(params, documents, spd, wps, bert_features, *, dims, attn=True,
            block_b=16):
    n_docs, max_sents, max_words = documents.shape
    S = n_docs * max_sents
    Hwp, Hs, Hsp, bert_p = dims["hwp"], dims["hs"], dims["hsp"], dims["bert_p"]
    bert_dim = bert_features.shape[-1]

    # Reference quirk: it concatenates UNSORTED bert features onto SORTED
    # documents and unsorts at the end -> in original document order this is a
    # permutation of bert_features by doc_unsort_ind.
    doc_sort_ind = jnp.argsort(-spd)
    doc_unsort_ind = jnp.argsort(doc_sort_ind)
    bert_used = bert_features[doc_unsort_ind]

    sent_mask = (jnp.arange(max_sents)[None, :] < spd[:, None]).astype(jnp.float32)
    word_mask = (jnp.arange(max_words)[None, :] < wps.reshape(S, 1)).astype(jnp.float32)

    S_pad = _round_up(S, block_b)
    Dc_pad = _round_up(n_docs, block_b)

    # -------- word level --------
    tokens_tm = jnp.pad(documents.reshape(S, max_words).T, ((0, 0), (0, S_pad - S)))
    x_w = params["embedding"][tokens_tm]                         # (Tw, S_pad, Ep) bf16 gather (glue)
    wmask_tm = jnp.pad(word_mask.T, ((0, 0), (0, S_pad - S))).reshape(
        max_words, S_pad, 1)

    words_out = bi_gru(x_w, wmask_tm, params["word_rnn"], block_b=block_b)
    w_alphas, sent_vecs = attention_pool(
        words_out, wmask_tm, params["word_att_w"], params["word_att_b"],
        params["word_ctx"], attn, block_b=block_b)

    word_alphas = w_alphas[:, :S, 0].T.reshape(n_docs, max_sents, max_words)
    word_alphas = jnp.where(sent_mask[:, :, None] > 0, word_alphas, 0.0)

    # -------- sentence level --------
    sent_vecs = sent_vecs[:S].reshape(n_docs, max_sents, 2 * Hwp)
    bert_padded = jnp.pad(bert_used.astype(jnp.float32),
                          ((0, 0), (0, 0), (0, bert_p - bert_dim)))
    sent_in = jnp.concatenate([sent_vecs, bert_padded], axis=-1)
    sent_in = jnp.pad(sent_in.transpose(1, 0, 2).astype(jnp.bfloat16),
                      ((0, 0), (0, Dc_pad - n_docs), (0, 0)))    # (Ts, Dc_pad, 2Hwp+bert_p)
    smask_tm = jnp.pad(sent_mask.T, ((0, 0), (0, Dc_pad - n_docs))).reshape(
        max_sents, Dc_pad, 1)

    sents_out = bi_gru(sent_in, smask_tm, params["sent_rnn"], block_b=block_b)
    s_alphas, doc_vecs = attention_pool(
        sents_out, smask_tm, params["sent_att_w"], params["sent_att_b"],
        params["sent_ctx"], attn, block_b=block_b)

    sentence_alphas = s_alphas[:, :n_docs, 0].T                  # (n_docs, Ts)
    docs_vec = jnp.concatenate(
        [doc_vecs[:n_docs, 0:Hs], doc_vecs[:n_docs, Hsp:Hsp + Hs]], axis=-1)

    return docs_vec, word_alphas, sentence_alphas


# ----------------------------------------------------------------------------
# Deterministic parameter init (torch layouts, then packed to padded layouts)
# ----------------------------------------------------------------------------

def init_params(key, vocab, emb, hw, hs, watt, satt, bert_dim, scale=0.2):
    Ep, Hwp, Hsp = _round_up(emb, 128), _round_up(hw, 128), _round_up(hs, 128)
    Awp, Asp, Bp = _round_up(watt, 128), _round_up(satt, 128), _round_up(bert_dim, 128)
    ks = jax.random.split(key, 12)

    def raw_gru(k, in_size, H):
        k1, k2, k3, k4 = jax.random.split(k, 4)
        return (jax.random.normal(k1, (3 * H, in_size)) * scale,
                jax.random.normal(k2, (3 * H, H)) * scale,
                jax.random.normal(k3, (3 * H,)) * scale,
                jax.random.normal(k4, (3 * H,)) * scale)

    emb_tbl = jnp.zeros((vocab, Ep), jnp.float32).at[:, :emb].set(
        jax.random.normal(ks[0], (vocab, emb)) * scale).astype(jnp.bfloat16)

    word_rnn = pack_bigru(raw_gru(ks[1], emb, hw), raw_gru(ks[2], emb, hw),
                          hw, Hwp, [(0, emb, 0)], Ep)
    waw, wab, wau = pack_att(
        jax.random.normal(ks[3], (2 * hw, watt)) * scale,
        jax.random.normal(ks[4], (watt,)) * scale,
        jax.random.normal(ks[5], (watt, 1)) * scale, hw, Hwp, Awp)

    # sentence GRU input = [word-GRU fwd | pad | word-GRU bwd | pad | bert | pad]
    sent_segs = [(0, hw, 0), (hw, hw, Hwp), (2 * hw, bert_dim, 2 * Hwp)]
    sent_rnn = pack_bigru(raw_gru(ks[6], 2 * hw + bert_dim, hs),
                          raw_gru(ks[7], 2 * hw + bert_dim, hs),
                          hs, Hsp, sent_segs, 2 * Hwp + Bp)
    saw, sab, sau = pack_att(
        jax.random.normal(ks[8], (2 * hs, satt)) * scale,
        jax.random.normal(ks[9], (satt,)) * scale,
        jax.random.normal(ks[10], (satt, 1)) * scale, hs, Hsp, Asp)

    params = {
        "embedding": emb_tbl,
        "word_rnn": word_rnn, "word_att_w": waw, "word_att_b": wab, "word_ctx": wau,
        "sent_rnn": sent_rnn, "sent_att_w": saw, "sent_att_b": sab, "sent_ctx": sau,
    }
    dims = {"hw": hw, "hwp": Hwp, "hs": hs, "hsp": Hsp, "bert_p": Bp, "emb_p": Ep}
    return params, dims


if __name__ == "__main__":
    vocab_size = 50
    emb_size = 64
    word_rnn_size = 64
    sentence_rnn_size = 64
    word_att_size = 64
    sentence_att_size = 64
    bert_feature_dim = 64
    n_docs, max_sents, max_words = 2, 4, 8

    key = jax.random.PRNGKey(0)
    kp, kd, kw, kb = jax.random.split(key, 4)

    params, dims = init_params(kp, vocab_size, emb_size, word_rnn_size,
                               sentence_rnn_size, word_att_size,
                               sentence_att_size, bert_feature_dim)

    documents = jax.random.randint(kd, (n_docs, max_sents, max_words),
                                   0, vocab_size, dtype=jnp.int32)
    sentences_per_document = jnp.array([3, 4], dtype=jnp.int32)  # distinct -> same sort as torch
    words_per_sentence = jax.random.randint(kw, (n_docs, max_sents),
                                            1, max_words + 1, dtype=jnp.int32)
    bert_features = jax.random.normal(kb, (n_docs, max_sents, bert_feature_dim),
                                      dtype=jnp.float32)

    fwd = jax.jit(functools.partial(forward, dims=dims, attn=True))
    docs_vec, word_alphas, sentence_alphas = fwd(
        params, documents, sentences_per_document, words_per_sentence, bert_features)
    jax.block_until_ready((docs_vec, word_alphas, sentence_alphas))

    assert docs_vec.shape == (n_docs, 2 * sentence_rnn_size)
    assert word_alphas.shape == (n_docs, max_sents, max_words)
    assert sentence_alphas.shape == (n_docs, max_sents)
    assert bool(jnp.all(jnp.isfinite(docs_vec)))
    assert bool(jnp.all(jnp.isfinite(word_alphas)))
    # sentence alphas form a valid distribution over valid sentences
    assert bool(jnp.allclose(jnp.sum(sentence_alphas, axis=1), 1.0, atol=1e-3))

    print("KERNEL_OK")
</pallas_src>

<mosaic_0001>
module attributes {stable_mosaic.version = 11 : i64} {
  func.func @_attention_kernel(%arg0: i32, %arg1: memref<8x16x256xbf16, #tpu.memory_space<vmem>>, %arg2: memref<8x16x1xf32, #tpu.memory_space<vmem>>, %arg3: memref<256x128xbf16, #tpu.memory_space<vmem>>, %arg4: memref<1x128xf32, #tpu.memory_space<vmem>>, %arg5: memref<1x128xf32, #tpu.memory_space<vmem>>, %arg6: memref<8x16x1xf32, #tpu.memory_space<vmem>>, %arg7: memref<16x256xf32, #tpu.memory_space<vmem>>) attributes {dimension_semantics = [#tpu.dimension_semantics<parallel>], iteration_bounds = array<i64: 1>, scalar_prefetch = 0 : i64, scratch_operands = 0 : i64, tpu.core_type = #tpu.core_type<tc>, window_params = [{transform_indices = @transform_0, window_bounds = array<i64: 8, 16, 256>}, {transform_indices = @transform_1, window_bounds = array<i64: 8, 16, 1>}, {pipeline_mode = #tpu.pipeline_mode<synchronous>, transform_indices = @transform_2, window_bounds = array<i64: 256, 128>}, {pipeline_mode = #tpu.pipeline_mode<synchronous>, transform_indices = @transform_3, window_bounds = array<i64: 1, 128>}, {pipeline_mode = #tpu.pipeline_mode<synchronous>, transform_indices = @transform_4, window_bounds = array<i64: 1, 128>}, {transform_indices = @transform_5, window_bounds = array<i64: 8, 16, 1>}, {transform_indices = @transform_6, window_bounds = array<i64: 16, 256>}]} {
    %c0 = arith.constant 0 : index
    %c0_0 = arith.constant 0 : index
    %c0_1 = arith.constant 0 : index
    %0 = vector.load %arg1[%c0, %c0_0, %c0_1] : memref<8x16x256xbf16, #tpu.memory_space<vmem>>, vector<8x16x256xbf16>
    %1 = vector.shape_cast %0 : vector<8x16x256xbf16> to vector<128x256xbf16>
    %c0_2 = arith.constant 0 : index
    %c0_3 = arith.constant 0 : index
    %2 = vector.load %arg3[%c0_2, %c0_3] : memref<256x128xbf16, #tpu.memory_space<vmem>>, vector<256x128xbf16>
    %cst = arith.constant dense<0.000000e+00> : vector<128x128xf32>
    %3 = tpu.matmul %1, %2, %cst {dimension_numbers = #tpu.dot_dimension_numbers<[1], [0], [0], [1], [0, 0, 1, 1], [], []>} : vector<128x256xbf16>, vector<256x128xbf16>, vector<128x128xf32> -> vector<128x128xf32>
    %c0_4 = arith.constant 0 : index
    %c0_5 = arith.constant 0 : index
    %4 = vector.load %arg4[%c0_4, %c0_5] : memref<1x128xf32, #tpu.memory_space<vmem>>, vector<1x128xf32>
    %5 = vector.broadcast %4 : vector<1x128xf32> to vector<128x128xf32>
    %6 = arith.addf %3, %5 : vector<128x128xf32>
    %7 = math.tanh %6 : vector<128x128xf32>
    %8 = vector.shape_cast %7 : vector<128x128xf32> to vector<8x16x128xf32>
    %c0_6 = arith.constant 0 : index
    %c0_7 = arith.constant 0 : index
    %9 = vector.load %arg5[%c0_6, %c0_7] : memref<1x128xf32, #tpu.memory_space<vmem>>, vector<1x128xf32>
    %10 = vector.shape_cast %9 : vector<1x128xf32> to vector<1x1x128xf32>
    %11 = vector.broadcast %10 : vector<1x1x128xf32> to vector<8x16x128xf32>
    %12 = arith.mulf %8, %11 : vector<8x16x128xf32>
    %cst_8 = arith.constant dense<0.000000e+00> : vector<8x16xf32>
    %13 = vector.multi_reduction <add>, %12, %cst_8 [2] : vector<8x16x128xf32> to vector<8x16xf32>
    %14 = vector.shape_cast %13 : vector<8x16xf32> to vector<8x16x1xf32>
    %c0_9 = arith.constant 0 : index
    %c0_10 = arith.constant 0 : index
    %c0_11 = arith.constant 0 : index
    %15 = vector.load %arg2[%c0_9, %c0_10, %c0_11] : memref<8x16x1xf32, #tpu.memory_space<vmem>>, vector<8x16x1xf32>
    %cst_12 = arith.constant 0.000000e+00 : f32
    %16 = vector.broadcast %cst_12 : f32 to vector<8x16x1xf32>
    %17 = arith.cmpf ogt, %15, %16 : vector<8x16x1xf32>
    %cst_13 = arith.constant -1.000000e+30 : f32
    %18 = vector.broadcast %cst_13 : f32 to vector<8x16x1xf32>
    %19 = arith.select %17, %14, %18 : vector<8x16x1xi1>, vector<8x16x1xf32>
    %cst_14 = arith.constant dense<0xFF800000> : vector<16x1xf32>
    %20 = vector.multi_reduction <maximumf>, %19, %cst_14 [0] : vector<8x16x1xf32> to vector<16x1xf32>
    %21 = vector.shape_cast %20 : vector<16x1xf32> to vector<1x16x1xf32>
    %22 = vector.broadcast %21 : vector<1x16x1xf32> to vector<8x16x1xf32>
    %23 = arith.subf %14, %22 : vector<8x16x1xf32>
    %cst_15 = arith.constant -1.000000e+30 : f32
    %24 = vector.broadcast %cst_15 : f32 to vector<8x16x1xf32>
    %25 = arith.select %17, %23, %24 : vector<8x16x1xi1>, vector<8x16x1xf32>
    %26 = math.exp %25 : vector<8x16x1xf32>
    %cst_16 = arith.constant dense<0.000000e+00> : vector<16x1xf32>
    %27 = vector.multi_reduction <add>, %26, %cst_16 [0] : vector<8x16x1xf32> to vector<16x1xf32>
    %28 = vector.shape_cast %27 : vector<16x1xf32> to vector<1x16x1xf32>
    %cst_17 = arith.constant 0.000000e+00 : f32
    %29 = vector.broadcast %cst_17 : f32 to vector<1x16x1xf32>
    %30 = arith.cmpf ogt, %28, %29 : vector<1x16x1xf32>
    %cst_18 = arith.constant 1.000000e+00 : f32
    %31 = vector.broadcast %cst_18 : f32 to vector<1x16x1xf32>
    %32 = arith.select %30, %28, %31 : vector<1x16x1xi1>, vector<1x16x1xf32>
    %33 = tpu.reciprocal %32 {approx = true} : vector<1x16x1xf32> -> vector<1x16x1xf32>
    %34 = arith.mulf %32, %33 : vector<1x16x1xf32>
    %cst_19 = arith.constant 2.000000e+00 : f32
    %35 = vector.broadcast %cst_19 : f32 to vector<1x16x1xf32>
    %36 = arith.subf %35, %34 : vector<1x16x1xf32>
    %37 = arith.mulf %33, %36 : vector<1x16x1xf32>
    %38 = vector.broadcast %37 : vector<1x16x1xf32> to vector<8x16x1xf32>
    %39 = arith.mulf %26, %38 : vector<8x16x1xf32>
    %c0_20 = arith.constant 0 : index
    %c0_21 = arith.constant 0 : index
    %c0_22 = arith.constant 0 : index
    %40 = vector.load %arg6[%c0_20, %c0_21, %c0_22] : memref<8x16x1xf32, #tpu.memory_space<vmem>>, vector<8x16x1xf32>
    tpu.vector_store %arg6[%c0_20, %c0_21, %c0_22], %39 {strides = array<i32>} : memref<8x16x1xf32, #tpu.memory_space<vmem>>, vector<8x16x1xf32>,
    %41 = arith.extf %0 : vector<8x16x256xbf16> to vector<8x16x256xf32>
    %42 = vector.broadcast %39 : vector<8x16x1xf32> to vector<8x16x256xf32>
    %43 = arith.mulf %42, %41 : vector<8x16x256xf32>
    %cst_23 = arith.constant dense<0.000000e+00> : vector<16x256xf32>
    %44 = vector.multi_reduction <add>, %43, %cst_23 [0] : vector<8x16x256xf32> to vector<16x256xf32>
    %c0_24 = arith.constant 0 : index
    %c0_25 = arith.constant 0 : index
    %45 = vector.load %arg7[%c0_24, %c0_25] : memref<16x256xf32, #tpu.memory_space<vmem>>, vector<16x256xf32>
    tpu.vector_store %arg7[%c0_24, %c0_25], %44 {strides = array<i32>} : memref<16x256xf32, #tpu.memory_space<vmem>>, vector<16x256xf32>,
    return
  }
  func.func @transform_0(%arg0: i32) -> (i32, i32, i32) {
    %c0_i32 = arith.constant 0 : i32
    %c0_i32_0 = arith.constant 0 : i32
    %c0_i32_1 = arith.constant 0 : i32
    return %c0_i32, %arg0, %c0_i32_0 : i32, i32, i32
  }
  func.func @transform_1(%arg0: i32) -> (i32, i32, i32) {
    %c0_i32 = arith.constant 0 : i32
    %c0_i32_0 = arith.constant 0 : i32
    %c0_i32_1 = arith.constant 0 : i32
    return %c0_i32, %arg0, %c0_i32_0 : i32, i32, i32
  }
  func.func @transform_2(%arg0: i32) -> (i32, i32) {
    %c0_i32 = arith.constant 0 : i32
    %c0_i32_0 = arith.constant 0 : i32
    %c0_i32_1 = arith.constant 0 : i32
    return %c0_i32, %c0_i32_0 : i32, i32
  }
  func.func @transform_3(%arg0: i32) -> (i32, i32) {
    %c0_i32 = arith.constant 0 : i32
    %c0_i32_0 = arith.constant 0 : i32
    %c0_i32_1 = arith.constant 0 : i32
    return %c0_i32, %c0_i32_0 : i32, i32
  }
  func.func @transform_4(%arg0: i32) -> (i32, i32) {
    %c0_i32 = arith.constant 0 : i32
    %c0_i32_0 = arith.constant 0 : i32
    %c0_i32_1 = arith.constant 0 : i32
    return %c0_i32, %c0_i32_0 : i32, i32
  }
  func.func @transform_5(%arg0: i32) -> (i32, i32, i32) {
    %c0_i32 = arith.constant 0 : i32
    %c0_i32_0 = arith.constant 0 : i32
    %c0_i32_1 = arith.constant 0 : i32
    return %c0_i32, %arg0, %c0_i32_0 : i32, i32, i32
  }
  func.func @transform_6(%arg0: i32) -> (i32, i32) {
    %c0_i32 = arith.constant 0 : i32
    %c0_i32_0 = arith.constant 0 : i32
    return %arg0, %c0_i32 : i32, i32
  }
}

module attributes {stable_mosaic.version = 11 : i64} {
  func.func @_bigru_kernel(%arg0: i32, %arg1: memref<8x16x128xbf16, #tpu.memory_space<vmem>>, %arg2: memref<128x768xbf16, #tpu.memory_space<vmem>>, %arg3: memref<1x768xf32, #tpu.memory_space<vmem>>, %arg4: memref<2x128x384xbf16, #tpu.memory_space<vmem>>, %arg5: memref<2x1x384xf32, #tpu.memory_space<vmem>>, %arg6: memref<8x16x1xf32, #tpu.memory_space<vmem>>, %arg7: memref<8x16x256xbf16, #tpu.memory_space<vmem>>, %arg8: memref<128x768xf32, #tpu.memory_space<vmem>>, %arg9: memref<16x128xf32, #tpu.memory_space<vmem>>) attributes {dimension_semantics = [#tpu.dimension_semantics<parallel>], iteration_bounds = array<i64: 1>, scalar_prefetch = 0 : i64, scratch_operands = 2 : i64, tpu.core_type = #tpu.core_type<tc>, window_params = [{transform_indices = @transform_0, window_bounds = array<i64: 8, 16, 128>}, {pipeline_mode = #tpu.pipeline_mode<synchronous>, transform_indices = @transform_1, window_bounds = array<i64: 128, 768>}, {pipeline_mode = #tpu.pipeline_mode<synchronous>, transform_indices = @transform_2, window_bounds = array<i64: 1, 768>}, {pipeline_mode = #tpu.pipeline_mode<synchronous>, transform_indices = @transform_3, window_bounds = array<i64: 2, 128, 384>}, {pipeline_mode = #tpu.pipeline_mode<synchronous>, transform_indices = @transform_4, window_bounds = array<i64: 2, 1, 384>}, {transform_indices = @transform_5, window_bounds = array<i64: 8, 16, 1>}, {transform_indices = @transform_6, window_bounds = array<i64: 8, 16, 256>}]} {
    %c0 = arith.constant 0 : index
    %c0_0 = arith.constant 0 : index
    %c0_1 = arith.constant 0 : index
    %0 = vector.load %arg1[%c0, %c0_0, %c0_1] : memref<8x16x128xbf16, #tpu.memory_space<vmem>>, vector<8x16x128xbf16>
    %1 = vector.shape_cast %0 : vector<8x16x128xbf16> to vector<128x128xbf16>
    %c0_2 = arith.constant 0 : index
    %c0_3 = arith.constant 0 : index
    %2 = vector.load %arg2[%c0_2, %c0_3] : memref<128x768xbf16, #tpu.memory_space<vmem>>, vector<128x768xbf16>
    %cst = arith.constant dense<0.000000e+00> : vector<128x768xf32>
    %3 = tpu.matmul %1, %2, %cst {dimension_numbers = #tpu.dot_dimension_numbers<[1], [0], [0], [1], [0, 0, 1, 1], [], []>} : vector<128x128xbf16>, vector<128x768xbf16>, vector<128x768xf32> -> vector<128x768xf32>
    %c0_4 = arith.constant 0 : index
    %c0_5 = arith.constant 0 : index
    %4 = vector.load %arg3[%c0_4, %c0_5] : memref<1x768xf32, #tpu.memory_space<vmem>>, vector<1x768xf32>
    %5 = vector.broadcast %4 : vector<1x768xf32> to vector<128x768xf32>
    %6 = arith.addf %3, %5 : vector<128x768xf32>
    %c0_6 = arith.constant 0 : index
    %c0_7 = arith.constant 0 : index
    %7 = vector.load %arg8[%c0_6, %c0_7] : memref<128x768xf32, #tpu.memory_space<vmem>>, vector<128x768xf32>
    tpu.vector_store %arg8[%c0_6, %c0_7], %6 {strides = array<i32>} : memref<128x768xf32, #tpu.memory_space<vmem>>, vector<128x768xf32>,
    %c0_8 = arith.constant 0 : index
    %c0_9 = arith.constant 0 : index
    %c0_10 = arith.constant 0 : index
    %8 = vector.load %arg4[%c0_8, %c0_9, %c0_10] : memref<2x128x384xbf16, #tpu.memory_space<vmem>>, vector<1x128x384xbf16>
    %9 = vector.shape_cast %8 : vector<1x128x384xbf16> to vector<128x384xbf16>
    %c0_11 = arith.constant 0 : index
    %c0_12 = arith.constant 0 : index
    %c0_13 = arith.constant 0 : index
    %10 = vector.load %arg5[%c0_11, %c0_12, %c0_13] : memref<2x1x384xf32, #tpu.memory_space<vmem>>, vector<1x1x384xf32>
    %11 = vector.shape_cast %10 : vector<1x1x384xf32> to vector<1x384xf32>
    %cst_14 = arith.constant 0.000000e+00 : f32
    %12 = vector.broadcast %cst_14 : f32 to vector<16x128xf32>
    %c0_15 = arith.constant 0 : index
    %c0_16 = arith.constant 0 : index
    %13 = vector.load %arg9[%c0_15, %c0_16] : memref<16x128xf32, #tpu.memory_space<vmem>>, vector<16x128xf32>
    tpu.vector_store %arg9[%c0_15, %c0_16], %12 {strides = array<i32>} : memref<16x128xf32, #tpu.memory_space<vmem>>, vector<16x128xf32>,
    %c0_i32 = arith.constant 0 : i32
    %c16_i32 = arith.constant 16 : i32
    %14 = arith.muli %c0_i32, %c16_i32 : i32
    %15 = tpu.assume_multiple %14, 16 : i32
    %16 = arith.index_cast %15 : i32 to index
    %c0_17 = arith.constant 0 : index
    %17 = vector.load %arg8[%16, %c0_17] : memref<128x768xf32, #tpu.memory_space<vmem>>, vector<16x384xf32>
    %c0_18 = arith.constant 0 : index
    %c0_19 = arith.constant 0 : index
    %18 = vector.load %arg9[%c0_18, %c0_19] : memref<16x128xf32, #tpu.memory_space<vmem>>, vector<16x128xf32>
    %19 = arith.truncf %18 : vector<16x128xf32> to vector<16x128xbf16>
    %cst_20 = arith.constant dense<0.000000e+00> : vector<16x384xf32>
    %20 = tpu.matmul %19, %9, %cst_20 {dimension_numbers = #tpu.dot_dimension_numbers<[1], [0], [0], [1], [0, 0, 1, 1], [], []>} : vector<16x128xbf16>, vector<128x384xbf16>, vector<16x384xf32> -> vector<16x384xf32>
    %21 = vector.broadcast %11 : vector<1x384xf32> to vector<16x384xf32>
    %22 = arith.addf %20, %21 : vector<16x384xf32>
    %23 = vector.extract_strided_slice %17 {offsets = [0, 0], sizes = [16, 128], strides = [1, 1]} : vector<16x384xf32> to vector<16x128xf32>
    %24 = vector.extract_strided_slice %22 {offsets = [0, 0], sizes = [16, 128], strides = [1, 1]} : vector<16x384xf32> to vector<16x128xf32>
    %25 = arith.addf %23, %24 : vector<16x128xf32>
    %26 = arith.negf %25 : vector<16x128xf32>
    %27 = math.exp %26 : vector<16x128xf32>
    %cst_21 = arith.constant 1.000000e+00 : f32
    %28 = vector.broadcast %cst_21 : f32 to vector<16x128xf32>
    %29 = arith.addf %28, %27 : vector<16x128xf32>
    %30 = arith.divf %28, %29 : vector<16x128xf32>
    %31 = vector.extract_strided_slice %17 {offsets = [0, 128], sizes = [16, 128], strides = [1, 1]} : vector<16x384xf32> to vector<16x128xf32>
    %32 = vector.extract_strided_slice %22 {offsets = [0, 128], sizes = [16, 128], strides = [1, 1]} : vector<16x384xf32> to vector<16x128xf32>
    %33 = arith.addf %31, %32 : vector<16x128xf32>
    %34 = arith.negf %33 : vector<16x128xf32>
    %35 = math.exp %34 : vector<16x128xf32>
    %cst_22 = arith.constant 1.000000e+00 : f32
    %36 = vector.broadcast %cst_22 : f32 to vector<16x128xf32>
    %37 = arith.addf %36, %35 : vector<16x128xf32>
    %38 = arith.divf %36, %37 : vector<16x128xf32>
    %39 = vector.extract_strided_slice %17 {offsets = [0, 256], sizes = [16, 128], strides = [1, 1]} : vector<16x384xf32> to vector<16x128xf32>
    %40 = vector.extract_strided_slice %22 {offsets = [0, 256], sizes = [16, 128], strides = [1, 1]} : vector<16x384xf32> to vector<16x128xf32>
    %41 = arith.mulf %30, %40 : vector<16x128xf32>
    %42 = arith.addf %39, %41 : vector<16x128xf32>
    %43 = math.tanh %42 : vector<16x128xf32>
    %cst_23 = arith.constant 1.000000e+00 : f32
    %44 = vector.broadcast %cst_23 : f32 to vector<16x128xf32>
    %45 = arith.subf %44, %38 : vector<16x128xf32>
    %46 = arith.mulf %45, %43 : vector<16x128xf32>
    %47 = arith.mulf %38, %18 : vector<16x128xf32>
    %48 = arith.addf %46, %47 : vector<16x128xf32>
    %49 = arith.index_cast %c0_i32 : i32 to index
    %c0_24 = arith.constant 0 : index
    %c0_25 = arith.constant 0 : index
    %50 = vector.load %arg6[%49, %c0_24, %c0_25] : memref<8x16x1xf32, #tpu.memory_space<vmem>>, vector<1x16x1xf32>
    %51 = vector.shape_cast %50 : vector<1x16x1xf32> to vector<16x1xf32>
    %cst_26 = arith.constant 0.000000e+00 : f32
    %52 = vector.broadcast %cst_26 : f32 to vector<16x1xf32>
    %53 = arith.cmpf ogt, %51, %52 : vector<16x1xf32>
    %54 = vector.shape_cast %53 : vector<16x1xi1> to vector<16x1xi1>
    %55 = vector.broadcast %54 : vector<16x1xi1> to vector<16x128xi1>
    %56 = arith.select %55, %48, %18 : vector<16x128xi1>, vector<16x128xf32>
    %c0_27 = arith.constant 0 : index
    %c0_28 = arith.constant 0 : index
    %57 = vector.load %arg9[%c0_27, %c0_28] : memref<16x128xf32, #tpu.memory_space<vmem>>, vector<16x128xf32>
    tpu.vector_store %arg9[%c0_27, %c0_28], %56 {strides = array<i32>} : memref<16x128xf32, #tpu.memory_space<vmem>>, vector<16x128xf32>,
    %cst_29 = arith.constant 0.000000e+00 : f32
    %58 = vector.shape_cast %53 : vector<16x1xi1> to vector<16x1xi1>
    %59 = vector.broadcast %58 : vector<16x1xi1> to vector<16x128xi1>
    %60 = vector.broadcast %cst_29 : f32 to vector<16x128xf32>
    %61 = arith.select %59, %48, %60 : vector<16x128xi1>, vector<16x128xf32>
    %62 = arith.truncf %61 : vector<16x128xf32> to vector<16x128xbf16>
    %63 = arith.index_cast %c0_i32 : i32 to index
    %c0_30 = arith.constant 0 : index
    %c0_31 = arith.constant 0 : index
    %64 = vector.load %arg7[%63, %c0_30, %c0_31] : memref<8x16x256xbf16, #tpu.memory_space<vmem>>, vector<1x16x128xbf16>
    %65 = vector.shape_cast %64 : vector<1x16x128xbf16> to vector<16x128xbf16>
    %66 = vector.shape_cast %62 : vector<16x128xbf16> to vector<1x16x128xbf16>
    tpu.vector_store %arg7[%63, %c0_30, %c0_31], %66 {strides = array<i32>} : memref<8x16x256xbf16, #tpu.memory_space<vmem>>, vector<1x16x128xbf16>,
    %c1_i32 = arith.constant 1 : i32
    %c16_i32_32 = arith.constant 16 : i32
    %67 = arith.muli %c1_i32, %c16_i32_32 : i32
    %68 = tpu.assume_multiple %67, 16 : i32
    %69 = arith.index_cast %68 : i32 to index
    %c0_33 = arith.constant 0 : index
    %70 = vector.load %arg8[%69, %c0_33] : memref<128x768xf32, #tpu.memory_space<vmem>>, vector<16x384xf32>
    %c0_34 = arith.constant 0 : index
    %c0_35 = arith.constant 0 : index
    %71 = vector.load %arg9[%c0_34, %c0_35] : memref<16x128xf32, #tpu.memory_space<vmem>>, vector<16x128xf32>
    %72 = arith.truncf %71 : vector<16x128xf32> to vector<16x128xbf16>
    %cst_36 = arith.constant dense<0.000000e+00> : vector<16x384xf32>
    %73 = tpu.matmul %72, %9, %cst_36 {dimension_numbers = #tpu.dot_dimension_numbers<[1], [0], [0], [1], [0, 0, 1, 1], [], []>} : vector<16x128xbf16>, vector<128x384xbf16>, vector<16x384xf32> -> vector<16x384xf32>
    %74 = vector.broadcast %11 : vector<1x384xf32> to vector<16x384xf32>
    %75 = arith.addf %73, %74 : vector<16x384xf32>
    %76 = vector.extract_strided_slice %70 {offsets = [0, 0], sizes = [16, 128], strides = [1, 1]} : vector<16x384xf32> to vector<16x128xf32>
    %77 = vector.extract_strided_slice %75 {offsets = [0, 0], sizes = [16, 128], strides = [1, 1]} : vector<16x384xf32> to vector<16x128xf32>
    %78 = arith.addf %76, %77 : vector<16x128xf32>
    %79 = arith.negf %78 : vector<16x128xf32>
    %80 = math.exp %79 : vector<16x128xf32>
    %cst_37 = arith.constant 1.000000e+00 : f32
    %81 = vector.broadcast %cst_37 : f32 to vector<16x128xf32>
    %82 = arith.addf %81, %80 : vector<16x128xf32>
    %83 = arith.divf %81, %82 : vector<16x128xf32>
    %84 = vector.extract_strided_slice %70 {offsets = [0, 128], sizes = [16, 128], strides = [1, 1]} : vector<16x384xf32> to vector<16x128xf32>
    %85 = vector.extract_strided_slice %75 {offsets = [0, 128], sizes = [16, 128], strides = [1, 1]} : vector<16x384xf32> to vector<16x128xf32>
    %86 = arith.addf %84, %85 : vector<16x128xf32>
    %87 = arith.negf %86 : vector<16x128xf32>
    %88 = math.exp %87 : vector<16x128xf32>
    %cst_38 = arith.constant 1.000000e+00 : f32
    %89 = vector.broadcast %cst_38 : f32 to vector<16x128xf32>
    %90 = arith.addf %89, %88 : vector<16x128xf32>
    %91 = arith.divf %89, %90 : vector<16x128xf32>
    %92 = vector.extract_strided_slice %70 {offsets = [0, 256], sizes = [16, 128], strides = [1, 1]} : vector<16x384xf32> to vector<16x128xf32>
    %93 = vector.extract_strided_slice %75 {offsets = [0, 256], sizes = [16, 128], strides = [1, 1]} : vector<16x384xf32> to vector<16x128xf32>
    %94 = arith.mulf %83, %93 : vector<16x128xf32>
    %95 = arith.addf %92, %94 : vector<16x128xf32>
    %96 = math.tanh %95 : vector<16x128xf32>
    %cst_39 = arith.constant 1.000000e+00 : f32
    %97 = vector.broadcast %cst_39 : f32 to vector<16x128xf32>
    %98 = arith.subf %97, %91 : vector<16x128xf32>
    %99 = arith.mulf %98, %96 : vector<16x128xf32>
    %100 = arith.mulf %91, %71 : vector<16x128xf32>
    %101 = arith.addf %99, %100 : vector<16x128xf32>
    %102 = arith.index_cast %c1_i32 : i32 to index
    %c0_40 = arith.constant 0 : index
    %c0_41 = arith.constant 0 : index
    %103 = vector.load %arg6[%102, %c0_40, %c0_41] : memref<8x16x1xf32, #tpu.memory_space<vmem>>, vector<1x16x1xf32>
    %104 = vector.shape_cast %103 : vector<1x16x1xf32> to vector<16x1xf32>
    %cst_42 = arith.constant 0.000000e+00 : f32
    %105 = vector.broadcast %cst_42 : f32 to vector<16x1xf32>
    %106 = arith.cmpf ogt, %104, %105 : vector<16x1xf32>
    %107 = vector.shape_cast %106 : vector<16x1xi1> to vector<16x1xi1>
    %108 = vector.broadcast %107 : vector<16x1xi1> to vector<16x128xi1>
    %109 = arith.select %108, %101, %71 : vector<16x128xi1>, vector<16x128xf32>
    %c0_43 = arith.constant 0 : index
    %c0_44 = arith.constant 0 : index
    %110 = vector.load %arg9[%c0_43, %c0_44] : memref<16x128xf32, #tpu.memory_space<vmem>>, vector<16x128xf32>
    tpu.vector_store %arg9[%c0_43, %c0_44], %109 {strides = array<i32>} : memref<16x128xf32, #tpu.memory_space<vmem>>, vector<16x128xf32>,
    %cst_45 = arith.constant 0.000000e+00 : f32
    %111 = vector.shape_cast %106 : vector<16x1xi1> to vector<16x1xi1>
    %112 = vector.broadcast %111 : vector<16x1xi1> to vector<16x128xi1>
    %113 = vector.broadcast %cst_45 : f32 to vector<16x128xf32>
    %114 = arith.select %112, %101, %113 : vector<16x128xi1>, vector<16x128xf32>
    %115 = arith.truncf %114 : vector<16x128xf32> to vector<16x128xbf16>
    %116 = arith.index_cast %c1_i32 : i32 to index
    %c0_46 = arith.constant 0 : index
    %c0_47 = arith.constant 0 : index
    %117 = vector.load %arg7[%116, %c0_46, %c0_47] : memref<8x16x256xbf16, #tpu.memory_space<vmem>>, vector<1x16x128xbf16>
    %118 = vector.shape_cast %117 : vector<1x16x128xbf16> to vector<16x128xbf16>
    %119 = vector.shape_cast %115 : vector<16x128xbf16> to vector<1x16x128xbf16>
    tpu.vector_store %arg7[%116, %c0_46, %c0_47], %119 {strides = array<i32>} : memref<8x16x256xbf16, #tpu.memory_space<vmem>>, vector<1x16x128xbf16>,
    %c2_i32 = arith.constant 2 : i32
    %c16_i32_48 = arith.constant 16 : i32
    %120 = arith.muli %c2_i32, %c16_i32_48 : i32
    %121 = tpu.assume_multiple %120, 16 : i32
    %122 = arith.index_cast %121 : i32 to index
    %c0_49 = arith.constant 0 : index
    %123 = vector.load %arg8[%122, %c0_49] : memref<128x768xf32, #tpu.memory_space<vmem>>, vector<16x384xf32>
    %c0_50 = arith.constant 0 : index
    %c0_51 = arith.constant 0 : index
    %124 = vector.load %arg9[%c0_50, %c0_51] : memref<16x128xf32, #tpu.memory_space<vmem>>, vector<16x128xf32>
    %125 = arith.truncf %124 : vector<16x128xf32> to vector<16x128xbf16>
    %cst_52 = arith.constant dense<0.000000e+00> : vector<16x384xf32>
    %126 = tpu.matmul %125, %9, %cst_52 {dimension_numbers = #tpu.dot_dimension_numbers<[1], [0], [0], [1], [0, 0, 1, 1], [], []>} : vector<16x128xbf16>, vector<128x384xbf16>, vector<16x384xf32> -> vector<16x384xf32>
    %127 = vector.broadcast %11 : vector<1x384xf32> to vector<16x384xf32>
    %128 = arith.addf %126, %127 : vector<16x384xf32>
    %129 = vector.extract_strided_slice %123 {offsets = [0, 0], sizes = [16, 128], strides = [1, 1]} : vector<16x384xf32> to vector<16x128xf32>
    %130 = vector.extract_strided_slice %128 {offsets = [0, 0], sizes = [16, 128], strides = [1, 1]} : vector<16x384xf32> to vector<16x128xf32>
    %131 = arith.addf %129, %130 : vector<16x128xf32>
    %132 = arith.negf %131 : vector<16x128xf32>
    %133 = math.exp %132 : vector<16x128xf32>
    %cst_53 = arith.constant 1.000000e+00 : f32
    %134 = vector.broadcast %cst_53 : f32 to vector<16x128xf32>
    %135 = arith.addf %134, %133 : vector<16x128xf32>
    %136 = arith.divf %134, %135 : vector<16x128xf32>
    %137 = vector.extract_strided_slice %123 {offsets = [0, 128], sizes = [16, 128], strides = [1, 1]} : vector<16x384xf32> to vector<16x128xf32>
    %138 = vector.extract_strided_slice %128 {offsets = [0, 128], sizes = [16, 128], strides = [1, 1]} : vector<16x384xf32> to vector<16x128xf32>
    %139 = arith.addf %137, %138 : vector<16x128xf32>
    %140 = arith.negf %139 : vector<16x128xf32>
    %141 = math.exp %140 : vector<16x128xf32>
    %cst_54 = arith.constant 1.000000e+00 : f32
    %142 = vector.broadcast %cst_54 : f32 to vector<16x128xf32>
    %143 = arith.addf %142, %141 : vector<16x128xf32>
    %144 = arith.divf %142, %143 : vector<16x128xf32>
    %145 = vector.extract_strided_slice %123 {offsets = [0, 256], sizes = [16, 128], strides = [1, 1]} : vector<16x384xf32> to vector<16x128xf32>
    %146 = vector.extract_strided_slice %128 {offsets = [0, 256], sizes = [16, 128], strides = [1, 1]} : vector<16x384xf32> to vector<16x128xf32>
    %147 = arith.mulf %136, %146 : vector<16x128xf32>
    %148 = arith.addf %145, %147 : vector<16x128xf32>
    %149 = math.tanh %148 : vector<16x128xf32>
    %cst_55 = arith.constant 1.000000e+00 : f32
    %150 = vector.broadcast %cst_55 : f32 to vector<16x128xf32>
    %151 = arith.subf %150, %144 : vector<16x128xf32>
    %152 = arith.mulf %151, %149 : vector<16x128xf32>
    %153 = arith.mulf %144, %124 : vector<16x128xf32>
    %154 = arith.addf %152, %153 : vector<16x128xf32>
    %155 = arith.index_cast %c2_i32 : i32 to index
    %c0_56 = arith.constant 0 : index
    %c0_57 = arith.constant 0 : index
    %156 = vector.load %arg6[%155, %c0_56, %c0_57] : memref<8x16x1xf32, #tpu.memory_space<vmem>>, vector<1x16x1xf32>
    %157 = vector.shape_cast %156 : vector<1x16x1xf32> to vector<16x1xf32>
    %cst_58 = arith.constant 0.000000e+00 : f32
    %158 = vector.broadcast %cst_58 : f32 to vector<16x1xf32>
    %159 = arith.cmpf ogt, %157, %158 : vector<16x1xf32>
    %160 = vector.shape_cast %159 : vector<16x1xi1> to vector<16x1xi1>
    %161 = vector.broadcast %160 : vector<16x1xi1> to vector<16x128xi1>
    %162 = arith.select %161, %154, %124 : vector<16x128xi1>, vector<16x128xf32>
    %c0_59 = arith.constant 0 : index
    %c0_60 = arith.constant 0 : index
    %163 = vector.load %arg9[%c0_59, %c0_60] : memref<16x128xf32, #tpu.memory_space<vmem>>, vector<16x128xf32>
    tpu.vector_store %arg9[%c0_59, %c0_60], %162 {strides = array<i32>} : memref<16x128xf32, #tpu.memory_space<vmem>>, vector<16x128xf32>,
    %cst_61 = arith.constant 0.000000e+00 : f32
    %164 = vector.shape_cast %159 : vector<16x1xi1> to vector<16x1xi1>
    %165 = vector.broadcast %164 : vector<16x1xi1> to vector<16x128xi1>
    %166 = vector.broadcast %cst_61 : f32 to vector<16x128xf32>
    %167 = arith.select %165, %154, %166 : vector<16x128xi1>, vector<16x128xf32>
    %168 = arith.truncf %167 : vector<16x128xf32> to vector<16x128xbf16>
    %169 = arith.index_cast %c2_i32 : i32 to index
    %c0_62 = arith.constant 0 : index
    %c0_63 = arith.constant 0 : index
    %170 = vector.load %arg7[%169, %c0_62, %c0_63] : memref<8x16x256xbf16, #tpu.memory_space<vmem>>, vector<1x16x128xbf16>
    %171 = vector.shape_cast %170 : vector<1x16x128xbf16> to vector<16x128xbf16>
    %172 = vector.shape_cast %168 : vector<16x128xbf16> to vector<1x16x128xbf16>
    tpu.vector_store %arg7[%169, %c0_62, %c0_63], %172 {strides = array<i32>} : memref<8x16x256xbf16, #tpu.memory_space<vmem>>, vector<1x16x128xbf16>,
    %c3_i32 = arith.constant 3 : i32
    %c16_i32_64 = arith.constant 16 : i32
    %173 = arith.muli %c3_i32, %c16_i32_64 : i32
    %174 = tpu.assume_multiple %173, 16 : i32
    %175 = arith.index_cast %174 : i32 to index
    %c0_65 = arith.constant 0 : index
    %176 = vector.load %arg8[%175, %c0_65] : memref<128x768xf32, #tpu.memory_space<vmem>>, vector<16x384xf32>
    %c0_66 = arith.constant 0 : index
    %c0_67 = arith.constant 0 : index
    %177 = vector.load %arg9[%c0_66, %c0_67] : memref<16x128xf32, #tpu.memory_space<vmem>>, vector<16x128xf32>
    %178 = arith.truncf %177 : vector<16x128xf32> to vector<16x128xbf16>
    %cst_68 = arith.constant dense<0.000000e+00> : vector<16x384xf32>
    %179 = tpu.matmul %178, %9, %cst_68 {dimension_numbers = #tpu.dot_dimension_numbers<[1], [0], [0], [1], [0, 0, 1, 1], [], []>} : vector<16x128xbf16>, vector<128x384xbf16>, vector<16x384xf32> -> vector<16x384xf32>
    %180 = vector.broadcast %11 : vector<1x384xf32> to vector<16x384xf32>
    %181 = arith.addf %179, %180 : vector<16x384xf32>
    %182 = vector.extract_strided_slice %176 {offsets = [0, 0], sizes = [16, 128], strides = [1, 1]} : vector<16x384xf32> to vector<16x128xf32>
    %183 = vector.extract_strided_slice %181 {offsets = [0, 0], sizes = [16, 128], strides = [1, 1]} : vector<16x384xf32> to vector<16x128xf32>
    %184 = arith.addf %182, %183 : vector<16x128xf32>
    %185 = arith.negf %184 : vector<16x128xf32>
    %186 = math.exp %185 : vector<16x128xf32>
    %cst_69 = arith.constant 1.000000e+00 : f32
    %187 = vector.broadcast %cst_69 : f32 to vector<16x128xf32>
    %188 = arith.addf %187, %186 : vector<16x128xf32>
    %189 = arith.divf %187, %188 : vector<16x128xf32>
    %190 = vector.extract_strided_slice %176 {offsets = [0, 128], sizes = [16, 128], strides = [1, 1]} : vector<16x384xf32> to vector<16x128xf32>
    %191 = vector.extract_strided_slice %181 {offsets = [0, 128], sizes = [16, 128], strides = [1, 1]} : vector<16x384xf32> to vector<16x128xf32>
    %192 = arith.addf %190, %191 : vector<16x128xf32>
    %193 = arith.negf %192 : vector<16x128xf32>
    %194 = math.exp %193 : vector<16x128xf32>
    %cst_70 = arith.constant 1.000000e+00 : f32
    %195 = vector.broadcast %cst_70 : f32 to vector<16x128xf32>
    %196 = arith.addf %195, %194 : vector<16x128xf32>
    %197 = arith.divf %195, %196 : vector<16x128xf32>
    %198 = vector.extract_strided_slice %176 {offsets = [0, 256], sizes = [16, 128], strides = [1, 1]} : vector<16x384xf32> to vector<16x128xf32>
    %199 = vector.extract_strided_slice %181 {offsets = [0, 256], sizes = [16, 128], strides = [1, 1]} : vector<16x384xf32> to vector<16x128xf32>
    %200 = arith.mulf %189, %199 : vector<16x128xf32>
    %201 = arith.addf %198, %200 : vector<16x128xf32>
    %202 = math.tanh %201 : vector<16x128xf32>
    %cst_71 = arith.constant 1.000000e+00 : f32
    %203 = vector.broadcast %cst_71 : f32 to vector<16x128xf32>
    %204 = arith.subf %203, %197 : vector<16x128xf32>
    %205 = arith.mulf %204, %202 : vector<16x128xf32>
    %206 = arith.mulf %197, %177 : vector<16x128xf32>
    %207 = arith.addf %205, %206 : vector<16x128xf32>
    %208 = arith.index_cast %c3_i32 : i32 to index
    %c0_72 = arith.constant 0 : index
    %c0_73 = arith.constant 0 : index
    %209 = vector.load %arg6[%208, %c0_72, %c0_73] : memref<8x16x1xf32, #tpu.memory_space<vmem>>, vector<1x16x1xf32>
    %210 = vector.shape_cast %209 : vector<1x16x1xf32> to vector<16x1xf32>
    %cst_74 = arith.constant 0.000000e+00 : f32
    %211 = vector.broadcast %cst_74 : f32 to vector<16x1xf32>
    %212 = arith.cmpf ogt, %210, %211 : vector<16x1xf32>
    %213 = vector.shape_cast %212 : vector<16x1xi1> to vector<16x1xi1>
    %214 = vector.broadcast %213 : vector<16x1xi1> to vector<16x128xi1>
    %215 = arith.select %214, %207, %177 : vector<16x128xi1>, vector<16x128xf32>
    %c0_75 = arith.constant 0 : index
    %c0_76 = arith.constant 0 : index
    %216 = vector.load %arg9[%c0_75, %c0_76] : memref<16x128xf32, #tpu.memory_space<vmem>>, vector<16x128xf32>
    tpu.vector_store %arg9[%c0_75, %c0_76], %215 {strides = array<i32>} : memref<16x128xf32, #tpu.memory_space<vmem>>, vector<16x128xf32>,
    %cst_77 = arith.constant 0.000000e+00 : f32
    %217 = vector.shape_cast %212 : vector<16x1xi1> to vector<16x1xi1>
    %218 = vector.broadcast %217 : vector<16x1xi1> to vector<16x128xi1>
    %219 = vector.broadcast %cst_77 : f32 to vector<16x128xf32>
    %220 = arith.select %218, %207, %219 : vector<16x128xi1>, vector<16x128xf32>
    %221 = arith.truncf %220 : vector<16x128xf32> to vector<16x128xbf16>
    %222 = arith.index_cast %c3_i32 : i32 to index
    %c0_78 = arith.constant 0 : index
    %c0_79 = arith.constant 0 : index
    %223 = vector.load %arg7[%222, %c0_78, %c0_79] : memref<8x16x256xbf16, #tpu.memory_space<vmem>>, vector<1x16x128xbf16>
    %224 = vector.shape_cast %223 : vector<1x16x128xbf16> to vector<16x128xbf16>
    %225 = vector.shape_cast %221 : vector<16x128xbf16> to vector<1x16x128xbf16>
    tpu.vector_store %arg7[%222, %c0_78, %c0_79], %225 {strides = array<i32>} : memref<8x16x256xbf16, #tpu.memory_space<vmem>>, vector<1x16x128xbf16>,
    %c4_i32 = arith.constant 4 : i32
    %c16_i32_80 = arith.constant 16 : i32
    %226 = arith.muli %c4_i32, %c16_i32_80 : i32
    %227 = tpu.assume_multiple %226, 16 : i32
    %228 = arith.index_cast %227 : i32 to index
    %c0_81 = arith.constant 0 : index
    %229 = vector.load %arg8[%228, %c0_81] : memref<128x768xf32, #tpu.memory_space<vmem>>, vector<16x384xf32>
    %c0_82 = arith.constant 0 : index
    %c0_83 = arith.constant 0 : index
    %230 = vector.load %arg9[%c0_82, %c0_83] : memref<16x128xf32, #tpu.memory_space<vmem>>, vector<16x128xf32>
    %231 = arith.truncf %230 : vector<16x128xf32> to vector<16x128xbf16>
    %cst_84 = arith.constant dense<0.000000e+00> : vector<16x384xf32>
    %232 = tpu.matmul %231, %9, %cst_84 {dimension_numbers = #tpu.dot_dimension_numbers<[1], [0], [0], [1], [0, 0, 1, 1], [], []>} : vector<16x128xbf16>, vector<128x384xbf16>, vector<16x384xf32> -> vector<16x384xf32>
    %233 = vector.broadcast %11 : vector<1x384xf32> to vector<16x384xf32>
    %234 = arith.addf %232, %233 : vector<16x384xf32>
    %235 = vector.extract_strided_slice %229 {offsets = [0, 0], sizes = [16, 128], strides = [1, 1]} : vector<16x384xf32> to vector<16x128xf32>
    %236 = vector.extract_strided_slice %234 {offsets = [0, 0], sizes = [16, 128], strides = [1, 1]} : vector<16x384xf32> to vector<16x128xf32>
    %237 = arith.addf %235, %236 : vector<16x128xf32>
    %238 = arith.negf %237 : vector<16x128xf32>
    %239 = math.exp %238 : vector<16x128xf32>
    %cst_85 = arith.constant 1.000000e+00 : f32
    %240 = vector.broadcast %cst_85 : f32 to vector<16x128xf32>
    %241 = arith.addf %240, %239 : vector<16x128xf32>
    %242 = arith.divf %240, %241 : vector<16x128xf32>
    %243 = vector.extract_strided_slice %229 {offsets = [0, 128], sizes = [16, 128], strides = [1, 1]} : vector<16x384xf32> to vector<16x128xf32>
    %244 = vector.extract_strided_slice %234 {offsets = [0, 128], sizes = [16, 128], strides = [1, 1]} : vector<16x384xf32> to vector<16x128xf32>
    %245 = arith.addf %243, %244 : vector<16x128xf32>
    %246 = arith.negf %245 : vector<16x128xf32>
    %247 = math.exp %246 : vector<16x128xf32>
    %cst_86 = arith.constant 1.000000e+00 : f32
    %248 = vector.broadcast %cst_86 : f32 to vector<16x128xf32>
    %249 = arith.addf %248, %247 : vector<16x128xf32>
    %250 = arith.divf %248, %249 : vector<16x128xf32>
    %251 = vector.extract_strided_slice %229 {offsets = [0, 256], sizes = [16, 128], strides = [1, 1]} : vector<16x384xf32> to vector<16x128xf32>
    %252 = vector.extract_strided_slice %234 {offsets = [0, 256], sizes = [16, 128], strides = [1, 1]} : vector<16x384xf32> to vector<16x128xf32>
    %253 = arith.mulf %242, %252 : vector<16x128xf32>
    %254 = arith.addf %251, %253 : vector<16x128xf32>
    %255 = math.tanh %254 : vector<16x128xf32>
    %cst_87 = arith.constant 1.000000e+00 : f32
    %256 = vector.broadcast %cst_87 : f32 to vector<16x128xf32>
    %257 = arith.subf %256, %250 : vector<16x128xf32>
    %258 = arith.mulf %257, %255 : vector<16x128xf32>
    %259 = arith.mulf %250, %230 : vector<16x128xf32>
    %260 = arith.addf %258, %259 : vector<16x128xf32>
    %261 = arith.index_cast %c4_i32 : i32 to index
    %c0_88 = arith.constant 0 : index
    %c0_89 = arith.constant 0 : index
    %262 = vector.load %arg6[%261, %c0_88, %c0_89] : memref<8x16x1xf32, #tpu.memory_space<vmem>>, vector<1x16x1xf32>
    %263 = vector.shape_cast %262 : vector<1x16x1xf32> to vector<16x1xf32>
    %cst_90 = arith.constant 0.000000e+00 : f32
    %264 = vector.broadcast %cst_90 : f32 to vector<16x1xf32>
    %265 = arith.cmpf ogt, %263, %264 : vector<16x1xf32>
    %266 = vector.shape_cast %265 : vector<16x1xi1> to vector<16x1xi1>
    %267 = vector.broadcast %266 : vector<16x1xi1> to vector<16x128xi1>
    %268 = arith.select %267, %260, %230 : vector<16x128xi1>, vector<16x128xf32>
    %c0_91 = arith.constant 0 : index
    %c0_92 = arith.constant 0 : index
    %269 = vector.load %arg9[%c0_91, %c0_92] : memref<16x128xf32, #tpu.memory_space<vmem>>, vector<16x128xf32>
    tpu.vector_store %arg9[%c0_91, %c0_92], %268 {strides = array<i32>} : memref<16x128xf32, #tpu.memory_space<vmem>>, vector<16x128xf32>,
    %cst_93 = arith.constant 0.000000e+00 : f32
    %270 = vector.shape_cast %265 : vector<16x1xi1> to vector<16x1xi1>
    %271 = vector.broadcast %270 : vector<16x1xi1> to vector<16x128xi1>
    %272 = vector.broadcast %cst_93 : f32 to vector<16x128xf32>
    %273 = arith.select %271, %260, %272 : vector<16x128xi1>, vector<16x128xf32>
    %274 = arith.truncf %273 : vector<16x128xf32> to vector<16x128xbf16>
    %275 = arith.index_cast %c4_i32 : i32 to index
    %c0_94 = arith.constant 0 : index
    %c0_95 = arith.constant 0 : index
    %276 = vector.load %arg7[%275, %c0_94, %c0_95] : memref<8x16x256xbf16, #tpu.memory_space<vmem>>, vector<1x16x128xbf16>
    %277 = vector.shape_cast %276 : vector<1x16x128xbf16> to vector<16x128xbf16>
    %278 = vector.shape_cast %274 : vector<16x128xbf16> to vector<1x16x128xbf16>
    tpu.vector_store %arg7[%275, %c0_94, %c0_95], %278 {strides = array<i32>} : memref<8x16x256xbf16, #tpu.memory_space<vmem>>, vector<1x16x128xbf16>,
    %c5_i32 = arith.constant 5 : i32
    %c16_i32_96 = arith.constant 16 : i32
    %279 = arith.muli %c5_i32, %c16_i32_96 : i32
    %280 = tpu.assume_multiple %279, 16 : i32
    %281 = arith.index_cast %280 : i32 to index
    %c0_97 = arith.constant 0 : index
    %282 = vector.load %arg8[%281, %c0_97] : memref<128x768xf32, #tpu.memory_space<vmem>>, vector<16x384xf32>
    %c0_98 = arith.constant 0 : index
    %c0_99 = arith.constant 0 : index
    %283 = vector.load %arg9[%c0_98, %c0_99] : memref<16x128xf32, #tpu.memory_space<vmem>>, vector<16x128xf32>
    %284 = arith.truncf %283 : vector<16x128xf32> to vector<16x128xbf16>
    %cst_100 = arith.constant dense<0.000000e+00> : vector<16x384xf32>
    %285 = tpu.matmul %284, %9, %cst_100 {dimension_numbers = #tpu.dot_dimension_numbers<[1], [0], [0], [1], [0, 0, 1, 1], [], []>} : vector<16x128xbf16>, vector<128x384xbf16>, vector<16x384xf32> -> vector<16x384xf32>
    %286 = vector.broadcast %11 : vector<1x384xf32> to vector<16x384xf32>
    %287 = arith.addf %285, %286 : vector<16x384xf32>
    %288 = vector.extract_strided_slice %282 {offsets = [0, 0], sizes = [16, 128], strides = [1, 1]} : vector<16x384xf32> to vector<16x128xf32>
    %289 = vector.extract_strided_slice %287 {offsets = [0, 0], sizes = [16, 128], strides = [1, 1]} : vector<16x384xf32> to vector<16x128xf32>
    %290 = arith.addf %288, %289 : vector<16x128xf32>
    %291 = arith.negf %290 : vector<16x128xf32>
    %292 = math.exp %291 : vector<16x128xf32>
    %cst_101 = arith.constant 1.000000e+00 : f32
    %293 = vector.broadcast %cst_101 : f32 to vector<16x128xf32>
    %294 = arith.addf %293, %292 : vector<16x128xf32>
    %295 = arith.divf %293, %294 : vector<16x128xf32>
    %296 = vector.extract_strided_slice %282 {offsets = [0, 128], sizes = [16, 128], strides = [1, 1]} : vector<16x384xf32> to vector<16x128xf32>
    %297 = vector.extract_strided_slice %287 {offsets = [0, 128], sizes = [16, 128], strides = [1, 1]} : vector<16x384xf32> to vector<16x128xf32>
    %298 = arith.addf %296, %297 : vector<16x128xf32>
    %299 = arith.negf %298 : vector<16x128xf32>
    %300 = math.exp %299 : vector<16x128xf32>
    %cst_102 = arith.constant 1.000000e+00 : f32
    %301 = vector.broadcast %cst_102 : f32 to vector<16x128xf32>
    %302 = arith.addf %301, %300 : vector<16x128xf32>
    %303 = arith.divf %301, %302 : vector<16x128xf32>
    %304 = vector.extract_strided_slice %282 {offsets = [0, 256], sizes = [16, 128], strides = [1, 1]} : vector<16x384xf32> to vector<16x128xf32>
    %305 = vector.extract_strided_slice %287 {offsets = [0, 256], sizes = [16, 128], strides = [1, 1]} : vector<16x384xf32> to vector<16x128xf32>
    %306 = arith.mulf %295, %305 : vector<16x128xf32>
    %307 = arith.addf %304, %306 : vector<16x128xf32>
    %308 = math.tanh %307 : vector<16x128xf32>
    %cst_103 = arith.constant 1.000000e+00 : f32
    %309 = vector.broadcast %cst_103 : f32 to vector<16x128xf32>
    %310 = arith.subf %309, %303 : vector<16x128xf32>
    %311 = arith.mulf %310, %308 : vector<16x128xf32>
    %312 = arith.mulf %303, %283 : vector<16x128xf32>
    %313 = arith.addf %311, %312 : vector<16x128xf32>
    %314 = arith.index_cast %c5_i32 : i32 to index
    %c0_104 = arith.constant 0 : index
    %c0_105 = arith.constant 0 : index
    %315 = vector.load %arg6[%314, %c0_104, %c0_105] : memref<8x16x1xf32, #tpu.memory_space<vmem>>, vector<1x16x1xf32>
    %316 = vector.shape_cast %315 : vector<1x16x1xf32> to vector<16x1xf32>
    %cst_106 = arith.constant 0.000000e+00 : f32
    %317 = vector.broadcast %cst_106 : f32 to vector<16x1xf32>
    %318 = arith.cmpf ogt, %316, %317 : vector<16x1xf32>
    %319 = vector.shape_cast %318 : vector<16x1xi1> to vector<16x1xi1>
    %320 = vector.broadcast %319 : vector<16x1xi1> to vector<16x128xi1>
    %321 = arith.select %320, %313, %283 : vector<16x128xi1>, vector<16x128xf32>
    %c0_107 = arith.constant 0 : index
    %c0_108 = arith.constant 0 : index
    %322 = vector.load %arg9[%c0_107, %c0_108] : memref<16x128xf32, #tpu.memory_space<vmem>>, vector<16x128xf32>
    tpu.vector_store %arg9[%c0_107, %c0_108], %321 {strides = array<i32>} : memref<16x128xf32, #tpu.memory_space<vmem>>, vector<16x128xf32>,
    %cst_109 = arith.constant 0.000000e+00 : f32
    %323 = vector.shape_cast %318 : vector<16x1xi1> to vector<16x1xi1>
    %324 = vector.broadcast %323 : vector<16x1xi1> to vector<16x128xi1>
    %325 = vector.broadcast %cst_109 : f32 to vector<16x128xf32>
    %326 = arith.select %324, %313, %325 : vector<16x128xi1>, vector<16x128xf32>
    %327 = arith.truncf %326 : vector<16x128xf32> to vector<16x128xbf16>
    %328 = arith.index_cast %c5_i32 : i32 to index
    %c0_110 = arith.constant 0 : index
    %c0_111 = arith.constant 0 : index
    %329 = vector.load %arg7[%328, %c0_110, %c0_111] : memref<8x16x256xbf16, #tpu.memory_space<vmem>>, vector<1x16x128xbf16>
    %330 = vector.shape_cast %329 : vector<1x16x128xbf16> to vector<16x128xbf16>
    %331 = vector.shape_cast %327 : vector<16x128xbf16> to vector<1x16x128xbf16>
    tpu.vector_store %arg7[%328, %c0_110, %c0_111], %331 {strides = array<i32>} : memref<8x16x256xbf16, #tpu.memory_space<vmem>>, vector<1x16x128xbf16>,
    %c6_i32 = arith.constant 6 : i32
    %c16_i32_112 = arith.constant 16 : i32
    %332 = arith.muli %c6_i32, %c16_i32_112 : i32
    %333 = tpu.assume_multiple %332, 16 : i32
    %334 = arith.index_cast %333 : i32 to index
    %c0_113 = arith.constant 0 : index
    %335 = vector.load %arg8[%334, %c0_113] : memref<128x768xf32, #tpu.memory_space<vmem>>, vector<16x384xf32>
    %c0_114 = arith.constant 0 : index
    %c0_115 = arith.constant 0 : index
    %336 = vector.load %arg9[%c0_114, %c0_115] : memref<16x128xf32, #tpu.memory_space<vmem>>, vector<16x128xf32>
    %337 = arith.truncf %336 : vector<16x128xf32> to vector<16x128xbf16>
    %cst_116 = arith.constant dense<0.000000e+00> : vector<16x384xf32>
    %338 = tpu.matmul %337, %9, %cst_116 {dimension_numbers = #tpu.dot_dimension_numbers<[1], [0], [0], [1], [0, 0, 1, 1], [], []>} : vector<16x128xbf16>, vector<128x384xbf16>, vector<16x384xf32> -> vector<16x384xf32>
    %339 = vector.broadcast %11 : vector<1x384xf32> to vector<16x384xf32>
    %340 = arith.addf %338, %339 : vector<16x384xf32>
    %341 = vector.extract_strided_slice %335 {offsets = [0, 0], sizes = [16, 128], strides = [1, 1]} : vector<16x384xf32> to vector<16x128xf32>
    %342 = vector.extract_strided_slice %340 {offsets = [0, 0], sizes = [16, 128], strides = [1, 1]} : vector<16x384xf32> to vector<16x128xf32>
    %343 = arith.addf %341, %342 : vector<16x128xf32>
    %344 = arith.negf %343 : vector<16x128xf32>
    %345 = math.exp %344 : vector<16x128xf32>
    %cst_117 = arith.constant 1.000000e+00 : f32
    %346 = vector.broadcast %cst_117 : f32 to vector<16x128xf32>
    %347 = arith.addf %346, %345 : vector<16x128xf32>
    %348 = arith.divf %346, %347 : vector<16x128xf32>
    %349 = vector.extract_strided_slice %335 {offsets = [0, 128], sizes = [16, 128], strides = [1, 1]} : vector<16x384xf32> to vector<16x128xf32>
    %350 = vector.extract_strided_slice %340 {offsets = [0, 128], sizes = [16, 128], strides = [1, 1]} : vector<16x384xf32> to vector<16x128xf32>
    %351 = arith.addf %349, %350 : vector<16x128xf32>
    %352 = arith.negf %351 : vector<16x128xf32>
    %353 = math.exp %352 : vector<16x128xf32>
    %cst_118 = arith.constant 1.000000e+00 : f32
    %354 = vector.broadcast %cst_118 : f32 to vector<16x128xf32>
    %355 = arith.addf %354, %353 : vector<16x128xf32>
    %356 = arith.divf %354, %355 : vector<16x128xf32>
    %357 = vector.extract_strided_slice %335 {offsets = [0, 256], sizes = [16, 128], strides = [1, 1]} : vector<16x384xf32> to vector<16x128xf32>
    %358 = vector.extract_strided_slice %340 {offsets = [0, 256], sizes = [16, 128], strides = [1, 1]} : vector<16x384xf32> to vector<16x128xf32>
    %359 = arith.mulf %348, %358 : vector<16x128xf32>
    %360 = arith.addf %357, %359 : vector<16x128xf32>
    %361 = math.tanh %360 : vector<16x128xf32>
    %cst_119 = arith.constant 1.000000e+00 : f32
    %362 = vector.broadcast %cst_119 : f32 to vector<16x128xf32>
    %363 = arith.subf %362, %356 : vector<16x128xf32>
    %364 = arith.mulf %363, %361 : vector<16x128xf32>
    %365 = arith.mulf %356, %336 : vector<16x128xf32>
    %366 = arith.addf %364, %365 : vector<16x128xf32>
    %367 = arith.index_cast %c6_i32 : i32 to index
    %c0_120 = arith.constant 0 : index
    %c0_121 = arith.constant 0 : index
    %368 = vector.load %arg6[%367, %c0_120, %c0_121] : memref<8x16x1xf32, #tpu.memory_space<vmem>>, vector<1x16x1xf32>
    %369 = vector.shape_cast %368 : vector<1x16x1xf32> to vector<16x1xf32>
    %cst_122 = arith.constant 0.000000e+00 : f32
    %370 = vector.broadcast %cst_122 : f32 to vector<16x1xf32>
    %371 = arith.cmpf ogt, %369, %370 : vector<16x1xf32>
    %372 = vector.shape_cast %371 : vector<16x1xi1> to vector<16x1xi1>
    %373 = vector.broadcast %372 : vector<16x1xi1> to vector<16x128xi1>
    %374 = arith.select %373, %366, %336 : vector<16x128xi1>, vector<16x128xf32>
    %c0_123 = arith.constant 0 : index
    %c0_124 = arith.constant 0 : index
    %375 = vector.load %arg9[%c0_123, %c0_124] : memref<16x128xf32, #tpu.memory_space<vmem>>, vector<16x128xf32>
    tpu.vector_store %arg9[%c0_123, %c0_124], %374 {strides = array<i32>} : memref<16x128xf32, #tpu.memory_space<vmem>>, vector<16x128xf32>,
    %cst_125 = arith.constant 0.000000e+00 : f32
    %376 = vector.shape_cast %371 : vector<16x1xi1> to vector<16x1xi1>
    %377 = vector.broadcast %376 : vector<16x1xi1> to vector<16x128xi1>
    %378 = vector.broadcast %cst_125 : f32 to vector<16x128xf32>
    %379 = arith.select %377, %366, %378 : vector<16x128xi1>, vector<16x128xf32>
    %380 = arith.truncf %379 : vector<16x128xf32> to vector<16x128xbf16>
    %381 = arith.index_cast %c6_i32 : i32 to index
    %c0_126 = arith.constant 0 : index
    %c0_127 = arith.constant 0 : index
    %382 = vector.load %arg7[%381, %c0_126, %c0_127] : memref<8x16x256xbf16, #tpu.memory_space<vmem>>, vector<1x16x128xbf16>
    %383 = vector.shape_cast %382 : vector<1x16x128xbf16> to vector<16x128xbf16>
    %384 = vector.shape_cast %380 : vector<16x128xbf16> to vector<1x16x128xbf16>
    tpu.vector_store %arg7[%381, %c0_126, %c0_127], %384 {strides = array<i32>} : memref<8x16x256xbf16, #tpu.memory_space<vmem>>, vector<1x16x128xbf16>,
    %c7_i32 = arith.constant 7 : i32
    %c16_i32_128 = arith.constant 16 : i32
    %385 = arith.muli %c7_i32, %c16_i32_128 : i32
    %386 = tpu.assume_multiple %385, 16 : i32
    %387 = arith.index_cast %386 : i32 to index
    %c0_129 = arith.constant 0 : index
    %388 = vector.load %arg8[%387, %c0_129] : memref<128x768xf32, #tpu.memory_space<vmem>>, vector<16x384xf32>
    %c0_130 = arith.constant 0 : index
    %c0_131 = arith.constant 0 : index
    %389 = vector.load %arg9[%c0_130, %c0_131] : memref<16x128xf32, #tpu.memory_space<vmem>>, vector<16x128xf32>
    %390 = arith.truncf %389 : vector<16x128xf32> to vector<16x128xbf16>
    %cst_132 = arith.constant dense<0.000000e+00> : vector<16x384xf32>
    %391 = tpu.matmul %390, %9, %cst_132 {dimension_numbers = #tpu.dot_dimension_numbers<[1], [0], [0], [1], [0, 0, 1, 1], [], []>} : vector<16x128xbf16>, vector<128x384xbf16>, vector<16x384xf32> -> vector<16x384xf32>
    %392 = vector.broadcast %11 : vector<1x384xf32> to vector<16x384xf32>
    %393 = arith.addf %391, %392 : vector<16x384xf32>
    %394 = vector.extract_strided_slice %388 {offsets = [0, 0], sizes = [16, 128], strides = [1, 1]} : vector<16x384xf32> to vector<16x128xf32>
    %395 = vector.extract_strided_slice %393 {offsets = [0, 0], sizes = [16, 128], strides = [1, 1]} : vector<16x384xf32> to vector<16x128xf32>
    %396 = arith.addf %394, %395 : vector<16x128xf32>
    %397 = arith.negf %396 : vector<16x128xf32>
    %398 = math.exp %397 : vector<16x128xf32>
    %cst_133 = arith.constant 1.000000e+00 : f32
    %399 = vector.broadcast %cst_133 : f32 to vector<16x128xf32>
    %400 = arith.addf %399, %398 : vector<16x128xf32>
    %401 = arith.divf %399, %400 : vector<16x128xf32>
    %402 = vector.extract_strided_slice %388 {offsets = [0, 128], sizes = [16, 128], strides = [1, 1]} : vector<16x384xf32> to vector<16x128xf32>
    %403 = vector.extract_strided_slice %393 {offsets = [0, 128], sizes = [16, 128], strides = [1, 1]} : vector<16x384xf32> to vector<16x128xf32>
    %404 = arith.addf %402, %403 : vector<16x128xf32>
    %405 = arith.negf %404 : vector<16x128xf32>
    %406 = math.exp %405 : vector<16x128xf32>
    %cst_134 = arith.constant 1.000000e+00 : f32
    %407 = vector.broadcast %cst_134 : f32 to vector<16x128xf32>
    %408 = arith.addf %407, %406 : vector<16x128xf32>
    %409 = arith.divf %407, %408 : vector<16x128xf32>
    %410 = vector.extract_strided_slice %388 {offsets = [0, 256], sizes = [16, 128], strides = [1, 1]} : vector<16x384xf32> to vector<16x128xf32>
    %411 = vector.extract_strided_slice %393 {offsets = [0, 256], sizes = [16, 128], strides = [1, 1]} : vector<16x384xf32> to vector<16x128xf32>
    %412 = arith.mulf %401, %411 : vector<16x128xf32>
    %413 = arith.addf %410, %412 : vector<16x128xf32>
    %414 = math.tanh %413 : vector<16x128xf32>
    %cst_135 = arith.constant 1.000000e+00 : f32
    %415 = vector.broadcast %cst_135 : f32 to vector<16x128xf32>
    %416 = arith.subf %415, %409 : vector<16x128xf32>
    %417 = arith.mulf %416, %414 : vector<16x128xf32>
    %418 = arith.mulf %409, %389 : vector<16x128xf32>
    %419 = arith.addf %417, %418 : vector<16x128xf32>
    %420 = arith.index_cast %c7_i32 : i32 to index
    %c0_136 = arith.constant 0 : index
    %c0_137 = arith.constant 0 : index
    %421 = vector.load %arg6[%420, %c0_136, %c0_137] : memref<8x16x1xf32, #tpu.memory_space<vmem>>, vector<1x16x1xf32>
    %422 = vector.shape_cast %421 : vector<1x16x1xf32> to vector<16x1xf32>
    %cst_138 = arith.constant 0.000000e+00 : f32
    %423 = vector.broadcast %cst_138 : f32 to vector<16x1xf32>
    %424 = arith.cmpf ogt, %422, %423 : vector<16x1xf32>
    %425 = vector.shape_cast %424 : vector<16x1xi1> to vector<16x1xi1>
    %426 = vector.broadcast %425 : vector<16x1xi1> to vector<16x128xi1>
    %427 = arith.select %426, %419, %389 : vector<16x128xi1>, vector<16x128xf32>
    %c0_139 = arith.constant 0 : index
    %c0_140 = arith.constant 0 : index
    %428 = vector.load %arg9[%c0_139, %c0_140] : memref<16x128xf32, #tpu.memory_space<vmem>>, vector<16x128xf32>
    tpu.vector_store %arg9[%c0_139, %c0_140], %427 {strides = array<i32>} : memref<16x128xf32, #tpu.memory_space<vmem>>, vector<16x128xf32>,
    %cst_141 = arith.constant 0.000000e+00 : f32
    %429 = vector.shape_cast %424 : vector<16x1xi1> to vector<16x1xi1>
    %430 = vector.broadcast %429 : vector<16x1xi1> to vector<16x128xi1>
    %431 = vector.broadcast %cst_141 : f32 to vector<16x128xf32>
    %432 = arith.select %430, %419, %431 : vector<16x128xi1>, vector<16x128xf32>
    %433 = arith.truncf %432 : vector<16x128xf32> to vector<16x128xbf16>
    %434 = arith.index_cast %c7_i32 : i32 to index
    %c0_142 = arith.constant 0 : index
    %c0_143 = arith.constant 0 : index
    %435 = vector.load %arg7[%434, %c0_142, %c0_143] : memref<8x16x256xbf16, #tpu.memory_space<vmem>>, vector<1x16x128xbf16>
    %436 = vector.shape_cast %435 : vector<1x16x128xbf16> to vector<16x128xbf16>
    %437 = vector.shape_cast %433 : vector<16x128xbf16> to vector<1x16x128xbf16>
    tpu.vector_store %arg7[%434, %c0_142, %c0_143], %437 {strides = array<i32>} : memref<8x16x256xbf16, #tpu.memory_space<vmem>>, vector<1x16x128xbf16>,
    %c8_i32 = arith.constant 8 : i32
    %c1 = arith.constant 1 : index
    %c0_144 = arith.constant 0 : index
    %c0_145 = arith.constant 0 : index
    %438 = vector.load %arg4[%c1, %c0_144, %c0_145] : memref<2x128x384xbf16, #tpu.memory_space<vmem>>, vector<1x128x384xbf16>
    %439 = vector.shape_cast %438 : vector<1x128x384xbf16> to vector<128x384xbf16>
    %c1_146 = arith.constant 1 : index
    %c0_147 = arith.constant 0 : index
    %c0_148 = arith.constant 0 : index
    %440 = vector.load %arg5[%c1_146, %c0_147, %c0_148] : memref<2x1x384xf32, #tpu.memory_space<vmem>>, vector<1x1x384xf32>
    %441 = vector.shape_cast %440 : vector<1x1x384xf32> to vector<1x384xf32>
    %cst_149 = arith.constant 0.000000e+00 : f32
    %442 = vector.broadcast %cst_149 : f32 to vector<16x128xf32>
    %c0_150 = arith.constant 0 : index
    %c0_151 = arith.constant 0 : index
    %443 = vector.load %arg9[%c0_150, %c0_151] : memref<16x128xf32, #tpu.memory_space<vmem>>, vector<16x128xf32>
    tpu.vector_store %arg9[%c0_150, %c0_151], %442 {strides = array<i32>} : memref<16x128xf32, #tpu.memory_space<vmem>>, vector<16x128xf32>,
    %c0_i32_152 = arith.constant 0 : i32
    %c7_i32_153 = arith.constant 7 : i32
    %444 = arith.subi %c7_i32_153, %c0_i32_152 : i32
    %c16_i32_154 = arith.constant 16 : i32
    %445 = arith.muli %444, %c16_i32_154 : i32
    %446 = tpu.assume_multiple %445, 16 : i32
    %447 = arith.index_cast %446 : i32 to index
    %c384 = arith.constant 384 : index
    %448 = vector.load %arg8[%447, %c384] : memref<128x768xf32, #tpu.memory_space<vmem>>, vector<16x384xf32>
    %c0_155 = arith.constant 0 : index
    %c0_156 = arith.constant 0 : index
    %449 = vector.load %arg9[%c0_155, %c0_156] : memref<16x128xf32, #tpu.memory_space<vmem>>, vector<16x128xf32>
    %450 = arith.truncf %449 : vector<16x128xf32> to vector<16x128xbf16>
    %cst_157 = arith.constant dense<0.000000e+00> : vector<16x384xf32>
    %451 = tpu.matmul %450, %439, %cst_157 {dimension_numbers = #tpu.dot_dimension_numbers<[1], [0], [0], [1], [0, 0, 1, 1], [], []>} : vector<16x128xbf16>, vector<128x384xbf16>, vector<16x384xf32> -> vector<16x384xf32>
    %452 = vector.broadcast %441 : vector<1x384xf32> to vector<16x384xf32>
    %453 = arith.addf %451, %452 : vector<16x384xf32>
    %454 = vector.extract_strided_slice %448 {offsets = [0, 0], sizes = [16, 128], strides = [1, 1]} : vector<16x384xf32> to vector<16x128xf32>
    %455 = vector.extract_strided_slice %453 {offsets = [0, 0], sizes = [16, 128], strides = [1, 1]} : vector<16x384xf32> to vector<16x128xf32>
    %456 = arith.addf %454, %455 : vector<16x128xf32>
    %457 = arith.negf %456 : vector<16x128xf32>
    %458 = math.exp %457 : vector<16x128xf32>
    %cst_158 = arith.constant 1.000000e+00 : f32
    %459 = vector.broadcast %cst_158 : f32 to vector<16x128xf32>
    %460 = arith.addf %459, %458 : vector<16x128xf32>
    %461 = arith.divf %459, %460 : vector<16x128xf32>
    %462 = vector.extract_strided_slice %448 {offsets = [0, 128], sizes = [16, 128], strides = [1, 1]} : vector<16x384xf32> to vector<16x128xf32>
    %463 = vector.extract_strided_slice %453 {offsets = [0, 128], sizes = [16, 128], strides = [1, 1]} : vector<16x384xf32> to vector<16x128xf32>
    %464 = arith.addf %462, %463 : vector<16x128xf32>
    %465 = arith.negf %464 : vector<16x128xf32>
    %466 = math.exp %465 : vector<16x128xf32>
    %cst_159 = arith.constant 1.000000e+00 : f32
    %467 = vector.broadcast %cst_159 : f32 to vector<16x128xf32>
    %468 = arith.addf %467, %466 : vector<16x128xf32>
    %469 = arith.divf %467, %468 : vector<16x128xf32>
    %470 = vector.extract_strided_slice %448 {offsets = [0, 256], sizes = [16, 128], strides = [1, 1]} : vector<16x384xf32> to vector<16x128xf32>
    %471 = vector.extract_strided_slice %453 {offsets = [0, 256], sizes = [16, 128], strides = [1, 1]} : vector<16x384xf32> to vector<16x128xf32>
    %472 = arith.mulf %461, %471 : vector<16x128xf32>
    %473 = arith.addf %470, %472 : vector<16x128xf32>
    %474 = math.tanh %473 : vector<16x128xf32>
    %cst_160 = arith.constant 1.000000e+00 : f32
    %475 = vector.broadcast %cst_160 : f32 to vector<16x128xf32>
    %476 = arith.subf %475, %469 : vector<16x128xf32>
    %477 = arith.mulf %476, %474 : vector<16x128xf32>
    %478 = arith.mulf %469, %449 : vector<16x128xf32>
    %479 = arith.addf %477, %478 : vector<16x128xf32>
    %480 = arith.index_cast %444 : i32 to index
    %c0_161 = arith.constant 0 : index
    %c0_162 = arith.constant 0 : index
    %481 = vector.load %arg6[%480, %c0_161, %c0_162] : memref<8x16x1xf32, #tpu.memory_space<vmem>>, vector<1x16x1xf32>
    %482 = vector.shape_cast %481 : vector<1x16x1xf32> to vector<16x1xf32>
    %cst_163 = arith.constant 0.000000e+00 : f32
    %483 = vector.broadcast %cst_163 : f32 to vector<16x1xf32>
    %484 = arith.cmpf ogt, %482, %483 : vector<16x1xf32>
    %485 = vector.shape_cast %484 : vector<16x1xi1> to vector<16x1xi1>
    %486 = vector.broadcast %485 : vector<16x1xi1> to vector<16x128xi1>
    %487 = arith.select %486, %479, %449 : vector<16x128xi1>, vector<16x128xf32>
    %c0_164 = arith.constant 0 : index
    %c0_165 = arith.constant 0 : index
    %488 = vector.load %arg9[%c0_164, %c0_165] : memref<16x128xf32, #tpu.memory_space<vmem>>, vector<16x128xf32>
    tpu.vector_store %arg9[%c0_164, %c0_165], %487 {strides = array<i32>} : memref<16x128xf32, #tpu.memory_space<vmem>>, vector<16x128xf32>,
    %cst_166 = arith.constant 0.000000e+00 : f32
    %489 = vector.shape_cast %484 : vector<16x1xi1> to vector<16x1xi1>
    %490 = vector.broadcast %489 : vector<16x1xi1> to vector<16x128xi1>
    %491 = vector.broadcast %cst_166 : f32 to vector<16x128xf32>
    %492 = arith.select %490, %479, %491 : vector<16x128xi1>, vector<16x128xf32>
    %493 = arith.truncf %492 : vector<16x128xf32> to vector<16x128xbf16>
    %494 = arith.index_cast %444 : i32 to index
    %c0_167 = arith.constant 0 : index
    %c128 = arith.constant 128 : index
    %495 = vector.load %arg7[%494, %c0_167, %c128] : memref<8x16x256xbf16, #tpu.memory_space<vmem>>, vector<1x16x128xbf16>
    %496 = vector.shape_cast %495 : vector<1x16x128xbf16> to vector<16x128xbf16>
    %497 = vector.shape_cast %493 : vector<16x128xbf16> to vector<1x16x128xbf16>
    tpu.vector_store %arg7[%494, %c0_167, %c128], %497 {strides = array<i32>} : memref<8x16x256xbf16, #tpu.memory_space<vmem>>, vector<1x16x128xbf16>,
    %c1_i32_168 = arith.constant 1 : i32
    %c7_i32_169 = arith.constant 7 : i32
    %498 = arith.subi %c7_i32_169, %c1_i32_168 : i32
    %c16_i32_170 = arith.constant 16 : i32
    %499 = arith.muli %498, %c16_i32_170 : i32
    %500 = tpu.assume_multiple %499, 16 : i32
    %501 = arith.index_cast %500 : i32 to index
    %c384_171 = arith.constant 384 : index
    %502 = vector.load %arg8[%501, %c384_171] : memref<128x768xf32, #tpu.memory_space<vmem>>, vector<16x384xf32>
    %c0_172 = arith.constant 0 : index
    %c0_173 = arith.constant 0 : index
    %503 = vector.load %arg9[%c0_172, %c0_173] : memref<16x128xf32, #tpu.memory_space<vmem>>, vector<16x128xf32>
    %504 = arith.truncf %503 : vector<16x128xf32> to vector<16x128xbf16>
    %cst_174 = arith.constant dense<0.000000e+00> : vector<16x384xf32>
    %505 = tpu.matmul %504, %439, %cst_174 {dimension_numbers = #tpu.dot_dimension_numbers<[1], [0], [0], [1], [0, 0, 1, 1], [], []>} : vector<16x128xbf16>, vector<128x384xbf16>, vector<16x384xf32> -> vector<16x384xf32>
    %506 = vector.broadcast %441 : vector<1x384xf32> to vector<16x384xf32>
    %507 = arith.addf %505, %506 : vector<16x384xf32>
    %508 = vector.extract_strided_slice %502 {offsets = [0, 0], sizes = [16, 128], strides = [1, 1]} : vector<16x384xf32> to vector<16x128xf32>
    %509 = vector.extract_strided_slice %507 {offsets = [0, 0], sizes = [16, 128], strides = [1, 1]} : vector<16x384xf32> to vector<16x128xf32>
    %510 = arith.addf %508, %509 : vector<16x128xf32>
    %511 = arith.negf %510 : vector<16x128xf32>
    %512 = math.exp %511 : vector<16x128xf32>
    %cst_175 = arith.constant 1.000000e+00 : f32
    %513 = vector.broadcast %cst_175 : f32 to vector<16x128xf32>
    %514 = arith.addf %513, %512 : vector<16x128xf32>
    %515 = arith.divf %513, %514 : vector<16x128xf32>
    %516 = vector.extract_strided_slice %502 {offsets = [0, 128], sizes = [16, 128], strides = [1, 1]} : vector<16x384xf32> to vector<16x128xf32>
    %517 = vector.extract_strided_slice %507 {offsets = [0, 128], sizes = [16, 128], strides = [1, 1]} : vector<16x384xf32> to vector<16x128xf32>
    %518 = arith.addf %516, %517 : vector<16x128xf32>
    %519 = arith.negf %518 : vector<16x128xf32>
    %520 = math.exp %519 : vector<16x128xf32>
    %cst_176 = arith.constant 1.000000e+00 : f32
    %521 = vector.broadcast %cst_176 : f32 to vector<16x128xf32>
    %522 = arith.addf %521, %520 : vector<16x128xf32>
    %523 = arith.divf %521, %522 : vector<16x128xf32>
    %524 = vector.extract_strided_slice %502 {offsets = [0, 256], sizes = [16, 128], strides = [1, 1]} : vector<16x384xf32> to vector<16x128xf32>
    %525 = vector.extract_strided_slice %507 {offsets = [0, 256], sizes = [16, 128], strides = [1, 1]} : vector<16x384xf32> to vector<16x128xf32>
    %526 = arith.mulf %515, %525 : vector<16x128xf32>
    %527 = arith.addf %524, %526 : vector<16x128xf32>
    %528 = math.tanh %527 : vector<16x128xf32>
    %cst_177 = arith.constant 1.000000e+00 : f32
    %529 = vector.broadcast %cst_177 : f32 to vector<16x128xf32>
    %530 = arith.subf %529, %523 : vector<16x128xf32>
    %531 = arith.mulf %530, %528 : vector<16x128xf32>
    %532 = arith.mulf %523, %503 : vector<16x128xf32>
    %533 = arith.addf %531, %532 : vector<16x128xf32>
    %534 = arith.index_cast %498 : i32 to index
    %c0_178 = arith.constant 0 : index
    %c0_179 = arith.constant 0 : index
    %535 = vector.load %arg6[%534, %c0_178, %c0_179] : memref<8x16x1xf32, #tpu.memory_space<vmem>>, vector<1x16x1xf32>
    %536 = vector.shape_cast %535 : vector<1x16x1xf32> to vector<16x1xf32>
    %cst_180 = arith.constant 0.000000e+00 : f32
    %537 = vector.broadcast %cst_180 : f32 to vector<16x1xf32>
    %538 = arith.cmpf ogt, %536, %537 : vector<16x1xf32>
    %539 = vector.shape_cast %538 : vector<16x1xi1> to vector<16x1xi1>
    %540 = vector.broadcast %539 : vector<16x1xi1> to vector<16x128xi1>
    %541 = arith.select %540, %533, %503 : vector<16x128xi1>, vector<16x128xf32>
    %c0_181 = arith.constant 0 : index
    %c0_182 = arith.constant 0 : index
    %542 = vector.load %arg9[%c0_181, %c0_182] : memref<16x128xf32, #tpu.memory_space<vmem>>, vector<16x128xf32>
    tpu.vector_store %arg9[%c0_181, %c0_182], %541 {strides = array<i32>} : memref<16x128xf32, #tpu.memory_space<vmem>>, vector<16x128xf32>,
    %cst_183 = arith.constant 0.000000e+00 : f32
    %543 = vector.shape_cast %538 : vector<16x1xi1> to vector<16x1xi1>
    %544 = vector.broadcast %543 : vector<16x1xi1> to vector<16x128xi1>
    %545 = vector.broadcast %cst_183 : f32 to vector<16x128xf32>
    %546 = arith.select %544, %533, %545 : vector<16x128xi1>, vector<16x128xf32>
    %547 = arith.truncf %546 : vector<16x128xf32> to vector<16x128xbf16>
    %548 = arith.index_cast %498 : i32 to index
    %c0_184 = arith.constant 0 : index
    %c128_185 = arith.constant 128 : index
    %549 = vector.load %arg7[%548, %c0_184, %c128_185] : memref<8x16x256xbf16, #tpu.memory_space<vmem>>, vector<1x16x128xbf16>
    %550 = vector.shape_cast %549 : vector<1x16x128xbf16> to vector<16x128xbf16>
    %551 = vector.shape_cast %547 : vector<16x128xbf16> to vector<1x16x128xbf16>
    tpu.vector_store %arg7[%548, %c0_184, %c128_185], %551 {strides = array<i32>} : memref<8x16x256xbf16, #tpu.memory_space<vmem>>, vector<1x16x128xbf16>,
    %c2_i32_186 = arith.constant 2 : i32
    %c7_i32_187 = arith.constant 7 : i32
    %552 = arith.subi %c7_i32_187, %c2_i32_186 : i32
    %c16_i32_188 = arith.constant 16 : i32
    %553 = arith.muli %552, %c16_i32_188 : i32
    %554 = tpu.assume_multiple %553, 16 : i32
    %555 = arith.index_cast %554 : i32 to index
    %c384_189 = arith.constant 384 : index
    %556 = vector.load %arg8[%555, %c384_189] : memref<128x768xf32, #tpu.memory_space<vmem>>, vector<16x384xf32>
    %c0_190 = arith.constant 0 : index
    %c0_191 = arith.constant 0 : index
    %557 = vector.load %arg9[%c0_190, %c0_191] : memref<16x128xf32, #tpu.memory_space<vmem>>, vector<16x128xf32>
    %558 = arith.truncf %557 : vector<16x128xf32> to vector<16x128xbf16>
    %cst_192 = arith.constant dense<0.000000e+00> : vector<16x384xf32>
    %559 = tpu.matmul %558, %439, %cst_192 {dimension_numbers = #tpu.dot_dimension_numbers<[1], [0], [0], [1], [0, 0, 1, 1], [], []>} : vector<16x128xbf16>, vector<128x384xbf16>, vector<16x384xf32> -> vector<16x384xf32>
    %560 = vector.broadcast %441 : vector<1x384xf32> to vector<16x384xf32>
    %561 = arith.addf %559, %560 : vector<16x384xf32>
    %562 = vector.extract_strided_slice %556 {offsets = [0, 0], sizes = [16, 128], strides = [1, 1]} : vector<16x384xf32> to vector<16x128xf32>
    %563 = vector.extract_strided_slice %561 {offsets = [0, 0], sizes = [16, 128], strides = [1, 1]} : vector<16x384xf32> to vector<16x128xf32>
    %564 = arith.addf %562, %563 : vector<16x128xf32>
    %565 = arith.negf %564 : vector<16x128xf32>
    %566 = math.exp %565 : vector<16x128xf32>
    %cst_193 = arith.constant 1.000000e+00 : f32
    %567 = vector.broadcast %cst_193 : f32 to vector<16x128xf32>
    %568 = arith.addf %567, %566 : vector<16x128xf32>
    %569 = arith.divf %567, %568 : vector<16x128xf32>
    %570 = vector.extract_strided_slice %556 {offsets = [0, 128], sizes = [16, 128], strides = [1, 1]} : vector<16x384xf32> to vector<16x128xf32>
    %571 = vector.extract_strided_slice %561 {offsets = [0, 128], sizes = [16, 128], strides = [1, 1]} : vector<16x384xf32> to vector<16x128xf32>
    %572 = arith.addf %570, %571 : vector<16x128xf32>
    %573 = arith.negf %572 : vector<16x128xf32>
    %574 = math.exp %573 : vector<16x128xf32>
    %cst_194 = arith.constant 1.000000e+00 : f32
    %575 = vector.broadcast %cst_194 : f32 to vector<16x128xf32>
    %576 = arith.addf %575, %574 : vector<16x128xf32>
    %577 = arith.divf %575, %576 : vector<16x128xf32>
    %578 = vector.extract_strided_slice %556 {offsets = [0, 256], sizes = [16, 128], strides = [1, 1]} : vector<16x384xf32> to vector<16x128xf32>
    %579 = vector.extract_strided_slice %561 {offsets = [0, 256], sizes = [16, 128], strides = [1, 1]} : vector<16x384xf32> to vector<16x128xf32>
    %580 = arith.mulf %569, %579 : vector<16x128xf32>
    %581 = arith.addf %578, %580 : vector<16x128xf32>
    %582 = math.tanh %581 : vector<16x128xf32>
    %cst_195 = arith.constant 1.000000e+00 : f32
    %583 = vector.broadcast %cst_195 : f32 to vector<16x128xf32>
    %584 = arith.subf %583, %577 : vector<16x128xf32>
    %585 = arith.mulf %584, %582 : vector<16x128xf32>
    %586 = arith.mulf %577, %557 : vector<16x128xf32>
    %587 = arith.addf %585, %586 : vector<16x128xf32>
    %588 = arith.index_cast %552 : i32 to index
    %c0_196 = arith.constant 0 : index
    %c0_197 = arith.constant 0 : index
    %589 = vector.load %arg6[%588, %c0_196, %c0_197] : memref<8x16x1xf32, #tpu.memory_space<vmem>>, vector<1x16x1xf32>
    %590 = vector.shape_cast %589 : vector<1x16x1xf32> to vector<16x1xf32>
    %cst_198 = arith.constant 0.000000e+00 : f32
    %591 = vector.broadcast %cst_198 : f32 to vector<16x1xf32>
    %592 = arith.cmpf ogt, %590, %591 : vector<16x1xf32>
    %593 = vector.shape_cast %592 : vector<16x1xi1> to vector<16x1xi1>
    %594 = vector.broadcast %593 : vector<16x1xi1> to vector<16x128xi1>
    %595 = arith.select %594, %587, %557 : vector<16x128xi1>, vector<16x128xf32>
    %c0_199 = arith.constant 0 : index
    %c0_200 = arith.constant 0 : index
    %596 = vector.load %arg9[%c0_199, %c0_200] : memref<16x128xf32, #tpu.memory_space<vmem>>, vector<16x128xf32>
    tpu.vector_store %arg9[%c0_199, %c0_200], %595 {strides = array<i32>} : memref<16x128xf32, #tpu.memory_space<vmem>>, vector<16x128xf32>,
    %cst_201 = arith.constant 0.000000e+00 : f32
    %597 = vector.shape_cast %592 : vector<16x1xi1> to vector<16x1xi1>
    %598 = vector.broadcast %597 : vector<16x1xi1> to vector<16x128xi1>
    %599 = vector.broadcast %cst_201 : f32 to vector<16x128xf32>
    %600 = arith.select %598, %587, %599 : vector<16x128xi1>, vector<16x128xf32>
    %601 = arith.truncf %600 : vector<16x128xf32> to vector<16x128xbf16>
    %602 = arith.index_cast %552 : i32 to index
    %c0_202 = arith.constant 0 : index
    %c128_203 = arith.constant 128 : index
    %603 = vector.load %arg7[%602, %c0_202, %c128_203] : memref<8x16x256xbf16, #tpu.memory_space<vmem>>, vector<1x16x128xbf16>
    %604 = vector.shape_cast %603 : vector<1x16x128xbf16> to vector<16x128xbf16>
    %605 = vector.shape_cast %601 : vector<16x128xbf16> to vector<1x16x128xbf16>
    tpu.vector_store %arg7[%602, %c0_202, %c128_203], %605 {strides = array<i32>} : memref<8x16x256xbf16, #tpu.memory_space<vmem>>, vector<1x16x128xbf16>,
    %c3_i32_204 = arith.constant 3 : i32
    %c7_i32_205 = arith.constant 7 : i32
    %606 = arith.subi %c7_i32_205, %c3_i32_204 : i32
    %c16_i32_206 = arith.constant 16 : i32
    %607 = arith.muli %606, %c16_i32_206 : i32
    %608 = tpu.assume_multiple %607, 16 : i32
    %609 = arith.index_cast %608 : i32 to index
    %c384_207 = arith.constant 384 : index
    %610 = vector.load %arg8[%609, %c384_207] : memref<128x768xf32, #tpu.memory_space<vmem>>, vector<16x384xf32>
    %c0_208 = arith.constant 0 : index
    %c0_209 = arith.constant 0 : index
    %611 = vector.load %arg9[%c0_208, %c0_209] : memref<16x128xf32, #tpu.memory_space<vmem>>, vector<16x128xf32>
    %612 = arith.truncf %611 : vector<16x128xf32> to vector<16x128xbf16>
    %cst_210 = arith.constant dense<0.000000e+00> : vector<16x384xf32>
    %613 = tpu.matmul %612, %439, %cst_210 {dimension_numbers = #tpu.dot_dimension_numbers<[1], [0], [0], [1], [0, 0, 1, 1], [], []>} : vector<16x128xbf16>, vector<128x384xbf16>, vector<16x384xf32> -> vector<16x384xf32>
    %614 = vector.broadcast %441 : vector<1x384xf32> to vector<16x384xf32>
    %615 = arith.addf %613, %614 : vector<16x384xf32>
    %616 = vector.extract_strided_slice %610 {offsets = [0, 0], sizes = [16, 128], strides = [1, 1]} : vector<16x384xf32> to vector<16x128xf32>
    %617 = vector.extract_strided_slice %615 {offsets = [0, 0], sizes = [16, 128], strides = [1, 1]} : vector<16x384xf32> to vector<16x128xf32>
    %618 = arith.addf %616, %617 : vector<16x128xf32>
    %619 = arith.negf %618 : vector<16x128xf32>
    %620 = math.exp %619 : vector<16x128xf32>
    %cst_211 = arith.constant 1.000000e+00 : f32
    %621 = vector.broadcast %cst_211 : f32 to vector<16x128xf32>
    %622 = arith.addf %621, %620 : vector<16x128xf32>
    %623 = arith.divf %621, %622 : vector<16x128xf32>
    %624 = vector.extract_strided_slice %610 {offsets = [0, 128], sizes = [16, 128], strides = [1, 1]} : vector<16x384xf32> to vector<16x128xf32>
    %625 = vector.extract_strided_slice %615 {offsets = [0, 128], sizes = [16, 128], strides = [1, 1]} : vector<16x384xf32> to vector<16x128xf32>
    %626 = arith.addf %624, %625 : vector<16x128xf32>
    %627 = arith.negf %626 : vector<16x128xf32>
    %628 = math.exp %627 : vector<16x128xf32>
    %cst_212 = arith.constant 1.000000e+00 : f32
    %629 = vector.broadcast %cst_212 : f32 to vector<16x128xf32>
    %630 = arith.addf %629, %628 : vector<16x128xf32>
    %631 = arith.divf %629, %630 : vector<16x128xf32>
    %632 = vector.extract_strided_slice %610 {offsets = [0, 256], sizes = [16, 128], strides = [1, 1]} : vector<16x384xf32> to vector<16x128xf32>
    %633 = vector.extract_strided_slice %615 {offsets = [0, 256], sizes = [16, 128], strides = [1, 1]} : vector<16x384xf32> to vector<16x128xf32>
    %634 = arith.mulf %623, %633 : vector<16x128xf32>
    %635 = arith.addf %632, %634 : vector<16x128xf32>
    %636 = math.tanh %635 : vector<16x128xf32>
    %cst_213 = arith.constant 1.000000e+00 : f32
    %637 = vector.broadcast %cst_213 : f32 to vector<16x128xf32>
    %638 = arith.subf %637, %631 : vector<16x128xf32>
    %639 = arith.mulf %638, %636 : vector<16x128xf32>
    %640 = arith.mulf %631, %611 : vector<16x128xf32>
    %641 = arith.addf %639, %640 : vector<16x128xf32>
    %642 = arith.index_cast %606 : i32 to index
    %c0_214 = arith.constant 0 : index
    %c0_215 = arith.constant 0 : index
    %643 = vector.load %arg6[%642, %c0_214, %c0_215] : memref<8x16x1xf32, #tpu.memory_space<vmem>>, vector<1x16x1xf32>
    %644 = vector.shape_cast %643 : vector<1x16x1xf32> to vector<16x1xf32>
    %cst_216 = arith.constant 0.000000e+00 : f32
    %645 = vector.broadcast %cst_216 : f32 to vector<16x1xf32>
    %646 = arith.cmpf ogt, %644, %645 : vector<16x1xf32>
    %647 = vector.shape_cast %646 : vector<16x1xi1> to vector<16x1xi1>
    %648 = vector.broadcast %647 : vector<16x1xi1> to vector<16x128xi1>
    %649 = arith.select %648, %641, %611 : vector<16x128xi1>, vector<16x128xf32>
    %c0_217 = arith.constant 0 : index
    %c0_218 = arith.constant 0 : index
    %650 = vector.load %arg9[%c0_217, %c0_218] : memref<16x128xf32, #tpu.memory_space<vmem>>, vector<16x128xf32>
    tpu.vector_store %arg9[%c0_217, %c0_218], %649 {strides = array<i32>} : memref<16x128xf32, #tpu.memory_space<vmem>>, vector<16x128xf32>,
    %cst_219 = arith.constant 0.000000e+00 : f32
    %651 = vector.shape_cast %646 : vector<16x1xi1> to vector<16x1xi1>
    %652 = vector.broadcast %651 : vector<16x1xi1> to vector<16x128xi1>
    %653 = vector.broadcast %cst_219 : f32 to vector<16x128xf32>
    %654 = arith.select %652, %641, %653 : vector<16x128xi1>, vector<16x128xf32>
    %655 = arith.truncf %654 : vector<16x128xf32> to vector<16x128xbf16>
    %656 = arith.index_cast %606 : i32 to index
    %c0_220 = arith.constant 0 : index
    %c128_221 = arith.constant 128 : index
    %657 = vector.load %arg7[%656, %c0_220, %c128_221] : memref<8x16x256xbf16, #tpu.memory_space<vmem>>, vector<1x16x128xbf16>
    %658 = vector.shape_cast %657 : vector<1x16x128xbf16> to vector<16x128xbf16>
    %659 = vector.shape_cast %655 : vector<16x128xbf16> to vector<1x16x128xbf16>
    tpu.vector_store %arg7[%656, %c0_220, %c128_221], %659 {strides = array<i32>} : memref<8x16x256xbf16, #tpu.memory_space<vmem>>, vector<1x16x128xbf16>,
    %c4_i32_222 = arith.constant 4 : i32
    %c7_i32_223 = arith.constant 7 : i32
    %660 = arith.subi %c7_i32_223, %c4_i32_222 : i32
    %c16_i32_224 = arith.constant 16 : i32
    %661 = arith.muli %660, %c16_i32_224 : i32
    %662 = tpu.assume_multiple %661, 16 : i32
    %663 = arith.index_cast %662 : i32 to index
    %c384_225 = arith.constant 384 : index
    %664 = vector.load %arg8[%663, %c384_225] : memref<128x768xf32, #tpu.memory_space<vmem>>, vector<16x384xf32>
    %c0_226 = arith.constant 0 : index
    %c0_227 = arith.constant 0 : index
    %665 = vector.load %arg9[%c0_226, %c0_227] : memref<16x128xf32, #tpu.memory_space<vmem>>, vector<16x128xf32>
    %666 = arith.truncf %665 : vector<16x128xf32> to vector<16x128xbf16>
    %cst_228 = arith.constant dense<0.000000e+00> : vector<16x384xf32>
    %667 = tpu.matmul %666, %439, %cst_228 {dimension_numbers = #tpu.dot_dimension_numbers<[1], [0], [0], [1], [0, 0, 1, 1], [], []>} : vector<16x128xbf16>, vector<128x384xbf16>, vector<16x384xf32> -> vector<16x384xf32>
    %668 = vector.broadcast %441 : vector<1x384xf32> to vector<16x384xf32>
    %669 = arith.addf %667, %668 : vector<16x384xf32>
    %670 = vector.extract_strided_slice %664 {offsets = [0, 0], sizes = [16, 128], strides = [1, 1]} : vector<16x384xf32> to vector<16x128xf32>
    %671 = vector.extract_strided_slice %669 {offsets = [0, 0], sizes = [16, 128], strides = [1, 1]} : vector<16x384xf32> to vector<16x128xf32>
    %672 = arith.addf %670, %671 : vector<16x128xf32>
    %673 = arith.negf %672 : vector<16x128xf32>
    %674 = math.exp %673 : vector<16x128xf32>
    %cst_229 = arith.constant 1.000000e+00 : f32
    %675 = vector.broadcast %cst_229 : f32 to vector<16x128xf32>
    %676 = arith.addf %675, %674 : vector<16x128xf32>
    %677 = arith.divf %675, %676 : vector<16x128xf32>
    %678 = vector.extract_strided_slice %664 {offsets = [0, 128], sizes = [16, 128], strides = [1, 1]} : vector<16x384xf32> to vector<16x128xf32>
    %679 = vector.extract_strided_slice %669 {offsets = [0, 128], sizes = [16, 128], strides = [1, 1]} : vector<16x384xf32> to vector<16x128xf32>
    %680 = arith.addf %678, %679 : vector<16x128xf32>
    %681 = arith.negf %680 : vector<16x128xf32>
    %682 = math.exp %681 : vector<16x128xf32>
    %cst_230 = arith.constant 1.000000e+00 : f32
    %683 = vector.broadcast %cst_230 : f32 to vector<16x128xf32>
    %684 = arith.addf %683, %682 : vector<16x128xf32>
    %685 = arith.divf %683, %684 : vector<16x128xf32>
    %686 = vector.extract_strided_slice %664 {offsets = [0, 256], sizes = [16, 128], strides = [1, 1]} : vector<16x384xf32> to vector<16x128xf32>
    %687 = vector.extract_strided_slice %669 {offsets = [0, 256], sizes = [16, 128], strides = [1, 1]} : vector<16x384xf32> to vector<16x128xf32>
    %688 = arith.mulf %677, %687 : vector<16x128xf32>
    %689 = arith.addf %686, %688 : vector<16x128xf32>
    %690 = math.tanh %689 : vector<16x128xf32>
    %cst_231 = arith.constant 1.000000e+00 : f32
    %691 = vector.broadcast %cst_231 : f32 to vector<16x128xf32>
    %692 = arith.subf %691, %685 : vector<16x128xf32>
    %693 = arith.mulf %692, %690 : vector<16x128xf32>
    %694 = arith.mulf %685, %665 : vector<16x128xf32>
    %695 = arith.addf %693, %694 : vector<16x128xf32>
    %696 = arith.index_cast %660 : i32 to index
    %c0_232 = arith.constant 0 : index
    %c0_233 = arith.constant 0 : index
    %697 = vector.load %arg6[%696, %c0_232, %c0_233] : memref<8x16x1xf32, #tpu.memory_space<vmem>>, vector<1x16x1xf32>
    %698 = vector.shape_cast %697 : vector<1x16x1xf32> to vector<16x1xf32>
    %cst_234 = arith.constant 0.000000e+00 : f32
    %699 = vector.broadcast %cst_234 : f32 to vector<16x1xf32>
    %700 = arith.cmpf ogt, %698, %699 : vector<16x1xf32>
    %701 = vector.shape_cast %700 : vector<16x1xi1> to vector<16x1xi1>
    %702 = vector.broadcast %701 : vector<16x1xi1> to vector<16x128xi1>
    %703 = arith.select %702, %695, %665 : vector<16x128xi1>, vector<16x128xf32>
    %c0_235 = arith.constant 0 : index
    %c0_236 = arith.constant 0 : index
    %704 = vector.load %arg9[%c0_235, %c0_236] : memref<16x128xf32, #tpu.memory_space<vmem>>, vector<16x128xf32>
    tpu.vector_store %arg9[%c0_235, %c0_236], %703 {strides = array<i32>} : memref<16x128xf32, #tpu.memory_space<vmem>>, vector<16x128xf32>,
    %cst_237 = arith.constant 0.000000e+00 : f32
    %705 = vector.shape_cast %700 : vector<16x1xi1> to vector<16x1xi1>
    %706 = vector.broadcast %705 : vector<16x1xi1> to vector<16x128xi1>
    %707 = vector.broadcast %cst_237 : f32 to vector<16x128xf32>
    %708 = arith.select %706, %695, %707 : vector<16x128xi1>, vector<16x128xf32>
    %709 = arith.truncf %708 : vector<16x128xf32> to vector<16x128xbf16>
    %710 = arith.index_cast %660 : i32 to index
    %c0_238 = arith.constant 0 : index
    %c128_239 = arith.constant 128 : index
    %711 = vector.load %arg7[%710, %c0_238, %c128_239] : memref<8x16x256xbf16, #tpu.memory_space<vmem>>, vector<1x16x128xbf16>
    %712 = vector.shape_cast %711 : vector<1x16x128xbf16> to vector<16x128xbf16>
    %713 = vector.shape_cast %709 : vector<16x128xbf16> to vector<1x16x128xbf16>
    tpu.vector_store %arg7[%710, %c0_238, %c128_239], %713 {strides = array<i32>} : memref<8x16x256xbf16, #tpu.memory_space<vmem>>, vector<1x16x128xbf16>,
    %c5_i32_240 = arith.constant 5 : i32
    %c7_i32_241 = arith.constant 7 : i32
    %714 = arith.subi %c7_i32_241, %c5_i32_240 : i32
    %c16_i32_242 = arith.constant 16 : i32
    %715 = arith.muli %714, %c16_i32_242 : i32
    %716 = tpu.assume_multiple %715, 16 : i32
    %717 = arith.index_cast %716 : i32 to index
    %c384_243 = arith.constant 384 : index
    %718 = vector.load %arg8[%717, %c384_243] : memref<128x768xf32, #tpu.memory_space<vmem>>, vector<16x384xf32>
    %c0_244 = arith.constant 0 : index
    %c0_245 = arith.constant 0 : index
    %719 = vector.load %arg9[%c0_244, %c0_245] : memref<16x128xf32, #tpu.memory_space<vmem>>, vector<16x128xf32>
    %720 = arith.truncf %719 : vector<16x128xf32> to vector<16x128xbf16>
    %cst_246 = arith.constant dense<0.000000e+00> : vector<16x384xf32>
    %721 = tpu.matmul %720, %439, %cst_246 {dimension_numbers = #tpu.dot_dimension_numbers<[1], [0], [0], [1], [0, 0, 1, 1], [], []>} : vector<16x128xbf16>, vector<128x384xbf16>, vector<16x384xf32> -> vector<16x384xf32>
    %722 = vector.broadcast %441 : vector<1x384xf32> to vector<16x384xf32>
    %723 = arith.addf %721, %722 : vector<16x384xf32>
    %724 = vector.extract_strided_slice %718 {offsets = [0, 0], sizes = [16, 128], strides = [1, 1]} : vector<16x384xf32> to vector<16x128xf32>
    %725 = vector.extract_strided_slice %723 {offsets = [0, 0], sizes = [16, 128], strides = [1, 1]} : vector<16x384xf32> to vector<16x128xf32>
    %726 = arith.addf %724, %725 : vector<16x128xf32>
    %727 = arith.negf %726 : vector<16x128xf32>
    %728 = math.exp %727 : vector<16x128xf32>
    %cst_247 = arith.constant 1.000000e+00 : f32
    %729 = vector.broadcast %cst_247 : f32 to vector<16x128xf32>
    %730 = arith.addf %729, %728 : vector<16x128xf32>
    %731 = arith.divf %729, %730 : vector<16x128xf32>
    %732 = vector.extract_strided_slice %718 {offsets = [0, 128], sizes = [16, 128], strides = [1, 1]} : vector<16x384xf32> to vector<16x128xf32>
    %733 = vector.extract_strided_slice %723 {offsets = [0, 128], sizes = [16, 128], strides = [1, 1]} : vector<16x384xf32> to vector<16x128xf32>
    %734 = arith.addf %732, %733 : vector<16x128xf32>
    %735 = arith.negf %734 : vector<16x128xf32>
    %736 = math.exp %735 : vector<16x128xf32>
    %cst_248 = arith.constant 1.000000e+00 : f32
    %737 = vector.broadcast %cst_248 : f32 to vector<16x128xf32>
    %738 = arith.addf %737, %736 : vector<16x128xf32>
    %739 = arith.divf %737, %738 : vector<16x128xf32>
    %740 = vector.extract_strided_slice %718 {offsets = [0, 256], sizes = [16, 128], strides = [1, 1]} : vector<16x384xf32> to vector<16x128xf32>
    %741 = vector.extract_strided_slice %723 {offsets = [0, 256], sizes = [16, 128], strides = [1, 1]} : vector<16x384xf32> to vector<16x128xf32>
    %742 = arith.mulf %731, %741 : vector<16x128xf32>
    %743 = arith.addf %740, %742 : vector<16x128xf32>
    %744 = math.tanh %743 : vector<16x128xf32>
    %cst_249 = arith.constant 1.000000e+00 : f32
    %745 = vector.broadcast %cst_249 : f32 to vector<16x128xf32>
    %746 = arith.subf %745, %739 : vector<16x128xf32>
    %747 = arith.mulf %746, %744 : vector<16x128xf32>
    %748 = arith.mulf %739, %719 : vector<16x128xf32>
    %749 = arith.addf %747, %748 : vector<16x128xf32>
    %750 = arith.index_cast %714 : i32 to index
    %c0_250 = arith.constant 0 : index
    %c0_251 = arith.constant 0 : index
    %751 = vector.load %arg6[%750, %c0_250, %c0_251] : memref<8x16x1xf32, #tpu.memory_space<vmem>>, vector<1x16x1xf32>
    %752 = vector.shape_cast %751 : vector<1x16x1xf32> to vector<16x1xf32>
    %cst_252 = arith.constant 0.000000e+00 : f32
    %753 = vector.broadcast %cst_252 : f32 to vector<16x1xf32>
    %754 = arith.cmpf ogt, %752, %753 : vector<16x1xf32>
    %755 = vector.shape_cast %754 : vector<16x1xi1> to vector<16x1xi1>
    %756 = vector.broadcast %755 : vector<16x1xi1> to vector<16x128xi1>
    %757 = arith.select %756, %749, %719 : vector<16x128xi1>, vector<16x128xf32>
    %c0_253 = arith.constant 0 : index
    %c0_254 = arith.constant 0 : index
    %758 = vector.load %arg9[%c0_253, %c0_254] : memref<16x128xf32, #tpu.memory_space<vmem>>, vector<16x128xf32>
    tpu.vector_store %arg9[%c0_253, %c0_254], %757 {strides = array<i32>} : memref<16x128xf32, #tpu.memory_space<vmem>>, vector<16x128xf32>,
    %cst_255 = arith.constant 0.000000e+00 : f32
    %759 = vector.shape_cast %754 : vector<16x1xi1> to vector<16x1xi1>
    %760 = vector.broadcast %759 : vector<16x1xi1> to vector<16x128xi1>
    %761 = vector.broadcast %cst_255 : f32 to vector<16x128xf32>
    %762 = arith.select %760, %749, %761 : vector<16x128xi1>, vector<16x128xf32>
    %763 = arith.truncf %762 : vector<16x128xf32> to vector<16x128xbf16>
    %764 = arith.index_cast %714 : i32 to index
    %c0_256 = arith.constant 0 : index
    %c128_257 = arith.constant 128 : index
    %765 = vector.load %arg7[%764, %c0_256, %c128_257] : memref<8x16x256xbf16, #tpu.memory_space<vmem>>, vector<1x16x128xbf16>
    %766 = vector.shape_cast %765 : vector<1x16x128xbf16> to vector<16x128xbf16>
    %767 = vector.shape_cast %763 : vector<16x128xbf16> to vector<1x16x128xbf16>
    tpu.vector_store %arg7[%764, %c0_256, %c128_257], %767 {strides = array<i32>} : memref<8x16x256xbf16, #tpu.memory_space<vmem>>, vector<1x16x128xbf16>,
    %c6_i32_258 = arith.constant 6 : i32
    %c7_i32_259 = arith.constant 7 : i32
    %768 = arith.subi %c7_i32_259, %c6_i32_258 : i32
    %c16_i32_260 = arith.constant 16 : i32
    %769 = arith.muli %768, %c16_i32_260 : i32
    %770 = tpu.assume_multiple %769, 16 : i32
    %771 = arith.index_cast %770 : i32 to index
    %c384_261 = arith.constant 384 : index
    %772 = vector.load %arg8[%771, %c384_261] : memref<128x768xf32, #tpu.memory_space<vmem>>, vector<16x384xf32>
    %c0_262 = arith.constant 0 : index
    %c0_263 = arith.constant 0 : index
    %773 = vector.load %arg9[%c0_262, %c0_263] : memref<16x128xf32, #tpu.memory_space<vmem>>, vector<16x128xf32>
    %774 = arith.truncf %773 : vector<16x128xf32> to vector<16x128xbf16>
    %cst_264 = arith.constant dense<0.000000e+00> : vector<16x384xf32>
    %775 = tpu.matmul %774, %439, %cst_264 {dimension_numbers = #tpu.dot_dimension_numbers<[1], [0], [0], [1], [0, 0, 1, 1], [], []>} : vector<16x128xbf16>, vector<128x384xbf16>, vector<16x384xf32> -> vector<16x384xf32>
    %776 = vector.broadcast %441 : vector<1x384xf32> to vector<16x384xf32>
    %777 = arith.addf %775, %776 : vector<16x384xf32>
    %778 = vector.extract_strided_slice %772 {offsets = [0, 0], sizes = [16, 128], strides = [1, 1]} : vector<16x384xf32> to vector<16x128xf32>
    %779 = vector.extract_strided_slice %777 {offsets = [0, 0], sizes = [16, 128], strides = [1, 1]} : vector<16x384xf32> to vector<16x128xf32>
    %780 = arith.addf %778, %779 : vector<16x128xf32>
    %781 = arith.negf %780 : vector<16x128xf32>
    %782 = math.exp %781 : vector<16x128xf32>
    %cst_265 = arith.constant 1.000000e+00 : f32
    %783 = vector.broadcast %cst_265 : f32 to vector<16x128xf32>
    %784 = arith.addf %783, %782 : vector<16x128xf32>
    %785 = arith.divf %783, %784 : vector<16x128xf32>
    %786 = vector.extract_strided_slice %772 {offsets = [0, 128], sizes = [16, 128], strides = [1, 1]} : vector<16x384xf32> to vector<16x128xf32>
    %787 = vector.extract_strided_slice %777 {offsets = [0, 128], sizes = [16, 128], strides = [1, 1]} : vector<16x384xf32> to vector<16x128xf32>
    %788 = arith.addf %786, %787 : vector<16x128xf32>
    %789 = arith.negf %788 : vector<16x128xf32>
    %790 = math.exp %789 : vector<16x128xf32>
    %cst_266 = arith.constant 1.000000e+00 : f32
    %791 = vector.broadcast %cst_266 : f32 to vector<16x128xf32>
    %792 = arith.addf %791, %790 : vector<16x128xf32>
    %793 = arith.divf %791, %792 : vector<16x128xf32>
    %794 = vector.extract_strided_slice %772 {offsets = [0, 256], sizes = [16, 128], strides = [1, 1]} : vector<16x384xf32> to vector<16x128xf32>
    %795 = vector.extract_strided_slice %777 {offsets = [0, 256], sizes = [16, 128], strides = [1, 1]} : vector<16x384xf32> to vector<16x128xf32>
    %796 = arith.mulf %785, %795 : vector<16x128xf32>
    %797 = arith.addf %794, %796 : vector<16x128xf32>
    %798 = math.tanh %797 : vector<16x128xf32>
    %cst_267 = arith.constant 1.000000e+00 : f32
    %799 = vector.broadcast %cst_267 : f32 to vector<16x128xf32>
    %800 = arith.subf %799, %793 : vector<16x128xf32>
    %801 = arith.mulf %800, %798 : vector<16x128xf32>
    %802 = arith.mulf %793, %773 : vector<16x128xf32>
    %803 = arith.addf %801, %802 : vector<16x128xf32>
    %804 = arith.index_cast %768 : i32 to index
    %c0_268 = arith.constant 0 : index
    %c0_269 = arith.constant 0 : index
    %805 = vector.load %arg6[%804, %c0_268, %c0_269] : memref<8x16x1xf32, #tpu.memory_space<vmem>>, vector<1x16x1xf32>
    %806 = vector.shape_cast %805 : vector<1x16x1xf32> to vector<16x1xf32>
    %cst_270 = arith.constant 0.000000e+00 : f32
    %807 = vector.broadcast %cst_270 : f32 to vector<16x1xf32>
    %808 = arith.cmpf ogt, %806, %807 : vector<16x1xf32>
    %809 = vector.shape_cast %808 : vector<16x1xi1> to vector<16x1xi1>
    %810 = vector.broadcast %809 : vector<16x1xi1> to vector<16x128xi1>
    %811 = arith.select %810, %803, %773 : vector<16x128xi1>, vector<16x128xf32>
    %c0_271 = arith.constant 0 : index
    %c0_272 = arith.constant 0 : index
    %812 = vector.load %arg9[%c0_271, %c0_272] : memref<16x128xf32, #tpu.memory_space<vmem>>, vector<16x128xf32>
    tpu.vector_store %arg9[%c0_271, %c0_272], %811 {strides = array<i32>} : memref<16x128xf32, #tpu.memory_space<vmem>>, vector<16x128xf32>,
    %cst_273 = arith.constant 0.000000e+00 : f32
    %813 = vector.shape_cast %808 : vector<16x1xi1> to vector<16x1xi1>
    %814 = vector.broadcast %813 : vector<16x1xi1> to vector<16x128xi1>
    %815 = vector.broadcast %cst_273 : f32 to vector<16x128xf32>
    %816 = arith.select %814, %803, %815 : vector<16x128xi1>, vector<16x128xf32>
    %817 = arith.truncf %816 : vector<16x128xf32> to vector<16x128xbf16>
    %818 = arith.index_cast %768 : i32 to index
    %c0_274 = arith.constant 0 : index
    %c128_275 = arith.constant 128 : index
    %819 = vector.load %arg7[%818, %c0_274, %c128_275] : memref<8x16x256xbf16, #tpu.memory_space<vmem>>, vector<1x16x128xbf16>
    %820 = vector.shape_cast %819 : vector<1x16x128xbf16> to vector<16x128xbf16>
    %821 = vector.shape_cast %817 : vector<16x128xbf16> to vector<1x16x128xbf16>
    tpu.vector_store %arg7[%818, %c0_274, %c128_275], %821 {strides = array<i32>} : memref<8x16x256xbf16, #tpu.memory_space<vmem>>, vector<1x16x128xbf16>,
    %c7_i32_276 = arith.constant 7 : i32
    %c7_i32_277 = arith.constant 7 : i32
    %822 = arith.subi %c7_i32_277, %c7_i32_276 : i32
    %c16_i32_278 = arith.constant 16 : i32
    %823 = arith.muli %822, %c16_i32_278 : i32
    %824 = tpu.assume_multiple %823, 16 : i32
    %825 = arith.index_cast %824 : i32 to index
    %c384_279 = arith.constant 384 : index
    %826 = vector.load %arg8[%825, %c384_279] : memref<128x768xf32, #tpu.memory_space<vmem>>, vector<16x384xf32>
    %c0_280 = arith.constant 0 : index
    %c0_281 = arith.constant 0 : index
    %827 = vector.load %arg9[%c0_280, %c0_281] : memref<16x128xf32, #tpu.memory_space<vmem>>, vector<16x128xf32>
    %828 = arith.truncf %827 : vector<16x128xf32> to vector<16x128xbf16>
    %cst_282 = arith.constant dense<0.000000e+00> : vector<16x384xf32>
    %829 = tpu.matmul %828, %439, %cst_282 {dimension_numbers = #tpu.dot_dimension_numbers<[1], [0], [0], [1], [0, 0, 1, 1], [], []>} : vector<16x128xbf16>, vector<128x384xbf16>, vector<16x384xf32> -> vector<16x384xf32>
    %830 = vector.broadcast %441 : vector<1x384xf32> to vector<16x384xf32>
    %831 = arith.addf %829, %830 : vector<16x384xf32>
    %832 = vector.extract_strided_slice %826 {offsets = [0, 0], sizes = [16, 128], strides = [1, 1]} : vector<16x384xf32> to vector<16x128xf32>
    %833 = vector.extract_strided_slice %831 {offsets = [0, 0], sizes = [16, 128], strides = [1, 1]} : vector<16x384xf32> to vector<16x128xf32>
    %834 = arith.addf %832, %833 : vector<16x128xf32>
    %835 = arith.negf %834 : vector<16x128xf32>
    %836 = math.exp %835 : vector<16x128xf32>
    %cst_283 = arith.constant 1.000000e+00 : f32
    %837 = vector.broadcast %cst_283 : f32 to vector<16x128xf32>
    %838 = arith.addf %837, %836 : vector<16x128xf32>
    %839 = arith.divf %837, %838 : vector<16x128xf32>
    %840 = vector.extract_strided_slice %826 {offsets = [0, 128], sizes = [16, 128], strides = [1, 1]} : vector<16x384xf32> to vector<16x128xf32>
    %841 = vector.extract_strided_slice %831 {offsets = [0, 128], sizes = [16, 128], strides = [1, 1]} : vector<16x384xf32> to vector<16x128xf32>
    %842 = arith.addf %840, %841 : vector<16x128xf32>
    %843 = arith.negf %842 : vector<16x128xf32>
    %844 = math.exp %843 : vector<16x128xf32>
    %cst_284 = arith.constant 1.000000e+00 : f32
    %845 = vector.broadcast %cst_284 : f32 to vector<16x128xf32>
    %846 = arith.addf %845, %844 : vector<16x128xf32>
    %847 = arith.divf %845, %846 : vector<16x128xf32>
    %848 = vector.extract_strided_slice %826 {offsets = [0, 256], sizes = [16, 128], strides = [1, 1]} : vector<16x384xf32> to vector<16x128xf32>
    %849 = vector.extract_strided_slice %831 {offsets = [0, 256], sizes = [16, 128], strides = [1, 1]} : vector<16x384xf32> to vector<16x128xf32>
    %850 = arith.mulf %839, %849 : vector<16x128xf32>
    %851 = arith.addf %848, %850 : vector<16x128xf32>
    %852 = math.tanh %851 : vector<16x128xf32>
    %cst_285 = arith.constant 1.000000e+00 : f32
    %853 = vector.broadcast %cst_285 : f32 to vector<16x128xf32>
    %854 = arith.subf %853, %847 : vector<16x128xf32>
    %855 = arith.mulf %854, %852 : vector<16x128xf32>
    %856 = arith.mulf %847, %827 : vector<16x128xf32>
    %857 = arith.addf %855, %856 : vector<16x128xf32>
    %858 = arith.index_cast %822 : i32 to index
    %c0_286 = arith.constant 0 : index
    %c0_287 = arith.constant 0 : index
    %859 = vector.load %arg6[%858, %c0_286, %c0_287] : memref<8x16x1xf32, #tpu.memory_space<vmem>>, vector<1x16x1xf32>
    %860 = vector.shape_cast %859 : vector<1x16x1xf32> to vector<16x1xf32>
    %cst_288 = arith.constant 0.000000e+00 : f32
    %861 = vector.broadcast %cst_288 : f32 to vector<16x1xf32>
    %862 = arith.cmpf ogt, %860, %861 : vector<16x1xf32>
    %863 = vector.shape_cast %862 : vector<16x1xi1> to vector<16x1xi1>
    %864 = vector.broadcast %863 : vector<16x1xi1> to vector<16x128xi1>
    %865 = arith.select %864, %857, %827 : vector<16x128xi1>, vector<16x128xf32>
    %c0_289 = arith.constant 0 : index
    %c0_290 = arith.constant 0 : index
    %866 = vector.load %arg9[%c0_289, %c0_290] : memref<16x128xf32, #tpu.memory_space<vmem>>, vector<16x128xf32>
    tpu.vector_store %arg9[%c0_289, %c0_290], %865 {strides = array<i32>} : memref<16x128xf32, #tpu.memory_space<vmem>>, vector<16x128xf32>,
    %cst_291 = arith.constant 0.000000e+00 : f32
    %867 = vector.shape_cast %862 : vector<16x1xi1> to vector<16x1xi1>
    %868 = vector.broadcast %867 : vector<16x1xi1> to vector<16x128xi1>
    %869 = vector.broadcast %cst_291 : f32 to vector<16x128xf32>
    %870 = arith.select %868, %857, %869 : vector<16x128xi1>, vector<16x128xf32>
    %871 = arith.truncf %870 : vector<16x128xf32> to vector<16x128xbf16>
    %872 = arith.index_cast %822 : i32 to index
    %c0_292 = arith.constant 0 : index
    %c128_293 = arith.constant 128 : index
    %873 = vector.load %arg7[%872, %c0_292, %c128_293] : memref<8x16x256xbf16, #tpu.memory_space<vmem>>, vector<1x16x128xbf16>
    %874 = vector.shape_cast %873 : vector<1x16x128xbf16> to vector<16x128xbf16>
    %875 = vector.shape_cast %871 : vector<16x128xbf16> to vector<1x16x128xbf16>
    tpu.vector_store %arg7[%872, %c0_292, %c128_293], %875 {strides = array<i32>} : memref<8x16x256xbf16, #tpu.memory_space<vmem>>, vector<1x16x128xbf16>,
    %c8_i32_294 = arith.constant 8 : i32
    return
  }
  func.func @transform_0(%arg0: i32) -> (i32, i32, i32) {
    %c0_i32 = arith.constant 0 : i32
    %c0_i32_0 = arith.constant 0 : i32
    %c0_i32_1 = arith.constant 0 : i32
    return %c0_i32, %arg0, %c0_i32_0 : i32, i32, i32
  }
  func.func @transform_1(%arg0: i32) -> (i32, i32) {
    %c0_i32 = arith.constant 0 : i32
    %c0_i32_0 = arith.constant 0 : i32
    %c0_i32_1 = arith.constant 0 : i32
    return %c0_i32, %c0_i32_0 : i32, i32
  }
  func.func @transform_2(%arg0: i32) -> (i32, i32) {
    %c0_i32 = arith.constant 0 : i32
    %c0_i32_0 = arith.constant 0 : i32
    %c0_i32_1 = arith.constant 0 : i32
    return %c0_i32, %c0_i32_0 : i32, i32
  }
  func.func @transform_3(%arg0: i32) -> (i32, i32, i32) {
    %c0_i32 = arith.constant 0 : i32
    %c0_i32_0 = arith.constant 0 : i32
    %c0_i32_1 = arith.constant 0 : i32
    %c0_i32_2 = arith.constant 0 : i32
    return %c0_i32, %c0_i32_0, %c0_i32_1 : i32, i32, i32
  }
  func.func @transform_4(%arg0: i32) -> (i32, i32, i32) {
    %c0_i32 = arith.constant 0 : i32
    %c0_i32_0 = arith.constant 0 : i32
    %c0_i32_1 = arith.constant 0 : i32
    %c0_i32_2 = arith.constant 0 : i32
    return %c0_i32, %c0_i32_0, %c0_i32_1 : i32, i32, i32
  }
  func.func @transform_5(%arg0: i32) -> (i32, i32, i32) {
    %c0_i32 = arith.constant 0 : i32
    %c0_i32_0 = arith.constant 0 : i32
    %c0_i32_1 = arith.constant 0 : i32
    return %c0_i32, %arg0, %c0_i32_0 : i32, i32, i32
  }
  func.func @transform_6(%arg0: i32) -> (i32, i32, i32) {
    %c0_i32 = arith.constant 0 : i32
    %c0_i32_0 = arith.constant 0 : i32
    %c0_i32_1 = arith.constant 0 : i32
    return %c0_i32, %arg0, %c0_i32_0 : i32, i32, i32
  }
}

module attributes {stable_mosaic.version = 11 : i64} {
  func.func @_bigru_kernel(%arg0: i32, %arg1: memref<4x16x384xbf16, #tpu.memory_space<vmem>>, %arg2: memref<384x768xbf16, #tpu.memory_space<vmem>>, %arg3: memref<1x768xf32, #tpu.memory_space<vmem>>, %arg4: memref<2x128x384xbf16, #tpu.memory_space<vmem>>, %arg5: memref<2x1x384xf32, #tpu.memory_space<vmem>>, %arg6: memref<4x16x1xf32, #tpu.memory_space<vmem>>, %arg7: memref<4x16x256xbf16, #tpu.memory_space<vmem>>, %arg8: memref<64x768xf32, #tpu.memory_space<vmem>>, %arg9: memref<16x128xf32, #tpu.memory_space<vmem>>) attributes {dimension_semantics = [#tpu.dimension_semantics<parallel>], iteration_bounds = array<i64: 1>, scalar_prefetch = 0 : i64, scratch_operands = 2 : i64, tpu.core_type = #tpu.core_type<tc>, window_params = [{transform_indices = @transform_0, window_bounds = array<i64: 4, 16, 384>}, {pipeline_mode = #tpu.pipeline_mode<synchronous>, transform_indices = @transform_1, window_bounds = array<i64: 384, 768>}, {pipeline_mode = #tpu.pipeline_mode<synchronous>, transform_indices = @transform_2, window_bounds = array<i64: 1, 768>}, {pipeline_mode = #tpu.pipeline_mode<synchronous>, transform_indices = @transform_3, window_bounds = array<i64: 2, 128, 384>}, {pipeline_mode = #tpu.pipeline_mode<synchronous>, transform_indices = @transform_4, window_bounds = array<i64: 2, 1, 384>}, {transform_indices = @transform_5, window_bounds = array<i64: 4, 16, 1>}, {transform_indices = @transform_6, window_bounds = array<i64: 4, 16, 256>}]} {
    %c0 = arith.constant 0 : index
    %c0_0 = arith.constant 0 : index
    %c0_1 = arith.constant 0 : index
    %0 = vector.load %arg1[%c0, %c0_0, %c0_1] : memref<4x16x384xbf16, #tpu.memory_space<vmem>>, vector<4x16x384xbf16>
    %1 = vector.shape_cast %0 : vector<4x16x384xbf16> to vector<64x384xbf16>
    %c0_2 = arith.constant 0 : index
    %c0_3 = arith.constant 0 : index
    %2 = vector.load %arg2[%c0_2, %c0_3] : memref<384x768xbf16, #tpu.memory_space<vmem>>, vector<384x768xbf16>
    %cst = arith.constant dense<0.000000e+00> : vector<64x768xf32>
    %3 = tpu.matmul %1, %2, %cst {dimension_numbers = #tpu.dot_dimension_numbers<[1], [0], [0], [1], [0, 0, 1, 1], [], []>} : vector<64x384xbf16>, vector<384x768xbf16>, vector<64x768xf32> -> vector<64x768xf32>
    %c0_4 = arith.constant 0 : index
    %c0_5 = arith.constant 0 : index
    %4 = vector.load %arg3[%c0_4, %c0_5] : memref<1x768xf32, #tpu.memory_space<vmem>>, vector<1x768xf32>
    %5 = vector.broadcast %4 : vector<1x768xf32> to vector<64x768xf32>
    %6 = arith.addf %3, %5 : vector<64x768xf32>
    %c0_6 = arith.constant 0 : index
    %c0_7 = arith.constant 0 : index
    %7 = vector.load %arg8[%c0_6, %c0_7] : memref<64x768xf32, #tpu.memory_space<vmem>>, vector<64x768xf32>
    tpu.vector_store %arg8[%c0_6, %c0_7], %6 {strides = array<i32>} : memref<64x768xf32, #tpu.memory_space<vmem>>, vector<64x768xf32>,
    %c0_8 = arith.constant 0 : index
    %c0_9 = arith.constant 0 : index
    %c0_10 = arith.constant 0 : index
    %8 = vector.load %arg4[%c0_8, %c0_9, %c0_10] : memref<2x128x384xbf16, #tpu.memory_space<vmem>>, vector<1x128x384xbf16>
    %9 = vector.shape_cast %8 : vector<1x128x384xbf16> to vector<128x384xbf16>
    %c0_11 = arith.constant 0 : index
    %c0_12 = arith.constant 0 : index
    %c0_13 = arith.constant 0 : index
    %10 = vector.load %arg5[%c0_11, %c0_12, %c0_13] : memref<2x1x384xf32, #tpu.memory_space<vmem>>, vector<1x1x384xf32>
    %11 = vector.shape_cast %10 : vector<1x1x384xf32> to vector<1x384xf32>
    %cst_14 = arith.constant 0.000000e+00 : f32
    %12 = vector.broadcast %cst_14 : f32 to vector<16x128xf32>
    %c0_15 = arith.constant 0 : index
    %c0_16 = arith.constant 0 : index
    %13 = vector.load %arg9[%c0_15, %c0_16] : memref<16x128xf32, #tpu.memory_space<vmem>>, vector<16x128xf32>
    tpu.vector_store %arg9[%c0_15, %c0_16], %12 {strides = array<i32>} : memref<16x128xf32, #tpu.memory_space<vmem>>, vector<16x128xf32>,
    %c0_i32 = arith.constant 0 : i32
    %c16_i32 = arith.constant 16 : i32
    %14 = arith.muli %c0_i32, %c16_i32 : i32
    %15 = tpu.assume_multiple %14, 16 : i32
    %16 = arith.index_cast %15 : i32 to index
    %c0_17 = arith.constant 0 : index
    %17 = vector.load %arg8[%16, %c0_17] : memref<64x768xf32, #tpu.memory_space<vmem>>, vector<16x384xf32>
    %c0_18 = arith.constant 0 : index
    %c0_19 = arith.constant 0 : index
    %18 = vector.load %arg9[%c0_18, %c0_19] : memref<16x128xf32, #tpu.memory_space<vmem>>, vector<16x128xf32>
    %19 = arith.truncf %18 : vector<16x128xf32> to vector<16x128xbf16>
    %cst_20 = arith.constant dense<0.000000e+00> : vector<16x384xf32>
    %20 = tpu.matmul %19, %9, %cst_20 {dimension_numbers = #tpu.dot_dimension_numbers<[1], [0], [0], [1], [0, 0, 1, 1], [], []>} : vector<16x128xbf16>, vector<128x384xbf16>, vector<16x384xf32> -> vector<16x384xf32>
    %21 = vector.broadcast %11 : vector<1x384xf32> to vector<16x384xf32>
    %22 = arith.addf %20, %21 : vector<16x384xf32>
    %23 = vector.extract_strided_slice %17 {offsets = [0, 0], sizes = [16, 128], strides = [1, 1]} : vector<16x384xf32> to vector<16x128xf32>
    %24 = vector.extract_strided_slice %22 {offsets = [0, 0], sizes = [16, 128], strides = [1, 1]} : vector<16x384xf32> to vector<16x128xf32>
    %25 = arith.addf %23, %24 : vector<16x128xf32>
    %26 = arith.negf %25 : vector<16x128xf32>
    %27 = math.exp %26 : vector<16x128xf32>
    %cst_21 = arith.constant 1.000000e+00 : f32
    %28 = vector.broadcast %cst_21 : f32 to vector<16x128xf32>
    %29 = arith.addf %28, %27 : vector<16x128xf32>
    %30 = arith.divf %28, %29 : vector<16x128xf32>
    %31 = vector.extract_strided_slice %17 {offsets = [0, 128], sizes = [16, 128], strides = [1, 1]} : vector<16x384xf32> to vector<16x128xf32>
    %32 = vector.extract_strided_slice %22 {offsets = [0, 128], sizes = [16, 128], strides = [1, 1]} : vector<16x384xf32> to vector<16x128xf32>
    %33 = arith.addf %31, %32 : vector<16x128xf32>
    %34 = arith.negf %33 : vector<16x128xf32>
    %35 = math.exp %34 : vector<16x128xf32>
    %cst_22 = arith.constant 1.000000e+00 : f32
    %36 = vector.broadcast %cst_22 : f32 to vector<16x128xf32>
    %37 = arith.addf %36, %35 : vector<16x128xf32>
    %38 = arith.divf %36, %37 : vector<16x128xf32>
    %39 = vector.extract_strided_slice %17 {offsets = [0, 256], sizes = [16, 128], strides = [1, 1]} : vector<16x384xf32> to vector<16x128xf32>
    %40 = vector.extract_strided_slice %22 {offsets = [0, 256], sizes = [16, 128], strides = [1, 1]} : vector<16x384xf32> to vector<16x128xf32>
    %41 = arith.mulf %30, %40 : vector<16x128xf32>
    %42 = arith.addf %39, %41 : vector<16x128xf32>
    %43 = math.tanh %42 : vector<16x128xf32>
    %cst_23 = arith.constant 1.000000e+00 : f32
    %44 = vector.broadcast %cst_23 : f32 to vector<16x128xf32>
    %45 = arith.subf %44, %38 : vector<16x128xf32>
    %46 = arith.mulf %45, %43 : vector<16x128xf32>
    %47 = arith.mulf %38, %18 : vector<16x128xf32>
    %48 = arith.addf %46, %47 : vector<16x128xf32>
    %49 = arith.index_cast %c0_i32 : i32 to index
    %c0_24 = arith.constant 0 : index
    %c0_25 = arith.constant 0 : index
    %50 = vector.load %arg6[%49, %c0_24, %c0_25] : memref<4x16x1xf32, #tpu.memory_space<vmem>>, vector<1x16x1xf32>
    %51 = vector.shape_cast %50 : vector<1x16x1xf32> to vector<16x1xf32>
    %cst_26 = arith.constant 0.000000e+00 : f32
    %52 = vector.broadcast %cst_26 : f32 to vector<16x1xf32>
    %53 = arith.cmpf ogt, %51, %52 : vector<16x1xf32>
    %54 = vector.shape_cast %53 : vector<16x1xi1> to vector<16x1xi1>
    %55 = vector.broadcast %54 : vector<16x1xi1> to vector<16x128xi1>
    %56 = arith.select %55, %48, %18 : vector<16x128xi1>, vector<16x128xf32>
    %c0_27 = arith.constant 0 : index
    %c0_28 = arith.constant 0 : index
    %57 = vector.load %arg9[%c0_27, %c0_28] : memref<16x128xf32, #tpu.memory_space<vmem>>, vector<16x128xf32>
    tpu.vector_store %arg9[%c0_27, %c0_28], %56 {strides = array<i32>} : memref<16x128xf32, #tpu.memory_space<vmem>>, vector<16x128xf32>,
    %cst_29 = arith.constant 0.000000e+00 : f32
    %58 = vector.shape_cast %53 : vector<16x1xi1> to vector<16x1xi1>
    %59 = vector.broadcast %58 : vector<16x1xi1> to vector<16x128xi1>
    %60 = vector.broadcast %cst_29 : f32 to vector<16x128xf32>
    %61 = arith.select %59, %48, %60 : vector<16x128xi1>, vector<16x128xf32>
    %62 = arith.truncf %61 : vector<16x128xf32> to vector<16x128xbf16>
    %63 = arith.index_cast %c0_i32 : i32 to index
    %c0_30 = arith.constant 0 : index
    %c0_31 = arith.constant 0 : index
    %64 = vector.load %arg7[%63, %c0_30, %c0_31] : memref<4x16x256xbf16, #tpu.memory_space<vmem>>, vector<1x16x128xbf16>
    %65 = vector.shape_cast %64 : vector<1x16x128xbf16> to vector<16x128xbf16>
    %66 = vector.shape_cast %62 : vector<16x128xbf16> to vector<1x16x128xbf16>
    tpu.vector_store %arg7[%63, %c0_30, %c0_31], %66 {strides = array<i32>} : memref<4x16x256xbf16, #tpu.memory_space<vmem>>, vector<1x16x128xbf16>,
    %c1_i32 = arith.constant 1 : i32
    %c16_i32_32 = arith.constant 16 : i32
    %67 = arith.muli %c1_i32, %c16_i32_32 : i32
    %68 = tpu.assume_multiple %67, 16 : i32
    %69 = arith.index_cast %68 : i32 to index
    %c0_33 = arith.constant 0 : index
    %70 = vector.load %arg8[%69, %c0_33] : memref<64x768xf32, #tpu.memory_space<vmem>>, vector<16x384xf32>
    %c0_34 = arith.constant 0 : index
    %c0_35 = arith.constant 0 : index
    %71 = vector.load %arg9[%c0_34, %c0_35] : memref<16x128xf32, #tpu.memory_space<vmem>>, vector<16x128xf32>
    %72 = arith.truncf %71 : vector<16x128xf32> to vector<16x128xbf16>
    %cst_36 = arith.constant dense<0.000000e+00> : vector<16x384xf32>
    %73 = tpu.matmul %72, %9, %cst_36 {dimension_numbers = #tpu.dot_dimension_numbers<[1], [0], [0], [1], [0, 0, 1, 1], [], []>} : vector<16x128xbf16>, vector<128x384xbf16>, vector<16x384xf32> -> vector<16x384xf32>
    %74 = vector.broadcast %11 : vector<1x384xf32> to vector<16x384xf32>
    %75 = arith.addf %73, %74 : vector<16x384xf32>
    %76 = vector.extract_strided_slice %70 {offsets = [0, 0], sizes = [16, 128], strides = [1, 1]} : vector<16x384xf32> to vector<16x128xf32>
    %77 = vector.extract_strided_slice %75 {offsets = [0, 0], sizes = [16, 128], strides = [1, 1]} : vector<16x384xf32> to vector<16x128xf32>
    %78 = arith.addf %76, %77 : vector<16x128xf32>
    %79 = arith.negf %78 : vector<16x128xf32>
    %80 = math.exp %79 : vector<16x128xf32>
    %cst_37 = arith.constant 1.000000e+00 : f32
    %81 = vector.broadcast %cst_37 : f32 to vector<16x128xf32>
    %82 = arith.addf %81, %80 : vector<16x128xf32>
    %83 = arith.divf %81, %82 : vector<16x128xf32>
    %84 = vector.extract_strided_slice %70 {offsets = [0, 128], sizes = [16, 128], strides = [1, 1]} : vector<16x384xf32> to vector<16x128xf32>
    %85 = vector.extract_strided_slice %75 {offsets = [0, 128], sizes = [16, 128], strides = [1, 1]} : vector<16x384xf32> to vector<16x128xf32>
    %86 = arith.addf %84, %85 : vector<16x128xf32>
    %87 = arith.negf %86 : vector<16x128xf32>
    %88 = math.exp %87 : vector<16x128xf32>
    %cst_38 = arith.constant 1.000000e+00 : f32
    %89 = vector.broadcast %cst_38 : f32 to vector<16x128xf32>
    %90 = arith.addf %89, %88 : vector<16x128xf32>
    %91 = arith.divf %89, %90 : vector<16x128xf32>
    %92 = vector.extract_strided_slice %70 {offsets = [0, 256], sizes = [16, 128], strides = [1, 1]} : vector<16x384xf32> to vector<16x128xf32>
    %93 = vector.extract_strided_slice %75 {offsets = [0, 256], sizes = [16, 128], strides = [1, 1]} : vector<16x384xf32> to vector<16x128xf32>
    %94 = arith.mulf %83, %93 : vector<16x128xf32>
    %95 = arith.addf %92, %94 : vector<16x128xf32>
    %96 = math.tanh %95 : vector<16x128xf32>
    %cst_39 = arith.constant 1.000000e+00 : f32
    %97 = vector.broadcast %cst_39 : f32 to vector<16x128xf32>
    %98 = arith.subf %97, %91 : vector<16x128xf32>
    %99 = arith.mulf %98, %96 : vector<16x128xf32>
    %100 = arith.mulf %91, %71 : vector<16x128xf32>
    %101 = arith.addf %99, %100 : vector<16x128xf32>
    %102 = arith.index_cast %c1_i32 : i32 to index
    %c0_40 = arith.constant 0 : index
    %c0_41 = arith.constant 0 : index
    %103 = vector.load %arg6[%102, %c0_40, %c0_41] : memref<4x16x1xf32, #tpu.memory_space<vmem>>, vector<1x16x1xf32>
    %104 = vector.shape_cast %103 : vector<1x16x1xf32> to vector<16x1xf32>
    %cst_42 = arith.constant 0.000000e+00 : f32
    %105 = vector.broadcast %cst_42 : f32 to vector<16x1xf32>
    %106 = arith.cmpf ogt, %104, %105 : vector<16x1xf32>
    %107 = vector.shape_cast %106 : vector<16x1xi1> to vector<16x1xi1>
    %108 = vector.broadcast %107 : vector<16x1xi1> to vector<16x128xi1>
    %109 = arith.select %108, %101, %71 : vector<16x128xi1>, vector<16x128xf32>
    %c0_43 = arith.constant 0 : index
    %c0_44 = arith.constant 0 : index
    %110 = vector.load %arg9[%c0_43, %c0_44] : memref<16x128xf32, #tpu.memory_space<vmem>>, vector<16x128xf32>
    tpu.vector_store %arg9[%c0_43, %c0_44], %109 {strides = array<i32>} : memref<16x128xf32, #tpu.memory_space<vmem>>, vector<16x128xf32>,
    %cst_45 = arith.constant 0.000000e+00 : f32
    %111 = vector.shape_cast %106 : vector<16x1xi1> to vector<16x1xi1>
    %112 = vector.broadcast %111 : vector<16x1xi1> to vector<16x128xi1>
    %113 = vector.broadcast %cst_45 : f32 to vector<16x128xf32>
    %114 = arith.select %112, %101, %113 : vector<16x128xi1>, vector<16x128xf32>
    %115 = arith.truncf %114 : vector<16x128xf32> to vector<16x128xbf16>
    %116 = arith.index_cast %c1_i32 : i32 to index
    %c0_46 = arith.constant 0 : index
    %c0_47 = arith.constant 0 : index
    %117 = vector.load %arg7[%116, %c0_46, %c0_47] : memref<4x16x256xbf16, #tpu.memory_space<vmem>>, vector<1x16x128xbf16>
    %118 = vector.shape_cast %117 : vector<1x16x128xbf16> to vector<16x128xbf16>
    %119 = vector.shape_cast %115 : vector<16x128xbf16> to vector<1x16x128xbf16>
    tpu.vector_store %arg7[%116, %c0_46, %c0_47], %119 {strides = array<i32>} : memref<4x16x256xbf16, #tpu.memory_space<vmem>>, vector<1x16x128xbf16>,
    %c2_i32 = arith.constant 2 : i32
    %c16_i32_48 = arith.constant 16 : i32
    %120 = arith.muli %c2_i32, %c16_i32_48 : i32
    %121 = tpu.assume_multiple %120, 16 : i32
    %122 = arith.index_cast %121 : i32 to index
    %c0_49 = arith.constant 0 : index
    %123 = vector.load %arg8[%122, %c0_49] : memref<64x768xf32, #tpu.memory_space<vmem>>, vector<16x384xf32>
    %c0_50 = arith.constant 0 : index
    %c0_51 = arith.constant 0 : index
    %124 = vector.load %arg9[%c0_50, %c0_51] : memref<16x128xf32, #tpu.memory_space<vmem>>, vector<16x128xf32>
    %125 = arith.truncf %124 : vector<16x128xf32> to vector<16x128xbf16>
    %cst_52 = arith.constant dense<0.000000e+00> : vector<16x384xf32>
    %126 = tpu.matmul %125, %9, %cst_52 {dimension_numbers = #tpu.dot_dimension_numbers<[1], [0], [0], [1], [0, 0, 1, 1], [], []>} : vector<16x128xbf16>, vector<128x384xbf16>, vector<16x384xf32> -> vector<16x384xf32>
    %127 = vector.broadcast %11 : vector<1x384xf32> to vector<16x384xf32>
    %128 = arith.addf %126, %127 : vector<16x384xf32>
    %129 = vector.extract_strided_slice %123 {offsets = [0, 0], sizes = [16, 128], strides = [1, 1]} : vector<16x384xf32> to vector<16x128xf32>
    %130 = vector.extract_strided_slice %128 {offsets = [0, 0], sizes = [16, 128], strides = [1, 1]} : vector<16x384xf32> to vector<16x128xf32>
    %131 = arith.addf %129, %130 : vector<16x128xf32>
    %132 = arith.negf %131 : vector<16x128xf32>
    %133 = math.exp %132 : vector<16x128xf32>
    %cst_53 = arith.constant 1.000000e+00 : f32
    %134 = vector.broadcast %cst_53 : f32 to vector<16x128xf32>
    %135 = arith.addf %134, %133 : vector<16x128xf32>
    %136 = arith.divf %134, %135 : vector<16x128xf32>
    %137 = vector.extract_strided_slice %123 {offsets = [0, 128], sizes = [16, 128], strides = [1, 1]} : vector<16x384xf32> to vector<16x128xf32>
    %138 = vector.extract_strided_slice %128 {offsets = [0, 128], sizes = [16, 128], strides = [1, 1]} : vector<16x384xf32> to vector<16x128xf32>
    %139 = arith.addf %137, %138 : vector<16x128xf32>
    %140 = arith.negf %139 : vector<16x128xf32>
    %141 = math.exp %140 : vector<16x128xf32>
    %cst_54 = arith.constant 1.000000e+00 : f32
    %142 = vector.broadcast %cst_54 : f32 to vector<16x128xf32>
    %143 = arith.addf %142, %141 : vector<16x128xf32>
    %144 = arith.divf %142, %143 : vector<16x128xf32>
    %145 = vector.extract_strided_slice %123 {offsets = [0, 256], sizes = [16, 128], strides = [1, 1]} : vector<16x384xf32> to vector<16x128xf32>
    %146 = vector.extract_strided_slice %128 {offsets = [0, 256], sizes = [16, 128], strides = [1, 1]} : vector<16x384xf32> to vector<16x128xf32>
    %147 = arith.mulf %136, %146 : vector<16x128xf32>
    %148 = arith.addf %145, %147 : vector<16x128xf32>
    %149 = math.tanh %148 : vector<16x128xf32>
    %cst_55 = arith.constant 1.000000e+00 : f32
    %150 = vector.broadcast %cst_55 : f32 to vector<16x128xf32>
    %151 = arith.subf %150, %144 : vector<16x128xf32>
    %152 = arith.mulf %151, %149 : vector<16x128xf32>
    %153 = arith.mulf %144, %124 : vector<16x128xf32>
    %154 = arith.addf %152, %153 : vector<16x128xf32>
    %155 = arith.index_cast %c2_i32 : i32 to index
    %c0_56 = arith.constant 0 : index
    %c0_57 = arith.constant 0 : index
    %156 = vector.load %arg6[%155, %c0_56, %c0_57] : memref<4x16x1xf32, #tpu.memory_space<vmem>>, vector<1x16x1xf32>
    %157 = vector.shape_cast %156 : vector<1x16x1xf32> to vector<16x1xf32>
    %cst_58 = arith.constant 0.000000e+00 : f32
    %158 = vector.broadcast %cst_58 : f32 to vector<16x1xf32>
    %159 = arith.cmpf ogt, %157, %158 : vector<16x1xf32>
    %160 = vector.shape_cast %159 : vector<16x1xi1> to vector<16x1xi1>
    %161 = vector.broadcast %160 : vector<16x1xi1> to vector<16x128xi1>
    %162 = arith.select %161, %154, %124 : vector<16x128xi1>, vector<16x128xf32>
    %c0_59 = arith.constant 0 : index
    %c0_60 = arith.constant 0 : index
    %163 = vector.load %arg9[%c0_59, %c0_60] : memref<16x128xf32, #tpu.memory_space<vmem>>, vector<16x128xf32>
    tpu.vector_store %arg9[%c0_59, %c0_60], %162 {strides = array<i32>} : memref<16x128xf32, #tpu.memory_space<vmem>>, vector<16x128xf32>,
    %cst_61 = arith.constant 0.000000e+00 : f32
    %164 = vector.shape_cast %159 : vector<16x1xi1> to vector<16x1xi1>
    %165 = vector.broadcast %164 : vector<16x1xi1> to vector<16x128xi1>
    %166 = vector.broadcast %cst_61 : f32 to vector<16x128xf32>
    %167 = arith.select %165, %154, %166 : vector<16x128xi1>, vector<16x128xf32>
    %168 = arith.truncf %167 : vector<16x128xf32> to vector<16x128xbf16>
    %169 = arith.index_cast %c2_i32 : i32 to index
    %c0_62 = arith.constant 0 : index
    %c0_63 = arith.constant 0 : index
    %170 = vector.load %arg7[%169, %c0_62, %c0_63] : memref<4x16x256xbf16, #tpu.memory_space<vmem>>, vector<1x16x128xbf16>
    %171 = vector.shape_cast %170 : vector<1x16x128xbf16> to vector<16x128xbf16>
    %172 = vector.shape_cast %168 : vector<16x128xbf16> to vector<1x16x128xbf16>
    tpu.vector_store %arg7[%169, %c0_62, %c0_63], %172 {strides = array<i32>} : memref<4x16x256xbf16, #tpu.memory_space<vmem>>, vector<1x16x128xbf16>,
    %c3_i32 = arith.constant 3 : i32
    %c16_i32_64 = arith.constant 16 : i32
    %173 = arith.muli %c3_i32, %c16_i32_64 : i32
    %174 = tpu.assume_multiple %173, 16 : i32
    %175 = arith.index_cast %174 : i32 to index
    %c0_65 = arith.constant 0 : index
    %176 = vector.load %arg8[%175, %c0_65] : memref<64x768xf32, #tpu.memory_space<vmem>>, vector<16x384xf32>
    %c0_66 = arith.constant 0 : index
    %c0_67 = arith.constant 0 : index
    %177 = vector.load %arg9[%c0_66, %c0_67] : memref<16x128xf32, #tpu.memory_space<vmem>>, vector<16x128xf32>
    %178 = arith.truncf %177 : vector<16x128xf32> to vector<16x128xbf16>
    %cst_68 = arith.constant dense<0.000000e+00> : vector<16x384xf32>
    %179 = tpu.matmul %178, %9, %cst_68 {dimension_numbers = #tpu.dot_dimension_numbers<[1], [0], [0], [1], [0, 0, 1, 1], [], []>} : vector<16x128xbf16>, vector<128x384xbf16>, vector<16x384xf32> -> vector<16x384xf32>
    %180 = vector.broadcast %11 : vector<1x384xf32> to vector<16x384xf32>
    %181 = arith.addf %179, %180 : vector<16x384xf32>
    %182 = vector.extract_strided_slice %176 {offsets = [0, 0], sizes = [16, 128], strides = [1, 1]} : vector<16x384xf32> to vector<16x128xf32>
    %183 = vector.extract_strided_slice %181 {offsets = [0, 0], sizes = [16, 128], strides = [1, 1]} : vector<16x384xf32> to vector<16x128xf32>
    %184 = arith.addf %182, %183 : vector<16x128xf32>
    %185 = arith.negf %184 : vector<16x128xf32>
    %186 = math.exp %185 : vector<16x128xf32>
    %cst_69 = arith.constant 1.000000e+00 : f32
    %187 = vector.broadcast %cst_69 : f32 to vector<16x128xf32>
    %188 = arith.addf %187, %186 : vector<16x128xf32>
    %189 = arith.divf %187, %188 : vector<16x128xf32>
    %190 = vector.extract_strided_slice %176 {offsets = [0, 128], sizes = [16, 128], strides = [1, 1]} : vector<16x384xf32> to vector<16x128xf32>
    %191 = vector.extract_strided_slice %181 {offsets = [0, 128], sizes = [16, 128], strides = [1, 1]} : vector<16x384xf32> to vector<16x128xf32>
    %192 = arith.addf %190, %191 : vector<16x128xf32>
    %193 = arith.negf %192 : vector<16x128xf32>
    %194 = math.exp %193 : vector<16x128xf32>
    %cst_70 = arith.constant 1.000000e+00 : f32
    %195 = vector.broadcast %cst_70 : f32 to vector<16x128xf32>
    %196 = arith.addf %195, %194 : vector<16x128xf32>
    %197 = arith.divf %195, %196 : vector<16x128xf32>
    %198 = vector.extract_strided_slice %176 {offsets = [0, 256], sizes = [16, 128], strides = [1, 1]} : vector<16x384xf32> to vector<16x128xf32>
    %199 = vector.extract_strided_slice %181 {offsets = [0, 256], sizes = [16, 128], strides = [1, 1]} : vector<16x384xf32> to vector<16x128xf32>
    %200 = arith.mulf %189, %199 : vector<16x128xf32>
    %201 = arith.addf %198, %200 : vector<16x128xf32>
    %202 = math.tanh %201 : vector<16x128xf32>
    %cst_71 = arith.constant 1.000000e+00 : f32
    %203 = vector.broadcast %cst_71 : f32 to vector<16x128xf32>
    %204 = arith.subf %203, %197 : vector<16x128xf32>
    %205 = arith.mulf %204, %202 : vector<16x128xf32>
    %206 = arith.mulf %197, %177 : vector<16x128xf32>
    %207 = arith.addf %205, %206 : vector<16x128xf32>
    %208 = arith.index_cast %c3_i32 : i32 to index
    %c0_72 = arith.constant 0 : index
    %c0_73 = arith.constant 0 : index
    %209 = vector.load %arg6[%208, %c0_72, %c0_73] : memref<4x16x1xf32, #tpu.memory_space<vmem>>, vector<1x16x1xf32>
    %210 = vector.shape_cast %209 : vector<1x16x1xf32> to vector<16x1xf32>
    %cst_74 = arith.constant 0.000000e+00 : f32
    %211 = vector.broadcast %cst_74 : f32 to vector<16x1xf32>
    %212 = arith.cmpf ogt, %210, %211 : vector<16x1xf32>
    %213 = vector.shape_cast %212 : vector<16x1xi1> to vector<16x1xi1>
    %214 = vector.broadcast %213 : vector<16x1xi1> to vector<16x128xi1>
    %215 = arith.select %214, %207, %177 : vector<16x128xi1>, vector<16x128xf32>
    %c0_75 = arith.constant 0 : index
    %c0_76 = arith.constant 0 : index
    %216 = vector.load %arg9[%c0_75, %c0_76] : memref<16x128xf32, #tpu.memory_space<vmem>>, vector<16x128xf32>
    tpu.vector_store %arg9[%c0_75, %c0_76], %215 {strides = array<i32>} : memref<16x128xf32, #tpu.memory_space<vmem>>, vector<16x128xf32>,
    %cst_77 = arith.constant 0.000000e+00 : f32
    %217 = vector.shape_cast %212 : vector<16x1xi1> to vector<16x1xi1>
    %218 = vector.broadcast %217 : vector<16x1xi1> to vector<16x128xi1>
    %219 = vector.broadcast %cst_77 : f32 to vector<16x128xf32>
    %220 = arith.select %218, %207, %219 : vector<16x128xi1>, vector<16x128xf32>
    %221 = arith.truncf %220 : vector<16x128xf32> to vector<16x128xbf16>
    %222 = arith.index_cast %c3_i32 : i32 to index
    %c0_78 = arith.constant 0 : index
    %c0_79 = arith.constant 0 : index
    %223 = vector.load %arg7[%222, %c0_78, %c0_79] : memref<4x16x256xbf16, #tpu.memory_space<vmem>>, vector<1x16x128xbf16>
    %224 = vector.shape_cast %223 : vector<1x16x128xbf16> to vector<16x128xbf16>
    %225 = vector.shape_cast %221 : vector<16x128xbf16> to vector<1x16x128xbf16>
    tpu.vector_store %arg7[%222, %c0_78, %c0_79], %225 {strides = array<i32>} : memref<4x16x256xbf16, #tpu.memory_space<vmem>>, vector<1x16x128xbf16>,
    %c4_i32 = arith.constant 4 : i32
    %c1 = arith.constant 1 : index
    %c0_80 = arith.constant 0 : index
    %c0_81 = arith.constant 0 : index
    %226 = vector.load %arg4[%c1, %c0_80, %c0_81] : memref<2x128x384xbf16, #tpu.memory_space<vmem>>, vector<1x128x384xbf16>
    %227 = vector.shape_cast %226 : vector<1x128x384xbf16> to vector<128x384xbf16>
    %c1_82 = arith.constant 1 : index
    %c0_83 = arith.constant 0 : index
    %c0_84 = arith.constant 0 : index
    %228 = vector.load %arg5[%c1_82, %c0_83, %c0_84] : memref<2x1x384xf32, #tpu.memory_space<vmem>>, vector<1x1x384xf32>
    %229 = vector.shape_cast %228 : vector<1x1x384xf32> to vector<1x384xf32>
    %cst_85 = arith.constant 0.000000e+00 : f32
    %230 = vector.broadcast %cst_85 : f32 to vector<16x128xf32>
    %c0_86 = arith.constant 0 : index
    %c0_87 = arith.constant 0 : index
    %231 = vector.load %arg9[%c0_86, %c0_87] : memref<16x128xf32, #tpu.memory_space<vmem>>, vector<16x128xf32>
    tpu.vector_store %arg9[%c0_86, %c0_87], %230 {strides = array<i32>} : memref<16x128xf32, #tpu.memory_space<vmem>>, vector<16x128xf32>,
    %c0_i32_88 = arith.constant 0 : i32
    %c3_i32_89 = arith.constant 3 : i32
    %232 = arith.subi %c3_i32_89, %c0_i32_88 : i32
    %c16_i32_90 = arith.constant 16 : i32
    %233 = arith.muli %232, %c16_i32_90 : i32
    %234 = tpu.assume_multiple %233, 16 : i32
    %235 = arith.index_cast %234 : i32 to index
    %c384 = arith.constant 384 : index
    %236 = vector.load %arg8[%235, %c384] : memref<64x768xf32, #tpu.memory_space<vmem>>, vector<16x384xf32>
    %c0_91 = arith.constant 0 : index
    %c0_92 = arith.constant 0 : index
    %237 = vector.load %arg9[%c0_91, %c0_92] : memref<16x128xf32, #tpu.memory_space<vmem>>, vector<16x128xf32>
    %238 = arith.truncf %237 : vector<16x128xf32> to vector<16x128xbf16>
    %cst_93 = arith.constant dense<0.000000e+00> : vector<16x384xf32>
    %239 = tpu.matmul %238, %227, %cst_93 {dimension_numbers = #tpu.dot_dimension_numbers<[1], [0], [0], [1], [0, 0, 1, 1], [], []>} : vector<16x128xbf16>, vector<128x384xbf16>, vector<16x384xf32> -> vector<16x384xf32>
    %240 = vector.broadcast %229 : vector<1x384xf32> to vector<16x384xf32>
    %241 = arith.addf %239, %240 : vector<16x384xf32>
    %242 = vector.extract_strided_slice %236 {offsets = [0, 0], sizes = [16, 128], strides = [1, 1]} : vector<16x384xf32> to vector<16x128xf32>
    %243 = vector.extract_strided_slice %241 {offsets = [0, 0], sizes = [16, 128], strides = [1, 1]} : vector<16x384xf32> to vector<16x128xf32>
    %244 = arith.addf %242, %243 : vector<16x128xf32>
    %245 = arith.negf %244 : vector<16x128xf32>
    %246 = math.exp %245 : vector<16x128xf32>
    %cst_94 = arith.constant 1.000000e+00 : f32
    %247 = vector.broadcast %cst_94 : f32 to vector<16x128xf32>
    %248 = arith.addf %247, %246 : vector<16x128xf32>
    %249 = arith.divf %247, %248 : vector<16x128xf32>
    %250 = vector.extract_strided_slice %236 {offsets = [0, 128], sizes = [16, 128], strides = [1, 1]} : vector<16x384xf32> to vector<16x128xf32>
    %251 = vector.extract_strided_slice %241 {offsets = [0, 128], sizes = [16, 128], strides = [1, 1]} : vector<16x384xf32> to vector<16x128xf32>
    %252 = arith.addf %250, %251 : vector<16x128xf32>
    %253 = arith.negf %252 : vector<16x128xf32>
    %254 = math.exp %253 : vector<16x128xf32>
    %cst_95 = arith.constant 1.000000e+00 : f32
    %255 = vector.broadcast %cst_95 : f32 to vector<16x128xf32>
    %256 = arith.addf %255, %254 : vector<16x128xf32>
    %257 = arith.divf %255, %256 : vector<16x128xf32>
    %258 = vector.extract_strided_slice %236 {offsets = [0, 256], sizes = [16, 128], strides = [1, 1]} : vector<16x384xf32> to vector<16x128xf32>
    %259 = vector.extract_strided_slice %241 {offsets = [0, 256], sizes = [16, 128], strides = [1, 1]} : vector<16x384xf32> to vector<16x128xf32>
    %260 = arith.mulf %249, %259 : vector<16x128xf32>
    %261 = arith.addf %258, %260 : vector<16x128xf32>
    %262 = math.tanh %261 : vector<16x128xf32>
    %cst_96 = arith.constant 1.000000e+00 : f32
    %263 = vector.broadcast %cst_96 : f32 to vector<16x128xf32>
    %264 = arith.subf %263, %257 : vector<16x128xf32>
    %265 = arith.mulf %264, %262 : vector<16x128xf32>
    %266 = arith.mulf %257, %237 : vector<16x128xf32>
    %267 = arith.addf %265, %266 : vector<16x128xf32>
    %268 = arith.index_cast %232 : i32 to index
    %c0_97 = arith.constant 0 : index
    %c0_98 = arith.constant 0 : index
    %269 = vector.load %arg6[%268, %c0_97, %c0_98] : memref<4x16x1xf32, #tpu.memory_space<vmem>>, vector<1x16x1xf32>
    %270 = vector.shape_cast %269 : vector<1x16x1xf32> to vector<16x1xf32>
    %cst_99 = arith.constant 0.000000e+00 : f32
    %271 = vector.broadcast %cst_99 : f32 to vector<16x1xf32>
    %272 = arith.cmpf ogt, %270, %271 : vector<16x1xf32>
    %273 = vector.shape_cast %272 : vector<16x1xi1> to vector<16x1xi1>
    %274 = vector.broadcast %273 : vector<16x1xi1> to vector<16x128xi1>
    %275 = arith.select %274, %267, %237 : vector<16x128xi1>, vector<16x128xf32>
    %c0_100 = arith.constant 0 : index
    %c0_101 = arith.constant 0 : index
    %276 = vector.load %arg9[%c0_100, %c0_101] : memref<16x128xf32, #tpu.memory_space<vmem>>, vector<16x128xf32>
    tpu.vector_store %arg9[%c0_100, %c0_101], %275 {strides = array<i32>} : memref<16x128xf32, #tpu.memory_space<vmem>>, vector<16x128xf32>,
    %cst_102 = arith.constant 0.000000e+00 : f32
    %277 = vector.shape_cast %272 : vector<16x1xi1> to vector<16x1xi1>
    %278 = vector.broadcast %277 : vector<16x1xi1> to vector<16x128xi1>
    %279 = vector.broadcast %cst_102 : f32 to vector<16x128xf32>
    %280 = arith.select %278, %267, %279 : vector<16x128xi1>, vector<16x128xf32>
    %281 = arith.truncf %280 : vector<16x128xf32> to vector<16x128xbf16>
    %282 = arith.index_cast %232 : i32 to index
    %c0_103 = arith.constant 0 : index
    %c128 = arith.constant 128 : index
    %283 = vector.load %arg7[%282, %c0_103, %c128] : memref<4x16x256xbf16, #tpu.memory_space<vmem>>, vector<1x16x128xbf16>
    %284 = vector.shape_cast %283 : vector<1x16x128xbf16> to vector<16x128xbf16>
    %285 = vector.shape_cast %281 : vector<16x128xbf16> to vector<1x16x128xbf16>
    tpu.vector_store %arg7[%282, %c0_103, %c128], %285 {strides = array<i32>} : memref<4x16x256xbf16, #tpu.memory_space<vmem>>, vector<1x16x128xbf16>,
    %c1_i32_104 = arith.constant 1 : i32
    %c3_i32_105 = arith.constant 3 : i32
    %286 = arith.subi %c3_i32_105, %c1_i32_104 : i32
    %c16_i32_106 = arith.constant 16 : i32
    %287 = arith.muli %286, %c16_i32_106 : i32
    %288 = tpu.assume_multiple %287, 16 : i32
    %289 = arith.index_cast %288 : i32 to index
    %c384_107 = arith.constant 384 : index
    %290 = vector.load %arg8[%289, %c384_107] : memref<64x768xf32, #tpu.memory_space<vmem>>, vector<16x384xf32>
    %c0_108 = arith.constant 0 : index
    %c0_109 = arith.constant 0 : index
    %291 = vector.load %arg9[%c0_108, %c0_109] : memref<16x128xf32, #tpu.memory_space<vmem>>, vector<16x128xf32>
    %292 = arith.truncf %291 : vector<16x128xf32> to vector<16x128xbf16>
    %cst_110 = arith.constant dense<0.000000e+00> : vector<16x384xf32>
    %293 = tpu.matmul %292, %227, %cst_110 {dimension_numbers = #tpu.dot_dimension_numbers<[1], [0], [0], [1], [0, 0, 1, 1], [], []>} : vector<16x128xbf16>, vector<128x384xbf16>, vector<16x384xf32> -> vector<16x384xf32>
    %294 = vector.broadcast %229 : vector<1x384xf32> to vector<16x384xf32>
    %295 = arith.addf %293, %294 : vector<16x384xf32>
    %296 = vector.extract_strided_slice %290 {offsets = [0, 0], sizes = [16, 128], strides = [1, 1]} : vector<16x384xf32> to vector<16x128xf32>
    %297 = vector.extract_strided_slice %295 {offsets = [0, 0], sizes = [16, 128], strides = [1, 1]} : vector<16x384xf32> to vector<16x128xf32>
    %298 = arith.addf %296, %297 : vector<16x128xf32>
    %299 = arith.negf %298 : vector<16x128xf32>
    %300 = math.exp %299 : vector<16x128xf32>
    %cst_111 = arith.constant 1.000000e+00 : f32
    %301 = vector.broadcast %cst_111 : f32 to vector<16x128xf32>
    %302 = arith.addf %301, %300 : vector<16x128xf32>
    %303 = arith.divf %301, %302 : vector<16x128xf32>
    %304 = vector.extract_strided_slice %290 {offsets = [0, 128], sizes = [16, 128], strides = [1, 1]} : vector<16x384xf32> to vector<16x128xf32>
    %305 = vector.extract_strided_slice %295 {offsets = [0, 128], sizes = [16, 128], strides = [1, 1]} : vector<16x384xf32> to vector<16x128xf32>
    %306 = arith.addf %304, %305 : vector<16x128xf32>
    %307 = arith.negf %306 : vector<16x128xf32>
    %308 = math.exp %307 : vector<16x128xf32>
    %cst_112 = arith.constant 1.000000e+00 : f32
    %309 = vector.broadcast %cst_112 : f32 to vector<16x128xf32>
    %310 = arith.addf %309, %308 : vector<16x128xf32>
    %311 = arith.divf %309, %310 : vector<16x128xf32>
    %312 = vector.extract_strided_slice %290 {offsets = [0, 256], sizes = [16, 128], strides = [1, 1]} : vector<16x384xf32> to vector<16x128xf32>
    %313 = vector.extract_strided_slice %295 {offsets = [0, 256], sizes = [16, 128], strides = [1, 1]} : vector<16x384xf32> to vector<16x128xf32>
    %314 = arith.mulf %303, %313 : vector<16x128xf32>
    %315 = arith.addf %312, %314 : vector<16x128xf32>
    %316 = math.tanh %315 : vector<16x128xf32>
    %cst_113 = arith.constant 1.000000e+00 : f32
    %317 = vector.broadcast %cst_113 : f32 to vector<16x128xf32>
    %318 = arith.subf %317, %311 : vector<16x128xf32>
    %319 = arith.mulf %318, %316 : vector<16x128xf32>
    %320 = arith.mulf %311, %291 : vector<16x128xf32>
    %321 = arith.addf %319, %320 : vector<16x128xf32>
    %322 = arith.index_cast %286 : i32 to index
    %c0_114 = arith.constant 0 : index
    %c0_115 = arith.constant 0 : index
    %323 = vector.load %arg6[%322, %c0_114, %c0_115] : memref<4x16x1xf32, #tpu.memory_space<vmem>>, vector<1x16x1xf32>
    %324 = vector.shape_cast %323 : vector<1x16x1xf32> to vector<16x1xf32>
    %cst_116 = arith.constant 0.000000e+00 : f32
    %325 = vector.broadcast %cst_116 : f32 to vector<16x1xf32>
    %326 = arith.cmpf ogt, %324, %325 : vector<16x1xf32>
    %327 = vector.shape_cast %326 : vector<16x1xi1> to vector<16x1xi1>
    %328 = vector.broadcast %327 : vector<16x1xi1> to vector<16x128xi1>
    %329 = arith.select %328, %321, %291 : vector<16x128xi1>, vector<16x128xf32>
    %c0_117 = arith.constant 0 : index
    %c0_118 = arith.constant 0 : index
    %330 = vector.load %arg9[%c0_117, %c0_118] : memref<16x128xf32, #tpu.memory_space<vmem>>, vector<16x128xf32>
    tpu.vector_store %arg9[%c0_117, %c0_118], %329 {strides = array<i32>} : memref<16x128xf32, #tpu.memory_space<vmem>>, vector<16x128xf32>,
    %cst_119 = arith.constant 0.000000e+00 : f32
    %331 = vector.shape_cast %326 : vector<16x1xi1> to vector<16x1xi1>
    %332 = vector.broadcast %331 : vector<16x1xi1> to vector<16x128xi1>
    %333 = vector.broadcast %cst_119 : f32 to vector<16x128xf32>
    %334 = arith.select %332, %321, %333 : vector<16x128xi1>, vector<16x128xf32>
    %335 = arith.truncf %334 : vector<16x128xf32> to vector<16x128xbf16>
    %336 = arith.index_cast %286 : i32 to index
    %c0_120 = arith.constant 0 : index
    %c128_121 = arith.constant 128 : index
    %337 = vector.load %arg7[%336, %c0_120, %c128_121] : memref<4x16x256xbf16, #tpu.memory_space<vmem>>, vector<1x16x128xbf16>
    %338 = vector.shape_cast %337 : vector<1x16x128xbf16> to vector<16x128xbf16>
    %339 = vector.shape_cast %335 : vector<16x128xbf16> to vector<1x16x128xbf16>
    tpu.vector_store %arg7[%336, %c0_120, %c128_121], %339 {strides = array<i32>} : memref<4x16x256xbf16, #tpu.memory_space<vmem>>, vector<1x16x128xbf16>,
    %c2_i32_122 = arith.constant 2 : i32
    %c3_i32_123 = arith.constant 3 : i32
    %340 = arith.subi %c3_i32_123, %c2_i32_122 : i32
    %c16_i32_124 = arith.constant 16 : i32
    %341 = arith.muli %340, %c16_i32_124 : i32
    %342 = tpu.assume_multiple %341, 16 : i32
    %343 = arith.index_cast %342 : i32 to index
    %c384_125 = arith.constant 384 : index
    %344 = vector.load %arg8[%343, %c384_125] : memref<64x768xf32, #tpu.memory_space<vmem>>, vector<16x384xf32>
    %c0_126 = arith.constant 0 : index
    %c0_127 = arith.constant 0 : index
    %345 = vector.load %arg9[%c0_126, %c0_127] : memref<16x128xf32, #tpu.memory_space<vmem>>, vector<16x128xf32>
    %346 = arith.truncf %345 : vector<16x128xf32> to vector<16x128xbf16>
    %cst_128 = arith.constant dense<0.000000e+00> : vector<16x384xf32>
    %347 = tpu.matmul %346, %227, %cst_128 {dimension_numbers = #tpu.dot_dimension_numbers<[1], [0], [0], [1], [0, 0, 1, 1], [], []>} : vector<16x128xbf16>, vector<128x384xbf16>, vector<16x384xf32> -> vector<16x384xf32>
    %348 = vector.broadcast %229 : vector<1x384xf32> to vector<16x384xf32>
    %349 = arith.addf %347, %348 : vector<16x384xf32>
    %350 = vector.extract_strided_slice %344 {offsets = [0, 0], sizes = [16, 128], strides = [1, 1]} : vector<16x384xf32> to vector<16x128xf32>
    %351 = vector.extract_strided_slice %349 {offsets = [0, 0], sizes = [16, 128], strides = [1, 1]} : vector<16x384xf32> to vector<16x128xf32>
    %352 = arith.addf %350, %351 : vector<16x128xf32>
    %353 = arith.negf %352 : vector<16x128xf32>
    %354 = math.exp %353 : vector<16x128xf32>
    %cst_129 = arith.constant 1.000000e+00 : f32
    %355 = vector.broadcast %cst_129 : f32 to vector<16x128xf32>
    %356 = arith.addf %355, %354 : vector<16x128xf32>
    %357 = arith.divf %355, %356 : vector<16x128xf32>
    %358 = vector.extract_strided_slice %344 {offsets = [0, 128], sizes = [16, 128], strides = [1, 1]} : vector<16x384xf32> to vector<16x128xf32>
    %359 = vector.extract_strided_slice %349 {offsets = [0, 128], sizes = [16, 128], strides = [1, 1]} : vector<16x384xf32> to vector<16x128xf32>
    %360 = arith.addf %358, %359 : vector<16x128xf32>
    %361 = arith.negf %360 : vector<16x128xf32>
    %362 = math.exp %361 : vector<16x128xf32>
    %cst_130 = arith.constant 1.000000e+00 : f32
    %363 = vector.broadcast %cst_130 : f32 to vector<16x128xf32>
    %364 = arith.addf %363, %362 : vector<16x128xf32>
    %365 = arith.divf %363, %364 : vector<16x128xf32>
    %366 = vector.extract_strided_slice %344 {offsets = [0, 256], sizes = [16, 128], strides = [1, 1]} : vector<16x384xf32> to vector<16x128xf32>
    %367 = vector.extract_strided_slice %349 {offsets = [0, 256], sizes = [16, 128], strides = [1, 1]} : vector<16x384xf32> to vector<16x128xf32>
    %368 = arith.mulf %357, %367 : vector<16x128xf32>
    %369 = arith.addf %366, %368 : vector<16x128xf32>
    %370 = math.tanh %369 : vector<16x128xf32>
    %cst_131 = arith.constant 1.000000e+00 : f32
    %371 = vector.broadcast %cst_131 : f32 to vector<16x128xf32>
    %372 = arith.subf %371, %365 : vector<16x128xf32>
    %373 = arith.mulf %372, %370 : vector<16x128xf32>
    %374 = arith.mulf %365, %345 : vector<16x128xf32>
    %375 = arith.addf %373, %374 : vector<16x128xf32>
    %376 = arith.index_cast %340 : i32 to index
    %c0_132 = arith.constant 0 : index
    %c0_133 = arith.constant 0 : index
    %377 = vector.load %arg6[%376, %c0_132, %c0_133] : memref<4x16x1xf32, #tpu.memory_space<vmem>>, vector<1x16x1xf32>
    %378 = vector.shape_cast %377 : vector<1x16x1xf32> to vector<16x1xf32>
    %cst_134 = arith.constant 0.000000e+00 : f32
    %379 = vector.broadcast %cst_134 : f32 to vector<16x1xf32>
    %380 = arith.cmpf ogt, %378, %379 : vector<16x1xf32>
    %381 = vector.shape_cast %380 : vector<16x1xi1> to vector<16x1xi1>
    %382 = vector.broadcast %381 : vector<16x1xi1> to vector<16x128xi1>
    %383 = arith.select %382, %375, %345 : vector<16x128xi1>, vector<16x128xf32>
    %c0_135 = arith.constant 0 : index
    %c0_136 = arith.constant 0 : index
    %384 = vector.load %arg9[%c0_135, %c0_136] : memref<16x128xf32, #tpu.memory_space<vmem>>, vector<16x128xf32>
    tpu.vector_store %arg9[%c0_135, %c0_136], %383 {strides = array<i32>} : memref<16x128xf32, #tpu.memory_space<vmem>>, vector<16x128xf32>,
    %cst_137 = arith.constant 0.000000e+00 : f32
    %385 = vector.shape_cast %380 : vector<16x1xi1> to vector<16x1xi1>
    %386 = vector.broadcast %385 : vector<16x1xi1> to vector<16x128xi1>
    %387 = vector.broadcast %cst_137 : f32 to vector<16x128xf32>
    %388 = arith.select %386, %375, %387 : vector<16x128xi1>, vector<16x128xf32>
    %389 = arith.truncf %388 : vector<16x128xf32> to vector<16x128xbf16>
    %390 = arith.index_cast %340 : i32 to index
    %c0_138 = arith.constant 0 : index
    %c128_139 = arith.constant 128 : index
    %391 = vector.load %arg7[%390, %c0_138, %c128_139] : memref<4x16x256xbf16, #tpu.memory_space<vmem>>, vector<1x16x128xbf16>
    %392 = vector.shape_cast %391 : vector<1x16x128xbf16> to vector<16x128xbf16>
    %393 = vector.shape_cast %389 : vector<16x128xbf16> to vector<1x16x128xbf16>
    tpu.vector_store %arg7[%390, %c0_138, %c128_139], %393 {strides = array<i32>} : memref<4x16x256xbf16, #tpu.memory_space<vmem>>, vector<1x16x128xbf16>,
    %c3_i32_140 = arith.constant 3 : i32
    %c3_i32_141 = arith.constant 3 : i32
    %394 = arith.subi %c3_i32_141, %c3_i32_140 : i32
    %c16_i32_142 = arith.constant 16 : i32
    %395 = arith.muli %394, %c16_i32_142 : i32
    %396 = tpu.assume_multiple %395, 16 : i32
    %397 = arith.index_cast %396 : i32 to index
    %c384_143 = arith.constant 384 : index
    %398 = vector.load %arg8[%397, %c384_143] : memref<64x768xf32, #tpu.memory_space<vmem>>, vector<16x384xf32>
    %c0_144 = arith.constant 0 : index
    %c0_145 = arith.constant 0 : index
    %399 = vector.load %arg9[%c0_144, %c0_145] : memref<16x128xf32, #tpu.memory_space<vmem>>, vector<16x128xf32>
    %400 = arith.truncf %399 : vector<16x128xf32> to vector<16x128xbf16>
    %cst_146 = arith.constant dense<0.000000e+00> : vector<16x384xf32>
    %401 = tpu.matmul %400, %227, %cst_146 {dimension_numbers = #tpu.dot_dimension_numbers<[1], [0], [0], [1], [0, 0, 1, 1], [], []>} : vector<16x128xbf16>, vector<128x384xbf16>, vector<16x384xf32> -> vector<16x384xf32>
    %402 = vector.broadcast %229 : vector<1x384xf32> to vector<16x384xf32>
    %403 = arith.addf %401, %402 : vector<16x384xf32>
    %404 = vector.extract_strided_slice %398 {offsets = [0, 0], sizes = [16, 128], strides = [1, 1]} : vector<16x384xf32> to vector<16x128xf32>
    %405 = vector.extract_strided_slice %403 {offsets = [0, 0], sizes = [16, 128], strides = [1, 1]} : vector<16x384xf32> to vector<16x128xf32>
    %406 = arith.addf %404, %405 : vector<16x128xf32>
    %407 = arith.negf %406 : vector<16x128xf32>
    %408 = math.exp %407 : vector<16x128xf32>
    %cst_147 = arith.constant 1.000000e+00 : f32
    %409 = vector.broadcast %cst_147 : f32 to vector<16x128xf32>
    %410 = arith.addf %409, %408 : vector<16x128xf32>
    %411 = arith.divf %409, %410 : vector<16x128xf32>
    %412 = vector.extract_strided_slice %398 {offsets = [0, 128], sizes = [16, 128], strides = [1, 1]} : vector<16x384xf32> to vector<16x128xf32>
    %413 = vector.extract_strided_slice %403 {offsets = [0, 128], sizes = [16, 128], strides = [1, 1]} : vector<16x384xf32> to vector<16x128xf32>
    %414 = arith.addf %412, %413 : vector<16x128xf32>
    %415 = arith.negf %414 : vector<16x128xf32>
    %416 = math.exp %415 : vector<16x128xf32>
    %cst_148 = arith.constant 1.000000e+00 : f32
    %417 = vector.broadcast %cst_148 : f32 to vector<16x128xf32>
    %418 = arith.addf %417, %416 : vector<16x128xf32>
    %419 = arith.divf %417, %418 : vector<16x128xf32>
    %420 = vector.extract_strided_slice %398 {offsets = [0, 256], sizes = [16, 128], strides = [1, 1]} : vector<16x384xf32> to vector<16x128xf32>
    %421 = vector.extract_strided_slice %403 {offsets = [0, 256], sizes = [16, 128], strides = [1, 1]} : vector<16x384xf32> to vector<16x128xf32>
    %422 = arith.mulf %411, %421 : vector<16x128xf32>
    %423 = arith.addf %420, %422 : vector<16x128xf32>
    %424 = math.tanh %423 : vector<16x128xf32>
    %cst_149 = arith.constant 1.000000e+00 : f32
    %425 = vector.broadcast %cst_149 : f32 to vector<16x128xf32>
    %426 = arith.subf %425, %419 : vector<16x128xf32>
    %427 = arith.mulf %426, %424 : vector<16x128xf32>
    %428 = arith.mulf %419, %399 : vector<16x128xf32>
    %429 = arith.addf %427, %428 : vector<16x128xf32>
    %430 = arith.index_cast %394 : i32 to index
    %c0_150 = arith.constant 0 : index
    %c0_151 = arith.constant 0 : index
    %431 = vector.load %arg6[%430, %c0_150, %c0_151] : memref<4x16x1xf32, #tpu.memory_space<vmem>>, vector<1x16x1xf32>
    %432 = vector.shape_cast %431 : vector<1x16x1xf32> to vector<16x1xf32>
    %cst_152 = arith.constant 0.000000e+00 : f32
    %433 = vector.broadcast %cst_152 : f32 to vector<16x1xf32>
    %434 = arith.cmpf ogt, %432, %433 : vector<16x1xf32>
    %435 = vector.shape_cast %434 : vector<16x1xi1> to vector<16x1xi1>
    %436 = vector.broadcast %435 : vector<16x1xi1> to vector<16x128xi1>
    %437 = arith.select %436, %429, %399 : vector<16x128xi1>, vector<16x128xf32>
    %c0_153 = arith.constant 0 : index
    %c0_154 = arith.constant 0 : index
    %438 = vector.load %arg9[%c0_153, %c0_154] : memref<16x128xf32, #tpu.memory_space<vmem>>, vector<16x128xf32>
    tpu.vector_store %arg9[%c0_153, %c0_154], %437 {strides = array<i32>} : memref<16x128xf32, #tpu.memory_space<vmem>>, vector<16x128xf32>,
    %cst_155 = arith.constant 0.000000e+00 : f32
    %439 = vector.shape_cast %434 : vector<16x1xi1> to vector<16x1xi1>
    %440 = vector.broadcast %439 : vector<16x1xi1> to vector<16x128xi1>
    %441 = vector.broadcast %cst_155 : f32 to vector<16x128xf32>
    %442 = arith.select %440, %429, %441 : vector<16x128xi1>, vector<16x128xf32>
    %443 = arith.truncf %442 : vector<16x128xf32> to vector<16x128xbf16>
    %444 = arith.index_cast %394 : i32 to index
    %c0_156 = arith.constant 0 : index
    %c128_157 = arith.constant 128 : index
    %445 = vector.load %arg7[%444, %c0_156, %c128_157] : memref<4x16x256xbf16, #tpu.memory_space<vmem>>, vector<1x16x128xbf16>
    %446 = vector.shape_cast %445 : vector<1x16x128xbf16> to vector<16x128xbf16>
    %447 = vector.shape_cast %443 : vector<16x128xbf16> to vector<1x16x128xbf16>
    tpu.vector_store %arg7[%444, %c0_156, %c128_157], %447 {strides = array<i32>} : memref<4x16x256xbf16, #tpu.memory_space<vmem>>, vector<1x16x128xbf16>,
    %c4_i32_158 = arith.constant 4 : i32
    return
  }
  func.func @transform_0(%arg0: i32) -> (i32, i32, i32) {
    %c0_i32 = arith.constant 0 : i32
    %c0_i32_0 = arith.constant 0 : i32
    %c0_i32_1 = arith.constant 0 : i32
    return %c0_i32, %arg0, %c0_i32_0 : i32, i32, i32
  }
  func.func @transform_1(%arg0: i32) -> (i32, i32) {
    %c0_i32 = arith.constant 0 : i32
    %c0_i32_0 = arith.constant 0 : i32
    %c0_i32_1 = arith.constant 0 : i32
    return %c0_i32, %c0_i32_0 : i32, i32
  }
  func.func @transform_2(%arg0: i32) -> (i32, i32) {
    %c0_i32 = arith.constant 0 : i32
    %c0_i32_0 = arith.constant 0 : i32
    %c0_i32_1 = arith.constant 0 : i32
    return %c0_i32, %c0_i32_0 : i32, i32
  }
  func.func @transform_3(%arg0: i32) -> (i32, i32, i32) {
    %c0_i32 = arith.constant 0 : i32
    %c0_i32_0 = arith.constant 0 : i32
    %c0_i32_1 = arith.constant 0 : i32
    %c0_i32_2 = arith.constant 0 : i32
    return %c0_i32, %c0_i32_0, %c0_i32_1 : i32, i32, i32
  }
  func.func @transform_4(%arg0: i32) -> (i32, i32, i32) {
    %c0_i32 = arith.constant 0 : i32
    %c0_i32_0 = arith.constant 0 : i32
    %c0_i32_1 = arith.constant 0 : i32
    %c0_i32_2 = arith.constant 0 : i32
    return %c0_i32, %c0_i32_0, %c0_i32_1 : i32, i32, i32
  }
  func.func @transform_5(%arg0: i32) -> (i32, i32, i32) {
    %c0_i32 = arith.constant 0 : i32
    %c0_i32_0 = arith.constant 0 : i32
    %c0_i32_1 = arith.constant 0 : i32
    return %c0_i32, %arg0, %c0_i32_0 : i32, i32, i32
  }
  func.func @transform_6(%arg0: i32) -> (i32, i32, i32) {
    %c0_i32 = arith.constant 0 : i32
    %c0_i32_0 = arith.constant 0 : i32
    %c0_i32_1 = arith.constant 0 : i32
    return %c0_i32, %arg0, %c0_i32_0 : i32, i32, i32
  }
}

module attributes {stable_mosaic.version = 11 : i64} {
  func.func @_attention_kernel(%arg0: i32, %arg1: memref<4x16x256xbf16, #tpu.memory_space<vmem>>, %arg2: memref<4x16x1xf32, #tpu.memory_space<vmem>>, %arg3: memref<256x128xbf16, #tpu.memory_space<vmem>>, %arg4: memref<1x128xf32, #tpu.memory_space<vmem>>, %arg5: memref<1x128xf32, #tpu.memory_space<vmem>>, %arg6: memref<4x16x1xf32, #tpu.memory_space<vmem>>, %arg7: memref<16x256xf32, #tpu.memory_space<vmem>>) attributes {dimension_semantics = [#tpu.dimension_semantics<parallel>], iteration_bounds = array<i64: 1>, scalar_prefetch = 0 : i64, scratch_operands = 0 : i64, tpu.core_type = #tpu.core_type<tc>, window_params = [{transform_indices = @transform_0, window_bounds = array<i64: 4, 16, 256>}, {transform_indices = @transform_1, window_bounds = array<i64: 4, 16, 1>}, {pipeline_mode = #tpu.pipeline_mode<synchronous>, transform_indices = @transform_2, window_bounds = array<i64: 256, 128>}, {pipeline_mode = #tpu.pipeline_mode<synchronous>, transform_indices = @transform_3, window_bounds = array<i64: 1, 128>}, {pipeline_mode = #tpu.pipeline_mode<synchronous>, transform_indices = @transform_4, window_bounds = array<i64: 1, 128>}, {transform_indices = @transform_5, window_bounds = array<i64: 4, 16, 1>}, {transform_indices = @transform_6, window_bounds = array<i64: 16, 256>}]} {
    %c0 = arith.constant 0 : index
    %c0_0 = arith.constant 0 : index
    %c0_1 = arith.constant 0 : index
    %0 = vector.load %arg1[%c0, %c0_0, %c0_1] : memref<4x16x256xbf16, #tpu.memory_space<vmem>>, vector<4x16x256xbf16>
    %1 = vector.shape_cast %0 : vector<4x16x256xbf16> to vector<64x256xbf16>
    %c0_2 = arith.constant 0 : index
    %c0_3 = arith.constant 0 : index
    %2 = vector.load %arg3[%c0_2, %c0_3] : memref<256x128xbf16, #tpu.memory_space<vmem>>, vector<256x128xbf16>
    %cst = arith.constant dense<0.000000e+00> : vector<64x128xf32>
    %3 = tpu.matmul %1, %2, %cst {dimension_numbers = #tpu.dot_dimension_numbers<[1], [0], [0], [1], [0, 0, 1, 1], [], []>} : vector<64x256xbf16>, vector<256x128xbf16>, vector<64x128xf32> -> vector<64x128xf32>
    %c0_4 = arith.constant 0 : index
    %c0_5 = arith.constant 0 : index
    %4 = vector.load %arg4[%c0_4, %c0_5] : memref<1x128xf32, #tpu.memory_space<vmem>>, vector<1x128xf32>
    %5 = vector.broadcast %4 : vector<1x128xf32> to vector<64x128xf32>
    %6 = arith.addf %3, %5 : vector<64x128xf32>
    %7 = math.tanh %6 : vector<64x128xf32>
    %8 = vector.shape_cast %7 : vector<64x128xf32> to vector<4x16x128xf32>
    %c0_6 = arith.constant 0 : index
    %c0_7 = arith.constant 0 : index
    %9 = vector.load %arg5[%c0_6, %c0_7] : memref<1x128xf32, #tpu.memory_space<vmem>>, vector<1x128xf32>
    %10 = vector.shape_cast %9 : vector<1x128xf32> to vector<1x1x128xf32>
    %11 = vector.broadcast %10 : vector<1x1x128xf32> to vector<4x16x128xf32>
    %12 = arith.mulf %8, %11 : vector<4x16x128xf32>
    %cst_8 = arith.constant dense<0.000000e+00> : vector<4x16xf32>
    %13 = vector.multi_reduction <add>, %12, %cst_8 [2] : vector<4x16x128xf32> to vector<4x16xf32>
    %14 = vector.shape_cast %13 : vector<4x16xf32> to vector<4x16x1xf32>
    %c0_9 = arith.constant 0 : index
    %c0_10 = arith.constant 0 : index
    %c0_11 = arith.constant 0 : index
    %15 = vector.load %arg2[%c0_9, %c0_10, %c0_11] : memref<4x16x1xf32, #tpu.memory_space<vmem>>, vector<4x16x1xf32>
    %cst_12 = arith.constant 0.000000e+00 : f32
    %16 = vector.broadcast %cst_12 : f32 to vector<4x16x1xf32>
    %17 = arith.cmpf ogt, %15, %16 : vector<4x16x1xf32>
    %cst_13 = arith.constant -1.000000e+30 : f32
    %18 = vector.broadcast %cst_13 : f32 to vector<4x16x1xf32>
    %19 = arith.select %17, %14, %18 : vector<4x16x1xi1>, vector<4x16x1xf32>
    %cst_14 = arith.constant dense<0xFF800000> : vector<16x1xf32>
    %20 = vector.multi_reduction <maximumf>, %19, %cst_14 [0] : vector<4x16x1xf32> to vector<16x1xf32>
    %21 = vector.shape_cast %20 : vector<16x1xf32> to vector<1x16x1xf32>
    %22 = vector.broadcast %21 : vector<1x16x1xf32> to vector<4x16x1xf32>
    %23 = arith.subf %14, %22 : vector<4x16x1xf32>
    %cst_15 = arith.constant -1.000000e+30 : f32
    %24 = vector.broadcast %cst_15 : f32 to vector<4x16x1xf32>
    %25 = arith.select %17, %23, %24 : vector<4x16x1xi1>, vector<4x16x1xf32>
    %26 = math.exp %25 : vector<4x16x1xf32>
    %cst_16 = arith.constant dense<0.000000e+00> : vector<16x1xf32>
    %27 = vector.multi_reduction <add>, %26, %cst_16 [0] : vector<4x16x1xf32> to vector<16x1xf32>
    %28 = vector.shape_cast %27 : vector<16x1xf32> to vector<1x16x1xf32>
    %cst_17 = arith.constant 0.000000e+00 : f32
    %29 = vector.broadcast %cst_17 : f32 to vector<1x16x1xf32>
    %30 = arith.cmpf ogt, %28, %29 : vector<1x16x1xf32>
    %cst_18 = arith.constant 1.000000e+00 : f32
    %31 = vector.broadcast %cst_18 : f32 to vector<1x16x1xf32>
    %32 = arith.select %30, %28, %31 : vector<1x16x1xi1>, vector<1x16x1xf32>
    %33 = tpu.reciprocal %32 {approx = true} : vector<1x16x1xf32> -> vector<1x16x1xf32>
    %34 = arith.mulf %32, %33 : vector<1x16x1xf32>
    %cst_19 = arith.constant 2.000000e+00 : f32
    %35 = vector.broadcast %cst_19 : f32 to vector<1x16x1xf32>
    %36 = arith.subf %35, %34 : vector<1x16x1xf32>
    %37 = arith.mulf %33, %36 : vector<1x16x1xf32>
    %38 = vector.broadcast %37 : vector<1x16x1xf32> to vector<4x16x1xf32>
    %39 = arith.mulf %26, %38 : vector<4x16x1xf32>
    %c0_20 = arith.constant 0 : index
    %c0_21 = arith.constant 0 : index
    %c0_22 = arith.constant 0 : index
    %40 = vector.load %arg6[%c0_20, %c0_21, %c0_22] : memref<4x16x1xf32, #tpu.memory_space<vmem>>, vector<4x16x1xf32>
    tpu.vector_store %arg6[%c0_20, %c0_21, %c0_22], %39 {strides = array<i32>} : memref<4x16x1xf32, #tpu.memory_space<vmem>>, vector<4x16x1xf32>,
    %41 = arith.extf %0 : vector<4x16x256xbf16> to vector<4x16x256xf32>
    %42 = vector.broadcast %39 : vector<4x16x1xf32> to vector<4x16x256xf32>
    %43 = arith.mulf %42, %41 : vector<4x16x256xf32>
    %cst_23 = arith.constant dense<0.000000e+00> : vector<16x256xf32>
    %44 = vector.multi_reduction <add>, %43, %cst_23 [0] : vector<4x16x256xf32> to vector<16x256xf32>
    %c0_24 = arith.constant 0 : index
    %c0_25 = arith.constant 0 : index
    %45 = vector.load %arg7[%c0_24, %c0_25] : memref<16x256xf32, #tpu.memory_space<vmem>>, vector<16x256xf32>
    tpu.vector_store %arg7[%c0_24, %c0_25], %44 {strides = array<i32>} : memref<16x256xf32, #tpu.memory_space<vmem>>, vector<16x256xf32>,
    return
  }
  func.func @transform_0(%arg0: i32) -> (i32, i32, i32) {
    %c0_i32 = arith.constant 0 : i32
    %c0_i32_0 = arith.constant 0 : i32
    %c0_i32_1 = arith.constant 0 : i32
    return %c0_i32, %arg0, %c0_i32_0 : i32, i32, i32
  }
  func.func @transform_1(%arg0: i32) -> (i32, i32, i32) {
    %c0_i32 = arith.constant 0 : i32
    %c0_i32_0 = arith.constant 0 : i32
    %c0_i32_1 = arith.constant 0 : i32
    return %c0_i32, %arg0, %c0_i32_0 : i32, i32, i32
  }
  func.func @transform_2(%arg0: i32) -> (i32, i32) {
    %c0_i32 = arith.constant 0 : i32
    %c0_i32_0 = arith.constant 0 : i32
    %c0_i32_1 = arith.constant 0 : i32
    return %c0_i32, %c0_i32_0 : i32, i32
  }
  func.func @transform_3(%arg0: i32) -> (i32, i32) {
    %c0_i32 = arith.constant 0 : i32
    %c0_i32_0 = arith.constant 0 : i32
    %c0_i32_1 = arith.constant 0 : i32
    return %c0_i32, %c0_i32_0 : i32, i32
  }
  func.func @transform_4(%arg0: i32) -> (i32, i32) {
    %c0_i32 = arith.constant 0 : i32
    %c0_i32_0 = arith.constant 0 : i32
    %c0_i32_1 = arith.constant 0 : i32
    return %c0_i32, %c0_i32_0 : i32, i32
  }
  func.func @transform_5(%arg0: i32) -> (i32, i32, i32) {
    %c0_i32 = arith.constant 0 : i32
    %c0_i32_0 = arith.constant 0 : i32
    %c0_i32_1 = arith.constant 0 : i32
    return %c0_i32, %arg0, %c0_i32_0 : i32, i32, i32
  }
  func.func @transform_6(%arg0: i32) -> (i32, i32) {
    %c0_i32 = arith.constant 0 : i32
    %c0_i32_0 = arith.constant 0 : i32
    return %arg0, %c0_i32 : i32, i32
  }
}

</mosaic_0001>

<bundles_post_ra>
// kernel: lt.30
= control target key start
LH: loop header
LB: loop body
LE: loop exit
PB: predicated region body
PF: predicated region fallthrough
CT: control target
= control target key end

     0   :  { %vm7_vm0 = vcmask 31744   ;;  %vm13_vm1 = vcmask 64544   ;;  %s39_s0 = inlined_call_operand.vmem [shape: s32[2,4], index: 0, kind: input, shape index: {}]   ;;  %s40_s1 = inlined_call_operand.vmem [shape: s32[8], index: 1, kind: output, shape index: {}]  }
   0x1   :  { %v4_v0 = vld [vmem:[%s39_s0] sm:$0x3]  ;;  %s22_s0 = smov 4  }
   0x2   :  { %5 = vst [vmem:[#allocation1] sm:$0x3] %v4_v0 }
   0x9   :  { %v10_v1 = vld [vmem:[#allocation1 + $0x1] sm:$0x1]   ;;  %v6_v2 = vld [vmem:[#allocation1] sm:$0x1]  }
   0xa   :  { %11 = vrot.lane.b32.xlu0 %v10_v1, %s22_s0  ;;  %8 = vst.msk [vmem:[#allocation0] sm:$0x1] %vm7_vm0, %v6_v2  }
  0x7c   :  { %v12_v3 = vpop.permute.xlu0 %11  }
  0x7d   :  { %14 = vst.msk [vmem:[#allocation0] sm:$0x1] %vm13_vm1, %v12_v3  }
  0x84   :  { %v18_v4 = vld [vmem:[#allocation0] sm:$0x1] }
  0x85   :  { %20 = vst [vmem:[%s40_s1] sm:$0x1] %v18_v4 }

// kernel: neg.1
= control target key start
LH: loop header
LB: loop body
LE: loop exit
PB: predicated region body
PF: predicated region fallthrough
CT: control target
= control target key end

     0   :  { %s24_s0 = inlined_call_operand.vmem [shape: s32[2], index: 0, kind: input, shape index: {}]   ;;  %s25_s1 = inlined_call_operand.vmem [shape: s32[2], index: 1, kind: output, shape index: {}]  }
   0x1   :  { %v2_v0 = vld [vmem:[%s24_s0] sm:$0x1] }
   0x2   :  { %v5_v1 = vsub.s32 0, %v2_v0 }
   0x4   :  { %7 = vst [vmem:[%s25_s1] sm:$0x1] %v5_v1 }

// kernel: forward.5
= control target key start
LH: loop header
LB: loop body
LE: loop exit
PB: predicated region body
PF: predicated region fallthrough
CT: control target
= control target key end

     0   :  { %vm470_vm1 = vcmask 7168   ;;  %s1678_s2 = inlined_call_operand.vmem [shape: bf16[256,128], index: 2, kind: input, shape index: {}]   ;;  %s1679_s0 = inlined_call_operand.vmem [shape: bf16[8,16,256], index: 0, kind: input, shape index: {}]   ;;  %s1680_s3 = inlined_call_operand.vmem [shape: f32[1,128], index: 3, kind: input, shape index: {}]   ;;  %s1681_s4 = inlined_call_operand.vmem [shape: f32[1,128], index: 4, kind: input, shape index: {}]   ;;  %s1682_s1 = inlined_call_operand.vmem [shape: f32[8,16,1], index: 1, kind: input, shape index: {}]   ;;  %s1683_s5 = inlined_call_operand.vmem [shape: f32[8,16,1], index: 5, kind: output, shape index: {0}]   ;;  %s1684_s6 = inlined_call_operand.vmem [shape: f32[16,256], index: 6, kind: output, shape index: {1}]  }
   0x1   :  { %v940_v0 = vld [vmem:[%s1678_s2 + $0x40] sm:$0xff]   ;;  %v942_v2 = vld [vmem:[%s1678_s2 + $0x48] sm:$0xff]   ;;  %v944_v4 = vld [vmem:[%s1678_s2 + $0x50] sm:$0xff]  }
   0x2   :  { %v941_v1 = vld [vmem:[%s1678_s2] sm:$0xff]   ;;  %857 = vmatprep.subr.bf16.mxu0 %v940_v0  ;;  %921 = vmatprep.subr.bf16.mxu1 %v940_v0  ;;  %v943_v3 = vld [vmem:[%s1678_s2 + $0x8] sm:$0xff]   ;;  %v945_v5 = vld [vmem:[%s1678_s2 + $0x10] sm:$0xff]  }
   0x3   :  { %858 = vmatpush3.bf16.msra.mxu0 %v941_v1  ;;  %929 = vmatpush3.bf16.msra.mxu1 %v941_v1  ;;  %v946_v6 = vld [vmem:[%s1678_s2 + $0x58] sm:$0xff]   ;;  %v948_v8 = vld [vmem:[%s1678_s2 + $0x60] sm:$0xff]   ;;  %v950_v10 = vld [vmem:[%s1678_s2 + $0x68] sm:$0xff]  }
   0x4   :  { %859 = vmatprep.subr.bf16.mxu0 %v942_v2  ;;  %922 = vmatprep.subr.bf16.mxu1 %v942_v2  ;;  %v947_v7 = vld [vmem:[%s1678_s2 + $0x18] sm:$0xff]   ;;  %v949_v9 = vld [vmem:[%s1678_s2 + $0x20] sm:$0xff]   ;;  %v1117_v12 = vld [vmem:[%s1679_s0 + $0x8] sm:$0xff] }
   0x5   :  { %v1112_v11 = vld [vmem:[%s1679_s0] sm:$0xff]  ;;  %1702 = vst [vmem:[#allocation2_spill] sm:$0xff] %v1117_v12  ;;  %v1129_v15 = vld [vmem:[%s1679_s0 + $0x48] sm:$0xff]  ;;  %v952_v18 = vld [vmem:[%s1678_s2 + $0x70] sm:$0xff]  }
   0x6   :  { %v1122_v13 = vld [vmem:[%s1679_s0 + $0x40] sm:$0xff]  ;;  %v825_v14 = vcombine.high %v1112_v11, %v1117_v12  ;;  %v951_v17 = vld [vmem:[%s1678_s2 + $0x28] sm:$0xff]   ;;  %v953_v19 = vld [vmem:[%s1678_s2 + $0x30] sm:$0xff]   ;;  %v824_v26 = vcombine.low %v1112_v11, %v1117_v12 }
   0x7   :  { %860 = vmatpush3.bf16.msra.mxu0 %v943_v3  ;;  %930 = vmatpush3.bf16.msra.mxu1 %v943_v3  ;;  %v833_v16 = vcombine.high %v1122_v13, %v1129_v15  ;;  %v954_v20 = vld [vmem:[%s1678_s2 + $0x78] sm:$0xff]   ;;  %v1151_v22 = vld [vmem:[%s1679_s0 + $0x10] sm:$0xff]  ;;  %v832_v27 = vcombine.low %v1122_v13, %v1129_v15  ;;  %v1179_v30 = vld [vmem:[%s1679_s0 + $0x20] sm:$0xff] }
   0x8   :  { %861 = vmatprep.subr.bf16.mxu0 %v944_v4  ;;  %923 = vmatprep.subr.bf16.mxu1 %v944_v4  ;;  %v955_v21 = vld [vmem:[%s1678_s2 + $0x38] sm:$0xff]   ;;  %v1161_v24 = vld [vmem:[%s1679_s0 + $0x50] sm:$0xff]  ;;  %v1184_v31 = vld [vmem:[%s1679_s0 + $0x28] sm:$0xff] }
   0x9   :  { %286 = vmatprep.mubr.bf16.mxu0 %v825_v14  ;;  %318 = vmatprep.mubr.bf16.mxu1 %v833_v16  ;;  %v1156_v23 = vld [vmem:[%s1679_s0 + $0x18] sm:$0xff]  ;;  %1704 = vst [vmem:[#allocation4_spill] sm:$0xff] %v1161_v24  ;;  %1705 = vst [vmem:[#allocation5_spill] sm:$0xff] %v1184_v31  ;;  %v1189_v32 = vld [vmem:[%s1679_s0 + $0x60] sm:$0xff]  ;;  %v829_v36 = vcombine.high %v1179_v30, %v1184_v31  ;;  %v828_v42 = vcombine.low %v1179_v30, %v1184_v31 }
   0xa   :  { %1703 = vst [vmem:[#allocation3_spill] sm:$0xff] %v1156_v23  ;;  %v1166_v25 = vld [vmem:[%s1679_s0 + $0x58] sm:$0xff]  ;;  %v827_v28 = vcombine.high %v1151_v22, %v1156_v23  ;;  %1706 = vst [vmem:[#allocation6_spill] sm:$0xff] %v1189_v32  ;;  %v1194_v33 = vld [vmem:[%s1679_s0 + $0x68] sm:$0xff]  ;;  %v826_v34 = vcombine.low %v1151_v22, %v1156_v23 }
   0xb   :  { %862 = vmatpush3.bf16.msra.mxu0 %v945_v5  ;;  %931 = vmatpush3.bf16.msra.mxu1 %v945_v5  ;;  %v835_v29 = vcombine.high %v1161_v24, %v1166_v25  ;;  %v834_v35 = vcombine.low %v1161_v24, %v1166_v25  ;;  %v837_v37 = vcombine.high %v1189_v32, %v1194_v33  ;;  %v1207_v38 = vld [vmem:[%s1679_s0 + $0x30] sm:$0xff]  ;;  %v1212_v39 = vld [vmem:[%s1679_s0 + $0x38] sm:$0xff]  ;;  %v1239_v50 = vld [vmem:[%s1680_s3] ss:$0 sm:$0xff] }
   0xc   :  { %863 = vmatprep.subr.bf16.mxu0 %v946_v6  ;;  %924 = vmatprep.subr.bf16.mxu1 %v946_v6  ;;  %1707 = vst [vmem:[#allocation7_spill] sm:$0xff] %v1212_v39  ;;  %v1217_v40 = vld [vmem:[%s1679_s0 + $0x70] sm:$0xff]  ;;  %v1222_v41 = vld [vmem:[%s1679_s0 + $0x78] sm:$0xff]  ;;  %v836_v43 = vcombine.low %v1189_v32, %v1194_v33  ;;  %v831_v44 = vcombine.high %v1207_v38, %v1212_v39 }
   0xd   :  { %1708 = vst [vmem:[#allocation8_spill] sm:$0xff] %v1217_v40  ;;  %1709 = vst [vmem:[#allocation9_spill] sm:$0xff] %v1222_v41  ;;  %v839_v45 = vcombine.high %v1217_v40, %v1222_v41  ;;  %v830_v46 = vcombine.low %v1207_v38, %v1212_v39  ;;  %v838_v47 = vcombine.low %v1217_v40, %v1222_v41 }
   0xf   :  { %864 = vmatpush3.bf16.msra.mxu0 %v947_v7  ;;  %932 = vmatpush3.bf16.msra.mxu1 %v947_v7 }
  0x10   :  { %865 = vmatprep.subr.bf16.mxu0 %v948_v8  ;;  %925 = vmatprep.subr.bf16.mxu1 %v948_v8 }
  0x13   :  { %866 = vmatpush3.bf16.msra.mxu0 %v949_v9  ;;  %933 = vmatpush3.bf16.msra.mxu1 %v949_v9 }
  0x14   :  { %867 = vmatprep.subr.bf16.mxu0 %v950_v10  ;;  %926 = vmatprep.subr.bf16.mxu1 %v950_v10 }
  0x17   :  { %868 = vmatpush3.bf16.msra.mxu0 %v951_v17  ;;  %934 = vmatpush3.bf16.msra.mxu1 %v951_v17 }
  0x18   :  { %869 = vmatprep.subr.bf16.mxu0 %v952_v18  ;;  %927 = vmatprep.subr.bf16.mxu1 %v952_v18 }
  0x1b   :  { %870 = vmatpush3.bf16.msra.mxu0 %v953_v19  ;;  %935 = vmatpush3.bf16.msra.mxu1 %v953_v19 }
  0x1c   :  { %871 = vmatprep.subr.bf16.mxu0 %v954_v20  ;;  %928 = vmatprep.subr.bf16.mxu1 %v954_v20  ;;  %v1251_v20 = vld [vmem:[%s1681_s4] ss:$0 sm:$0xff] }
  0x1f   :  { %872 = vmatpush3.bf16.msra.mxu0 %v955_v21  ;;  %936 = vmatpush3.bf16.msra.mxu1 %v955_v21 }
  0x22   :  { %287 = vmatmul.mubr.bf16.vlgmr.msra.gmra.mrb[0].mxu0 %v824_v26  ;;  %319 = vmatmul.mubr.bf16.vlgmr.msra.gmra.mrb[0].mxu1 %v832_v27 }
  0x23   :  { %294 = vmatprep.mubr.bf16.mxu0 %v827_v28  ;;  %326 = vmatprep.mubr.bf16.mxu1 %v835_v29 }
  0x2a   :  { %295 = vmatmul.mubr.bf16.gmra.mrb[4].mxu0 %v826_v34  ;;  %327 = vmatmul.mubr.bf16.gmra.mrb[4].mxu1 %v834_v35 }
  0x2b   :  { %302 = vmatprep.mubr.bf16.mxu0 %v829_v36  ;;  %334 = vmatprep.mubr.bf16.mxu1 %v837_v37 }
  0x32   :  { %303 = vmatmul.mubr.bf16.gmra.mrb[8].mxu0 %v828_v42  ;;  %335 = vmatmul.mubr.bf16.gmra.mrb[8].mxu1 %v836_v43 }
  0x33   :  { %310 = vmatprep.mubr.bf16.mxu0 %v831_v44  ;;  %342 = vmatprep.mubr.bf16.mxu1 %v839_v45 }
  0x3a   :  { %311 = vmatmul.mubr.bf16.gmra.mrb[12].mxu0 %v830_v46  ;;  %343 = vmatmul.mubr.bf16.gmra.mrb[12].mxu1 %v838_v47 }
  0xf5   :  { %v873_v48 = vpop.f32.mrb[0].mxu0  ;;  %v897_v49 = vpop.f32.mrb[0].mxu1 }
  0xf6   :  { %v874_v51 = vpop.f32.mrb[1].mxu0  ;;  %v898_v52 = vpop.f32.mrb[1].mxu1 }
  0xf7   :  { %v875_v53 = vadd.f32 %v874_v51, %v873_v48  ;;  %v876_v54 = vpop.f32.mrb[2].mxu0  ;;  %v899_v55 = vadd.f32 %v898_v52, %v897_v49  ;;  %v900_v56 = vpop.f32.mrb[2].mxu1 }
  0xf8   :  { %v877_v57 = vpop.f32.mrb[3].mxu0  ;;  %v901_v58 = vpop.f32.mrb[3].mxu1 }
  0xf9   :  { %v289_v59 = vadd.f32 %v875_v53, %v1239_v50  ;;  %v321_v60 = vadd.f32 %v899_v55, %v1239_v50  ;;  %v878_v61 = vadd.f32 %v877_v57, %v876_v54  ;;  %v902_v62 = vadd.f32 %v901_v58, %v900_v56 }
  0xfb   :  { %972 = vtanh.f32 %v289_v59  ;;  %v324_v63 = vadd.f32 %v902_v62, %v1239_v50  ;;  %v292_v0 = vadd.f32 %v878_v61, %v1239_v50 }
  0xfc   :  { %974 = vtanh.f32 %v321_v60 }
  0xfd   :  { %v879_v1 = vpop.f32.mrb[4].mxu0  ;;  %v903_v2 = vpop.f32.mrb[4].mxu1  ;;  %976 = vtanh.f32 %v324_v63 }
  0xfe   :  { %v880_v3 = vpop.f32.mrb[5].mxu0  ;;  %v904_v4 = vpop.f32.mrb[5].mxu1  ;;  %978 = vtanh.f32 %v292_v0 }
  0xff   :  { %v881_v5 = vadd.f32 %v880_v3, %v879_v1  ;;  %v882_v6 = vpop.f32.mrb[6].mxu0  ;;  %v905_v7 = vadd.f32 %v904_v4, %v903_v2  ;;  %v906_v8 = vpop.f32.mrb[6].mxu1 }
 0x100   :  { %v883_v9 = vpop.f32.mrb[7].mxu0  ;;  %v907_v10 = vpop.f32.mrb[7].mxu1 }
 0x101   :  { %v297_v14 = vadd.f32 %v881_v5, %v1239_v50  ;;  %v329_v16 = vadd.f32 %v905_v7, %v1239_v50  ;;  %v884_v17 = vadd.f32 %v883_v9, %v882_v6  ;;  %v908_v18 = vadd.f32 %v907_v10, %v906_v8 }
 0x103   :  { %980 = vtanh.f32 %v297_v14  ;;  %v300_v19 = vadd.f32 %v884_v17, %v1239_v50  ;;  %v332_v21 = vadd.f32 %v908_v18, %v1239_v50 }
 0x104   :  { %982 = vtanh.f32 %v329_v16 }
 0x105   :  { %v973_v26 = vpop.eup %972  ;;  %984 = vtanh.f32 %v300_v19  ;;  %v885_v27 = vpop.f32.mrb[8].mxu0 }
 0x106   :  { %v909_v28 = vpop.f32.mrb[8].mxu1  ;;  %v975_v29 = vpop.eup %974  ;;  %v374_v36 = vmul.f32 %v973_v26, %v1251_v20  ;;  %986 = vtanh.f32 %v332_v21 }
 0x107   :  { %v886_v34 = vpop.f32.mrb[9].mxu0  ;;  %v910_v35 = vpop.f32.mrb[9].mxu1  ;;  %v382_v48 = vmul.f32 %v975_v29, %v1251_v20 }
 0x108   :  { %v887_v37 = vadd.f32 %v886_v34, %v885_v27  ;;  %v888_v42 = vpop.f32.mrb[10].mxu0  ;;  %v911_v43 = vadd.f32 %v910_v35, %v909_v28  ;;  %v912_v44 = vpop.f32.mrb[10].mxu1  ;;  %390 = vadd.xlane.f32.xlu0 %v374_v36 }
 0x109   :  { %v977_v45 = vpop.eup %976  ;;  %v889_v46 = vpop.f32.mrb[11].mxu0 }
 0x10a   :  { %v913_v47 = vpop.f32.mrb[11].mxu1  ;;  %v305_v49 = vadd.f32 %v887_v37, %v1239_v50  ;;  %v337_v51 = vadd.f32 %v911_v43, %v1239_v50  ;;  %v890_v52 = vadd.f32 %v889_v46, %v888_v42  ;;  %v979_v54 = vpop.eup %978  ;;  %v383_v55 = vmul.f32 %v977_v45, %v1251_v20 }
 0x10b   :  { %v914_v53 = vadd.f32 %v913_v47, %v912_v44  ;;  %v375_v1 = vmul.f32 %v979_v54, %v1251_v20 }
 0x10c   :  { %988 = vtanh.f32 %v305_v49  ;;  %v308_v56 = vadd.f32 %v890_v52, %v1239_v50  ;;  %408 = vadd.xlane.f32.xlu1 %v383_v55  ;;  %406 = vadd.xlane.f32.xlu0 %v382_v48  ;;  %v1040_v52 = vmov 0  }
 0x10d   :  { %990 = vtanh.f32 %v337_v51  ;;  %v340_v57 = vadd.f32 %v914_v53, %v1239_v50  ;;  %v981_v58 = vpop.eup %980  ;;  %v891_v59 = vpop.f32.mrb[12].mxu0  ;;  %939 = vset.pattern.permute.xlu1 %v1040_v52  ;;  %938 = vset.pattern.permute.xlu0 %v1040_v52 }
 0x10e   :  { %992 = vtanh.f32 %v308_v56  ;;  %v915_v60 = vpop.f32.mrb[12].mxu1  ;;  %v983_v61 = vpop.eup %982  ;;  %v376_v0 = vmul.f32 %v981_v58, %v1251_v20 }
 0x10f   :  { %v892_v62 = vpop.f32.mrb[13].mxu0  ;;  %v916_v63 = vpop.f32.mrb[13].mxu1  ;;  %994 = vtanh.f32 %v340_v57  ;;  %v384_v9 = vmul.f32 %v983_v61, %v1251_v20 }
 0x110   :  { %v985_v2 = vpop.eup %984  ;;  %v893_v3 = vadd.f32 %v892_v62, %v891_v59  ;;  %v894_v4 = vpop.f32.mrb[14].mxu0  ;;  %v917_v5 = vadd.f32 %v916_v63, %v915_v60  ;;  %394 = vadd.xlane.f32.xlu1 %v376_v0  ;;  %392 = vadd.xlane.f32.xlu0 %v375_v1  ;;  %v1300_v60 = vld [vmem:[%s1682_s1] sm:$0xff]  ;;  %v1309_v63 = vld [vmem:[%s1682_s1 + $0x28] sm:$0xff] }
 0x111   :  { %v918_v6 = vpop.f32.mrb[14].mxu1  ;;  %v895_v7 = vpop.f32.mrb[15].mxu0  ;;  %v377_v19 = vmul.f32 %v985_v2, %v1251_v20  ;;  %v1314_v0 = vld [vmem:[%s1682_s1 + $0x48] sm:$0xff]  ;;  %v1319_v1 = vld [vmem:[%s1682_s1 + $0x40] sm:$0xff]  ;;  %v1324_v2 = vld [vmem:[%s1682_s1 + $0x10] sm:$0xff]  ;;  %vm443_vm2 = vcmp.gt.f32.partialorder %v1309_v63, 0.0 }
 0x112   :  { %v919_v8 = vpop.f32.mrb[15].mxu1  ;;  %v313_v10 = vadd.f32 %v893_v3, %v1239_v50  ;;  %v345_v14 = vadd.f32 %v917_v5, %v1239_v50  ;;  %v896_v16 = vadd.f32 %v895_v7, %v894_v4  ;;  %v987_v18 = vpop.eup %986  ;;  %v1329_v3 = vld [vmem:[%s1682_s1 + $0x8] sm:$0xff]  ;;  %v1334_v4 = vld [vmem:[%s1682_s1 + $0x18] sm:$0xff]  ;;  %v1339_v5 = vld [vmem:[%s1682_s1 + $0x50] sm:$0xff]  ;;  %vm438_vm3 = vcmp.gt.f32.partialorder %v1300_v60, 0.0 }
 0x113   :  { %v920_v17 = vadd.f32 %v919_v8, %v918_v6  ;;  %v385_v29 = vmul.f32 %v987_v18, %v1251_v20  ;;  %v1345_v6 = vld [vmem:[%s1682_s1 + $0x58] sm:$0xff]  ;;  %v1351_v7 = vld [vmem:[%s1682_s1 + $0x60] sm:$0xff]  ;;  %v1356_v8 = vld [vmem:[%s1682_s1 + $0x30] sm:$0xff]  ;;  %vm447_vm4 = vcmp.gt.f32.partialorder %v1314_v0, 0.0  ;;  %vm1685_vm5 = vcmp.gt.f32.partialorder %v1319_v1, 0.0 }
 0x114   :  { %996 = vtanh.f32 %v313_v10  ;;  %v316_v21 = vadd.f32 %v896_v16, %v1239_v50  ;;  %396 = vadd.xlane.f32.xlu1 %v377_v19  ;;  %410 = vadd.xlane.f32.xlu0 %v384_v9  ;;  %vm440_vm6 = vcmp.gt.f32.partialorder %v1324_v2, 0.0  ;;  %v1374_v16 = vld [vmem:[%s1682_s1 + $0x38] sm:$0xff]  ;;  %vm439_vm7 = vcmp.gt.f32.partialorder %v1329_v3, 0.0  ;;  %v1385_v18 = vld [vmem:[%s1682_s1 + $0x70] sm:$0xff] }
 0x115   :  { %998 = vtanh.f32 %v345_v14  ;;  %v348_v27 = vadd.f32 %v920_v17, %v1239_v50  ;;  %v1369_v14 = vld [vmem:[%s1682_s1 + $0x68] sm:$0xff]  ;;  %vm441_vm8 = vcmp.gt.f32.partialorder %v1334_v4, 0.0  ;;  %vm448_vm9 = vcmp.gt.f32.partialorder %v1339_v5, 0.0 }
 0x116   :  { %v989_v26 = vpop.eup %988  ;;  %1000 = vtanh.f32 %v316_v21  ;;  %vm449_vm10 = vcmp.gt.f32.partialorder %v1345_v6, 0.0  ;;  %vm450_vm11 = vcmp.gt.f32.partialorder %v1351_v7, 0.0  ;;  %vm444_vm12 = vcmp.gt.f32.partialorder %v1356_v8, 0.0  ;;  %v1396_v21 = vld [vmem:[%s1682_s1 + $0x78] sm:$0xff] }
 0x117   :  { %v991_v28 = vpop.eup %990  ;;  %v378_v34 = vmul.f32 %v989_v26, %v1251_v20  ;;  %1002 = vtanh.f32 %v348_v27  ;;  %vm451_vm13 = vcmp.gt.f32.partialorder %v1369_v14, 0.0  ;;  %vm445_vm14 = vcmp.gt.f32.partialorder %v1374_v16, 0.0 }
 0x118   :  { %v993_v35 = vpop.eup %992  ;;  %412 = vadd.xlane.f32.xlu1 %v385_v29  ;;  %v386_v36 = vmul.f32 %v991_v28, %v1251_v20  ;;  %vm452_vm15 = vcmp.gt.f32.partialorder %v1385_v18, 0.0 }
 0x119   :  { %398 = vadd.xlane.f32.xlu0 %v378_v34  ;;  %v995_v37 = vpop.eup %994  ;;  %v379_v42 = vmul.f32 %v993_v35, %v1251_v20 }
 0x11a   :  { %v387_v50 = vmul.f32 %v995_v37, %v1251_v20 }
 0x11c   :  { %400 = vadd.xlane.f32.xlu1 %v379_v42 }
 0x11d   :  { %414 = vadd.xlane.f32.xlu0 %v386_v36 }
 0x11e   :  { %v997_v43 = vpop.eup %996 }
 0x11f   :  { %v999_v44 = vpop.eup %998  ;;  %v380_v45 = vmul.f32 %v997_v43, %v1251_v20 }
 0x120   :  { %v1001_v46 = vpop.eup %1000  ;;  %416 = vadd.xlane.f32.xlu1 %v387_v50  ;;  %v388_v47 = vmul.f32 %v999_v44, %v1251_v20 }
 0x121   :  { %402 = vadd.xlane.f32.xlu0 %v380_v45  ;;  %v381_v48 = vmul.f32 %v1001_v46, %v1251_v20  ;;  %v1003_v49 = vpop.eup %1002 }
 0x122   :  { %v389_v51 = vmul.f32 %v1003_v49, %v1251_v20  ;;  %v1295_v20 = vld [vmem:[%s1682_s1 + $0x20] sm:$0xff] }
 0x123   :  { %vm442_vm0 = vcmp.gt.f32.partialorder %v1295_v20, 0.0 }
 0x124   :  { %404 = vadd.xlane.f32.xlu1 %v381_v48 }
 0x125   :  { %418 = vadd.xlane.f32.xlu0 %v388_v47 }
 0x128   :  { %420 = vadd.xlane.f32.xlu1 %v389_v51 }
 0x195   :  { %v1278_v53 = vpop.xlane.xlu0 %390 }
 0x196   :  { %v454_v26 = vsel %vm438_vm3, %v1278_v53, -1e+30 }
 0x197   :  { %v471_v44 = vsel %vm470_vm1, %v454_v26, -inf }
 0x199   :  { %v1280_v54 = vpop.xlane.xlu1 %408  ;;  %v1282_v55 = vpop.xlane.xlu0 %406 }
 0x19a   :  { %v462_v28 = vsel %vm1685_vm5, %v1282_v55, -1e+30  ;;  %vm453_vm5 = vcmp.gt.f32.partialorder %v1396_v21, 0.0  ;;  %v463_v50 = vsel %vm447_vm4, %v1280_v54, -1e+30 }
 0x19b   :  { %v477_v52 = vsel %vm470_vm1, %v462_v28, -inf }
 0x19d   :  { %v1284_v56 = vpop.xlane.xlu1 %394  ;;  %v1286_v57 = vpop.xlane.xlu0 %392 }
 0x19e   :  { %v456_v27 = vsel %vm440_vm6, %v1284_v56, -1e+30  ;;  %v455_v29 = vsel %vm439_vm7, %v1286_v57, -1e+30 }
 0x19f   :  { %v472_v45 = vsel %vm470_vm1, %v456_v27, -inf  ;;  %v486_v47 = vsel %vm470_vm1, %v455_v29, -inf }
 0x1a1   :  { %v1288_v58 = vpop.xlane.xlu1 %396  ;;  %v1290_v59 = vpop.xlane.xlu0 %410 }
 0x1a2   :  { %v464_v37 = vsel %vm448_vm9, %v1290_v59, -1e+30  ;;  %v457_v48 = vsel %vm441_vm8, %v1288_v58, -1e+30 }
 0x1a5   :  { %v1302_v61 = vpop.xlane.xlu1 %412 }
 0x1a6   :  { %v1304_v62 = vpop.xlane.xlu0 %398 }
 0x1a7   :  { %v458_v17 = vsel %vm442_vm0, %v1304_v62, -1e+30 }
 0x1a8   :  { %v473_v34 = vsel %vm470_vm1, %v458_v17, -inf  ;;  %v479_v17 = vsel %vm470_vm1, %v464_v37, -inf  ;;  %v487_v37 = vsel %vm470_vm1, %v457_v48, -inf }
 0x1a9   :  { %v1362_v9 = vpop.xlane.xlu1 %400  ;;  %v474_v49 = vmax.f32 %v471_v44, %v473_v34 }
 0x1aa   :  { %v1364_v10 = vpop.xlane.xlu0 %414  ;;  %v459_v19 = vsel %vm443_vm2, %v1362_v9, -1e+30 }
 0x1ab   :  { %v488_v42 = vsel %vm470_vm1, %v459_v19, -inf  ;;  %v465_v19 = vsel %vm449_vm10, %v1302_v61, -1e+30  ;;  %v466_v29 = vsel %vm450_vm11, %v1364_v10, -1e+30 }
 0x1ac   :  { %v489_v26 = vmax.f32 %v486_v47, %v488_v42  ;;  %v478_v47 = vmax.f32 %v474_v49, %v477_v52 }
 0x1ad   :  { %v1413_v35 = vpop.xlane.xlu1 %416 }
 0x1ae   :  { %v1415_v36 = vpop.xlane.xlu0 %402  ;;  %v467_v42 = vsel %vm451_vm13, %v1413_v35, -1e+30 }
 0x1af   :  { %v460_v43 = vsel %vm444_vm12, %v1415_v36, -1e+30  ;;  %v496_v48 = vsel %vm470_vm1, %v467_v42, -inf }
 0x1b0   :  { %v475_v46 = vsel %vm470_vm1, %v460_v43, -inf }
 0x1b1   :  { %v476_v51 = vmax.f32 %v472_v45, %v475_v46  ;;  %v405_v27 = vpop.xlane.xlu1 %404  ;;  %v492_v46 = vsel %vm470_vm1, %v463_v50, -inf }
 0x1b2   :  { %v1441_v40 = vpop.xlane.xlu0 %418  ;;  %v461_v34 = vsel %vm445_vm14, %v405_v27, -1e+30  ;;  %v493_v39 = vmax.f32 %v489_v26, %v492_v46 }
 0x1b3   :  { %v480_v43 = vmax.f32 %v476_v51, %v479_v17  ;;  %v468_v28 = vsel %vm452_vm15, %v1441_v40, -1e+30  ;;  %v490_v44 = vsel %vm470_vm1, %v461_v34, -inf  ;;  %v494_v51 = vsel %vm470_vm1, %v465_v19, -inf }
 0x1b4   :  { %v483_v45 = vsel %vm470_vm1, %v468_v28, -inf  ;;  %v491_v32 = vmax.f32 %v487_v37, %v490_v44  ;;  %v481_v17 = vsel %vm470_vm1, %v466_v29, -inf  ;;  %v497_v23 = vmax.f32 %v493_v39, %v496_v48 }
 0x1b5   :  { %v421_v31 = vpop.xlane.xlu1 %420  ;;  %v484_v12 = vmax.f32 %v480_v43, %v483_v45  ;;  %v482_v28 = vmax.f32 %v478_v47, %v481_v17 }
 0x1b6   :  { %v495_v41 = vmax.f32 %v491_v32, %v494_v51  ;;  %v469_v24 = vsel %vm453_vm5, %v421_v31, -1e+30 }
 0x1b7   :  { %v498_v34 = vsel %vm470_vm1, %v469_v24, -inf  ;;  %v485_v49 = vmax.f32 %v482_v28, %v484_v12 }
 0x1b8   :  { %v499_v50 = vmax.f32 %v495_v41, %v498_v34 }
 0x1b9   :  { %v505_v29 = vsub.f32 %v1304_v62, %v485_v49  ;;  %v501_v42 = vsub.f32 %v1278_v53, %v485_v49  ;;  %v503_v41 = vsub.f32 %v1284_v56, %v485_v49  ;;  %v507_v53 = vsub.f32 %v1415_v36, %v485_v49 }
 0x1ba   :  { %v500_v52 = vmax.f32 %v497_v23, %v499_v50  ;;  %v509_v63 = vsub.f32 %v1282_v55, %v485_v49  ;;  %v511_v6 = vsub.f32 %v1290_v59, %v485_v49  ;;  %v513_v46 = vsub.f32 %v1364_v10, %v485_v49 }
 0x1bb   :  { %v517_v56 = vsel %vm438_vm3, %v501_v42, -1e+30  ;;  %v519_v20 = vsel %vm440_vm6, %v503_v41, -1e+30  ;;  %v523_v55 = vsel %vm444_vm12, %v507_v53, -1e+30  ;;  %v515_v47 = vsub.f32 %v1441_v40, %v485_v49 }
 0x1bc   :  { %v502_v19 = vsub.f32 %v1286_v57, %v500_v52  ;;  %v504_v26 = vsub.f32 %v1288_v58, %v500_v52  ;;  %v506_v37 = vsub.f32 %v1362_v9, %v500_v52  ;;  %v508_v43 = vsub.f32 %v405_v27, %v500_v52 }
 0x1bd   :  { %v512_v32 = vsub.f32 %v1302_v61, %v500_v52  ;;  %v521_v57 = vsel %vm442_vm0, %v505_v29, -1e+30  ;;  %v514_v9 = vsub.f32 %v1413_v35, %v500_v52  ;;  %v510_v36 = vsub.f32 %v1280_v54, %v500_v52 }
 0x1be   :  { %v518_v24 = vsel %vm439_vm7, %v502_v19, -1e+30  ;;  %v520_v12 = vsel %vm441_vm8, %v504_v26, -1e+30  ;;  %v522_v23 = vsel %vm443_vm2, %v506_v37, -1e+30  ;;  %v516_v27 = vsub.f32 %v421_v31, %v500_v52 }
 0x1bf   :  { %v524_v39 = vsel %vm445_vm14, %v508_v43, -1e+30  ;;  %v535_v58 = vmul.f32 1.442695, %v518_v24  ;;  %v539_v61 = vmul.f32 1.442695, %v520_v12 }
 0x1c0   :  { %v528_v62 = vsel %vm449_vm10, %v512_v32, -1e+30  ;;  %v543_v3 = vmul.f32 1.442695, %v522_v23  ;;  %v547_v4 = vmul.f32 1.442695, %v524_v39 }
 0x1c1   :  { %1004 = vpow2.f32 %v535_v58  ;;  %v541_v16 = vmul.f32 1.442695, %v521_v57  ;;  %v555_v44 = vmul.f32 1.442695, %v528_v62  ;;  %v533_v35 = vmul.f32 1.442695, %v517_v56 }
 0x1c2   :  { %1006 = vpow2.f32 %v539_v61  ;;  %v526_v60 = vsel %vm447_vm4, %v510_v36, -1e+30  ;;  %v530_v45 = vsel %vm451_vm13, %v514_v9, -1e+30  ;;  %v537_v2 = vmul.f32 1.442695, %v519_v20 }
 0x1c3   :  { %1008 = vpow2.f32 %v543_v3  ;;  %vm1710_vm0 = vcmp.gt.f32.partialorder %v1319_v1, 0.0  ;;  %v551_v31 = vmul.f32 1.442695, %v526_v60  ;;  %v545_v59 = vmul.f32 1.442695, %v523_v55 }
 0x1c4   :  { %1010 = vpow2.f32 %v547_v4  ;;  %v525_v54 = vsel %vm1710_vm0, %v509_v63, -1e+30  ;;  %v532_v8 = vsel %vm453_vm5, %v516_v27, -1e+30  ;;  %v527_v0 = vsel %vm448_vm9, %v511_v6, -1e+30 }
 0x1c5   :  { %1012 = vpow2.f32 %v541_v16  ;;  %v559_v14 = vmul.f32 1.442695, %v530_v45  ;;  %v549_v51 = vmul.f32 1.442695, %v525_v54  ;;  %v529_v1 = vsel %vm450_vm11, %v513_v46, -1e+30 }
 0x1c6   :  { %1014 = vpow2.f32 %v555_v44  ;;  %v563_v10 = vmul.f32 1.442695, %v532_v8  ;;  %v553_v21 = vmul.f32 1.442695, %v527_v0  ;;  %v531_v40 = vsel %vm452_vm15, %v515_v47, -1e+30 }
 0x1c7   :  { %1016 = vpow2.f32 %v533_v35  ;;  %v557_v7 = vmul.f32 1.442695, %v529_v1  ;;  %v561_v52 = vmul.f32 1.442695, %v531_v40 }
 0x1c8   :  { %1018 = vpow2.f32 %v537_v2 }
 0x1c9   :  { %1020 = vpow2.f32 %v551_v31 }
 0x1ca   :  { %1022 = vpow2.f32 %v545_v59 }
 0x1cb   :  { %v1508_v17 = vpop.eup %1004  ;;  %1024 = vpow2.f32 %v559_v14 }
 0x1cc   :  { %v1510_v48 = vpop.eup %1006  ;;  %v580_v5 = vsel %vm470_vm1, %v1508_v17, 0.0  ;;  %1026 = vpow2.f32 %v549_v51 }
 0x1cd   :  { %v1516_v34 = vpop.eup %1008  ;;  %v581_v28 = vsel %vm470_vm1, %v1510_v48, 0.0  ;;  %1028 = vpow2.f32 %v563_v10 }
 0x1ce   :  { %v1520_v50 = vpop.eup %1010  ;;  %v582_v49 = vadd.f32 %v581_v28, %v580_v5  ;;  %1030 = vpow2.f32 %v553_v21  ;;  %v583_v18 = vsel %vm470_vm1, %v1516_v34, 0.0 }
 0x1cf   :  { %v1524_v19 = vpop.eup %1012  ;;  %1032 = vpow2.f32 %v557_v7  ;;  %v585_v37 = vsel %vm470_vm1, %v1520_v50, 0.0 }
 0x1d0   :  { %v584_v29 = vadd.f32 %v583_v18, %v582_v49  ;;  %v1015_v26 = vpop.eup %1014  ;;  %1034 = vpow2.f32 %v561_v52  ;;  %v568_v61 = vsel %vm470_vm1, %v1524_v19, 0.0 }
 0x1d1   :  { %v1528_v43 = vpop.eup %1016  ;;  %v589_v4 = vsel %vm470_vm1, %v1015_v26, 0.0 }
 0x1d2   :  { %v586_v32 = vadd.f32 %v585_v37, %v584_v29  ;;  %v1530_v42 = vpop.eup %1018  ;;  %v565_v24 = vsel %vm470_vm1, %v1528_v43, 0.0 }
 0x1d3   :  { %v1021_v12 = vpop.eup %1020  ;;  %v566_v23 = vsel %vm470_vm1, %v1530_v42, 0.0 }
 0x1d4   :  { %v1023_v39 = vpop.eup %1022  ;;  %v567_v41 = vadd.f32 %v566_v23, %v565_v24  ;;  %v587_v57 = vsel %vm470_vm1, %v1021_v12, 0.0 }
 0x1d5   :  { %v1025_v58 = vpop.eup %1024  ;;  %v588_v53 = vadd.f32 %v587_v57, %v586_v32  ;;  %v570_v9 = vsel %vm470_vm1, %v1023_v39, 0.0 }
 0x1d6   :  { %v1027_v62 = vpop.eup %1026  ;;  %v569_v3 = vadd.f32 %v568_v61, %v567_v41  ;;  %v591_v36 = vsel %vm470_vm1, %v1025_v58, 0.0  ;;  %v643_v61 = vunpack.c.l.bf16 %v1151_v22 }
 0x1d7   :  { %v1029_v63 = vpop.eup %1028  ;;  %v590_v56 = vadd.f32 %v589_v4, %v588_v53  ;;  %v572_v6 = vsel %vm470_vm1, %v1027_v62, 0.0  ;;  %v644_v53 = vunpack.c.h.bf16 %v1151_v22  ;;  %v640_v4 = vunpack.c.h.bf16 %v1112_v11 }
 0x1d8   :  { %v1031_v16 = vpop.eup %1030  ;;  %v571_v20 = vadd.f32 %v570_v9, %v569_v3  ;;  %v593_v55 = vsel %vm470_vm1, %v1029_v63, 0.0  ;;  %v639_v3 = vunpack.c.l.bf16 %v1112_v11  ;;  %v648_v9 = vunpack.c.h.bf16 %v1179_v30 }
 0x1d9   :  { %v592_v27 = vadd.f32 %v591_v36, %v590_v56  ;;  %v1033_v44 = vpop.eup %1032  ;;  %v574_v60 = vsel %vm470_vm1, %v1031_v16, 0.0  ;;  %v651_v36 = vunpack.c.l.bf16 %v1207_v38  ;;  %v661_v22 = vunpack.c.l.bf16 %v1166_v25 }
 0x1da   :  { %v573_v35 = vadd.f32 %v572_v6, %v571_v20  ;;  %v1035_v2 = vpop.eup %1034  ;;  %v576_v54 = vsel %vm470_vm1, %v1033_v44, 0.0  ;;  %v658_v20 = vunpack.c.h.bf16 %v1129_v15  ;;  %v652_v6 = vunpack.c.h.bf16 %v1207_v38 }
 0x1db   :  { %v594_v45 = vadd.f32 %v593_v55, %v592_v27  ;;  %v578_v8 = vsel %vm470_vm1, %v1035_v2, 0.0  ;;  %v662_v27 = vunpack.c.h.bf16 %v1166_v25  ;;  %v656_v11 = vunpack.c.h.bf16 %v1122_v13 }
 0x1dc   :  { %v575_v46 = vadd.f32 %v574_v60, %v573_v35  ;;  %v665_v55 = vunpack.c.l.bf16 %v1194_v33  ;;  %v1711_v35 = vld [vmem:[#allocation3_spill] sm:$0xff] }
 0x1dd   :  { %vm596_vm2 = vcmp.gt.f32.partialorder %v594_v45, 0.0  ;;  %v645_v60 = vunpack.c.l.bf16 %v1711_v35 }
 0x1de   :  { %v577_v31 = vadd.f32 %v576_v54, %v575_v46  ;;  %v598_v59 = vsel %vm596_vm2, %v594_v45, 1.0  ;;  %v1712_v45 = vld [vmem:[#allocation4_spill] sm:$0xff]  ;;  %v1713_v46 = vld [vmem:[#allocation9_spill] sm:$0xff] }
 0x1df   :  { %1036 = vrcp.f32 %v598_v59  ;;  %v660_v38 = vunpack.c.h.bf16 %v1712_v45  ;;  %v669_v54 = vunpack.c.l.bf16 %v1713_v46  ;;  %v670_v25 = vunpack.c.h.bf16 %v1713_v46 }
 0x1e0   :  { %v579_v47 = vadd.f32 %v578_v8, %v577_v31  ;;  %v1714_v8 = vld [vmem:[#allocation2_spill] sm:$0xff] }
 0x1e2   :  { %vm595_vm3 = vcmp.gt.f32.partialorder %v579_v47, 0.0 }
 0x1e3   :  { %v597_v0 = vsel %vm595_vm3, %v579_v47, 1.0  ;;  %v642_v47 = vunpack.c.h.bf16 %v1714_v8 }
 0x1e4   :  { %1038 = vrcp.f32 %v597_v0 }
 0x1e9   :  { %v1037_v14 = vpop.eup %1036 }
 0x1ea   :  { %v602_v51 = vmul.f32 %v1037_v14, %v598_v59 }
 0x1ec   :  { %v604_v1 = vsub.f32 2.0, %v602_v51 }
 0x1ee   :  { %v1039_v10 = vpop.eup %1038  ;;  %v606_v21 = vmul.f32 %v1037_v14, %v604_v1 }
 0x1ef   :  { %v601_v40 = vmul.f32 %v1039_v10, %v597_v0  ;;  %v1715_v0 = vld [vmem:[#allocation5_spill] sm:$0xff] }
 0x1f0   :  { %v616_v5 = vmul.f32 %v1021_v12, %v606_v21  ;;  %v618_v7 = vmul.f32 %v1015_v26, %v606_v21  ;;  %v620_v28 = vmul.f32 %v1025_v58, %v606_v21  ;;  %v622_v49 = vmul.f32 %v1029_v63, %v606_v21 }
 0x1f1   :  { %v603_v52 = vsub.f32 2.0, %v601_v40  ;;  %v608_v18 = vmul.f32 %v1508_v17, %v606_v21  ;;  %v610_v29 = vmul.f32 %v1510_v48, %v606_v21  ;;  %v612_v37 = vmul.f32 %v1516_v34, %v606_v21 }
 0x1f2   :  { %632 = vst.msk [vmem:[%s1683_s5 + $0x48] sm:$0xff] %vm470_vm1, %v616_v5  ;;  %634 = vst.msk [vmem:[%s1683_s5 + $0x58] sm:$0xff] %vm470_vm1, %v618_v7  ;;  %v614_v17 = vmul.f32 %v1520_v50, %v606_v21  ;;  %v647_v63 = vunpack.c.l.bf16 %v1179_v30  ;;  %v666_v30 = vunpack.c.h.bf16 %v1194_v33  ;;  %v649_v14 = vunpack.c.l.bf16 %v1715_v0 }
 0x1f3   :  { %636 = vst.msk [vmem:[%s1683_s5 + $0x68] sm:$0xff] %vm470_vm1, %v620_v28  ;;  %638 = vst.msk [vmem:[%s1683_s5 + $0x78] sm:$0xff] %vm470_vm1, %v622_v49  ;;  %v605_v48 = vmul.f32 %v1039_v10, %v603_v52  ;;  %v650_v51 = vunpack.c.h.bf16 %v1715_v0 }
 0x1f4   :  { %624 = vst.msk [vmem:[%s1683_s5 + $0x8] sm:$0xff] %vm470_vm1, %v608_v18  ;;  %626 = vst.msk [vmem:[%s1683_s5 + $0x18] sm:$0xff] %vm470_vm1, %v610_v29 }
 0x1f5   :  { %628 = vst.msk [vmem:[%s1683_s5 + $0x28] sm:$0xff] %vm470_vm1, %v612_v37  ;;  %630 = vst.msk [vmem:[%s1683_s5 + $0x38] sm:$0xff] %vm470_vm1, %v614_v17  ;;  %v609_v34 = vmul.f32 %v1530_v42, %v605_v48  ;;  %v607_v50 = vmul.f32 %v1528_v43, %v605_v48  ;;  %v611_v26 = vmul.f32 %v1524_v19, %v605_v48 }
 0x1f6   :  { %v613_v32 = vmul.f32 %v1023_v39, %v605_v48  ;;  %v615_v24 = vmul.f32 %v1027_v62, %v605_v48  ;;  %v617_v12 = vmul.f32 %v1031_v16, %v605_v48  ;;  %v619_v23 = vmul.f32 %v1033_v44, %v605_v48 }
 0x1f7   :  { %v621_v41 = vmul.f32 %v1035_v2, %v605_v48  ;;  %683 = vperm.xlu1 %939, %v609_v34   ;;  %625 = vst.msk [vmem:[%s1683_s5 + $0x10] sm:$0xff] %vm470_vm1, %v609_v34  ;;  %673 = vperm.xlu0 %938, %v607_v50   ;;  %623 = vst.msk [vmem:[%s1683_s5] sm:$0xff] %vm470_vm1, %v607_v50  ;;  %v657_v16 = vunpack.c.l.bf16 %v1129_v15  ;;  %v655_v44 = vunpack.c.l.bf16 %v1122_v13  ;;  %v646_v15 = vunpack.c.h.bf16 %v1711_v35 }
 0x1f8   :  { %627 = vst.msk [vmem:[%s1683_s5 + $0x20] sm:$0xff] %vm470_vm1, %v611_v26  ;;  %629 = vst.msk [vmem:[%s1683_s5 + $0x30] sm:$0xff] %vm470_vm1, %v613_v32  ;;  %v659_v2 = vunpack.c.l.bf16 %v1712_v45  ;;  %v641_v13 = vunpack.c.l.bf16 %v1714_v8 }
 0x1f9   :  { %631 = vst.msk [vmem:[%s1683_s5 + $0x40] sm:$0xff] %vm470_vm1, %v615_v24  ;;  %633 = vst.msk [vmem:[%s1683_s5 + $0x50] sm:$0xff] %vm470_vm1, %v617_v12 }
 0x1fa   :  { %635 = vst.msk [vmem:[%s1683_s5 + $0x60] sm:$0xff] %vm470_vm1, %v619_v23  ;;  %637 = vst.msk [vmem:[%s1683_s5 + $0x70] sm:$0xff] %vm470_vm1, %v621_v41 }
 0x1fb   :  { %693 = vperm.xlu1 %939, %v611_v26   ;;  %718 = vperm.xlu0 %938, %v616_v5  }
 0x1ff   :  { %703 = vperm.xlu1 %939, %v613_v32   ;;  %728 = vperm.xlu0 %938, %v618_v7  }
 0x203   :  { %713 = vperm.xlu1 %939, %v615_v24   ;;  %738 = vperm.xlu0 %938, %v620_v28   ;;  %v1716_v28 = vld [vmem:[#allocation7_spill] sm:$0xff] }
 0x204   :  { %v654_v52 = vunpack.c.h.bf16 %v1716_v28 }
 0x207   :  { %723 = vperm.xlu1 %939, %v617_v12   ;;  %748 = vperm.xlu0 %938, %v622_v49   ;;  %v653_v49 = vunpack.c.l.bf16 %v1716_v28 }
 0x20b   :  { %678 = vperm.xlu1 %939, %v608_v18  }
 0x20f   :  { %688 = vperm.xlu1 %939, %v610_v29  }
 0x213   :  { %698 = vperm.xlu1 %939, %v612_v37  }
 0x217   :  { %708 = vperm.xlu1 %939, %v614_v17   ;;  %v1717_v17 = vld [vmem:[#allocation6_spill] sm:$0xff] }
 0x218   :  { %v663_v48 = vunpack.c.l.bf16 %v1717_v17  ;;  %v664_v34 = vunpack.c.h.bf16 %v1717_v17 }
 0x21b   :  { %733 = vperm.xlu1 %939, %v619_v23  }
 0x21f   :  { %743 = vperm.xlu1 %939, %v621_v41  }
 0x276   :  { %v684_v19 = vpop.permute.xlu1 %683  ;;  %v674_v57 = vpop.permute.xlu0 %673 }
 0x277   :  { %v755_v1 = vmul.f32 %v684_v19, %v643_v61  ;;  %v756_v10 = vmul.f32 %v684_v19, %v644_v53  ;;  %v751_v21 = vmul.f32 %v674_v57, %v639_v3  ;;  %v752_v40 = vmul.f32 %v674_v57, %v640_v4  ;;  %v1718_v3 = vld [vmem:[#allocation8_spill] sm:$0xff] }
 0x278   :  { %v667_v4 = vunpack.c.l.bf16 %v1718_v3 }
 0x279   :  { %v783_v12 = vadd.f32 %v755_v1, %v751_v21  ;;  %v790_v23 = vadd.f32 %v756_v10, %v752_v40 }
 0x27a   :  { %v694_v43 = vpop.permute.xlu1 %693  ;;  %v1622_v62 = vpop.permute.xlu0 %718 }
 0x27b   :  { %v759_v18 = vmul.f32 %v694_v43, %v647_v63  ;;  %v760_v29 = vmul.f32 %v694_v43, %v648_v9  ;;  %v668_v43 = vunpack.c.h.bf16 %v1718_v3  ;;  %v770_v0 = vmul.f32 %v1622_v62, %v658_v20 }
 0x27d   :  { %v784_v63 = vadd.f32 %v783_v12, %v759_v18  ;;  %v791_v9 = vadd.f32 %v790_v23, %v760_v29 }
 0x27e   :  { %v704_v42 = vpop.permute.xlu1 %703  ;;  %v729_v59 = vpop.permute.xlu0 %728 }
 0x27f   :  { %v763_v41 = vmul.f32 %v704_v42, %v651_v36  ;;  %v764_v19 = vmul.f32 %v704_v42, %v652_v6  ;;  %v769_v6 = vmul.f32 %v1622_v62, %v657_v16  ;;  %v773_v1 = vmul.f32 %v729_v59, %v661_v22 }
 0x282   :  { %v714_v39 = vpop.permute.xlu1 %713  ;;  %v739_v57 = vpop.permute.xlu0 %738 }
 0x283   :  { %v767_v35 = vmul.f32 %v714_v39, %v655_v44  ;;  %v774_v44 = vmul.f32 %v729_v59, %v662_v27  ;;  %v778_v62 = vmul.f32 %v739_v57, %v666_v30 }
 0x286   :  { %v1618_v58 = vpop.permute.xlu1 %723  ;;  %v749_v21 = vpop.permute.xlu0 %748 }
 0x287   :  { %v771_v42 = vmul.f32 %v1618_v58, %v659_v2  ;;  %v772_v36 = vmul.f32 %v1618_v58, %v660_v38  ;;  %v777_v58 = vmul.f32 %v739_v57, %v665_v55  ;;  %v781_v22 = vmul.f32 %v749_v21, %v669_v54 }
 0x288   :  { %v782_v27 = vmul.f32 %v749_v21, %v670_v25 }
 0x28a   :  { %v679_v56 = vpop.permute.xlu1 %678 }
 0x28b   :  { %v753_v50 = vmul.f32 %v679_v56, %v641_v13  ;;  %v754_v26 = vmul.f32 %v679_v56, %v642_v47  ;;  %v785_v13 = vadd.f32 %v784_v63, %v763_v41  ;;  %v792_v47 = vadd.f32 %v791_v9, %v764_v19 }
 0x28e   :  { %v689_v31 = vpop.permute.xlu1 %688 }
 0x28f   :  { %v757_v5 = vmul.f32 %v689_v31, %v645_v60  ;;  %v758_v7 = vmul.f32 %v689_v31, %v646_v15  ;;  %v768_v60 = vmul.f32 %v714_v39, %v656_v11  ;;  %v786_v39 = vadd.f32 %v785_v13, %v767_v35 }
 0x291   :  { %v797_v61 = vadd.f32 %v757_v5, %v753_v50  ;;  %v804_v53 = vadd.f32 %v758_v7, %v754_v26  ;;  %v793_v11 = vadd.f32 %v792_v47, %v768_v60 }
 0x292   :  { %v699_v37 = vpop.permute.xlu1 %698 }
 0x293   :  { %v761_v32 = vmul.f32 %v699_v37, %v649_v14  ;;  %v762_v24 = vmul.f32 %v699_v37, %v650_v51  ;;  %v794_v2 = vadd.f32 %v793_v11, %v772_v36 }
 0x295   :  { %v798_v45 = vadd.f32 %v797_v61, %v761_v32  ;;  %v805_v56 = vadd.f32 %v804_v53, %v762_v24 }
 0x296   :  { %v709_v15 = vpop.permute.xlu1 %708 }
 0x297   :  { %v765_v31 = vmul.f32 %v709_v15, %v653_v49  ;;  %v766_v8 = vmul.f32 %v709_v15, %v654_v52  ;;  %v787_v49 = vadd.f32 %v786_v39, %v771_v42 }
 0x299   :  { %v799_v14 = vadd.f32 %v798_v45, %v765_v31  ;;  %v806_v51 = vadd.f32 %v805_v56, %v766_v8 }
 0x29a   :  { %v734_v10 = vpop.permute.xlu1 %733 }
 0x29b   :  { %v800_v40 = vadd.f32 %v799_v14, %v769_v6  ;;  %v807_v5 = vadd.f32 %v806_v51, %v770_v0  ;;  %v775_v7 = vmul.f32 %v734_v10, %v663_v48  ;;  %v776_v28 = vmul.f32 %v734_v10, %v664_v34 }
 0x29d   :  { %v801_v16 = vadd.f32 %v800_v40, %v773_v1  ;;  %v808_v20 = vadd.f32 %v807_v5, %v774_v44  ;;  %v788_v38 = vadd.f32 %v787_v49, %v775_v7  ;;  %v795_v59 = vadd.f32 %v794_v2, %v776_v28 }
 0x29e   :  { %v744_v52 = vpop.permute.xlu1 %743 }
 0x29f   :  { %v802_v18 = vadd.f32 %v801_v16, %v777_v58  ;;  %v809_v29 = vadd.f32 %v808_v20, %v778_v62  ;;  %v779_v37 = vmul.f32 %v744_v52, %v667_v4  ;;  %v780_v17 = vmul.f32 %v744_v52, %v668_v43 }
 0x2a1   :  { %v803_v48 = vadd.f32 %v802_v18, %v781_v22  ;;  %v810_v55 = vadd.f32 %v809_v29, %v782_v27  ;;  %v789_v34 = vadd.f32 %v788_v38, %v779_v37  ;;  %v796_v33 = vadd.f32 %v795_v59, %v780_v17 }
 0x2a3   :  { %811 = vst [vmem:[%s1684_s6] sm:$0xff] %v789_v34  ;;  %812 = vst [vmem:[%s1684_s6 + $0x8] sm:$0xff] %v796_v33 }
 0x2a4   :  { %813 = vst [vmem:[%s1684_s6 + $0x10] sm:$0xff] %v803_v48  ;;  %814 = vst [vmem:[%s1684_s6 + $0x18] sm:$0xff] %v810_v55 }

// kernel: forward.7
= control target key start
LH: loop header
LB: loop body
LE: loop exit
PB: predicated region body
PF: predicated region fallthrough
CT: control target
= control target key end

     0   :  { %vm334_vm4 = vcmask 7168   ;;  %s930_s2 = inlined_call_operand.vmem [shape: bf16[256,128], index: 2, kind: input, shape index: {}]   ;;  %s931_s0 = inlined_call_operand.vmem [shape: bf16[4,16,256], index: 0, kind: input, shape index: {}]   ;;  %s932_s3 = inlined_call_operand.vmem [shape: f32[1,128], index: 3, kind: input, shape index: {}]   ;;  %s933_s4 = inlined_call_operand.vmem [shape: f32[1,128], index: 4, kind: input, shape index: {}]   ;;  %s934_s1 = inlined_call_operand.vmem [shape: f32[4,16,1], index: 1, kind: input, shape index: {}]   ;;  %s935_s5 = inlined_call_operand.vmem [shape: f32[4,16,1], index: 5, kind: output, shape index: {0}]   ;;  %s936_s6 = inlined_call_operand.vmem [shape: f32[16,256], index: 6, kind: output, shape index: {1}]  }
   0x1   :  { %v604_v0 = vld [vmem:[%s930_s2 + $0x40] sm:$0xff]   ;;  %v606_v2 = vld [vmem:[%s930_s2 + $0x48] sm:$0xff]   ;;  %v608_v4 = vld [vmem:[%s930_s2 + $0x50] sm:$0xff]  }
   0x2   :  { %v605_v1 = vld [vmem:[%s930_s2] sm:$0xff]   ;;  %545 = vmatprep.subr.bf16.mxu0 %v604_v0  ;;  %585 = vmatprep.subr.bf16.mxu1 %v604_v0  ;;  %v607_v3 = vld [vmem:[%s930_s2 + $0x8] sm:$0xff]   ;;  %v609_v5 = vld [vmem:[%s930_s2 + $0x10] sm:$0xff]  }
   0x3   :  { %546 = vmatpush3.bf16.msra.mxu0 %v605_v1  ;;  %593 = vmatpush3.bf16.msra.mxu1 %v605_v1  ;;  %v610_v6 = vld [vmem:[%s930_s2 + $0x58] sm:$0xff]   ;;  %v612_v8 = vld [vmem:[%s930_s2 + $0x60] sm:$0xff]   ;;  %v614_v10 = vld [vmem:[%s930_s2 + $0x68] sm:$0xff]  }
   0x4   :  { %547 = vmatprep.subr.bf16.mxu0 %v606_v2  ;;  %586 = vmatprep.subr.bf16.mxu1 %v606_v2  ;;  %v611_v7 = vld [vmem:[%s930_s2 + $0x18] sm:$0xff]   ;;  %v613_v9 = vld [vmem:[%s930_s2 + $0x20] sm:$0xff]   ;;  %v741_v12 = vld [vmem:[%s931_s0 + $0x8] sm:$0xff] }
   0x5   :  { %v736_v11 = vld [vmem:[%s931_s0] sm:$0xff]  ;;  %v753_v15 = vld [vmem:[%s931_s0 + $0x28] sm:$0xff]  ;;  %v616_v18 = vld [vmem:[%s930_s2 + $0x70] sm:$0xff]  }
   0x6   :  { %v746_v13 = vld [vmem:[%s931_s0 + $0x20] sm:$0xff]  ;;  %v521_v14 = vcombine.high %v736_v11, %v741_v12  ;;  %v615_v17 = vld [vmem:[%s930_s2 + $0x28] sm:$0xff]   ;;  %v617_v19 = vld [vmem:[%s930_s2 + $0x30] sm:$0xff]   ;;  %v520_v26 = vcombine.low %v736_v11, %v741_v12 }
   0x7   :  { %548 = vmatpush3.bf16.msra.mxu0 %v607_v3  ;;  %594 = vmatpush3.bf16.msra.mxu1 %v607_v3  ;;  %v525_v16 = vcombine.high %v746_v13, %v753_v15  ;;  %v618_v20 = vld [vmem:[%s930_s2 + $0x78] sm:$0xff]   ;;  %v775_v22 = vld [vmem:[%s931_s0 + $0x10] sm:$0xff]  ;;  %v524_v27 = vcombine.low %v746_v13, %v753_v15  ;;  %v519_v34 = vld [vmem:[%s932_s3] ss:$0 sm:$0xff] }
   0x8   :  { %549 = vmatprep.subr.bf16.mxu0 %v608_v4  ;;  %587 = vmatprep.subr.bf16.mxu1 %v608_v4  ;;  %v619_v21 = vld [vmem:[%s930_s2 + $0x38] sm:$0xff]   ;;  %v785_v24 = vld [vmem:[%s931_s0 + $0x30] sm:$0xff]  ;;  %v544_v0 = vld [vmem:[%s933_s4] ss:$0 sm:$0xff] }
   0x9   :  { %238 = vmatprep.mubr.bf16.mxu0 %v521_v14  ;;  %254 = vmatprep.mubr.bf16.mxu1 %v525_v16  ;;  %v780_v23 = vld [vmem:[%s931_s0 + $0x18] sm:$0xff] }
   0xa   :  { %v790_v25 = vld [vmem:[%s931_s0 + $0x38] sm:$0xff]  ;;  %v523_v28 = vcombine.high %v775_v22, %v780_v23  ;;  %v522_v30 = vcombine.low %v775_v22, %v780_v23 }
   0xb   :  { %550 = vmatpush3.bf16.msra.mxu0 %v609_v5  ;;  %595 = vmatpush3.bf16.msra.mxu1 %v609_v5  ;;  %v527_v29 = vcombine.high %v785_v24, %v790_v25  ;;  %v526_v31 = vcombine.low %v785_v24, %v790_v25 }
   0xc   :  { %551 = vmatprep.subr.bf16.mxu0 %v610_v6  ;;  %588 = vmatprep.subr.bf16.mxu1 %v610_v6 }
   0xf   :  { %552 = vmatpush3.bf16.msra.mxu0 %v611_v7  ;;  %596 = vmatpush3.bf16.msra.mxu1 %v611_v7 }
  0x10   :  { %553 = vmatprep.subr.bf16.mxu0 %v612_v8  ;;  %589 = vmatprep.subr.bf16.mxu1 %v612_v8 }
  0x13   :  { %554 = vmatpush3.bf16.msra.mxu0 %v613_v9  ;;  %597 = vmatpush3.bf16.msra.mxu1 %v613_v9 }
  0x14   :  { %555 = vmatprep.subr.bf16.mxu0 %v614_v10  ;;  %590 = vmatprep.subr.bf16.mxu1 %v614_v10 }
  0x17   :  { %556 = vmatpush3.bf16.msra.mxu0 %v615_v17  ;;  %598 = vmatpush3.bf16.msra.mxu1 %v615_v17 }
  0x18   :  { %557 = vmatprep.subr.bf16.mxu0 %v616_v18  ;;  %591 = vmatprep.subr.bf16.mxu1 %v616_v18 }
  0x1b   :  { %558 = vmatpush3.bf16.msra.mxu0 %v617_v19  ;;  %599 = vmatpush3.bf16.msra.mxu1 %v617_v19 }
  0x1c   :  { %559 = vmatprep.subr.bf16.mxu0 %v618_v20  ;;  %592 = vmatprep.subr.bf16.mxu1 %v618_v20 }
  0x1f   :  { %560 = vmatpush3.bf16.msra.mxu0 %v619_v21  ;;  %600 = vmatpush3.bf16.msra.mxu1 %v619_v21 }
  0x22   :  { %239 = vmatmul.mubr.bf16.vlgmr.msra.gmra.mrb[0].mxu0 %v520_v26  ;;  %255 = vmatmul.mubr.bf16.vlgmr.msra.gmra.mrb[0].mxu1 %v524_v27  ;;  %v664_v26 = vmov 0  }
  0x23   :  { %246 = vmatprep.mubr.bf16.mxu0 %v523_v28  ;;  %262 = vmatprep.mubr.bf16.mxu1 %v527_v29  ;;  %v314_v29 = vld [vmem:[%s934_s1 + $0x20] sm:$0xff] }
  0x24   :  { %603 = vset.pattern.permute.xlu1 %v664_v26  ;;  %602 = vset.pattern.permute.xlu0 %v664_v26  ;;  %vm322_vm0 = vcmp.gt.f32.partialorder %v314_v29, 0.0 }
  0x2a   :  { %247 = vmatmul.mubr.bf16.gmra.mrb[4].mxu0 %v522_v30  ;;  %263 = vmatmul.mubr.bf16.gmra.mrb[4].mxu1 %v526_v31  ;;  %v312_v30 = vld [vmem:[%s934_s1 + $0x10] sm:$0xff] }
  0x2b   :  { %vm320_vm1 = vcmp.gt.f32.partialorder %v312_v30, 0.0 }
  0xf5   :  { %v561_v32 = vpop.f32.mrb[0].mxu0  ;;  %v573_v33 = vpop.f32.mrb[0].mxu1 }
  0xf6   :  { %v562_v35 = vpop.f32.mrb[1].mxu0  ;;  %v574_v36 = vpop.f32.mrb[1].mxu1 }
  0xf7   :  { %v563_v37 = vadd.f32 %v562_v35, %v561_v32  ;;  %v564_v38 = vpop.f32.mrb[2].mxu0  ;;  %v575_v39 = vadd.f32 %v574_v36, %v573_v33  ;;  %v576_v40 = vpop.f32.mrb[2].mxu1  ;;  %v310_v32 = vld [vmem:[%s934_s1] sm:$0xff]  ;;  %v316_v33 = vld [vmem:[%s934_s1 + $0x30] sm:$0xff]  ;;  %v311_v35 = vld [vmem:[%s934_s1 + $0x8] sm:$0xff] }
  0xf8   :  { %v565_v41 = vpop.f32.mrb[3].mxu0  ;;  %v577_v42 = vpop.f32.mrb[3].mxu1  ;;  %vm318_vm2 = vcmp.gt.f32.partialorder %v310_v32, 0.0  ;;  %vm324_vm3 = vcmp.gt.f32.partialorder %v316_v33, 0.0  ;;  %vm319_vm5 = vcmp.gt.f32.partialorder %v311_v35, 0.0 }
  0xf9   :  { %v241_v43 = vadd.f32 %v563_v37, %v519_v34  ;;  %v257_v44 = vadd.f32 %v575_v39, %v519_v34  ;;  %v566_v45 = vadd.f32 %v565_v41, %v564_v38  ;;  %v578_v46 = vadd.f32 %v577_v42, %v576_v40  ;;  %v315_v37 = vld [vmem:[%s934_s1 + $0x28] sm:$0xff]  ;;  %v313_v40 = vld [vmem:[%s934_s1 + $0x18] sm:$0xff] }
  0xfa   :  { %v317_v42 = vld [vmem:[%s934_s1 + $0x38] sm:$0xff]  ;;  %vm323_vm6 = vcmp.gt.f32.partialorder %v315_v37, 0.0  ;;  %vm321_vm7 = vcmp.gt.f32.partialorder %v313_v40, 0.0 }
  0xfb   :  { %628 = vtanh.f32 %v241_v43  ;;  %v260_v47 = vadd.f32 %v578_v46, %v519_v34  ;;  %v244_v48 = vadd.f32 %v566_v45, %v519_v34  ;;  %vm325_vm8 = vcmp.gt.f32.partialorder %v317_v42, 0.0 }
  0xfc   :  { %630 = vtanh.f32 %v257_v44 }
  0xfd   :  { %v567_v49 = vpop.f32.mrb[4].mxu0  ;;  %v579_v50 = vpop.f32.mrb[4].mxu1  ;;  %632 = vtanh.f32 %v260_v47 }
  0xfe   :  { %v568_v51 = vpop.f32.mrb[5].mxu0  ;;  %v580_v52 = vpop.f32.mrb[5].mxu1  ;;  %634 = vtanh.f32 %v244_v48 }
  0xff   :  { %v569_v53 = vadd.f32 %v568_v51, %v567_v49  ;;  %v581_v54 = vadd.f32 %v580_v52, %v579_v50  ;;  %v570_v55 = vpop.f32.mrb[6].mxu0  ;;  %v582_v56 = vpop.f32.mrb[6].mxu1 }
 0x100   :  { %v571_v57 = vpop.f32.mrb[7].mxu0  ;;  %v583_v58 = vpop.f32.mrb[7].mxu1 }
 0x101   :  { %v249_v59 = vadd.f32 %v569_v53, %v519_v34  ;;  %v265_v60 = vadd.f32 %v581_v54, %v519_v34  ;;  %v572_v61 = vadd.f32 %v571_v57, %v570_v55  ;;  %v584_v62 = vadd.f32 %v583_v58, %v582_v56 }
 0x103   :  { %636 = vtanh.f32 %v249_v59  ;;  %v252_v63 = vadd.f32 %v572_v61, %v519_v34  ;;  %v268_v2 = vadd.f32 %v584_v62, %v519_v34 }
 0x104   :  { %638 = vtanh.f32 %v265_v60 }
 0x105   :  { %v629_v1 = vpop.eup %628  ;;  %640 = vtanh.f32 %v252_v63 }
 0x106   :  { %v631_v3 = vpop.eup %630  ;;  %v286_v4 = vmul.f32 %v629_v1, %v544_v0  ;;  %642 = vtanh.f32 %v268_v2 }
 0x107   :  { %v633_v5 = vpop.eup %632  ;;  %v290_v6 = vmul.f32 %v631_v3, %v544_v0 }
 0x108   :  { %294 = vadd.xlane.f32.xlu0 %v286_v4  ;;  %v291_v7 = vmul.f32 %v633_v5, %v544_v0  ;;  %v635_v8 = vpop.eup %634 }
 0x109   :  { %v287_v16 = vmul.f32 %v635_v8, %v544_v0 }
 0x10a   :  { %304 = vadd.xlane.f32.xlu1 %v291_v7 }
 0x10c   :  { %302 = vadd.xlane.f32.xlu0 %v290_v6 }
 0x10d   :  { %v637_v9 = vpop.eup %636 }
 0x10e   :  { %v639_v10 = vpop.eup %638  ;;  %v288_v14 = vmul.f32 %v637_v9, %v544_v0 }
 0x10f   :  { %v641_v17 = vpop.eup %640  ;;  %v292_v19 = vmul.f32 %v639_v10, %v544_v0 }
 0x110   :  { %298 = vadd.xlane.f32.xlu1 %v288_v14  ;;  %296 = vadd.xlane.f32.xlu0 %v287_v16  ;;  %v289_v18 = vmul.f32 %v641_v17, %v544_v0  ;;  %v643_v20 = vpop.eup %642 }
 0x111   :  { %v293_v21 = vmul.f32 %v643_v20, %v544_v0 }
 0x114   :  { %300 = vadd.xlane.f32.xlu1 %v289_v18  ;;  %306 = vadd.xlane.f32.xlu0 %v292_v19 }
 0x118   :  { %308 = vadd.xlane.f32.xlu1 %v293_v21 }
 0x195   :  { %v295_v27 = vpop.xlane.xlu0 %294 }
 0x196   :  { %v326_v41 = vsel %vm318_vm2, %v295_v27, -1e+30 }
 0x197   :  { %v810_v28 = vpop.xlane.xlu1 %304  ;;  %v335_v48 = vsel %vm334_vm4, %v326_v41, -inf }
 0x198   :  { %v331_v51 = vsel %vm323_vm6, %v810_v28, -1e+30 }
 0x199   :  { %v303_v31 = vpop.xlane.xlu0 %302  ;;  %v344_v59 = vsel %vm334_vm4, %v331_v51, -inf }
 0x19a   :  { %v330_v38 = vsel %vm322_vm0, %v303_v31, -1e+30 }
 0x19b   :  { %v337_v43 = vsel %vm334_vm4, %v330_v38, -inf }
 0x19c   :  { %v338_v52 = vmax.f32 %v335_v48, %v337_v43 }
 0x19d   :  { %v299_v34 = vpop.xlane.xlu1 %298  ;;  %v297_v36 = vpop.xlane.xlu0 %296 }
 0x19e   :  { %v328_v39 = vsel %vm320_vm1, %v299_v34, -1e+30  ;;  %v327_v49 = vsel %vm319_vm5, %v297_v36, -1e+30 }
 0x19f   :  { %v336_v44 = vsel %vm334_vm4, %v328_v39, -inf  ;;  %v342_v56 = vsel %vm334_vm4, %v327_v49, -inf }
 0x1a0   :  { %v345_v2 = vmax.f32 %v342_v56, %v344_v59 }
 0x1a1   :  { %v301_v45 = vpop.xlane.xlu1 %300  ;;  %v307_v46 = vpop.xlane.xlu0 %306 }
 0x1a2   :  { %v332_v47 = vsel %vm324_vm3, %v307_v46, -1e+30  ;;  %v329_v53 = vsel %vm321_vm7, %v301_v45, -1e+30 }
 0x1a3   :  { %v339_v50 = vsel %vm334_vm4, %v332_v47, -inf  ;;  %v343_v60 = vsel %vm334_vm4, %v329_v53, -inf }
 0x1a4   :  { %v340_v54 = vmax.f32 %v336_v44, %v339_v50 }
 0x1a5   :  { %v309_v55 = vpop.xlane.xlu1 %308 }
 0x1a6   :  { %v341_v57 = vmax.f32 %v338_v52, %v340_v54  ;;  %v333_v58 = vsel %vm325_vm8, %v309_v55, -1e+30 }
 0x1a7   :  { %v346_v61 = vsel %vm334_vm4, %v333_v58, -inf }
 0x1a8   :  { %v349_v62 = vsub.f32 %v295_v27, %v341_v57  ;;  %v351_v63 = vsub.f32 %v299_v34, %v341_v57  ;;  %v353_v0 = vsub.f32 %v303_v31, %v341_v57  ;;  %v355_v1 = vsub.f32 %v307_v46, %v341_v57 }
 0x1a9   :  { %v347_v3 = vmax.f32 %v343_v60, %v346_v61 }
 0x1aa   :  { %v357_v4 = vsel %vm318_vm2, %v349_v62, -1e+30  ;;  %v361_v5 = vsel %vm322_vm0, %v353_v0, -1e+30  ;;  %v363_v6 = vsel %vm324_vm3, %v355_v1, -1e+30 }
 0x1ab   :  { %v365_v7 = vmul.f32 1.442695, %v357_v4  ;;  %v373_v8 = vmul.f32 1.442695, %v361_v5  ;;  %v348_v9 = vmax.f32 %v345_v2, %v347_v3  ;;  %v377_v10 = vmul.f32 1.442695, %v363_v6 }
 0x1ac   :  { %v359_v14 = vsel %vm320_vm1, %v351_v63, -1e+30 }
 0x1ad   :  { %644 = vpow2.f32 %v365_v7  ;;  %v350_v16 = vsub.f32 %v297_v36, %v348_v9  ;;  %v352_v17 = vsub.f32 %v301_v45, %v348_v9  ;;  %v354_v18 = vsub.f32 %v810_v28, %v348_v9 }
 0x1ae   :  { %v356_v19 = vsub.f32 %v309_v55, %v348_v9  ;;  %v369_v20 = vmul.f32 1.442695, %v359_v14  ;;  %646 = vpow2.f32 %v373_v8  ;;  %v427_v9 = vunpack.c.l.bf16 %v775_v22 }
 0x1af   :  { %v360_v21 = vsel %vm321_vm7, %v352_v17, -1e+30  ;;  %v362_v26 = vsel %vm323_vm6, %v354_v18, -1e+30  ;;  %v358_v27 = vsel %vm319_vm5, %v350_v16, -1e+30  ;;  %v423_v14 = vunpack.c.l.bf16 %v736_v11 }
 0x1b0   :  { %v364_v29 = vsel %vm325_vm8, %v356_v19, -1e+30  ;;  %v371_v31 = vmul.f32 1.442695, %v360_v21  ;;  %v375_v32 = vmul.f32 1.442695, %v362_v26  ;;  %648 = vpow2.f32 %v369_v20 }
 0x1b1   :  { %650 = vpow2.f32 %v377_v10  ;;  %v367_v30 = vmul.f32 1.442695, %v358_v27  ;;  %v379_v33 = vmul.f32 1.442695, %v364_v29  ;;  %v428_v10 = vunpack.c.h.bf16 %v775_v22 }
 0x1b2   :  { %652 = vpow2.f32 %v371_v31  ;;  %v424_v16 = vunpack.c.h.bf16 %v736_v11  ;;  %v431_v19 = vunpack.c.l.bf16 %v746_v13  ;;  %v432_v20 = vunpack.c.h.bf16 %v746_v13 }
 0x1b3   :  { %654 = vpow2.f32 %v375_v32  ;;  %v436_v22 = vunpack.c.h.bf16 %v785_v24 }
 0x1b4   :  { %656 = vpow2.f32 %v367_v30 }
 0x1b5   :  { %658 = vpow2.f32 %v379_v33  ;;  %v435_v33 = vunpack.c.l.bf16 %v785_v24  ;;  %v429_v24 = vunpack.c.l.bf16 %v780_v23 }
 0x1b7   :  { %v645_v28 = vpop.eup %644 }
 0x1b8   :  { %v647_v34 = vpop.eup %646  ;;  %v381_v36 = vsel %vm334_vm4, %v645_v28, 0.0 }
 0x1b9   :  { %v384_v41 = vsel %vm334_vm4, %v647_v34, 0.0 }
 0x1ba   :  { %v649_v37 = vpop.eup %648 }
 0x1bb   :  { %v651_v38 = vpop.eup %650  ;;  %v382_v35 = vsel %vm334_vm4, %v649_v37, 0.0 }
 0x1bc   :  { %v653_v39 = vpop.eup %652  ;;  %v383_v40 = vadd.f32 %v382_v35, %v381_v36  ;;  %v386_v46 = vsel %vm334_vm4, %v651_v38, 0.0 }
 0x1bd   :  { %v655_v42 = vpop.eup %654  ;;  %v389_v44 = vsel %vm334_vm4, %v653_v39, 0.0 }
 0x1be   :  { %v385_v43 = vadd.f32 %v384_v41, %v383_v40  ;;  %v657_v45 = vpop.eup %656  ;;  %v391_v51 = vsel %vm334_vm4, %v655_v42, 0.0  ;;  %v430_v41 = vunpack.c.h.bf16 %v780_v23 }
 0x1bf   :  { %v388_v48 = vsel %vm334_vm4, %v657_v45, 0.0  ;;  %v659_v49 = vpop.eup %658 }
 0x1c0   :  { %v387_v47 = vadd.f32 %v386_v46, %v385_v43  ;;  %v390_v50 = vadd.f32 %v389_v44, %v388_v48  ;;  %v393_v54 = vsel %vm334_vm4, %v659_v49, 0.0  ;;  %v425_v43 = vunpack.c.l.bf16 %v741_v12 }
 0x1c1   :  { %v426_v44 = vunpack.c.h.bf16 %v741_v12  ;;  %v434_v46 = vunpack.c.h.bf16 %v753_v15 }
 0x1c2   :  { %vm395_vm9 = vcmp.gt.f32.partialorder %v387_v47, 0.0  ;;  %v392_v53 = vadd.f32 %v391_v51, %v390_v50  ;;  %v437_v50 = vunpack.c.l.bf16 %v790_v25  ;;  %v438_v51 = vunpack.c.h.bf16 %v790_v25 }
 0x1c3   :  { %v397_v52 = vsel %vm395_vm9, %v387_v47, 1.0 }
 0x1c4   :  { %660 = vrcp.f32 %v397_v52  ;;  %v394_v55 = vadd.f32 %v393_v54, %v392_v53 }
 0x1c6   :  { %vm396_vm10 = vcmp.gt.f32.partialorder %v394_v55, 0.0 }
 0x1c7   :  { %v398_v56 = vsel %vm396_vm10, %v394_v55, 1.0 }
 0x1c8   :  { %662 = vrcp.f32 %v398_v56 }
 0x1ce   :  { %v661_v57 = vpop.eup %660 }
 0x1cf   :  { %v401_v58 = vmul.f32 %v661_v57, %v397_v52 }
 0x1d1   :  { %v403_v59 = vsub.f32 2.0, %v401_v58 }
 0x1d2   :  { %v663_v60 = vpop.eup %662 }
 0x1d3   :  { %v405_v61 = vmul.f32 %v661_v57, %v403_v59  ;;  %v402_v62 = vmul.f32 %v663_v60, %v398_v56 }
 0x1d5   :  { %v409_v63 = vmul.f32 %v649_v37, %v405_v61  ;;  %v407_v0 = vmul.f32 %v645_v28, %v405_v61  ;;  %v411_v1 = vmul.f32 %v647_v34, %v405_v61  ;;  %v413_v2 = vmul.f32 %v651_v38, %v405_v61 }
 0x1d6   :  { %v404_v3 = vsub.f32 2.0, %v402_v62 }
 0x1d7   :  { %451 = vperm.xlu1 %603, %v409_v63   ;;  %417 = vst.msk [vmem:[%s935_s5 + $0x10] sm:$0xff] %vm334_vm4, %v409_v63  ;;  %441 = vperm.xlu0 %602, %v407_v0   ;;  %415 = vst.msk [vmem:[%s935_s5] sm:$0xff] %vm334_vm4, %v407_v0 }
 0x1d8   :  { %419 = vst.msk [vmem:[%s935_s5 + $0x20] sm:$0xff] %vm334_vm4, %v411_v1  ;;  %421 = vst.msk [vmem:[%s935_s5 + $0x30] sm:$0xff] %vm334_vm4, %v413_v2  ;;  %v406_v4 = vmul.f32 %v663_v60, %v404_v3 }
 0x1da   :  { %v408_v5 = vmul.f32 %v657_v45, %v406_v4  ;;  %v410_v6 = vmul.f32 %v653_v39, %v406_v4  ;;  %v412_v7 = vmul.f32 %v655_v42, %v406_v4  ;;  %v414_v8 = vmul.f32 %v659_v49, %v406_v4 }
 0x1db   :  { %461 = vperm.xlu1 %603, %v411_v1   ;;  %v433_v45 = vunpack.c.l.bf16 %v753_v15 }
 0x1dc   :  { %416 = vst.msk [vmem:[%s935_s5 + $0x8] sm:$0xff] %vm334_vm4, %v408_v5  ;;  %418 = vst.msk [vmem:[%s935_s5 + $0x18] sm:$0xff] %vm334_vm4, %v410_v6 }
 0x1dd   :  { %420 = vst.msk [vmem:[%s935_s5 + $0x28] sm:$0xff] %vm334_vm4, %v412_v7  ;;  %422 = vst.msk [vmem:[%s935_s5 + $0x38] sm:$0xff] %vm334_vm4, %v414_v8 }
 0x1df   :  { %471 = vperm.xlu1 %603, %v413_v2  }
 0x1e3   :  { %446 = vperm.xlu1 %603, %v408_v5  }
 0x1e7   :  { %456 = vperm.xlu1 %603, %v410_v6  }
 0x1eb   :  { %466 = vperm.xlu1 %603, %v412_v7  }
 0x1ef   :  { %476 = vperm.xlu1 %603, %v414_v8  }
 0x256   :  { %v452_v17 = vpop.permute.xlu1 %451  ;;  %v442_v18 = vpop.permute.xlu0 %441 }
 0x257   :  { %v483_v21 = vmul.f32 %v452_v17, %v427_v9  ;;  %v484_v26 = vmul.f32 %v452_v17, %v428_v10  ;;  %v479_v27 = vmul.f32 %v442_v18, %v423_v14  ;;  %v480_v29 = vmul.f32 %v442_v18, %v424_v16 }
 0x259   :  { %v495_v28 = vadd.f32 %v483_v21, %v479_v27  ;;  %v498_v34 = vadd.f32 %v484_v26, %v480_v29 }
 0x25a   :  { %v462_v31 = vpop.permute.xlu1 %461 }
 0x25b   :  { %v487_v32 = vmul.f32 %v462_v31, %v431_v19  ;;  %v488_v30 = vmul.f32 %v462_v31, %v432_v20 }
 0x25d   :  { %v496_v36 = vadd.f32 %v495_v28, %v487_v32  ;;  %v499_v37 = vadd.f32 %v498_v34, %v488_v30 }
 0x25e   :  { %v472_v11 = vpop.permute.xlu1 %471 }
 0x25f   :  { %v491_v38 = vmul.f32 %v472_v11, %v435_v33  ;;  %v492_v35 = vmul.f32 %v472_v11, %v436_v22 }
 0x261   :  { %v497_v39 = vadd.f32 %v496_v36, %v491_v38  ;;  %v500_v13 = vadd.f32 %v499_v37, %v492_v35 }
 0x262   :  { %v447_v40 = vpop.permute.xlu1 %446 }
 0x263   :  { %507 = vst [vmem:[%s936_s6] sm:$0xff] %v497_v39  ;;  %508 = vst [vmem:[%s936_s6 + $0x8] sm:$0xff] %v500_v13  ;;  %v481_v52 = vmul.f32 %v447_v40, %v425_v43  ;;  %v482_v53 = vmul.f32 %v447_v40, %v426_v44 }
 0x266   :  { %v457_v42 = vpop.permute.xlu1 %456 }
 0x267   :  { %v485_v47 = vmul.f32 %v457_v42, %v429_v24  ;;  %v486_v48 = vmul.f32 %v457_v42, %v430_v41 }
 0x269   :  { %v501_v55 = vadd.f32 %v485_v47, %v481_v52  ;;  %v504_v56 = vadd.f32 %v486_v48, %v482_v53 }
 0x26a   :  { %v467_v49 = vpop.permute.xlu1 %466 }
 0x26b   :  { %v489_v54 = vmul.f32 %v467_v49, %v433_v45  ;;  %v490_v23 = vmul.f32 %v467_v49, %v434_v46 }
 0x26d   :  { %v502_v58 = vadd.f32 %v501_v55, %v489_v54  ;;  %v505_v12 = vadd.f32 %v504_v56, %v490_v23 }
 0x26e   :  { %v477_v57 = vpop.permute.xlu1 %476 }
 0x26f   :  { %v493_v59 = vmul.f32 %v477_v57, %v437_v50  ;;  %v494_v60 = vmul.f32 %v477_v57, %v438_v51 }
 0x271   :  { %v503_v61 = vadd.f32 %v502_v58, %v493_v59  ;;  %v506_v15 = vadd.f32 %v505_v12, %v494_v60 }
 0x273   :  { %509 = vst [vmem:[%s936_s6 + $0x10] sm:$0xff] %v503_v61  ;;  %510 = vst [vmem:[%s936_s6 + $0x18] sm:$0xff] %v506_v15 }

// kernel: forward.4
= control target key start
LH: loop header
LB: loop body
LE: loop exit
PB: predicated region body
PF: predicated region fallthrough
CT: control target
= control target key end

     0   :  { %v7493_v1 = vmov 0   ;;  %v7495_v58 = vmov 0.0   ;;  %s7484_s1 = inlined_call_operand.vmem [shape: bf16[128,768], index: 1, kind: input, shape index: {}]   ;;  %s7485_s0 = inlined_call_operand.vmem [shape: bf16[8,16,128], index: 0, kind: input, shape index: {}]   ;;  %s7486_s3 = inlined_call_operand.vmem [shape: bf16[2,128,384], index: 3, kind: input, shape index: {}]   ;;  %s7487_s5 = inlined_call_operand.vmem [shape: f32[8,16,1], index: 5, kind: input, shape index: {}]   ;;  %s7488_s2 = inlined_call_operand.vmem [shape: f32[1,768], index: 2, kind: input, shape index: {}]   ;;  %s7489_s4 = inlined_call_operand.vmem [shape: f32[2,1,384], index: 4, kind: input, shape index: {}]   ;;  %s7490_s6 = inlined_call_operand.vmem [shape: bf16[8,16,256], index: 6, kind: output, shape index: {}]  }
   0x1   :  { %v4791_v0 = vld [vmem:[%s7484_s1 + $0x4] ss:$24 sps:$4 sm:$0xff]   ;;  %440 = vmatprep.mubr.bf16.mxu0 %v7493_v1  ;;  %553 = vmatprep.mubr.bf16.mxu1 %v7493_v1  ;;  %v4793_v2 = vld [vmem:[%s7484_s1] ss:$24 sps:$4 sm:$0xff]   ;;  %v4794_v3 = vld [vmem:[%s7484_s1 + $0x34] ss:$24 sps:$4 sm:$0xff]  }
   0x2   :  { %4789 = vset.pattern.permute.xlu0 %v7493_v1  ;;  %4790 = vset.pattern.permute.xlu1 %v7493_v1  ;;  %v4796_v4 = vld [vmem:[%s7484_s1 + $0x30] ss:$24 sps:$4 sm:$0xff]   ;;  %v4797_v5 = vld [vmem:[%s7484_s1 + $0x64] ss:$24 sps:$4 sm:$0xff]   ;;  %v4799_v6 = vld [vmem:[%s7484_s1 + $0x60] ss:$24 sps:$4 sm:$0xff]  }
   0x3   :  { %408 = vmatprep.subr.bf16.mxu0 %v4791_v0  ;;  %v4800_v7 = vld [vmem:[%s7484_s1 + $0x94] ss:$24 sps:$4 sm:$0xff]   ;;  %v4802_v8 = vld [vmem:[%s7484_s1 + $0x90] ss:$24 sps:$4 sm:$0xff]   ;;  %v4803_v9 = vld [vmem:[%s7484_s1 + $0xc4] ss:$24 sps:$4 sm:$0xff]  }
   0x4   :  { %409 = vmatpush1.bf16.msra.mxu0 %v4793_v2  ;;  %v4805_v10 = vld [vmem:[%s7484_s1 + $0xc0] ss:$24 sps:$4 sm:$0xff]   ;;  %v4806_v11 = vld [vmem:[%s7484_s1 + $0xf4] ss:$24 sps:$4 sm:$0xff]   ;;  %v4808_v12 = vld [vmem:[%s7484_s1 + $0xf0] ss:$24 sps:$4 sm:$0xff]  }
   0x5   :  { %410 = vmatprep.subr.bf16.mxu0 %v4794_v3  ;;  %v4809_v13 = vld [vmem:[%s7484_s1 + $0x124] ss:$24 sps:$4 sm:$0xff]   ;;  %v4811_v14 = vld [vmem:[%s7484_s1 + $0x120] ss:$24 sps:$4 sm:$0xff]   ;;  %v4812_v15 = vld [vmem:[%s7484_s1 + $0x154] ss:$24 sps:$4 sm:$0xff]  }
   0x6   :  { %v4814_v16 = vld [vmem:[%s7484_s1 + $0x150] ss:$24 sps:$4 sm:$0xff]   ;;  %v4818_v17 = vld [vmem:[%s7484_s1 + $0x14] ss:$24 sps:$4 sm:$0xff]   ;;  %v5403_v19 = vld [vmem:[%s7485_s0] sm:$0xff]  }
   0x7   :  { %v4844_v18 = vld [vmem:[%s7484_s1 + $0xc] ss:$24 sps:$4 sm:$0xff]   ;;  %v4816_v20 = vld [vmem:[%s7484_s1 + $0x10] ss:$24 sps:$4 sm:$0xff]   ;;  %v4850_v23 = vld [vmem:[%s7484_s1 + $0x3c] ss:$24 sps:$4 sm:$0xff]  }
   0x8   :  { %411 = vmatpush1.bf16.msra.mxu0 %v4796_v4  ;;  %521 = vmatprep.subr.bf16.mxu1 %v4844_v18  ;;  %v4849_v21 = vld [vmem:[%s7484_s1 + $0x8] ss:$24 sps:$4 sm:$0xff]   ;;  %v4822_v22 = vld [vmem:[%s7484_s1 + $0x44] ss:$24 sps:$4 sm:$0xff]   ;;  %v4852_v24 = vld [vmem:[%s7484_s1 + $0x38] ss:$24 sps:$4 sm:$0xff]  }
   0x9   :  { %412 = vmatprep.subr.bf16.mxu0 %v4797_v5  ;;  %522 = vmatpush1.bf16.msra.mxu1 %v4849_v21  ;;  %v4853_v25 = vld [vmem:[%s7484_s1 + $0x6c] ss:$24 sps:$4 sm:$0xff]   ;;  %v4820_v26 = vld [vmem:[%s7484_s1 + $0x40] ss:$24 sps:$4 sm:$0xff]   ;;  %v4859_v29 = vld [vmem:[%s7484_s1 + $0x9c] ss:$24 sps:$4 sm:$0xff]  }
   0xa   :  { %523 = vmatprep.subr.bf16.mxu1 %v4850_v23  ;;  %v4826_v27 = vld [vmem:[%s7484_s1 + $0x74] ss:$24 sps:$4 sm:$0xff]   ;;  %v4857_v28 = vld [vmem:[%s7484_s1 + $0x68] ss:$24 sps:$4 sm:$0xff]   ;;  %v4830_v32 = vld [vmem:[%s7484_s1 + $0xa4] ss:$24 sps:$4 sm:$0xff]  }
   0xb   :  { %v5440_v30 = vld [vmem:[%s7485_s0 + $0x8] sm:$0xff]   ;;  %v4861_v33 = vld [vmem:[%s7484_s1 + $0x98] ss:$24 sps:$4 sm:$0xff]   ;;  %v4868_v38 = vld [vmem:[%s7484_s1 + $0xfc] ss:$24 sps:$4 sm:$0xff]  }
   0xc   :  { %413 = vmatpush1.bf16.msra.mxu0 %v4799_v6  ;;  %v4824_v31 = vld [vmem:[%s7484_s1 + $0x70] ss:$24 sps:$4 sm:$0xff]   ;;  %v4862_v34 = vld [vmem:[%s7484_s1 + $0xcc] ss:$24 sps:$4 sm:$0xff]   ;;  %v4828_v35 = vld [vmem:[%s7484_s1 + $0xa0] ss:$24 sps:$4 sm:$0xff]  }
   0xd   :  { %414 = vmatprep.subr.bf16.mxu0 %v4800_v7  ;;  %524 = vmatpush1.bf16.msra.mxu1 %v4852_v24  ;;  %v4834_v36 = vld [vmem:[%s7484_s1 + $0xd4] ss:$24 sps:$4 sm:$0xff]   ;;  %v4866_v37 = vld [vmem:[%s7484_s1 + $0xc8] ss:$24 sps:$4 sm:$0xff]   ;;  %v4838_v41 = vld [vmem:[%s7484_s1 + $0x104] ss:$24 sps:$4 sm:$0xff]  }
   0xe   :  { %525 = vmatprep.subr.bf16.mxu1 %v4853_v25  ;;  %v5471_v39 = vld [vmem:[%s7485_s0 + $0x10] sm:$0xff]   ;;  %v4871_v43 = vld [vmem:[%s7484_s1 + $0x12c] ss:$24 sps:$4 sm:$0xff]   ;;  %v4836_v44 = vld [vmem:[%s7484_s1 + $0x100] ss:$24 sps:$4 sm:$0xff]  }
   0xf   :  { %v4832_v40 = vld [vmem:[%s7484_s1 + $0xd0] ss:$24 sps:$4 sm:$0xff]   ;;  %v4842_v45 = vld [vmem:[%s7484_s1 + $0x134] ss:$24 sps:$4 sm:$0xff]   ;;  %v5502_v48 = vld [vmem:[%s7485_s0 + $0x18] sm:$0xff]  }
  0x10   :  { %415 = vmatpush1.bf16.msra.mxu0 %v4802_v8  ;;  %v4870_v42 = vld [vmem:[%s7484_s1 + $0xf8] ss:$24 sps:$4 sm:$0xff]   ;;  %v4875_v46 = vld [vmem:[%s7484_s1 + $0x128] ss:$24 sps:$4 sm:$0xff]   ;;  %v4877_v47 = vld [vmem:[%s7484_s1 + $0x15c] ss:$24 sps:$4 sm:$0xff]  }
  0x11   :  { %416 = vmatprep.subr.bf16.mxu0 %v4803_v9  ;;  %526 = vmatpush1.bf16.msra.mxu1 %v4857_v28  ;;  %v4840_v49 = vld [vmem:[%s7484_s1 + $0x130] ss:$24 sps:$4 sm:$0xff]   ;;  %v4848_v50 = vld [vmem:[%s7484_s1 + $0x164] ss:$24 sps:$4 sm:$0xff]   ;;  %v4846_v53 = vld [vmem:[%s7484_s1 + $0x160] ss:$24 sps:$4 sm:$0xff]  }
  0x12   :  { %527 = vmatprep.subr.bf16.mxu1 %v4859_v29  ;;  %v4879_v51 = vld [vmem:[%s7484_s1 + $0x158] ss:$24 sps:$4 sm:$0xff]   ;;  %v1160_v52 = vld [vmem:[%s7487_s5] sm:$0xff]  ;;  %v1161_v54 = vld [vmem:[%s7487_s5 + $0x8] sm:$0xff] }
  0x13   :  { %vm1162_vm0 = vcmp.gt.f32.partialorder %v1160_v52, 0.0  ;;  %v5527_v55 = vld [vmem:[%s7486_s3 + $0x4] ss:$12 sps:$4 sm:$0xff]   ;;  %v5532_v56 = vld [vmem:[%s7486_s3 + $0x8] ss:$12 sps:$4 sm:$0xff]   ;;  %vm1163_vm1 = vcmp.gt.f32.partialorder %v1161_v54, 0.0 }
  0x14   :  { %417 = vmatpush1.bf16.msra.mxu0 %v4805_v10  ;;  %v5535_v57 = vsel %vm1162_vm0, 1, %v7493_v1  ;;  %v3992_v59 = vld [vmem:[%s7487_s5 + $0x20] sm:$0xff]  ;;  %v3982_v61 = vld [vmem:[%s7487_s5 + $0x10] sm:$0xff]  ;;  %v3983_v62 = vld [vmem:[%s7487_s5 + $0x18] sm:$0xff]  ;;  %v5555_v63 = vsel %vm1163_vm1, 1, %v7493_v1  ;;  %vm5305_vm0 = vmmov 0  }
  0x15   :  { %418 = vmatprep.subr.bf16.mxu0 %v4806_v11  ;;  %528 = vmatpush1.bf16.msra.mxu1 %v4861_v33  ;;  %v5545_v60 = vld [vmem:[%s7485_s0 + $0x20] sm:$0xff]   ;;  %vm1331_vm2 = vcmp.gt.f32.partialorder %v3982_v61, 0.0  ;;  %vm1501_vm3 = vcmp.gt.f32.partialorder %v3992_v59, 0.0  ;;  %v4002_v2 = vld [vmem:[%s7487_s5 + $0x30] sm:$0xff]  ;;  %vm1332_vm4 = vcmp.gt.f32.partialorder %v3983_v62, 0.0  ;;  %v3993_v5 = vld [vmem:[%s7487_s5 + $0x28] sm:$0xff] }
  0x16   :  { %529 = vmatprep.subr.bf16.mxu1 %v4862_v34  ;;  %1167 = vperm.xlu0 %4789, %v5535_v57   ;;  %v5562_v0 = vld [vmem:[%s7486_s3 + $0x20] ss:$12 sps:$4 sm:$0xff]   ;;  %v5568_v3 = vsel %vm1331_vm2, 1, %v7493_v1  ;;  %v5582_v6 = vld [vmem:[%s7486_s3 + $0x38] ss:$12 sps:$4 sm:$0xff]   ;;  %v4022_v7 = vld [vmem:[%s7487_s5 + $0x50] sm:$0xff] }
  0x17   :  { %v4012_v4 = vld [vmem:[%s7487_s5 + $0x40] sm:$0xff]  ;;  %v4003_v8 = vld [vmem:[%s7487_s5 + $0x38] sm:$0xff]  ;;  %v5593_v9 = vsel %vm1501_vm3, 1, %v7493_v1  ;;  %vm1671_vm5 = vcmp.gt.f32.partialorder %v4002_v2, 0.0  ;;  %1336 = vperm.xlu1 %4790, %v5568_v3   ;;  %v5599_v10 = vld [vmem:[%s7485_s0 + $0x28] sm:$0xff]   ;;  %v5603_v11 = vsel %vm1332_vm4, 1, %v7493_v1 }
  0x18   :  { %419 = vmatpush1.bf16.msra.mxu0 %v4808_v12  ;;  %vm1841_vm6 = vcmp.gt.f32.partialorder %v4012_v4, 0.0  ;;  %vm1502_vm7 = vcmp.gt.f32.partialorder %v3993_v5, 0.0  ;;  %vm1672_vm8 = vcmp.gt.f32.partialorder %v4003_v8, 0.0  ;;  %v5609_v12 = vld [vmem:[%s7486_s3 + $0x50] ss:$12 sps:$4 sm:$0xff]   ;;  %vm2011_vm9 = vcmp.gt.f32.partialorder %v4022_v7, 0.0 }
  0x19   :  { %420 = vmatprep.subr.bf16.mxu0 %v4809_v13  ;;  %530 = vmatpush1.bf16.msra.mxu1 %v4866_v37  ;;  %v5613_v13 = vsel %vm1671_vm5, 1, %v7493_v1  ;;  %v5636_v18 = vld [vmem:[%s7486_s3 + $0x68] ss:$12 sps:$4 sm:$0xff]   ;;  %v2013_v23 = vsel %vm2011_vm9, 1, %v7493_v1  ;;  %v5664_v24 = vld [vmem:[%s7486_s3 + $0x80] ss:$12 sps:$4 sm:$0xff]  }
  0x1a   :  { %531 = vmatprep.subr.bf16.mxu1 %v4868_v38  ;;  %1170 = vperm.xlu0 %4789, %v5555_v63   ;;  %v5649_v21 = vld [vmem:[%s7485_s0 + $0x30] sm:$0xff]   ;;  %v5684_v29 = vld [vmem:[%s7486_s3 + $0x98] ss:$12 sps:$4 sm:$0xff]   ;;  %v5715_v38 = vld [vmem:[%s7486_s3] ss:$12 sps:$4 sm:$0xff]   ;;  %v7491_v52 = vmov 0.0|0.0  }
  0x1b   :  { %1339 = vperm.xlu1 %4790, %v5603_v11   ;;  %v4110_v33 = vld [vmem:[%s7487_s5 + $0x78] sm:$0xff] }
  0x1c   :  { %421 = vmatpush1.bf16.msra.mxu0 %v4811_v14  ;;  %v5617_v14 = vsel %vm1841_vm6, 1, %v7493_v1  ;;  %vm2699_vm15 = vcmp.gt.f32.partialorder %v4110_v33, 0.0 }
  0x1d   :  { %422 = vmatprep.subr.bf16.mxu0 %v4812_v15  ;;  %532 = vmatpush1.bf16.msra.mxu1 %v4870_v42  ;;  %v5621_v15 = vsel %vm1502_vm7, 1, %v7493_v1  ;;  %v2701_v37 = vsel %vm2699_vm15, 1, %v7493_v1  ;;  %v5736_v42 = vld [vmem:[%s7486_s3 + $0x34] ss:$12 sps:$4 sm:$0xff]  }
  0x1e   :  { %533 = vmatprep.subr.bf16.mxu1 %v4871_v43  ;;  %1506 = vperm.xlu0 %4789, %v5593_v9   ;;  %v5750_v43 = vld [vmem:[%s7486_s3 + $0x4c] ss:$12 sps:$4 sm:$0xff]  }
  0x1f   :  { %1509 = vperm.xlu1 %4790, %v5621_v15  }
  0x20   :  { %423 = vmatpush1.bf16.msra.mxu0 %v4814_v16  ;;  %v5626_v16 = vsel %vm1672_vm8, 1, %v7493_v1 }
  0x21   :  { %634 = vmatprep.subr.bf16.mxu0 %v4818_v17  ;;  %534 = vmatpush1.bf16.msra.mxu1 %v4875_v46  ;;  %v4013_v17 = vld [vmem:[%s7487_s5 + $0x48] sm:$0xff] }
  0x22   :  { %535 = vmatprep.subr.bf16.mxu1 %v4877_v47  ;;  %1676 = vperm.xlu0 %4789, %v5613_v13   ;;  %vm1842_vm10 = vcmp.gt.f32.partialorder %v4013_v17, 0.0  ;;  %v5781_v46 = vld [vmem:[%s7486_s3 + $0x7c] ss:$12 sps:$4 sm:$0xff]   ;;  %v5792_v47 = vld [vmem:[%s7486_s3 + $0x78] ss:$12 sps:$4 sm:$0xff]  }
  0x23   :  { %441 = vmatmul.mubr.bf16.vlgmr.msra.gmra.mrb[0].mxu0 %v5403_v19  ;;  %1679 = vperm.xlu1 %4790, %v5626_v16   ;;  %v5667_v25 = vsel %vm1842_vm10, 1, %v7493_v1 }
  0x24   :  { %635 = vmatpush1.bf16.msra.mxu0 %v4816_v20  ;;  %450 = vmatprep.mubr.bf16.mxu0 %v7493_v1  ;;  %v4032_v20 = vld [vmem:[%s7487_s5 + $0x60] sm:$0xff] }
  0x25   :  { %636 = vmatprep.subr.bf16.mxu0 %v4822_v22  ;;  %536 = vmatpush1.bf16.msra.mxu1 %v4879_v51  ;;  %v4023_v22 = vld [vmem:[%s7487_s5 + $0x58] sm:$0xff]  ;;  %vm2181_vm11 = vcmp.gt.f32.partialorder %v4032_v20, 0.0  ;;  %v5824_v51 = vld [vmem:[%s7486_s3 + $0xa8] ss:$12 sps:$4 sm:$0xff]  }
  0x26   :  { %4369 = vmatprep.subr.bf16.mxu1 %v7495_v58  ;;  %1846 = vperm.xlu0 %4789, %v5617_v14   ;;  %vm2012_vm12 = vcmp.gt.f32.partialorder %v4023_v22, 0.0  ;;  %v2183_v28 = vsel %vm2181_vm11, 1, %v7493_v1 }
  0x27   :  { %1849 = vperm.xlu1 %4790, %v5667_v25  }
  0x28   :  { %637 = vmatpush1.bf16.msra.mxu0 %v4820_v26  ;;  %554 = vmatmul.mubr.bf16.vlgmr.msra.gmra.mrb[0].mxu1 %v5403_v19  ;;  %v4109_v26 = vld [vmem:[%s7487_s5 + $0x70] sm:$0xff] }
  0x29   :  { %638 = vmatprep.subr.bf16.mxu0 %v4826_v27  ;;  %4370 = vmatpush3.bf16.msra.mxu1 %v5532_v56  ;;  %v4033_v27 = vld [vmem:[%s7487_s5 + $0x68] sm:$0xff]  ;;  %vm2698_vm13 = vcmp.gt.f32.partialorder %v4109_v26, 0.0 }
  0x2a   :  { %563 = vmatprep.mubr.bf16.mxu1 %v7493_v1  ;;  %4371 = vmatprep.subr.bf16.mxu1 %v7495_v58  ;;  %vm2182_vm14 = vcmp.gt.f32.partialorder %v4033_v27, 0.0  ;;  %v2700_v34 = vsel %vm2698_vm13, 1, %v7493_v1 }
  0x2b   :  { %451 = vmatmul.mubr.bf16.gmra.mrb[4].mxu0 %v5440_v30  ;;  %2016 = vperm.xlu0 %4789, %v2013_v23  }
  0x2c   :  { %460 = vmatprep.mubr.bf16.mxu0 %v7493_v1  ;;  %639 = vmatpush1.bf16.msra.mxu0 %v4824_v31  ;;  %v2014_v31 = vsel %vm2012_vm12, 1, %v7493_v1 }
  0x2d   :  { %640 = vmatprep.subr.bf16.mxu0 %v4830_v32  ;;  %4372 = vmatpush3.bf16.msra.mxu1 %v5562_v0  ;;  %v5691_v32 = vld [vmem:[%s7485_s0 + $0x38] sm:$0xff]  }
  0x2e   :  { %4373 = vmatprep.subr.bf16.mxu1 %v7495_v58  ;;  %2019 = vperm.xlu1 %4790, %v2014_v31  }
  0x2f   :  { %2186 = vperm.xlu0 %4789, %v2183_v28  }
  0x30   :  { %641 = vmatpush1.bf16.msra.mxu0 %v4828_v35  ;;  %564 = vmatmul.mubr.bf16.gmra.mrb[4].mxu1 %v5440_v30  ;;  %v5703_v35 = vld [vmem:[%s7486_s3 + $0xb0] ss:$12 sps:$4 sm:$0xff]  }
  0x31   :  { %642 = vmatprep.subr.bf16.mxu0 %v4834_v36  ;;  %573 = vmatprep.mubr.bf16.mxu1 %v7493_v1  ;;  %v2184_v36 = vsel %vm2182_vm14, 1, %v7493_v1 }
  0x32   :  { %4374 = vmatpush3.bf16.msra.mxu1 %v5582_v6  ;;  %2189 = vperm.xlu1 %4790, %v2184_v36  }
  0x33   :  { %461 = vmatmul.mubr.bf16.gmra.mrb[8].mxu0 %v5471_v39  ;;  %4375 = vmatprep.subr.bf16.mxu1 %v7495_v58 }
  0x34   :  { %470 = vmatprep.mubr.bf16.mxu0 %v7493_v1  ;;  %643 = vmatpush1.bf16.msra.mxu0 %v4832_v40  ;;  %v5721_v40 = vld [vmem:[%s7486_s3 + $0x1c] ss:$12 sps:$4 sm:$0xff]  }
  0x35   :  { %644 = vmatprep.subr.bf16.mxu0 %v4838_v41  ;;  %2703 = vperm.xlu0 %4789, %v2700_v34   ;;  %v5730_v41 = vld [vmem:[%s7486_s3 + $0x18] ss:$12 sps:$4 sm:$0xff]  }
  0x36   :  { %4376 = vmatpush3.bf16.msra.mxu1 %v5609_v12  ;;  %2706 = vperm.xlu1 %4790, %v2701_v37  }
  0x37   :  { %4377 = vmatprep.subr.bf16.mxu1 %v7495_v58 }
  0x38   :  { %645 = vmatpush1.bf16.msra.mxu0 %v4836_v44  ;;  %574 = vmatmul.mubr.bf16.gmra.mrb[8].mxu1 %v5471_v39  ;;  %v5760_v44 = vld [vmem:[%s7486_s3 + $0x48] ss:$12 sps:$4 sm:$0xff]  }
  0x39   :  { %646 = vmatprep.subr.bf16.mxu0 %v4842_v45  ;;  %583 = vmatprep.mubr.bf16.mxu1 %v7493_v1  ;;  %v5766_v45 = vld [vmem:[%s7486_s3 + $0x64] ss:$12 sps:$4 sm:$0xff]  }
  0x3a   :  { %4378 = vmatpush3.bf16.msra.mxu1 %v5636_v18  ;;  %2868 = vperm.xlu0 %4789, %v2183_v28  }
  0x3b   :  { %471 = vmatmul.mubr.bf16.gmra.mrb[12].mxu0 %v5502_v48  ;;  %4379 = vmatprep.subr.bf16.mxu1 %v7495_v58 }
  0x3c   :  { %480 = vmatprep.mubr.bf16.mxu0 %v7493_v1  ;;  %647 = vmatpush1.bf16.msra.mxu0 %v4840_v49  ;;  %v5798_v49 = vld [vmem:[%s7486_s3 + $0x94] ss:$12 sps:$4 sm:$0xff]  }
  0x3d   :  { %648 = vmatprep.subr.bf16.mxu0 %v4848_v50  ;;  %2871 = vperm.xlu1 %4790, %v2184_v36   ;;  %v5812_v50 = vld [vmem:[%s7486_s3 + $0xac] ss:$12 sps:$4 sm:$0xff]  }
  0x3e   :  { %4380 = vmatpush3.bf16.msra.mxu1 %v5664_v24  ;;  %3033 = vperm.xlu0 %4789, %v2013_v23  }
  0x3f   :  { %4381 = vmatprep.subr.bf16.mxu1 %v7495_v58 }
  0x40   :  { %649 = vmatpush1.bf16.msra.mxu0 %v4846_v53  ;;  %584 = vmatmul.mubr.bf16.gmra.mrb[12].mxu1 %v5502_v48 }
  0x41   :  { %1034 = vmatprep.subr.bf16.mxu0 %v5527_v55  ;;  %593 = vmatprep.mubr.bf16.mxu1 %v7493_v1 }
  0x42   :  { %4382 = vmatpush3.bf16.msra.mxu1 %v5684_v29  ;;  %3198 = vperm.xlu0 %4789, %v5617_v14  }
  0x43   :  { %481 = vmatmul.mubr.bf16.gmra.mrb[16].mxu0 %v5545_v60  ;;  %4383 = vmatprep.subr.bf16.mxu1 %v7495_v58 }
  0x44   :  { %490 = vmatprep.mubr.bf16.mxu0 %v7493_v1  ;;  %3036 = vperm.xlu1 %4790, %v2014_v31  }
  0x46   :  { %4384 = vmatpush3.bf16.msra.mxu1 %v5703_v35  ;;  %3363 = vperm.xlu0 %4789, %v5613_v13  }
  0x47   :  { %4389 = vmatprep.subr.bf16.mxu1 %v7495_v58 }
  0x48   :  { %594 = vmatmul.mubr.bf16.gmra.mrb[16].mxu1 %v5545_v60  ;;  %3201 = vperm.xlu1 %4790, %v5667_v25  }
  0x49   :  { %603 = vmatprep.mubr.bf16.mxu1 %v7493_v1 }
  0x4a   :  { %3528 = vperm.xlu0 %4789, %v5593_v9  }
  0x4b   :  { %491 = vmatmul.mubr.bf16.gmra.mrb[20].mxu0 %v5599_v10 }
  0x4c   :  { %500 = vmatprep.mubr.bf16.mxu0 %v7493_v1  ;;  %3366 = vperm.xlu1 %4790, %v5626_v16  }
  0x4e   :  { %3693 = vperm.xlu0 %4789, %v5568_v3   ;;  %v5897_v3 = vld [vmem:[%s7488_s2] sm:$0x3f] }
  0x50   :  { %604 = vmatmul.mubr.bf16.gmra.mrb[20].mxu1 %v5599_v10  ;;  %3531 = vperm.xlu1 %4790, %v5621_v15  }
  0x51   :  { %613 = vmatprep.mubr.bf16.mxu1 %v7493_v1 }
  0x52   :  { %2356 = vperm.xlu0 %4789, %v2700_v34  }
  0x53   :  { %501 = vmatmul.mubr.bf16.gmra.mrb[24].mxu0 %v5649_v21 }
  0x54   :  { %510 = vmatprep.mubr.bf16.mxu0 %v7493_v1  ;;  %3696 = vperm.xlu1 %4790, %v5603_v11  }
  0x56   :  { %3858 = vperm.xlu0 %4789, %v5535_v57   ;;  %v90_v57 = vlaneseq }
  0x58   :  { %614 = vmatmul.mubr.bf16.gmra.mrb[24].mxu1 %v5649_v21  ;;  %2359 = vperm.xlu1 %4790, %v2701_v37   ;;  %v5885_v61 = vshrl.u32 %v90_v57, 7 }
  0x59   :  { %623 = vmatprep.mubr.bf16.mxu1 %v7493_v1 }
  0x5a   :  { %v5914_v13 = vsub.s32 2, %v5885_v61 }
  0x5b   :  { %511 = vmatmul.mubr.bf16.gmra.mrb[28].mxu0 %v5691_v32 }
  0x5c   :  { %666 = vmatprep.mubr.bf16.mxu0 %v7493_v1  ;;  %3861 = vperm.xlu1 %4790, %v5555_v63   ;;  %v104_v63 = vsub.s32 3, %v5885_v61  ;;  %7514 = vst [vmem:[#allocation8_spill] sm:$0xff] %v5914_v13  ;;  %v5923_v17 = vrot.slane %v5897_v3, %v5914_v13 }
  0x5e   :  { %v5900_v4 = vrot.slane %v5897_v3, %v104_v63 }
  0x60   :  { %624 = vmatmul.mubr.bf16.gmra.mrb[28].mxu1 %v5691_v32  ;;  %7511 = vst [vmem:[#allocation5_spill] sm:$0xff] %v5900_v4 }
  0x61   :  { %4385 = vmatprep.mubr.msk.bf16.mxu1 %vm5305_vm0, %v7495_v58 }
  0x63   :  { %667 = vmatmul.mubr.bf16.vlgmr.msra.gmra.mrb[32].mxu0 %v5403_v19  ;;  %v5743_v19 = vld [vmem:[%s7486_s3 + $0x30] ss:$12 sps:$4 sm:$0xff]  }
  0x64   :  { %1035 = vmatpush1.bf16.msra.mxu0 %v5715_v38  ;;  %676 = vmatprep.mubr.bf16.mxu0 %v7493_v1 }
  0x65   :  { %1036 = vmatprep.subr.bf16.mxu0 %v5721_v40 }
  0x68   :  { %1037 = vmatpush1.bf16.msra.mxu0 %v5730_v41  ;;  %4386 = vmatmul.mubr.bf16.vlgmr.msra.gmra.mrb[32].mxu1 %v7491_v52 }
  0x69   :  { %1038 = vmatprep.subr.bf16.mxu0 %v5736_v42  ;;  %4390 = vmatpush3.bf16.msra.mxu1 %v5532_v56 }
  0x6a   :  { %4391 = vmatprep.subr.bf16.mxu1 %v7495_v58  ;;  %4405 = vmatprep.mubr.msk.bf16.mxu1 %vm5305_vm0, %v7495_v58 }
  0x6b   :  { %677 = vmatmul.mubr.bf16.gmra.mrb[36].mxu0 %v5440_v30  ;;  %v5774_v30 = vld [vmem:[%s7486_s3 + $0x60] ss:$12 sps:$4 sm:$0xff]  }
  0x6c   :  { %686 = vmatprep.mubr.bf16.mxu0 %v7493_v1  ;;  %1039 = vmatpush1.bf16.msra.mxu0 %v5743_v19 }
  0x6d   :  { %1040 = vmatprep.subr.bf16.mxu0 %v5750_v43  ;;  %4392 = vmatpush3.bf16.msra.mxu1 %v5562_v0 }
  0x6e   :  { %4393 = vmatprep.subr.bf16.mxu1 %v7495_v58 }
  0x70   :  { %1041 = vmatpush1.bf16.msra.mxu0 %v5760_v44 }
  0x71   :  { %1042 = vmatprep.subr.bf16.mxu0 %v5766_v45  ;;  %4394 = vmatpush3.bf16.msra.mxu1 %v5582_v6 }
  0x72   :  { %4395 = vmatprep.subr.bf16.mxu1 %v7495_v58 }
  0x73   :  { %687 = vmatmul.mubr.bf16.gmra.mrb[40].mxu0 %v5471_v39  ;;  %v5805_v39 = vld [vmem:[%s7486_s3 + $0x90] ss:$12 sps:$4 sm:$0xff]  }
  0x74   :  { %696 = vmatprep.mubr.bf16.mxu0 %v7493_v1  ;;  %1043 = vmatpush1.bf16.msra.mxu0 %v5774_v30 }
  0x75   :  { %1044 = vmatprep.subr.bf16.mxu0 %v5781_v46  ;;  %4396 = vmatpush3.bf16.msra.mxu1 %v5609_v12 }
  0x76   :  { %4397 = vmatprep.subr.bf16.mxu1 %v7495_v58 }
  0x78   :  { %1045 = vmatpush1.bf16.msra.mxu0 %v5792_v47 }
  0x79   :  { %1046 = vmatprep.subr.bf16.mxu0 %v5798_v49  ;;  %4398 = vmatpush3.bf16.msra.mxu1 %v5636_v18 }
  0x7a   :  { %4399 = vmatprep.subr.bf16.mxu1 %v7495_v58 }
  0x7b   :  { %697 = vmatmul.mubr.bf16.gmra.mrb[44].mxu0 %v5502_v48 }
  0x7c   :  { %706 = vmatprep.mubr.bf16.mxu0 %v7493_v1  ;;  %1047 = vmatpush1.bf16.msra.mxu0 %v5805_v39 }
  0x7d   :  { %1048 = vmatprep.subr.bf16.mxu0 %v5812_v50  ;;  %4400 = vmatpush3.bf16.msra.mxu1 %v5664_v24 }
  0x7e   :  { %4401 = vmatprep.subr.bf16.mxu1 %v7495_v58 }
  0x80   :  { %1049 = vmatpush1.bf16.msra.mxu0 %v5824_v51 }
  0x81   :  { %1202 = vmatprep.subr.bf16.mxu0 %v5527_v55  ;;  %4402 = vmatpush3.bf16.msra.mxu1 %v5684_v29 }
  0x82   :  { %4403 = vmatprep.subr.bf16.mxu1 %v7495_v58 }
  0x83   :  { %707 = vmatmul.mubr.bf16.gmra.mrb[48].mxu0 %v5545_v60 }
  0x84   :  { %716 = vmatprep.mubr.bf16.mxu0 %v7493_v1 }
  0x85   :  { %4404 = vmatpush3.bf16.msra.mxu1 %v5703_v35 }
  0x86   :  { %4409 = vmatprep.subr.bf16.mxu1 %v7495_v58 }
  0x8b   :  { %717 = vmatmul.mubr.bf16.gmra.mrb[52].mxu0 %v5599_v10 }
  0x8c   :  { %726 = vmatprep.mubr.bf16.mxu0 %v7493_v1 }
  0x93   :  { %727 = vmatmul.mubr.bf16.gmra.mrb[56].mxu0 %v5649_v21 }
  0x94   :  { %736 = vmatprep.mubr.bf16.mxu0 %v7493_v1 }
  0x95   :  { %v5875_v48 = vpop.permute.xlu0 %1167 }
  0x96   :  { %v5881_v59 = vpop.permute.xlu1 %1336  ;;  %vm1172_vm4 = vcmp.eq.s32.totalorder %v5875_v48, 1  ;;  %v7581_v48 = vmov 0.0  }
  0x97   :  { %vm1341_vm7 = vcmp.eq.s32.totalorder %v5881_v59, 1 }
  0x99   :  { %v5877_v53 = vpop.permute.xlu0 %1170 }
  0x9a   :  { %v5887_v62 = vpop.permute.xlu1 %1339  ;;  %vm1173_vm5 = vcmp.eq.s32.totalorder %v5877_v53, 1  ;;  %v7582_v53 = vmov 0  }
  0x9b   :  { %737 = vmatmul.mubr.bf16.gmra.mrb[60].mxu0 %v5691_v32  ;;  %vm4213_vm6 = vmpackc.low %vm1173_vm5, %vm1172_vm4  ;;  %vm1342_vm8 = vcmp.eq.s32.totalorder %v5887_v62, 1  ;;  %v6251_v62 = vld [vmem:[%s7486_s3 + $0x8] ss:$12 sps:$4 sm:$0xff]  }
  0x9c   :  { %1066 = vmatprep.mubr.bf16.mxu0 %v7493_v1 }
  0x9d   :  { %v5879_v54 = vpop.permute.xlu0 %1506 }
  0x9e   :  { %vm1511_vm9 = vcmp.eq.s32.totalorder %v5879_v54, 1 }
  0xa1   :  { %v5883_v60 = vpop.permute.xlu0 %1676 }
  0xa2   :  { %vm1681_vm11 = vcmp.eq.s32.totalorder %v5883_v60, 1 }
  0xa3   :  { %1067 = vmatmul.mubr.bf16.vlgmr.msra.gmra.mrb[0].mxu0 %v7491_v52 }
  0xa4   :  { %1203 = vmatpush1.bf16.msra.mxu0 %v5715_v38  ;;  %1234 = vmatprep.mubr.bf16.mxu0 %v7493_v1 }
  0xa5   :  { %1204 = vmatprep.subr.bf16.mxu0 %v5721_v40  ;;  %v5890_v2 = vpop.permute.xlu0 %1846 }
  0xa6   :  { %7510 = vst [vmem:[#allocation4_spill] sm:$0xff] %v5890_v2 }
  0xa8   :  { %1205 = vmatpush1.bf16.msra.mxu0 %v5730_v41 }
  0xa9   :  { %1206 = vmatprep.subr.bf16.mxu0 %v5736_v42 }
  0xaa   :  { %v5906_v9 = vpop.permute.xlu0 %2016 }
  0xab   :  { %7512 = vst [vmem:[#allocation6_spill] sm:$0xff] %v5906_v9 }
  0xac   :  { %1207 = vmatpush1.bf16.msra.mxu0 %v5743_v19 }
  0xad   :  { %1208 = vmatprep.subr.bf16.mxu0 %v5750_v43 }
  0xae   :  { %v5925_v20 = vpop.permute.xlu0 %2186 }
  0xaf   :  { %7517 = vst [vmem:[#allocation11_spill] sm:$0xff] %v5925_v20 }
  0xb0   :  { %1209 = vmatpush1.bf16.msra.mxu0 %v5760_v44 }
  0xb1   :  { %1210 = vmatprep.subr.bf16.mxu0 %v5766_v45 }
  0xb4   :  { %1211 = vmatpush1.bf16.msra.mxu0 %v5774_v30  ;;  %v5943_v34 = vpop.permute.xlu0 %2703 }
  0xb5   :  { %1212 = vmatprep.subr.bf16.mxu0 %v5781_v46  ;;  %7522 = vst [vmem:[#allocation16_spill] sm:$0xff] %v5943_v34  ;;  %vm2708_vm1 = vcmp.eq.s32.totalorder %v5943_v34, 1 }
  0xb8   :  { %1213 = vmatpush1.bf16.msra.mxu0 %v5792_v47 }
  0xb9   :  { %1214 = vmatprep.subr.bf16.mxu0 %v5798_v49 }
  0xbc   :  { %1215 = vmatpush1.bf16.msra.mxu0 %v5805_v39 }
  0xbd   :  { %1216 = vmatprep.subr.bf16.mxu0 %v5812_v50 }
  0xc0   :  { %1217 = vmatpush1.bf16.msra.mxu0 %v5824_v51 }
  0xc1   :  { %1372 = vmatprep.subr.bf16.mxu0 %v5527_v55  ;;  %v5892_v55 = vpop.permute.xlu1 %1509 }
  0xc2   :  { %vm1512_vm10 = vcmp.eq.s32.totalorder %v5892_v55, 1  ;;  %v6336_v55 = vld [vmem:[%s7486_s3] ss:$12 sps:$4 sm:$0xff]  }
  0xc5   :  { %v5904_v7 = vpop.permute.xlu1 %1679 }
  0xc6   :  { %vm1682_vm12 = vcmp.eq.s32.totalorder %v5904_v7, 1 }
  0xc9   :  { %v5919_v16 = vpop.permute.xlu1 %1849 }
  0xca   :  { %7516 = vst [vmem:[#allocation10_spill] sm:$0xff] %v5919_v16 }
  0xcd   :  { %v5927_v22 = vpop.permute.xlu1 %2019 }
  0xce   :  { %7518 = vst [vmem:[#allocation12_spill] sm:$0xff] %v5927_v22 }
  0xd1   :  { %v5941_v33 = vpop.permute.xlu1 %2189 }
  0xd2   :  { %7521 = vst [vmem:[#allocation15_spill] sm:$0xff] %v5941_v33 }
  0xd5   :  { %v5946_v37 = vpop.permute.xlu1 %2706 }
  0xd6   :  { %7523 = vst [vmem:[#allocation17_spill] sm:$0xff] %v5946_v37  ;;  %vm2709_vm2 = vcmp.eq.s32.totalorder %v5946_v37, 1 }
  0xd7   :  { %vm5959_vm3 = vmpackc.low %vm2709_vm2, %vm2708_vm1 }
  0xfb   :  { %v5902_v5 = vpop.f32.mrb[0].mxu1 }
  0xfc   :  { %v557_v8 = vpop.f32.mrb[1].mxu1 }
  0xfd   :  { %v5909_v10 = vadd.f32 %v557_v8, %v5900_v4  ;;  %v5911_v11 = vpop.f32.mrb[2].mxu1 }
  0xfe   :  { %v561_v14 = vpop.f32.mrb[3].mxu1 }
  0xff   :  { %7513 = vst [vmem:[#allocation7_spill] sm:$0xff] %v5909_v10  ;;  %v5917_v15 = vadd.f32 %v561_v14, %v5900_v4 }
 0x101   :  { %7515 = vst [vmem:[#allocation9_spill] sm:$0xff] %v5917_v15 }
 0x103   :  { %v565_v21 = vpop.f32.mrb[4].mxu1 }
 0x104   :  { %v5930_v23 = vadd.f32 %v565_v21, %v5923_v17  ;;  %v567_v25 = vpop.f32.mrb[5].mxu1  ;;  %v7525_v21 = vmov 0 }
 0x105   :  { %v5933_v26 = vadd.f32 %v567_v25, %v5900_v4  ;;  %v569_v27 = vpop.f32.mrb[6].mxu1  ;;  %v7526_v21 = vsel %vm5959_vm3, 4294967295, %v7525_v21 }
 0x106   :  { %v5936_v28 = vadd.f32 %v569_v27, %v5923_v17  ;;  %v571_v31 = vpop.f32.mrb[7].mxu1  ;;  %7527 = vst [vmem:[#allocation19_spill] sm:$0xff] %v7526_v21 }
 0x107   :  { %7519 = vst [vmem:[#allocation13_spill] sm:$0xff] %v5933_v26  ;;  %v5939_v32 = vadd.f32 %v571_v31, %v5900_v4 }
 0x109   :  { %7520 = vst [vmem:[#allocation14_spill] sm:$0xff] %v5939_v32 }
 0x10b   :  { %v575_v36 = vpop.f32.mrb[8].mxu1 }
 0x10c   :  { %v5949_v57 = vadd.f32 %v575_v36, %v5923_v17  ;;  %v577_v63 = vpop.f32.mrb[9].mxu1 }
 0x10d   :  { %v5953_v8 = vadd.f32 %v577_v63, %v5900_v4  ;;  %v579_v14 = vpop.f32.mrb[10].mxu1 }
 0x10e   :  { %v5964_v25 = vadd.f32 %v579_v14, %v5923_v17  ;;  %v581_v27 = vpop.f32.mrb[11].mxu1  ;;  %v108_v14 = vsub.s32 4, %v5885_v61 }
 0x10f   :  { %7524 = vst [vmem:[#allocation18_spill] sm:$0xff] %v5953_v8  ;;  %v5967_v31 = vadd.f32 %v581_v27, %v5900_v4  ;;  %v112_v27 = vsub.s32 5, %v5885_v61 }
 0x110   :  { %v5984_v26 = vrot.slane %v5897_v3, %v108_v14 }
 0x111   :  { %7528 = vst [vmem:[#allocation20_spill] sm:$0xff] %v5967_v31  ;;  %v5987_v31 = vrot.slane %v5897_v3, %v112_v27 }
 0x112   :  { %7531 = vst [vmem:[#allocation23_spill] sm:$0xff] %v5984_v26 }
 0x113   :  { %v585_v36 = vpop.f32.mrb[12].mxu1  ;;  %7532 = vst [vmem:[#allocation24_spill] sm:$0xff] %v5987_v31 }
 0x114   :  { %v5970_v63 = vadd.f32 %v585_v36, %v5923_v17  ;;  %v587_v52 = vpop.f32.mrb[13].mxu1 }
 0x115   :  { %v5973_v1 = vadd.f32 %v587_v52, %v5900_v4  ;;  %v589_v58 = vpop.f32.mrb[14].mxu1 }
 0x116   :  { %v5976_v15 = vadd.f32 %v589_v58, %v5923_v17  ;;  %v591_v10 = vpop.f32.mrb[15].mxu1 }
 0x117   :  { %7529 = vst [vmem:[#allocation21_spill] sm:$0xff] %v5973_v1  ;;  %v5980_v32 = vadd.f32 %v591_v10, %v5900_v4 }
 0x119   :  { %7530 = vst [vmem:[#allocation22_spill] sm:$0xff] %v5980_v32 }
 0x11b   :  { %v595_v36 = vpop.f32.mrb[16].mxu1 }
 0x11c   :  { %v5990_v52 = vadd.f32 %v595_v36, %v5923_v17  ;;  %v597_v58 = vpop.f32.mrb[17].mxu1 }
 0x11d   :  { %v5993_v8 = vadd.f32 %v597_v58, %v5900_v4  ;;  %v599_v1 = vpop.f32.mrb[18].mxu1 }
 0x11e   :  { %v5996_v10 = vadd.f32 %v599_v1, %v5923_v17  ;;  %v601_v32 = vpop.f32.mrb[19].mxu1 }
 0x11f   :  { %7533 = vst [vmem:[#allocation25_spill] sm:$0xff] %v5993_v8  ;;  %v6002_v27 = vadd.f32 %v601_v32, %v5900_v4 }
 0x121   :  { %7535 = vst [vmem:[#allocation27_spill] sm:$0xff] %v6002_v27 }
 0x123   :  { %v605_v1 = vpop.f32.mrb[20].mxu1 }
 0x124   :  { %v6014_v20 = vadd.f32 %v605_v1, %v5923_v17 }
 0x126   :  { %7539 = vst [vmem:[#allocation31_spill] sm:$0xff] %v6014_v20 }
 0x136   :  { %v668_v21 = vpop.f32.mrb[32].mxu0 }
 0x137   :  { %v5999_v14 = vadd.f32 %v668_v21, %v5984_v26  ;;  %v670_v37 = vpop.f32.mrb[33].mxu0  ;;  %v607_v21 = vpop.f32.mrb[21].mxu1 }
 0x138   :  { %v6005_v36 = vadd.f32 %v670_v37, %v5987_v31  ;;  %v672_v34 = vpop.f32.mrb[34].mxu0  ;;  %v609_v32 = vpop.f32.mrb[22].mxu1 }
 0x139   :  { %7534 = vst [vmem:[#allocation26_spill] sm:$0xff] %v5999_v14  ;;  %v6008_v58 = vadd.f32 %v672_v34, %v5984_v26  ;;  %v674_v8 = vpop.f32.mrb[35].mxu0  ;;  %v6017_v14 = vadd.f32 %v607_v21, %v5900_v4  ;;  %v6020_v37 = vadd.f32 %v609_v32, %v5923_v17 }
 0x13a   :  { %7536 = vst [vmem:[#allocation28_spill] sm:$0xff] %v6005_v36  ;;  %v6011_v33 = vadd.f32 %v674_v8, %v5987_v31  ;;  %v611_v36 = vpop.f32.mrb[23].mxu1 }
 0x13b   :  { %7537 = vst [vmem:[#allocation29_spill] sm:$0xff] %v6008_v58  ;;  %7540 = vst [vmem:[#allocation32_spill] sm:$0xff] %v6017_v14  ;;  %v6026_v8 = vadd.f32 %v611_v36, %v5900_v4  ;;  %v615_v32 = vpop.f32.mrb[24].mxu1 }
 0x13c   :  { %7538 = vst [vmem:[#allocation30_spill] sm:$0xff] %v6011_v33  ;;  %7541 = vst [vmem:[#allocation33_spill] sm:$0xff] %v6020_v37  ;;  %v6038_v9 = vadd.f32 %v615_v32, %v5923_v17 }
 0x13d   :  { %7543 = vst [vmem:[#allocation35_spill] sm:$0xff] %v6026_v8 }
 0x13e   :  { %v678_v27 = vpop.f32.mrb[36].mxu0  ;;  %7547 = vst [vmem:[#allocation39_spill] sm:$0xff] %v6038_v9 }
 0x13f   :  { %v6023_v34 = vadd.f32 %v678_v27, %v5984_v26  ;;  %v680_v58 = vpop.f32.mrb[37].mxu0  ;;  %v617_v27 = vpop.f32.mrb[25].mxu1 }
 0x140   :  { %v6029_v1 = vadd.f32 %v680_v58, %v5987_v31  ;;  %v682_v33 = vpop.f32.mrb[38].mxu0  ;;  %v619_v36 = vpop.f32.mrb[26].mxu1 }
 0x141   :  { %7542 = vst [vmem:[#allocation34_spill] sm:$0xff] %v6023_v34  ;;  %v6032_v21 = vadd.f32 %v682_v33, %v5984_v26  ;;  %v684_v14 = vpop.f32.mrb[39].mxu0  ;;  %v6041_v34 = vadd.f32 %v617_v27, %v5900_v4  ;;  %v6044_v58 = vadd.f32 %v619_v36, %v5923_v17 }
 0x142   :  { %7544 = vst [vmem:[#allocation36_spill] sm:$0xff] %v6029_v1  ;;  %v6035_v22 = vadd.f32 %v684_v14, %v5987_v31  ;;  %v621_v1 = vpop.f32.mrb[27].mxu1 }
 0x143   :  { %7545 = vst [vmem:[#allocation37_spill] sm:$0xff] %v6032_v21  ;;  %7548 = vst [vmem:[#allocation40_spill] sm:$0xff] %v6041_v34  ;;  %v6050_v14 = vadd.f32 %v621_v1, %v5900_v4  ;;  %v625_v36 = vpop.f32.mrb[28].mxu1 }
 0x144   :  { %7546 = vst [vmem:[#allocation38_spill] sm:$0xff] %v6035_v22  ;;  %7549 = vst [vmem:[#allocation41_spill] sm:$0xff] %v6044_v58  ;;  %v6062_v58 = vadd.f32 %v625_v36, %v5923_v17 }
 0x145   :  { %7551 = vst [vmem:[#allocation43_spill] sm:$0xff] %v6050_v14 }
 0x146   :  { %v688_v8 = vpop.f32.mrb[40].mxu0  ;;  %7555 = vst [vmem:[#allocation47_spill] sm:$0xff] %v6062_v58 }
 0x147   :  { %v6047_v33 = vadd.f32 %v688_v8, %v5984_v26  ;;  %v690_v21 = vpop.f32.mrb[41].mxu0  ;;  %v6064_v8 = vpop.f32.mrb[29].mxu1 }
 0x148   :  { %v6053_v32 = vadd.f32 %v690_v21, %v5987_v31  ;;  %v692_v22 = vpop.f32.mrb[42].mxu0  ;;  %7556 = vst [vmem:[#allocation48_spill] sm:$0xff] %v6064_v8 }
 0x149   :  { %7550 = vst [vmem:[#allocation42_spill] sm:$0xff] %v6047_v33  ;;  %v6056_v27 = vadd.f32 %v692_v22, %v5984_v26  ;;  %v694_v34 = vpop.f32.mrb[43].mxu0  ;;  %v629_v33 = vpop.f32.mrb[30].mxu1 }
 0x14a   :  { %7552 = vst [vmem:[#allocation44_spill] sm:$0xff] %v6053_v32  ;;  %v6059_v9 = vadd.f32 %v694_v34, %v5987_v31  ;;  %v6067_v14 = vadd.f32 %v629_v33, %v5923_v17  ;;  %v6069_v21 = vpop.f32.mrb[31].mxu1 }
 0x14b   :  { %7553 = vst [vmem:[#allocation45_spill] sm:$0xff] %v6056_v27  ;;  %7558 = vst [vmem:[#allocation50_spill] sm:$0xff] %v6069_v21  ;;  %v6083_v4 = vpop.f32.mrb[32].mxu1 }
 0x14c   :  { %7554 = vst [vmem:[#allocation46_spill] sm:$0xff] %v6059_v9  ;;  %7557 = vst [vmem:[#allocation49_spill] sm:$0xff] %v6067_v14  ;;  %v4387_v33 = vpop.f32.mrb[33].mxu1 }
 0x14d   :  { %v6085_v14 = vpop.f32.mrb[34].mxu1 }
 0x14e   :  { %v698_v1 = vpop.f32.mrb[44].mxu0 }
 0x14f   :  { %v6072_v22 = vadd.f32 %v698_v1, %v5984_v26  ;;  %v700_v32 = vpop.f32.mrb[45].mxu0  ;;  %v4388_v1 = vpop.f32.mrb[35].mxu1 }
 0x150   :  { %v6075_v34 = vadd.f32 %v700_v32, %v5987_v31  ;;  %v702_v9 = vpop.f32.mrb[46].mxu0 }
 0x151   :  { %7559 = vst [vmem:[#allocation51_spill] sm:$0xff] %v6072_v22  ;;  %v6078_v36 = vadd.f32 %v702_v9, %v5984_v26  ;;  %v704_v27 = vpop.f32.mrb[47].mxu0 }
 0x152   :  { %7560 = vst [vmem:[#allocation52_spill] sm:$0xff] %v6075_v34  ;;  %v6081_v8 = vadd.f32 %v704_v27, %v5987_v31 }
 0x153   :  { %7561 = vst [vmem:[#allocation53_spill] sm:$0xff] %v6078_v36 }
 0x154   :  { %7562 = vst [vmem:[#allocation54_spill] sm:$0xff] %v6081_v8 }
 0x156   :  { %v708_v21 = vpop.f32.mrb[48].mxu0 }
 0x157   :  { %v6088_v22 = vadd.f32 %v708_v21, %v5984_v26  ;;  %v710_v32 = vpop.f32.mrb[49].mxu0 }
 0x158   :  { %v6091_v34 = vadd.f32 %v710_v32, %v5987_v31  ;;  %v712_v9 = vpop.f32.mrb[50].mxu0 }
 0x159   :  { %7563 = vst [vmem:[#allocation55_spill] sm:$0xff] %v6088_v22  ;;  %v6094_v36 = vadd.f32 %v712_v9, %v5984_v26  ;;  %v714_v27 = vpop.f32.mrb[51].mxu0 }
 0x15a   :  { %7564 = vst [vmem:[#allocation56_spill] sm:$0xff] %v6091_v34  ;;  %v6097_v8 = vadd.f32 %v714_v27, %v5987_v31 }
 0x15b   :  { %7565 = vst [vmem:[#allocation57_spill] sm:$0xff] %v6094_v36 }
 0x15c   :  { %7566 = vst [vmem:[#allocation58_spill] sm:$0xff] %v6097_v8 }
 0x15e   :  { %v718_v33 = vpop.f32.mrb[52].mxu0 }
 0x15f   :  { %v6100_v58 = vadd.f32 %v718_v33, %v5984_v26  ;;  %v720_v1 = vpop.f32.mrb[53].mxu0 }
 0x160   :  { %v6103_v21 = vadd.f32 %v720_v1, %v5987_v31  ;;  %v722_v22 = vpop.f32.mrb[54].mxu0 }
 0x161   :  { %7567 = vst [vmem:[#allocation59_spill] sm:$0xff] %v6100_v58  ;;  %v6106_v32 = vadd.f32 %v722_v22, %v5984_v26  ;;  %v724_v34 = vpop.f32.mrb[55].mxu0 }
 0x162   :  { %7568 = vst [vmem:[#allocation60_spill] sm:$0xff] %v6103_v21  ;;  %v6109_v9 = vadd.f32 %v724_v34, %v5987_v31  ;;  %v875_v34 = vld [vmem:[%s7489_s4] sm:$0x7] }
 0x163   :  { %7569 = vst [vmem:[#allocation61_spill] sm:$0xff] %v6106_v32  ;;  %v6124_v32 = vsub.s32 0, %v5885_v61 }
 0x164   :  { %7570 = vst [vmem:[#allocation62_spill] sm:$0xff] %v6109_v9 }
 0x165   :  { %7575 = vst [vmem:[#allocation67_spill] sm:$0xff] %v6124_v32 }
 0x166   :  { %v728_v36 = vpop.f32.mrb[56].mxu0 }
 0x167   :  { %v6112_v27 = vadd.f32 %v728_v36, %v5984_v26  ;;  %v730_v8 = vpop.f32.mrb[57].mxu0 }
 0x168   :  { %v6115_v33 = vadd.f32 %v730_v8, %v5987_v31  ;;  %v732_v58 = vpop.f32.mrb[58].mxu0  ;;  %v6132_v8 = vsub.s32 1, %v5885_v61 }
 0x169   :  { %7571 = vst [vmem:[#allocation63_spill] sm:$0xff] %v6112_v27  ;;  %v6118_v1 = vadd.f32 %v732_v58, %v5984_v26  ;;  %v734_v21 = vpop.f32.mrb[59].mxu0  ;;  %v93_v58 = vrot.slane %v5897_v3, %v6124_v32 }
 0x16a   :  { %7572 = vst [vmem:[#allocation64_spill] sm:$0xff] %v6115_v33  ;;  %v6121_v22 = vadd.f32 %v734_v21, %v5987_v31  ;;  %7577 = vst [vmem:[#allocation69_spill] sm:$0xff] %v6132_v8  ;;  %v894_v21 = vrot.slane %v875_v34, %v6124_v32  ;;  %v898_v27 = vrot.slane %v875_v34, %v6132_v8 }
 0x16b   :  { %7573 = vst [vmem:[#allocation65_spill] sm:$0xff] %v6118_v1  ;;  %v97_v1 = vrot.slane %v5897_v3, %v6132_v8 }
 0x16c   :  { %7574 = vst [vmem:[#allocation66_spill] sm:$0xff] %v6121_v22  ;;  %v6146_v31 = vadd.f32 %v894_v21, %v93_v58 }
 0x16e   :  { %v6129_v36 = vpop.f32.mrb[60].mxu0 }
 0x16f   :  { %7576 = vst [vmem:[#allocation68_spill] sm:$0xff] %v6129_v36  ;;  %v6134_v9 = vpop.f32.mrb[61].mxu0  ;;  %v6148_v36 = vadd.f32 %v898_v27, %v97_v1 }
 0x170   :  { %7578 = vst [vmem:[#allocation70_spill] sm:$0xff] %v6134_v9  ;;  %v6139_v22 = vpop.f32.mrb[62].mxu0 }
 0x171   :  { %7579 = vst [vmem:[#allocation71_spill] sm:$0xff] %v6139_v22  ;;  %v6141_v33 = vpop.f32.mrb[63].mxu0 }
 0x172   :  { %7580 = vst [vmem:[#allocation72_spill] sm:$0xff] %v6141_v33 }
 0x176   :  { %v1068_v61 = vpop.f32.mrb[0].mxu0 }
 0x177   :  { %v4690_v9 = vadd.f32 %v6146_v31, %v1068_v61  ;;  %v1070_v26 = vpop.f32.mrb[1].mxu0 }
 0x178   :  { %v1072_v37 = vpop.f32.mrb[2].mxu0  ;;  %v4692_v33 = vadd.f32 %v6148_v36, %v1070_v26 }
 0x179   :  { %v3972_v20 = vmul.f32 -1.442695, %v4690_v9  ;;  %v4694_v32 = vadd.f32 %v6146_v31, %v1072_v37  ;;  %v1074_v22 = vpop.f32.mrb[3].mxu0  ;;  %v6155_v37 = vrot.slane %v875_v34, %v5914_v13  ;;  %v560_v34 = vadd.f32 %v5911_v11, %v5923_v17 }
 0x17a   :  { %v4696_v3 = vadd.f32 %v6148_v36, %v1074_v22  ;;  %v3974_v58 = vmul.f32 -1.442695, %v4692_v33  ;;  %v556_v22 = vadd.f32 %v5902_v5, %v5923_v17 }
 0x17b   :  { %4935 = vpow2.f32 %v3972_v20  ;;  %v3973_v16 = vmul.f32 -1.442695, %v4694_v32  ;;  %v1112_v32 = vadd.f32 %v6083_v4, %v6155_v37 }
 0x17c   :  { %v3975_v21 = vmul.f32 -1.442695, %v4696_v3 }
 0x17d   :  { %4937 = vpow2.f32 %v3973_v16 }
 0x17e   :  { %4939 = vpow2.f32 %v3974_v58  ;;  %v1115_v58 = vadd.f32 %v6085_v14, %v6155_v37 }
 0x17f   :  { %4941 = vpow2.f32 %v3975_v21 }
 0x185   :  { %v4936_v27 = vpop.eup %4935 }
 0x186   :  { %v1126_v1 = vadd.f32 1.0, %v4936_v27 }
 0x187   :  { %v4938_v61 = vpop.eup %4937 }
 0x188   :  { %4943 = vrcp.f32 %v1126_v1  ;;  %v1127_v8 = vadd.f32 1.0, %v4938_v61  ;;  %v4940_v9 = vpop.eup %4939 }
 0x189   :  { %v4942_v26 = vpop.eup %4941  ;;  %v1140_v20 = vadd.f32 1.0, %v4940_v9 }
 0x18a   :  { %4945 = vrcp.f32 %v1127_v8  ;;  %v1141_v16 = vadd.f32 1.0, %v4942_v26 }
 0x18b   :  { %4947 = vrcp.f32 %v1140_v20 }
 0x18c   :  { %4949 = vrcp.f32 %v1141_v16 }
 0x192   :  { %v4944_v33 = vpop.eup %4943 }
 0x193   :  { %v1146_v3 = vmul.f32 %v4944_v33, %v1112_v32 }
 0x194   :  { %v4946_v8 = vpop.eup %4945 }
 0x195   :  { %v1148_v21 = vadd.f32 %v1146_v3, %v556_v22  ;;  %v1147_v27 = vmul.f32 %v4946_v8, %v1115_v58  ;;  %v4948_v4 = vpop.eup %4947 }
 0x196   :  { %v4950_v61 = vpop.eup %4949  ;;  %v1152_v9 = vsub.f32 1.0, %v4948_v4  ;;  %v1156_v5 = vmul.f32 0.0, %v4948_v4 }
 0x197   :  { %4951 = vtanh.f32 %v1148_v21  ;;  %v1149_v1 = vadd.f32 %v1147_v27, %v560_v34  ;;  %v1153_v20 = vsub.f32 1.0, %v4950_v61  ;;  %v1157_v14 = vmul.f32 0.0, %v4950_v61 }
 0x199   :  { %4953 = vtanh.f32 %v1149_v1 }
 0x1a1   :  { %v4952_v26 = vpop.eup %4951 }
 0x1a2   :  { %v1154_v32 = vmul.f32 %v4952_v26, %v1152_v9 }
 0x1a3   :  { %v4954_v33 = vpop.eup %4953 }
 0x1a4   :  { %v1155_v13 = vmul.f32 %v4954_v33, %v1153_v20  ;;  %v1158_v2 = vadd.f32 %v1156_v5, %v1154_v32 }
 0x1a6   :  { %v1159_v11 = vadd.f32 %v1157_v14, %v1155_v13  ;;  %v6167_v17 = vsel %vm1172_vm4, %v1158_v2, 0.0 }
 0x1a7   :  { %v4181_v16 = vpack.c.bf16 %v6167_v17, %v6167_v17 }
 0x1a8   :  { %v4214_v22 = vpack.c.bf16 %v1159_v11, %v1158_v2  ;;  %v6171_v3 = vsel %vm1173_vm5, %v1159_v11, 0.0 }
 0x1a9   :  { %v4182_v58 = vpack.c.bf16 %v6171_v3, %v6171_v3  ;;  %1188 = vst [vmem:[%s7490_s6] sm:$0xf] %v4181_v16 }
 0x1aa   :  { %4215 = vmatmul.mubr.msk.bf16.vlgmr.msra.gmra.mrb[4].mxu0 %vm4213_vm6, %v4214_v22  ;;  %4406 = vmatmul.mubr.msk.bf16.vlgmr.msra.gmra.mrb[36].mxu1 %vm4213_vm6, %v4214_v22 }
 0x1ab   :  { %1373 = vmatpush1.bf16.msra.mxu0 %v5715_v38  ;;  %4410 = vmatpush3.bf16.msra.mxu1 %v5532_v56  ;;  %1189 = vst [vmem:[%s7490_s6 + $0x8] sm:$0xf] %v4182_v58  ;;  %v6217_v56 = vld [vmem:[%s7486_s3 + $0x4] ss:$12 sps:$4 sm:$0xff]  }
 0x1ac   :  { %1374 = vmatprep.subr.bf16.mxu0 %v5721_v40  ;;  %4411 = vmatprep.subr.bf16.mxu1 %v7581_v48 }
 0x1ad   :  { %1404 = vmatprep.mubr.bf16.mxu0 %v7582_v53  ;;  %4425 = vmatprep.mubr.msk.bf16.mxu1 %vm5305_vm0, %v7581_v48 }
 0x1af   :  { %1375 = vmatpush1.bf16.msra.mxu0 %v5730_v41  ;;  %4412 = vmatpush3.bf16.msra.mxu1 %v5562_v0 }
 0x1b0   :  { %1376 = vmatprep.subr.bf16.mxu0 %v5736_v42  ;;  %4413 = vmatprep.subr.bf16.mxu1 %v7581_v48 }
 0x1b3   :  { %1377 = vmatpush1.bf16.msra.mxu0 %v5743_v19  ;;  %4414 = vmatpush3.bf16.msra.mxu1 %v5582_v6 }
 0x1b4   :  { %1378 = vmatprep.subr.bf16.mxu0 %v5750_v43  ;;  %4415 = vmatprep.subr.bf16.mxu1 %v7581_v48 }
 0x1b7   :  { %1379 = vmatpush1.bf16.msra.mxu0 %v5760_v44  ;;  %4416 = vmatpush3.bf16.msra.mxu1 %v5609_v12 }
 0x1b8   :  { %1380 = vmatprep.subr.bf16.mxu0 %v5766_v45  ;;  %4417 = vmatprep.subr.bf16.mxu1 %v7581_v48 }
 0x1bb   :  { %1381 = vmatpush1.bf16.msra.mxu0 %v5774_v30  ;;  %4418 = vmatpush3.bf16.msra.mxu1 %v5636_v18 }
 0x1bc   :  { %1382 = vmatprep.subr.bf16.mxu0 %v5781_v46  ;;  %4419 = vmatprep.subr.bf16.mxu1 %v7581_v48 }
 0x1bf   :  { %1383 = vmatpush1.bf16.msra.mxu0 %v5792_v47  ;;  %4420 = vmatpush3.bf16.msra.mxu1 %v5664_v24 }
 0x1c0   :  { %1384 = vmatprep.subr.bf16.mxu0 %v5798_v49  ;;  %4421 = vmatprep.subr.bf16.mxu1 %v7581_v48 }
 0x1c3   :  { %1385 = vmatpush1.bf16.msra.mxu0 %v5805_v39  ;;  %4422 = vmatpush3.bf16.msra.mxu1 %v5684_v29 }
 0x1c4   :  { %1386 = vmatprep.subr.bf16.mxu0 %v5812_v50  ;;  %4423 = vmatprep.subr.bf16.mxu1 %v7581_v48 }
 0x1c7   :  { %1387 = vmatpush1.bf16.msra.mxu0 %v5824_v51  ;;  %4424 = vmatpush3.bf16.msra.mxu1 %v5703_v35 }
 0x1c8   :  { %1542 = vmatprep.subr.bf16.mxu0 %v6217_v56  ;;  %4429 = vmatprep.subr.bf16.mxu1 %v7581_v48 }
 0x27d   :  { %v1236_v0 = vpop.f32.mrb[4].mxu0  ;;  %v1279_v6 = vpop.f32.mrb[36].mxu1 }
 0x27e   :  { %v4698_v12 = vadd.f32 %v6146_v31, %v1236_v0  ;;  %v1238_v18 = vpop.f32.mrb[5].mxu0  ;;  %v4407_v2 = vpop.f32.mrb[37].mxu1  ;;  %v1280_v58 = vadd.f32 %v1279_v6, %v6155_v37 }
 0x27f   :  { %v1240_v13 = vpop.f32.mrb[6].mxu0  ;;  %v1282_v8 = vpop.f32.mrb[38].mxu1  ;;  %v4700_v4 = vadd.f32 %v6148_v36, %v1238_v18 }
 0x280   :  { %v3978_v34 = vmul.f32 -1.442695, %v4698_v12  ;;  %v4702_v21 = vadd.f32 %v6146_v31, %v1240_v13  ;;  %v1242_v27 = vpop.f32.mrb[7].mxu0  ;;  %v4408_v1 = vpop.f32.mrb[39].mxu1  ;;  %v1283_v2 = vadd.f32 %v1282_v8, %v6155_v37 }
 0x281   :  { %v4704_v9 = vadd.f32 %v6148_v36, %v1242_v27  ;;  %v3980_v26 = vmul.f32 -1.442695, %v4700_v4 }
 0x282   :  { %4955 = vpow2.f32 %v3978_v34  ;;  %v3979_v61 = vmul.f32 -1.442695, %v4702_v21 }
 0x283   :  { %v3981_v5 = vmul.f32 -1.442695, %v4704_v9 }
 0x284   :  { %4957 = vpow2.f32 %v3979_v61 }
 0x285   :  { %4959 = vpow2.f32 %v3980_v26 }
 0x286   :  { %4961 = vpow2.f32 %v3981_v5 }
 0x28c   :  { %v4956_v20 = vpop.eup %4955 }
 0x28d   :  { %v1294_v32 = vadd.f32 1.0, %v4956_v20 }
 0x28e   :  { %v4958_v33 = vpop.eup %4957 }
 0x28f   :  { %4963 = vrcp.f32 %v1294_v32  ;;  %v1295_v14 = vadd.f32 1.0, %v4958_v33  ;;  %v4960_v11 = vpop.eup %4959 }
 0x290   :  { %v4962_v16 = vpop.eup %4961  ;;  %v1308_v22 = vadd.f32 1.0, %v4960_v11 }
 0x291   :  { %4965 = vrcp.f32 %v1295_v14  ;;  %v1309_v0 = vadd.f32 1.0, %v4962_v16 }
 0x292   :  { %4967 = vrcp.f32 %v1308_v22 }
 0x293   :  { %4969 = vrcp.f32 %v1309_v0 }
 0x299   :  { %v4964_v12 = vpop.eup %4963 }
 0x29a   :  { %v1314_v18 = vmul.f32 %v4964_v12, %v1280_v58 }
 0x29b   :  { %v4966_v13 = vpop.eup %4965 }
 0x29c   :  { %v1316_v34 = vadd.f32 %v1314_v18, %v5930_v23  ;;  %v1315_v21 = vmul.f32 %v4966_v13, %v1283_v2  ;;  %v4968_v1 = vpop.eup %4967 }
 0x29d   :  { %v4970_v4 = vpop.eup %4969  ;;  %v1320_v61 = vsub.f32 1.0, %v4968_v1  ;;  %v1324_v5 = vmul.f32 %v4968_v1, %v6167_v17 }
 0x29e   :  { %4971 = vtanh.f32 %v1316_v34  ;;  %v1317_v27 = vadd.f32 %v1315_v21, %v5936_v28  ;;  %v1321_v6 = vsub.f32 1.0, %v4970_v4  ;;  %v1325_v8 = vmul.f32 %v4970_v4, %v6171_v3 }
 0x2a0   :  { %4973 = vtanh.f32 %v1317_v27 }
 0x2a8   :  { %v4972_v9 = vpop.eup %4971 }
 0x2a9   :  { %v1322_v26 = vmul.f32 %v4972_v9, %v1320_v61 }
 0x2aa   :  { %v4974_v20 = vpop.eup %4973 }
 0x2ab   :  { %v1323_v32 = vmul.f32 %v4974_v20, %v1321_v6  ;;  %v1326_v33 = vadd.f32 %v1324_v5, %v1322_v26 }
 0x2ad   :  { %v1327_v23 = vadd.f32 %v1325_v8, %v1323_v32  ;;  %v1347_v14 = vsel %vm1341_vm7, %v1326_v33, 0.0  ;;  %v6234_v11 = vsel %vm1341_vm7, %v1326_v33, %v6167_v17 }
 0x2ae   :  { %v4183_v28 = vpack.c.bf16 %v1347_v14, %v1347_v14 }
 0x2af   :  { %v6237_v16 = vsel %vm1342_vm8, %v1327_v23, %v6171_v3  ;;  %v1348_v22 = vsel %vm1342_vm8, %v1327_v23, 0.0 }
 0x2b0   :  { %v4184_v58 = vpack.c.bf16 %v1348_v22, %v1348_v22  ;;  %3986 = vst [vmem:[%s7490_s6 + $0x10] sm:$0xf] %v4183_v28  ;;  %v1371_v59 = vpack.c.bf16 %v6237_v16, %v6234_v11 }
 0x2b2   :  { %3987 = vst [vmem:[%s7490_s6 + $0x18] sm:$0xf] %v4184_v58  ;;  %1405 = vmatmul.mubr.bf16.vlgmr.msra.gmra.mrb[8].mxu0 %v1371_v59  ;;  %4426 = vmatmul.mubr.bf16.vlgmr.msra.gmra.mrb[40].mxu1 %v1371_v59 }
 0x2b3   :  { %1543 = vmatpush1.bf16.msra.mxu0 %v5715_v38  ;;  %4430 = vmatpush3.bf16.msra.mxu1 %v6251_v62  ;;  %v6263_v38 = vld [vmem:[%s7486_s3 + $0x20] ss:$12 sps:$4 sm:$0xff]  }
 0x2b4   :  { %1544 = vmatprep.subr.bf16.mxu0 %v5721_v40  ;;  %4431 = vmatprep.subr.bf16.mxu1 %v7581_v48  ;;  %v6272_v40 = vld [vmem:[%s7486_s3 + $0x38] ss:$12 sps:$4 sm:$0xff]  }
 0x2b5   :  { %1574 = vmatprep.mubr.bf16.mxu0 %v7582_v53  ;;  %4445 = vmatprep.mubr.msk.bf16.mxu1 %vm5305_vm0, %v7581_v48 }
 0x2b7   :  { %1545 = vmatpush1.bf16.msra.mxu0 %v5730_v41  ;;  %4432 = vmatpush3.bf16.msra.mxu1 %v6263_v38  ;;  %v6281_v41 = vld [vmem:[%s7486_s3 + $0x50] ss:$12 sps:$4 sm:$0xff]  }
 0x2b8   :  { %1546 = vmatprep.subr.bf16.mxu0 %v5736_v42  ;;  %4433 = vmatprep.subr.bf16.mxu1 %v7581_v48  ;;  %v6290_v42 = vld [vmem:[%s7486_s3 + $0x68] ss:$12 sps:$4 sm:$0xff]  }
 0x2bb   :  { %1547 = vmatpush1.bf16.msra.mxu0 %v5743_v19  ;;  %4434 = vmatpush3.bf16.msra.mxu1 %v6272_v40 }
 0x2bc   :  { %1548 = vmatprep.subr.bf16.mxu0 %v5750_v43  ;;  %4435 = vmatprep.subr.bf16.mxu1 %v7581_v48 }
 0x2bf   :  { %1549 = vmatpush1.bf16.msra.mxu0 %v5760_v44  ;;  %4436 = vmatpush3.bf16.msra.mxu1 %v6281_v41 }
 0x2c0   :  { %1550 = vmatprep.subr.bf16.mxu0 %v5766_v45  ;;  %4437 = vmatprep.subr.bf16.mxu1 %v7581_v48 }
 0x2c3   :  { %1551 = vmatpush1.bf16.msra.mxu0 %v5774_v30  ;;  %4438 = vmatpush3.bf16.msra.mxu1 %v6290_v42 }
 0x2c4   :  { %1552 = vmatprep.subr.bf16.mxu0 %v5781_v46  ;;  %4439 = vmatprep.subr.bf16.mxu1 %v7581_v48 }
 0x2c7   :  { %1553 = vmatpush1.bf16.msra.mxu0 %v5792_v47  ;;  %4440 = vmatpush3.bf16.msra.mxu1 %v5664_v24 }
 0x2c8   :  { %1554 = vmatprep.subr.bf16.mxu0 %v5798_v49  ;;  %4441 = vmatprep.subr.bf16.mxu1 %v7581_v48 }
 0x2cb   :  { %1555 = vmatpush1.bf16.msra.mxu0 %v5805_v39  ;;  %4442 = vmatpush3.bf16.msra.mxu1 %v5684_v29 }
 0x2cc   :  { %1556 = vmatprep.subr.bf16.mxu0 %v5812_v50  ;;  %4443 = vmatprep.subr.bf16.mxu1 %v7581_v48 }
 0x2cf   :  { %1557 = vmatpush1.bf16.msra.mxu0 %v5824_v51  ;;  %4444 = vmatpush3.bf16.msra.mxu1 %v5703_v35 }
 0x2d0   :  { %1712 = vmatprep.subr.bf16.mxu0 %v6217_v56  ;;  %4449 = vmatprep.subr.bf16.mxu1 %v7581_v48 }
 0x385   :  { %v1406_v24 = vpop.f32.mrb[8].mxu0  ;;  %v1449_v19 = vpop.f32.mrb[40].mxu1 }
 0x386   :  { %v4706_v43 = vadd.f32 %v6146_v31, %v1406_v24  ;;  %v1408_v44 = vpop.f32.mrb[9].mxu0  ;;  %v4427_v45 = vpop.f32.mrb[41].mxu1  ;;  %v1450_v27 = vadd.f32 %v1449_v19, %v6155_v37 }
 0x387   :  { %v1410_v30 = vpop.f32.mrb[10].mxu0  ;;  %v1452_v29 = vpop.f32.mrb[42].mxu1  ;;  %v4708_v50 = vadd.f32 %v6148_v36, %v1408_v44 }
 0x388   :  { %v3988_v46 = vmul.f32 -1.442695, %v4706_v43  ;;  %v4710_v47 = vadd.f32 %v6146_v31, %v1410_v30  ;;  %v1412_v49 = vpop.f32.mrb[11].mxu0  ;;  %v4428_v39 = vpop.f32.mrb[43].mxu1  ;;  %v1453_v9 = vadd.f32 %v1452_v29, %v6155_v37 }
 0x389   :  { %v4712_v51 = vadd.f32 %v6148_v36, %v1412_v49  ;;  %v3990_v17 = vmul.f32 -1.442695, %v4708_v50  ;;  %v6374_v49 = vld [vmem:[%s7486_s3 + $0x4c] ss:$12 sps:$4 sm:$0xff]   ;;  %v6381_v39 = vld [vmem:[%s7486_s3 + $0x48] ss:$12 sps:$4 sm:$0xff]  }
 0x38a   :  { %4975 = vpow2.f32 %v3988_v46  ;;  %v3989_v35 = vmul.f32 -1.442695, %v4710_v47  ;;  %v6360_v46 = vld [vmem:[%s7486_s3 + $0x34] ss:$12 sps:$4 sm:$0xff]   ;;  %v6367_v47 = vld [vmem:[%s7486_s3 + $0x30] ss:$12 sps:$4 sm:$0xff]  }
 0x38b   :  { %v3991_v3 = vmul.f32 -1.442695, %v4712_v51  ;;  %v6388_v50 = vld [vmem:[%s7486_s3 + $0x64] ss:$12 sps:$4 sm:$0xff]   ;;  %v6402_v51 = vld [vmem:[%s7486_s3 + $0x7c] ss:$12 sps:$4 sm:$0xff]  }
 0x38c   :  { %4977 = vpow2.f32 %v3989_v35  ;;  %v6395_v35 = vld [vmem:[%s7486_s3 + $0x60] ss:$12 sps:$4 sm:$0xff]  }
 0x38d   :  { %4979 = vpow2.f32 %v3990_v17  ;;  %v6409_v17 = vld [vmem:[%s7486_s3 + $0x78] ss:$12 sps:$4 sm:$0xff]  }
 0x38e   :  { %4981 = vpow2.f32 %v3991_v3  ;;  %v6415_v3 = vld [vmem:[%s7486_s3 + $0x80] ss:$12 sps:$4 sm:$0xff]  }
 0x394   :  { %v4976_v0 = vpop.eup %4975 }
 0x395   :  { %v1464_v12 = vadd.f32 1.0, %v4976_v0  ;;  %v6421_v0 = vld [vmem:[%s7486_s3 + $0x94] ss:$12 sps:$4 sm:$0xff]  }
 0x396   :  { %v4978_v18 = vpop.eup %4977 }
 0x397   :  { %4983 = vrcp.f32 %v1464_v12  ;;  %v1465_v2 = vadd.f32 1.0, %v4978_v18  ;;  %v4980_v13 = vpop.eup %4979  ;;  %v6428_v12 = vld [vmem:[%s7486_s3 + $0x90] ss:$12 sps:$4 sm:$0xff]   ;;  %v6434_v18 = vld [vmem:[%s7486_s3 + $0x98] ss:$12 sps:$4 sm:$0xff]  }
 0x398   :  { %v4982_v34 = vpop.eup %4981  ;;  %v1478_v21 = vadd.f32 1.0, %v4980_v13  ;;  %v6447_v13 = vld [vmem:[%s7486_s3 + $0xa8] ss:$12 sps:$4 sm:$0xff]  }
 0x399   :  { %4985 = vrcp.f32 %v1465_v2  ;;  %v1479_v1 = vadd.f32 1.0, %v4982_v34  ;;  %v6440_v2 = vld [vmem:[%s7486_s3 + $0xac] ss:$12 sps:$4 sm:$0xff]   ;;  %v6453_v34 = vld [vmem:[%s7486_s3 + $0xb0] ss:$12 sps:$4 sm:$0xff]  }
 0x39a   :  { %4987 = vrcp.f32 %v1478_v21 }
 0x39b   :  { %4989 = vrcp.f32 %v1479_v1 }
 0x3a1   :  { %v4984_v4 = vpop.eup %4983 }
 0x3a2   :  { %v1484_v61 = vmul.f32 %v4984_v4, %v1450_v27 }
 0x3a3   :  { %v4986_v6 = vpop.eup %4985 }
 0x3a4   :  { %v1486_v26 = vadd.f32 %v1484_v61, %v5949_v57  ;;  %v1485_v5 = vmul.f32 %v4986_v6, %v1453_v9  ;;  %v4988_v32 = vpop.eup %4987 }
 0x3a5   :  { %v4990_v8 = vpop.eup %4989  ;;  %v1490_v33 = vsub.f32 1.0, %v4988_v32  ;;  %v1494_v14 = vmul.f32 %v4988_v32, %v6234_v11 }
 0x3a6   :  { %4991 = vtanh.f32 %v1486_v26  ;;  %v1487_v20 = vadd.f32 %v1485_v5, %v5964_v25  ;;  %v1491_v28 = vsub.f32 1.0, %v4990_v8  ;;  %v1495_v59 = vmul.f32 %v4990_v8, %v6237_v16 }
 0x3a8   :  { %4993 = vtanh.f32 %v1487_v20 }
 0x3b0   :  { %v4992_v23 = vpop.eup %4991 }
 0x3b1   :  { %v1492_v22 = vmul.f32 %v4992_v23, %v1490_v33 }
 0x3b2   :  { %v4994_v58 = vpop.eup %4993 }
 0x3b3   :  { %v1493_v24 = vmul.f32 %v4994_v58, %v1491_v28  ;;  %v1496_v19 = vadd.f32 %v1494_v14, %v1492_v22 }
 0x3b5   :  { %v1497_v57 = vadd.f32 %v1495_v59, %v1493_v24  ;;  %v1517_v43 = vsel %vm1511_vm9, %v1496_v19, 0.0  ;;  %v6320_v44 = vsel %vm1511_vm9, %v1496_v19, %v6234_v11  ;;  %v6343_v11 = vld [vmem:[%s7486_s3 + $0x1c] ss:$12 sps:$4 sm:$0xff]  }
 0x3b6   :  { %v4185_v25 = vpack.c.bf16 %v1517_v43, %v1517_v43 }
 0x3b7   :  { %v6323_v45 = vsel %vm1512_vm10, %v1497_v57, %v6237_v16  ;;  %v1518_v30 = vsel %vm1512_vm10, %v1497_v57, 0.0  ;;  %v6353_v16 = vld [vmem:[%s7486_s3 + $0x18] ss:$12 sps:$4 sm:$0xff]  }
 0x3b8   :  { %v4186_v29 = vpack.c.bf16 %v1518_v30, %v1518_v30  ;;  %3996 = vst [vmem:[%s7490_s6 + $0x20] sm:$0xf] %v4185_v25  ;;  %v1541_v54 = vpack.c.bf16 %v6323_v45, %v6320_v44 }
 0x3ba   :  { %3997 = vst [vmem:[%s7490_s6 + $0x28] sm:$0xf] %v4186_v29  ;;  %1575 = vmatmul.mubr.bf16.vlgmr.msra.gmra.mrb[12].mxu0 %v1541_v54  ;;  %4446 = vmatmul.mubr.bf16.vlgmr.msra.gmra.mrb[44].mxu1 %v1541_v54 }
 0x3bb   :  { %1713 = vmatpush1.bf16.msra.mxu0 %v6336_v55  ;;  %4450 = vmatpush3.bf16.msra.mxu1 %v6251_v62 }
 0x3bc   :  { %1714 = vmatprep.subr.bf16.mxu0 %v6343_v11  ;;  %4451 = vmatprep.subr.bf16.mxu1 %v7581_v48 }
 0x3bd   :  { %1744 = vmatprep.mubr.bf16.mxu0 %v7582_v53  ;;  %4465 = vmatprep.mubr.msk.bf16.mxu1 %vm5305_vm0, %v7581_v48 }
 0x3bf   :  { %1715 = vmatpush1.bf16.msra.mxu0 %v6353_v16  ;;  %4452 = vmatpush3.bf16.msra.mxu1 %v6263_v38 }
 0x3c0   :  { %1716 = vmatprep.subr.bf16.mxu0 %v6360_v46  ;;  %4453 = vmatprep.subr.bf16.mxu1 %v7581_v48 }
 0x3c3   :  { %1717 = vmatpush1.bf16.msra.mxu0 %v6367_v47  ;;  %4454 = vmatpush3.bf16.msra.mxu1 %v6272_v40 }
 0x3c4   :  { %1718 = vmatprep.subr.bf16.mxu0 %v6374_v49  ;;  %4455 = vmatprep.subr.bf16.mxu1 %v7581_v48 }
 0x3c7   :  { %1719 = vmatpush1.bf16.msra.mxu0 %v6381_v39  ;;  %4456 = vmatpush3.bf16.msra.mxu1 %v6281_v41 }
 0x3c8   :  { %1720 = vmatprep.subr.bf16.mxu0 %v6388_v50  ;;  %4457 = vmatprep.subr.bf16.mxu1 %v7581_v48 }
 0x3cb   :  { %1721 = vmatpush1.bf16.msra.mxu0 %v6395_v35  ;;  %4458 = vmatpush3.bf16.msra.mxu1 %v6290_v42 }
 0x3cc   :  { %1722 = vmatprep.subr.bf16.mxu0 %v6402_v51  ;;  %4459 = vmatprep.subr.bf16.mxu1 %v7581_v48 }
 0x3cf   :  { %1723 = vmatpush1.bf16.msra.mxu0 %v6409_v17  ;;  %4460 = vmatpush3.bf16.msra.mxu1 %v6415_v3 }
 0x3d0   :  { %1724 = vmatprep.subr.bf16.mxu0 %v6421_v0  ;;  %4461 = vmatprep.subr.bf16.mxu1 %v7581_v48 }
 0x3d3   :  { %1725 = vmatpush1.bf16.msra.mxu0 %v6428_v12  ;;  %4462 = vmatpush3.bf16.msra.mxu1 %v6434_v18 }
 0x3d4   :  { %1726 = vmatprep.subr.bf16.mxu0 %v6440_v2  ;;  %4463 = vmatprep.subr.bf16.mxu1 %v7581_v48 }
 0x3d7   :  { %1727 = vmatpush1.bf16.msra.mxu0 %v6447_v13  ;;  %4464 = vmatpush3.bf16.msra.mxu1 %v6453_v34 }
 0x3d8   :  { %1882 = vmatprep.subr.bf16.mxu0 %v6217_v56  ;;  %4469 = vmatprep.subr.bf16.mxu1 %v7581_v48 }
 0x48d   :  { %v1576_v21 = vpop.f32.mrb[12].mxu0  ;;  %v1619_v27 = vpop.f32.mrb[44].mxu1 }
 0x48e   :  { %v4714_v1 = vadd.f32 %v6146_v31, %v1576_v21  ;;  %v1578_v4 = vpop.f32.mrb[13].mxu0  ;;  %v4447_v61 = vpop.f32.mrb[45].mxu1  ;;  %v1620_v25 = vadd.f32 %v1619_v27, %v6155_v37 }
 0x48f   :  { %v1580_v9 = vpop.f32.mrb[14].mxu0  ;;  %v1622_v6 = vpop.f32.mrb[46].mxu1  ;;  %v4716_v8 = vadd.f32 %v6148_v36, %v1578_v4 }
 0x490   :  { %v3998_v26 = vmul.f32 -1.442695, %v4714_v1  ;;  %v4718_v5 = vadd.f32 %v6146_v31, %v1580_v9  ;;  %v1582_v20 = vpop.f32.mrb[15].mxu0  ;;  %v4448_v32 = vpop.f32.mrb[47].mxu1  ;;  %v1623_v21 = vadd.f32 %v1622_v6, %v6155_v37 }
 0x491   :  { %v4720_v23 = vadd.f32 %v6148_v36, %v1582_v20  ;;  %v4000_v14 = vmul.f32 -1.442695, %v4716_v8 }
 0x492   :  { %4995 = vpow2.f32 %v3998_v26  ;;  %v3999_v33 = vmul.f32 -1.442695, %v4718_v5 }
 0x493   :  { %v4001_v28 = vmul.f32 -1.442695, %v4720_v23 }
 0x494   :  { %4997 = vpow2.f32 %v3999_v33 }
 0x495   :  { %4999 = vpow2.f32 %v4000_v14 }
 0x496   :  { %5001 = vpow2.f32 %v4001_v28 }
 0x49c   :  { %v4996_v22 = vpop.eup %4995 }
 0x49d   :  { %v1634_v58 = vadd.f32 1.0, %v4996_v22 }
 0x49e   :  { %v4998_v59 = vpop.eup %4997 }
 0x49f   :  { %5003 = vrcp.f32 %v1634_v58  ;;  %v1635_v24 = vadd.f32 1.0, %v4998_v59  ;;  %v5000_v19 = vpop.eup %4999 }
 0x4a0   :  { %v5002_v57 = vpop.eup %5001  ;;  %v1648_v43 = vadd.f32 1.0, %v5000_v19 }
 0x4a1   :  { %5005 = vrcp.f32 %v1635_v24  ;;  %v1649_v30 = vadd.f32 1.0, %v5002_v57 }
 0x4a2   :  { %5007 = vrcp.f32 %v1648_v43 }
 0x4a3   :  { %5009 = vrcp.f32 %v1649_v30 }
 0x4a9   :  { %v5004_v29 = vpop.eup %5003 }
 0x4aa   :  { %v1654_v54 = vmul.f32 %v5004_v29, %v1620_v25 }
 0x4ab   :  { %v5006_v1 = vpop.eup %5005 }
 0x4ac   :  { %v1656_v4 = vadd.f32 %v1654_v54, %v5970_v63  ;;  %v1655_v61 = vmul.f32 %v5006_v1, %v1623_v21  ;;  %v5008_v26 = vpop.eup %5007 }
 0x4ad   :  { %v5010_v5 = vpop.eup %5009  ;;  %v1660_v20 = vsub.f32 1.0, %v5008_v26  ;;  %v1664_v27 = vmul.f32 %v5008_v26, %v6320_v44 }
 0x4ae   :  { %5011 = vtanh.f32 %v1656_v4  ;;  %v1657_v9 = vadd.f32 %v1655_v61, %v5976_v15  ;;  %v1661_v8 = vsub.f32 1.0, %v5010_v5  ;;  %v1665_v6 = vmul.f32 %v5010_v5, %v6323_v45 }
 0x4b0   :  { %5013 = vtanh.f32 %v1657_v9 }
 0x4b8   :  { %v5012_v32 = vpop.eup %5011 }
 0x4b9   :  { %v1662_v33 = vmul.f32 %v5012_v32, %v1660_v20 }
 0x4ba   :  { %v5014_v23 = vpop.eup %5013 }
 0x4bb   :  { %v1663_v14 = vmul.f32 %v5014_v23, %v1661_v8  ;;  %v1666_v28 = vadd.f32 %v1664_v27, %v1662_v33 }
 0x4bd   :  { %v1667_v63 = vadd.f32 %v1665_v6, %v1663_v14  ;;  %v1687_v22 = vsel %vm1681_vm11, %v1666_v28, 0.0  ;;  %v6471_v58 = vsel %vm1681_vm11, %v1666_v28, %v6320_v44 }
 0x4be   :  { %v4187_v15 = vpack.c.bf16 %v1687_v22, %v1687_v22 }
 0x4bf   :  { %v6474_v59 = vsel %vm1682_vm12, %v1667_v63, %v6323_v45  ;;  %v1688_v24 = vsel %vm1682_vm12, %v1667_v63, 0.0 }
 0x4c0   :  { %v4188_v19 = vpack.c.bf16 %v1688_v24, %v1688_v24  ;;  %4006 = vst [vmem:[%s7490_s6 + $0x30] sm:$0xf] %v4187_v15  ;;  %v1711_v60 = vpack.c.bf16 %v6474_v59, %v6471_v58 }
 0x4c2   :  { %4007 = vst [vmem:[%s7490_s6 + $0x38] sm:$0xf] %v4188_v19  ;;  %1745 = vmatmul.mubr.bf16.vlgmr.msra.gmra.mrb[16].mxu0 %v1711_v60  ;;  %4466 = vmatmul.mubr.bf16.vlgmr.msra.gmra.mrb[48].mxu1 %v1711_v60 }
 0x4c3   :  { %1883 = vmatpush1.bf16.msra.mxu0 %v6336_v55  ;;  %4470 = vmatpush3.bf16.msra.mxu1 %v6251_v62 }
 0x4c4   :  { %1884 = vmatprep.subr.bf16.mxu0 %v6343_v11  ;;  %4471 = vmatprep.subr.bf16.mxu1 %v7581_v48 }
 0x4c5   :  { %1914 = vmatprep.mubr.bf16.mxu0 %v7582_v53  ;;  %4485 = vmatprep.mubr.msk.bf16.mxu1 %vm5305_vm0, %v7581_v48 }
 0x4c7   :  { %1885 = vmatpush1.bf16.msra.mxu0 %v6353_v16  ;;  %4472 = vmatpush3.bf16.msra.mxu1 %v6263_v38 }
 0x4c8   :  { %1886 = vmatprep.subr.bf16.mxu0 %v6360_v46  ;;  %4473 = vmatprep.subr.bf16.mxu1 %v7581_v48 }
 0x4cb   :  { %1887 = vmatpush1.bf16.msra.mxu0 %v6367_v47  ;;  %4474 = vmatpush3.bf16.msra.mxu1 %v6272_v40 }
 0x4cc   :  { %1888 = vmatprep.subr.bf16.mxu0 %v6374_v49  ;;  %4475 = vmatprep.subr.bf16.mxu1 %v7581_v48 }
 0x4cf   :  { %1889 = vmatpush1.bf16.msra.mxu0 %v6381_v39  ;;  %4476 = vmatpush3.bf16.msra.mxu1 %v6281_v41 }
 0x4d0   :  { %1890 = vmatprep.subr.bf16.mxu0 %v6388_v50  ;;  %4477 = vmatprep.subr.bf16.mxu1 %v7581_v48 }
 0x4d3   :  { %1891 = vmatpush1.bf16.msra.mxu0 %v6395_v35  ;;  %4478 = vmatpush3.bf16.msra.mxu1 %v6290_v42 }
 0x4d4   :  { %1892 = vmatprep.subr.bf16.mxu0 %v6402_v51  ;;  %4479 = vmatprep.subr.bf16.mxu1 %v7581_v48 }
 0x4d7   :  { %1893 = vmatpush1.bf16.msra.mxu0 %v6409_v17  ;;  %4480 = vmatpush3.bf16.msra.mxu1 %v6415_v3 }
 0x4d8   :  { %1894 = vmatprep.subr.bf16.mxu0 %v6421_v0  ;;  %4481 = vmatprep.subr.bf16.mxu1 %v7581_v48 }
 0x4db   :  { %1895 = vmatpush1.bf16.msra.mxu0 %v6428_v12  ;;  %4482 = vmatpush3.bf16.msra.mxu1 %v6434_v18 }
 0x4dc   :  { %1896 = vmatprep.subr.bf16.mxu0 %v6440_v2  ;;  %4483 = vmatprep.subr.bf16.mxu1 %v7581_v48 }
 0x4df   :  { %1897 = vmatpush1.bf16.msra.mxu0 %v6447_v13  ;;  %4484 = vmatpush3.bf16.msra.mxu1 %v6453_v34 }
 0x4e0   :  { %2052 = vmatprep.subr.bf16.mxu0 %v6217_v56  ;;  %4489 = vmatprep.subr.bf16.mxu1 %v7581_v48 }
 0x595   :  { %v1746_v7 = vpop.f32.mrb[16].mxu0  ;;  %v1789_v44 = vpop.f32.mrb[48].mxu1 }
 0x596   :  { %v4722_v45 = vadd.f32 %v6146_v31, %v1746_v7  ;;  %v1748_v57 = vpop.f32.mrb[17].mxu0  ;;  %v4467_v43 = vpop.f32.mrb[49].mxu1  ;;  %v1790_v14 = vadd.f32 %v1789_v44, %v6155_v37 }
 0x597   :  { %v1750_v25 = vpop.f32.mrb[18].mxu0  ;;  %v1792_v30 = vpop.f32.mrb[50].mxu1  ;;  %v4724_v4 = vadd.f32 %v6148_v36, %v1748_v57 }
 0x598   :  { %v4008_v29 = vmul.f32 -1.442695, %v4722_v45  ;;  %v4726_v54 = vadd.f32 %v6146_v31, %v1750_v25  ;;  %v1752_v21 = vpop.f32.mrb[19].mxu0  ;;  %v4468_v1 = vpop.f32.mrb[51].mxu1  ;;  %v1793_v15 = vadd.f32 %v1792_v30, %v6155_v37 }
 0x599   :  { %v4728_v9 = vadd.f32 %v6148_v36, %v1752_v21  ;;  %v4010_v26 = vmul.f32 -1.442695, %v4724_v4 }
 0x59a   :  { %5015 = vpow2.f32 %v4008_v29  ;;  %v4009_v61 = vmul.f32 -1.442695, %v4726_v54 }
 0x59b   :  { %v4011_v5 = vmul.f32 -1.442695, %v4728_v9 }
 0x59c   :  { %5017 = vpow2.f32 %v4009_v61 }
 0x59d   :  { %5019 = vpow2.f32 %v4010_v26  ;;  %v7584_v26 = vld [vmem:[#allocation10_spill] sm:$0xff] }
 0x59e   :  { %5021 = vpow2.f32 %v4011_v5  ;;  %vm1852_vm14 = vcmp.eq.s32.totalorder %v7584_v26, 1  ;;  %v7585_v26 = vld [vmem:[#allocation31_spill] sm:$0xff] }
 0x5a4   :  { %v5016_v20 = vpop.eup %5015 }
 0x5a5   :  { %v1804_v32 = vadd.f32 1.0, %v5016_v20 }
 0x5a6   :  { %v5018_v27 = vpop.eup %5017 }
 0x5a7   :  { %5023 = vrcp.f32 %v1804_v32  ;;  %v1805_v8 = vadd.f32 1.0, %v5018_v27  ;;  %v5020_v33 = vpop.eup %5019 }
 0x5a8   :  { %v5022_v23 = vpop.eup %5021  ;;  %v1818_v6 = vadd.f32 1.0, %v5020_v33 }
 0x5a9   :  { %5025 = vrcp.f32 %v1805_v8  ;;  %v1819_v28 = vadd.f32 1.0, %v5022_v23 }
 0x5aa   :  { %5027 = vrcp.f32 %v1818_v6 }
 0x5ab   :  { %5029 = vrcp.f32 %v1819_v28 }
 0x5b1   :  { %v5024_v63 = vpop.eup %5023 }
 0x5b2   :  { %v1824_v22 = vmul.f32 %v5024_v63, %v1790_v14 }
 0x5b3   :  { %v5026_v24 = vpop.eup %5025 }
 0x5b4   :  { %v1826_v19 = vadd.f32 %v1824_v22, %v5990_v52  ;;  %v1825_v60 = vmul.f32 %v5026_v24, %v1793_v15  ;;  %v5028_v45 = vpop.eup %5027  ;;  %v7583_v52 = vld [vmem:[#allocation4_spill] sm:$0xff] }
 0x5b5   :  { %v5030_v57 = vpop.eup %5029  ;;  %v1830_v43 = vsub.f32 1.0, %v5028_v45  ;;  %v1834_v44 = vmul.f32 %v5028_v45, %v6471_v58  ;;  %vm1851_vm13 = vcmp.eq.s32.totalorder %v7583_v52, 1 }
 0x5b6   :  { %5031 = vtanh.f32 %v1826_v19  ;;  %v1827_v7 = vadd.f32 %v1825_v60, %v5996_v10  ;;  %v1831_v29 = vsub.f32 1.0, %v5030_v57  ;;  %v1835_v30 = vmul.f32 %v5030_v57, %v6474_v59 }
 0x5b8   :  { %5033 = vtanh.f32 %v1827_v7 }
 0x5c0   :  { %v5032_v25 = vpop.eup %5031 }
 0x5c1   :  { %v1832_v54 = vmul.f32 %v5032_v25, %v1830_v43 }
 0x5c2   :  { %v5034_v21 = vpop.eup %5033 }
 0x5c3   :  { %v1833_v1 = vmul.f32 %v5034_v21, %v1831_v29  ;;  %v1836_v4 = vadd.f32 %v1834_v44, %v1832_v54 }
 0x5c5   :  { %v1837_v61 = vadd.f32 %v1835_v30, %v1833_v1  ;;  %v1857_v9 = vsel %vm1851_vm13, %v1836_v4, 0.0  ;;  %v6532_v5 = vsel %vm1851_vm13, %v1836_v4, %v6471_v58 }
 0x5c6   :  { %v4189_v10 = vpack.c.bf16 %v1857_v9, %v1857_v9 }
 0x5c7   :  { %v6535_v20 = vsel %vm1852_vm14, %v1837_v61, %v6474_v59  ;;  %v1858_v32 = vsel %vm1852_vm14, %v1837_v61, 0.0 }
 0x5c8   :  { %v4190_v27 = vpack.c.bf16 %v1858_v32, %v1858_v32  ;;  %4016 = vst [vmem:[%s7490_s6 + $0x40] sm:$0xf] %v4189_v10  ;;  %v1881_v8 = vpack.c.bf16 %v6535_v20, %v6532_v5 }
 0x5ca   :  { %4017 = vst [vmem:[%s7490_s6 + $0x48] sm:$0xf] %v4190_v27  ;;  %1915 = vmatmul.mubr.bf16.vlgmr.msra.gmra.mrb[20].mxu0 %v1881_v8  ;;  %4486 = vmatmul.mubr.bf16.vlgmr.msra.gmra.mrb[52].mxu1 %v1881_v8  ;;  %v7586_v27 = vld [vmem:[#allocation33_spill] sm:$0xff] }
 0x5cb   :  { %2053 = vmatpush1.bf16.msra.mxu0 %v6336_v55  ;;  %4490 = vmatpush3.bf16.msra.mxu1 %v6251_v62 }
 0x5cc   :  { %2054 = vmatprep.subr.bf16.mxu0 %v6343_v11  ;;  %4491 = vmatprep.subr.bf16.mxu1 %v7581_v48 }
 0x5cd   :  { %2084 = vmatprep.mubr.bf16.mxu0 %v7582_v53  ;;  %4505 = vmatprep.mubr.msk.bf16.mxu1 %vm5305_vm0, %v7581_v48 }
 0x5cf   :  { %2055 = vmatpush1.bf16.msra.mxu0 %v6353_v16  ;;  %4492 = vmatpush3.bf16.msra.mxu1 %v6263_v38 }
 0x5d0   :  { %2056 = vmatprep.subr.bf16.mxu0 %v6360_v46  ;;  %4493 = vmatprep.subr.bf16.mxu1 %v7581_v48 }
 0x5d3   :  { %2057 = vmatpush1.bf16.msra.mxu0 %v6367_v47  ;;  %4494 = vmatpush3.bf16.msra.mxu1 %v6272_v40 }
 0x5d4   :  { %2058 = vmatprep.subr.bf16.mxu0 %v6374_v49  ;;  %4495 = vmatprep.subr.bf16.mxu1 %v7581_v48 }
 0x5d7   :  { %2059 = vmatpush1.bf16.msra.mxu0 %v6381_v39  ;;  %4496 = vmatpush3.bf16.msra.mxu1 %v6281_v41 }
 0x5d8   :  { %2060 = vmatprep.subr.bf16.mxu0 %v6388_v50  ;;  %4497 = vmatprep.subr.bf16.mxu1 %v7581_v48 }
 0x5db   :  { %2061 = vmatpush1.bf16.msra.mxu0 %v6395_v35  ;;  %4498 = vmatpush3.bf16.msra.mxu1 %v6290_v42 }
 0x5dc   :  { %2062 = vmatprep.subr.bf16.mxu0 %v6402_v51  ;;  %4499 = vmatprep.subr.bf16.mxu1 %v7581_v48 }
 0x5df   :  { %2063 = vmatpush1.bf16.msra.mxu0 %v6409_v17  ;;  %4500 = vmatpush3.bf16.msra.mxu1 %v6415_v3 }
 0x5e0   :  { %2064 = vmatprep.subr.bf16.mxu0 %v6421_v0  ;;  %4501 = vmatprep.subr.bf16.mxu1 %v7581_v48 }
 0x5e3   :  { %2065 = vmatpush1.bf16.msra.mxu0 %v6428_v12  ;;  %4502 = vmatpush3.bf16.msra.mxu1 %v6434_v18 }
 0x5e4   :  { %2066 = vmatprep.subr.bf16.mxu0 %v6440_v2  ;;  %4503 = vmatprep.subr.bf16.mxu1 %v7581_v48 }
 0x5e7   :  { %2067 = vmatpush1.bf16.msra.mxu0 %v6447_v13  ;;  %4504 = vmatpush3.bf16.msra.mxu1 %v6453_v34 }
 0x5e8   :  { %4509 = vmatprep.subr.bf16.mxu1 %v7581_v48  ;;  %2222 = vmatprep.subr.bf16.mxu0 %v6217_v56 }
 0x69d   :  { %v1916_v58 = vpop.f32.mrb[20].mxu0  ;;  %v1959_v59 = vpop.f32.mrb[52].mxu1 }
 0x69e   :  { %v4730_v33 = vadd.f32 %v6146_v31, %v1916_v58  ;;  %v1918_v23 = vpop.f32.mrb[21].mxu0  ;;  %v4487_v6 = vpop.f32.mrb[53].mxu1  ;;  %v1960_v30 = vadd.f32 %v1959_v59, %v6155_v37 }
 0x69f   :  { %v1920_v14 = vpop.f32.mrb[22].mxu0  ;;  %v1962_v28 = vpop.f32.mrb[54].mxu1  ;;  %v4732_v19 = vadd.f32 %v6148_v36, %v1918_v23 }
 0x6a0   :  { %v4018_v63 = vmul.f32 -1.442695, %v4730_v33  ;;  %v4734_v22 = vadd.f32 %v6146_v31, %v1920_v14  ;;  %v1922_v15 = vpop.f32.mrb[23].mxu0  ;;  %v4488_v24 = vpop.f32.mrb[55].mxu1  ;;  %v1963_v61 = vadd.f32 %v1962_v28, %v6155_v37 }
 0x6a1   :  { %v4736_v7 = vadd.f32 %v6148_v36, %v1922_v15  ;;  %v4020_v56 = vmul.f32 -1.442695, %v4732_v19  ;;  %v7587_v19 = vld [vmem:[#allocation6_spill] sm:$0xff] }
 0x6a2   :  { %5035 = vpow2.f32 %v4018_v63  ;;  %v4019_v60 = vmul.f32 -1.442695, %v4734_v22  ;;  %vm2021_vm15 = vcmp.eq.s32.totalorder %v7587_v19, 1  ;;  %v7592_v19 = vld [vmem:[#allocation15_spill] sm:$0xff] }
 0x6a3   :  { %v4021_v45 = vmul.f32 -1.442695, %v4736_v7  ;;  %vm2192_vm6 = vcmp.eq.s32.totalorder %v7592_v19, 1  ;;  %v6878_v19 = vld [vmem:[%s7489_s4 + $0x3] sm:$0x7] }
 0x6a4   :  { %5037 = vpow2.f32 %v4019_v60 }
 0x6a5   :  { %5039 = vpow2.f32 %v4020_v56  ;;  %v7588_v56 = vld [vmem:[#allocation12_spill] sm:$0xff] }
 0x6a6   :  { %5041 = vpow2.f32 %v4021_v45  ;;  %vm2022_vm4 = vcmp.eq.s32.totalorder %v7588_v56, 1 }
 0x6ac   :  { %v5036_v57 = vpop.eup %5035 }
 0x6ad   :  { %v1974_v43 = vadd.f32 1.0, %v5036_v57 }
 0x6ae   :  { %v5038_v25 = vpop.eup %5037 }
 0x6af   :  { %5043 = vrcp.f32 %v1974_v43  ;;  %v1975_v44 = vadd.f32 1.0, %v5038_v25  ;;  %v5040_v29 = vpop.eup %5039 }
 0x6b0   :  { %v5042_v54 = vpop.eup %5041  ;;  %v1988_v21 = vadd.f32 1.0, %v5040_v29 }
 0x6b1   :  { %5045 = vrcp.f32 %v1975_v44  ;;  %v1989_v1 = vadd.f32 1.0, %v5042_v54 }
 0x6b2   :  { %5047 = vrcp.f32 %v1988_v21 }
 0x6b3   :  { %5049 = vrcp.f32 %v1989_v1 }
 0x6b9   :  { %v5044_v4 = vpop.eup %5043 }
 0x6ba   :  { %v1994_v52 = vmul.f32 %v5044_v4, %v1960_v30 }
 0x6bb   :  { %v5046_v9 = vpop.eup %5045 }
 0x6bc   :  { %v1996_v10 = vadd.f32 %v1994_v52, %v7585_v26  ;;  %v1995_v32 = vmul.f32 %v5046_v9, %v1963_v61  ;;  %v5048_v58 = vpop.eup %5047  ;;  %v7589_v52 = vld [vmem:[#allocation39_spill] sm:$0xff]  ;;  %v7590_v26 = vld [vmem:[#allocation41_spill] sm:$0xff] }
 0x6bd   :  { %v5050_v33 = vpop.eup %5049  ;;  %v2000_v23 = vsub.f32 1.0, %v5048_v58  ;;  %v2004_v59 = vmul.f32 %v5048_v58, %v6532_v5 }
 0x6be   :  { %5051 = vtanh.f32 %v1996_v10  ;;  %v1997_v8 = vadd.f32 %v1995_v32, %v7586_v27  ;;  %v2001_v14 = vsub.f32 1.0, %v5050_v33  ;;  %v2005_v28 = vmul.f32 %v5050_v33, %v6535_v20 }
 0x6c0   :  { %5053 = vtanh.f32 %v1997_v8 }
 0x6c8   :  { %v5052_v6 = vpop.eup %5051 }
 0x6c9   :  { %v2002_v63 = vmul.f32 %v5052_v6, %v2000_v23 }
 0x6ca   :  { %v5054_v22 = vpop.eup %5053 }
 0x6cb   :  { %v2003_v15 = vmul.f32 %v5054_v22, %v2001_v14  ;;  %v2006_v24 = vadd.f32 %v2004_v59, %v2002_v63 }
 0x6cd   :  { %v2007_v60 = vadd.f32 %v2005_v28, %v2003_v15  ;;  %v2027_v7 = vsel %vm2021_vm15, %v2006_v24, 0.0  ;;  %v6593_v57 = vsel %vm2021_vm15, %v2006_v24, %v6532_v5  ;;  %v7591_v28 = vld [vmem:[#allocation11_spill] sm:$0xff] }
 0x6ce   :  { %v4191_v45 = vpack.c.bf16 %v2027_v7, %v2027_v7  ;;  %vm2191_vm5 = vcmp.eq.s32.totalorder %v7591_v28, 1 }
 0x6cf   :  { %v6596_v43 = vsel %vm2022_vm4, %v2007_v60, %v6535_v20  ;;  %v2028_v25 = vsel %vm2022_vm4, %v2007_v60, 0.0 }
 0x6d0   :  { %v4192_v44 = vpack.c.bf16 %v2028_v25, %v2028_v25  ;;  %4026 = vst [vmem:[%s7490_s6 + $0x50] sm:$0xf] %v4191_v45  ;;  %v2051_v29 = vpack.c.bf16 %v6596_v43, %v6593_v57  ;;  %v6667_v25 = vld [vmem:[%s7486_s3 + $0xc0] ss:$12 sps:$4 sm:$0xff]  }
 0x6d2   :  { %4027 = vst [vmem:[%s7490_s6 + $0x58] sm:$0xf] %v4192_v44  ;;  %2085 = vmatmul.mubr.bf16.vlgmr.msra.gmra.mrb[24].mxu0 %v2051_v29  ;;  %4506 = vmatmul.mubr.bf16.vlgmr.msra.gmra.mrb[56].mxu1 %v2051_v29 }
 0x6d3   :  { %4510 = vmatpush3.bf16.msra.mxu1 %v6251_v62  ;;  %2223 = vmatpush1.bf16.msra.mxu0 %v6336_v55  ;;  %v6642_v62 = vld [vmem:[%s7486_s3 + $0xc4] ss:$12 sps:$4 sm:$0xff]  }
 0x6d4   :  { %4511 = vmatprep.subr.bf16.mxu1 %v7581_v48  ;;  %2224 = vmatprep.subr.bf16.mxu0 %v6343_v11 }
 0x6d5   :  { %2254 = vmatprep.mubr.bf16.mxu0 %v7582_v53  ;;  %4525 = vmatprep.mubr.msk.bf16.mxu1 %vm5305_vm0, %v7581_v48 }
 0x6d7   :  { %4512 = vmatpush3.bf16.msra.mxu1 %v6263_v38  ;;  %2225 = vmatpush1.bf16.msra.mxu0 %v6353_v16 }
 0x6d8   :  { %4513 = vmatprep.subr.bf16.mxu1 %v7581_v48  ;;  %2226 = vmatprep.subr.bf16.mxu0 %v6360_v46 }
 0x6db   :  { %4514 = vmatpush3.bf16.msra.mxu1 %v6272_v40  ;;  %2227 = vmatpush1.bf16.msra.mxu0 %v6367_v47 }
 0x6dc   :  { %4515 = vmatprep.subr.bf16.mxu1 %v7581_v48  ;;  %2228 = vmatprep.subr.bf16.mxu0 %v6374_v49 }
 0x6df   :  { %4516 = vmatpush3.bf16.msra.mxu1 %v6281_v41  ;;  %2229 = vmatpush1.bf16.msra.mxu0 %v6381_v39 }
 0x6e0   :  { %4517 = vmatprep.subr.bf16.mxu1 %v7581_v48  ;;  %2230 = vmatprep.subr.bf16.mxu0 %v6388_v50 }
 0x6e3   :  { %4518 = vmatpush3.bf16.msra.mxu1 %v6290_v42  ;;  %2231 = vmatpush1.bf16.msra.mxu0 %v6395_v35 }
 0x6e4   :  { %4519 = vmatprep.subr.bf16.mxu1 %v7581_v48  ;;  %2232 = vmatprep.subr.bf16.mxu0 %v6402_v51 }
 0x6e7   :  { %4520 = vmatpush3.bf16.msra.mxu1 %v6415_v3  ;;  %2233 = vmatpush1.bf16.msra.mxu0 %v6409_v17 }
 0x6e8   :  { %4521 = vmatprep.subr.bf16.mxu1 %v7581_v48  ;;  %2234 = vmatprep.subr.bf16.mxu0 %v6421_v0 }
 0x6eb   :  { %4522 = vmatpush3.bf16.msra.mxu1 %v6434_v18  ;;  %2235 = vmatpush1.bf16.msra.mxu0 %v6428_v12 }
 0x6ec   :  { %4523 = vmatprep.subr.bf16.mxu1 %v7581_v48  ;;  %2236 = vmatprep.subr.bf16.mxu0 %v6440_v2 }
 0x6ef   :  { %4524 = vmatpush3.bf16.msra.mxu1 %v6453_v34  ;;  %2237 = vmatpush1.bf16.msra.mxu0 %v6447_v13 }
 0x6f0   :  { %2570 = vmatprep.subr.bf16.mxu1 %v6642_v62  ;;  %2735 = vmatprep.subr.bf16.mxu0 %v6642_v62 }
 0x7a5   :  { %v2086_v38 = vpop.f32.mrb[24].mxu0  ;;  %v2129_v40 = vpop.f32.mrb[56].mxu1 }
 0x7a6   :  { %v4738_v41 = vadd.f32 %v6146_v31, %v2086_v38  ;;  %v2088_v42 = vpop.f32.mrb[25].mxu0  ;;  %v4507_v55 = vpop.f32.mrb[57].mxu1  ;;  %v2130_v20 = vadd.f32 %v2129_v40, %v6155_v37  ;;  %v6693_v38 = vld [vmem:[%s7486_s3 + $0xf4] ss:$12 sps:$4 sm:$0xff]   ;;  %v6702_v40 = vld [vmem:[%s7486_s3 + $0xf0] ss:$12 sps:$4 sm:$0xff]  }
 0x7a7   :  { %v2090_v11 = vpop.f32.mrb[26].mxu0  ;;  %v2132_v16 = vpop.f32.mrb[58].mxu1  ;;  %v4740_v50 = vadd.f32 %v6148_v36, %v2088_v42  ;;  %v6716_v42 = vld [vmem:[%s7486_s3 + $0x108] ss:$12 sps:$4 sm:$0xff]   ;;  %v6722_v55 = vld [vmem:[%s7486_s3 + $0x124] ss:$12 sps:$4 sm:$0xff]  }
 0x7a8   :  { %v4028_v46 = vmul.f32 -1.442695, %v4738_v41  ;;  %v4742_v47 = vadd.f32 %v6146_v31, %v2090_v11  ;;  %v2092_v49 = vpop.f32.mrb[27].mxu0  ;;  %v4508_v39 = vpop.f32.mrb[59].mxu1  ;;  %v2133_v1 = vadd.f32 %v2132_v16, %v6155_v37  ;;  %v6708_v41 = vld [vmem:[%s7486_s3 + $0x10c] ss:$12 sps:$4 sm:$0xff]  }
 0x7a9   :  { %v4744_v51 = vadd.f32 %v6148_v36, %v2092_v49  ;;  %v4030_v17 = vmul.f32 -1.442695, %v4740_v50  ;;  %v6730_v11 = vld [vmem:[%s7486_s3 + $0x120] ss:$12 sps:$4 sm:$0xff]   ;;  %v6736_v16 = vld [vmem:[%s7486_s3 + $0x13c] ss:$12 sps:$4 sm:$0xff]  }
 0x7aa   :  { %5055 = vpow2.f32 %v4028_v46  ;;  %v4029_v35 = vmul.f32 -1.442695, %v4742_v47  ;;  %v6744_v46 = vld [vmem:[%s7486_s3 + $0x138] ss:$12 sps:$4 sm:$0xff]   ;;  %v6750_v47 = vld [vmem:[%s7486_s3 + $0x154] ss:$12 sps:$4 sm:$0xff]  }
 0x7ab   :  { %v4031_v3 = vmul.f32 -1.442695, %v4744_v51  ;;  %v6758_v49 = vld [vmem:[%s7486_s3 + $0x150] ss:$12 sps:$4 sm:$0xff]   ;;  %v6764_v39 = vld [vmem:[%s7486_s3 + $0x16c] ss:$12 sps:$4 sm:$0xff]  }
 0x7ac   :  { %5057 = vpow2.f32 %v4029_v35  ;;  %v6772_v50 = vld [vmem:[%s7486_s3 + $0x168] ss:$12 sps:$4 sm:$0xff]   ;;  %v7593_v51 = vmov 0.0|0.0  }
 0x7ad   :  { %5059 = vpow2.f32 %v4030_v17  ;;  %v6781_v35 = vld [vmem:[%s7486_s3 + $0xc8] ss:$12 sps:$4 sm:$0xff]   ;;  %v6791_v17 = vld [vmem:[%s7486_s3 + $0xe0] ss:$12 sps:$4 sm:$0xff]  }
 0x7ae   :  { %5061 = vpow2.f32 %v4031_v3  ;;  %v6800_v3 = vld [vmem:[%s7486_s3 + $0xf8] ss:$12 sps:$4 sm:$0xff]  }
 0x7b4   :  { %v5056_v0 = vpop.eup %5055 }
 0x7b5   :  { %v2144_v12 = vadd.f32 1.0, %v5056_v0  ;;  %v6807_v0 = vld [vmem:[%s7486_s3 + $0x110] ss:$12 sps:$4 sm:$0xff]  }
 0x7b6   :  { %v5058_v18 = vpop.eup %5057 }
 0x7b7   :  { %5063 = vrcp.f32 %v2144_v12  ;;  %v2145_v2 = vadd.f32 1.0, %v5058_v18  ;;  %v5060_v13 = vpop.eup %5059  ;;  %v6814_v12 = vld [vmem:[%s7486_s3 + $0x128] ss:$12 sps:$4 sm:$0xff]   ;;  %v6821_v18 = vld [vmem:[%s7486_s3 + $0x140] ss:$12 sps:$4 sm:$0xff]  }
 0x7b8   :  { %v5062_v34 = vpop.eup %5061  ;;  %v2158_v5 = vadd.f32 1.0, %v5060_v13  ;;  %v6835_v13 = vld [vmem:[%s7486_s3 + $0x170] ss:$12 sps:$4 sm:$0xff]  }
 0x7b9   :  { %5065 = vrcp.f32 %v2145_v2  ;;  %v2159_v54 = vadd.f32 1.0, %v5062_v34  ;;  %v6828_v2 = vld [vmem:[%s7486_s3 + $0x158] ss:$12 sps:$4 sm:$0xff]  }
 0x7ba   :  { %5067 = vrcp.f32 %v2158_v5 }
 0x7bb   :  { %5069 = vrcp.f32 %v2159_v54 }
 0x7c1   :  { %v5064_v21 = vpop.eup %5063 }
 0x7c2   :  { %v2164_v30 = vmul.f32 %v5064_v21, %v2130_v20 }
 0x7c3   :  { %v5066_v4 = vpop.eup %5065 }
 0x7c4   :  { %v2166_v61 = vadd.f32 %v2164_v30, %v7589_v52  ;;  %v2165_v9 = vmul.f32 %v5066_v4, %v2133_v1  ;;  %v5068_v32 = vpop.eup %5067 }
 0x7c5   :  { %v5070_v27 = vpop.eup %5069  ;;  %v2170_v8 = vsub.f32 1.0, %v5068_v32  ;;  %v2174_v6 = vmul.f32 %v5068_v32, %v6593_v57 }
 0x7c6   :  { %5071 = vtanh.f32 %v2166_v61  ;;  %v2167_v10 = vadd.f32 %v2165_v9, %v7590_v26  ;;  %v2171_v33 = vsub.f32 1.0, %v5070_v27  ;;  %v2175_v63 = vmul.f32 %v5070_v27, %v6596_v43 }
 0x7c8   :  { %5073 = vtanh.f32 %v2167_v10 }
 0x7d0   :  { %v5072_v58 = vpop.eup %5071 }
 0x7d1   :  { %v2172_v23 = vmul.f32 %v5072_v58, %v2170_v8  ;;  %v6863_v8 = vpop.permute.xlu0 %2868 }
 0x7d2   :  { %v5074_v59 = vpop.eup %5073 }
 0x7d3   :  { %v2173_v14 = vmul.f32 %v5074_v59, %v2171_v33  ;;  %v2176_v22 = vadd.f32 %v2174_v6, %v2172_v23  ;;  %v6865_v33 = vpop.permute.xlu1 %2871 }
 0x7d5   :  { %v2177_v15 = vadd.f32 %v2175_v63, %v2173_v14  ;;  %v2197_v24 = vsel %vm2191_vm5, %v2176_v22, 0.0  ;;  %v6659_v7 = vsel %vm2191_vm5, %v2176_v22, %v6593_v57  ;;  %v6677_v57 = vld [vmem:[%s7486_s3 + $0xdc] ss:$12 sps:$4 sm:$0xff]   ;;  %v6867_v6 = vpop.permute.xlu0 %3033 }
 0x7d6   :  { %v4193_v60 = vpack.c.bf16 %v2197_v24, %v2197_v24 }
 0x7d7   :  { %v6662_v56 = vsel %vm2192_vm6, %v2177_v15, %v6596_v43  ;;  %v2198_v45 = vsel %vm2192_vm6, %v2177_v15, 0.0  ;;  %v6686_v43 = vld [vmem:[%s7486_s3 + $0xd8] ss:$12 sps:$4 sm:$0xff]   ;;  %v6869_v14 = vpop.permute.xlu1 %3036 }
 0x7d8   :  { %v4194_v44 = vpack.c.bf16 %v2198_v45, %v2198_v45  ;;  %4036 = vst [vmem:[%s7490_s6 + $0x60] sm:$0xf] %v4193_v60  ;;  %v2221_v29 = vpack.c.bf16 %v6662_v56, %v6659_v7  ;;  %vm3039_vm9 = vcmp.eq.s32.totalorder %v6869_v14, 1 }
 0x7d9   :  { %v6871_v22 = vpop.permute.xlu0 %3198 }
 0x7da   :  { %4037 = vst [vmem:[%s7490_s6 + $0x68] sm:$0xf] %v4194_v44  ;;  %2255 = vmatmul.mubr.bf16.vlgmr.msra.gmra.mrb[28].mxu0 %v2221_v29  ;;  %4526 = vmatmul.mubr.bf16.vlgmr.msra.gmra.mrb[60].mxu1 %v2221_v29  ;;  %vm3203_vm10 = vcmp.eq.s32.totalorder %v6871_v22, 1 }
 0x7db   :  { %2571 = vmatpush1.bf16.msra.mxu1 %v6667_v25  ;;  %2602 = vmatprep.mubr.bf16.mxu1 %v7582_v53  ;;  %v6873_v15 = vpop.permute.xlu1 %3201 }
 0x7dc   :  { %2572 = vmatprep.subr.bf16.mxu1 %v6677_v57  ;;  %2736 = vmatpush1.bf16.msra.mxu0 %v6667_v25  ;;  %vm3204_vm11 = vcmp.eq.s32.totalorder %v6873_v15, 1  ;;  %v7159_v15 = vld [vmem:[%s7486_s3 + $0xc0] ss:$12 sps:$4 sm:$0xff]  }
 0x7dd   :  { %2737 = vmatprep.subr.bf16.mxu0 %v6677_v57  ;;  %2767 = vmatprep.mubr.bf16.mxu0 %v7582_v53  ;;  %v6881_v29 = vpop.permute.xlu0 %3363 }
 0x7de   :  { %vm3368_vm12 = vcmp.eq.s32.totalorder %v6881_v29, 1 }
 0x7df   :  { %2573 = vmatpush1.bf16.msra.mxu1 %v6686_v43 }
 0x7e0   :  { %2574 = vmatprep.subr.bf16.mxu1 %v6693_v38  ;;  %2738 = vmatpush1.bf16.msra.mxu0 %v6686_v43 }
 0x7e1   :  { %2739 = vmatprep.subr.bf16.mxu0 %v6693_v38 }
 0x7e3   :  { %2575 = vmatpush1.bf16.msra.mxu1 %v6702_v40 }
 0x7e4   :  { %2576 = vmatprep.subr.bf16.mxu1 %v6708_v41  ;;  %2740 = vmatpush1.bf16.msra.mxu0 %v6702_v40 }
 0x7e5   :  { %2741 = vmatprep.subr.bf16.mxu0 %v6708_v41 }
 0x7e7   :  { %2577 = vmatpush1.bf16.msra.mxu1 %v6716_v42 }
 0x7e8   :  { %2578 = vmatprep.subr.bf16.mxu1 %v6722_v55  ;;  %2742 = vmatpush1.bf16.msra.mxu0 %v6716_v42 }
 0x7e9   :  { %2743 = vmatprep.subr.bf16.mxu0 %v6722_v55 }
 0x7eb   :  { %2579 = vmatpush1.bf16.msra.mxu1 %v6730_v11 }
 0x7ec   :  { %2580 = vmatprep.subr.bf16.mxu1 %v6736_v16  ;;  %2744 = vmatpush1.bf16.msra.mxu0 %v6730_v11 }
 0x7ed   :  { %2745 = vmatprep.subr.bf16.mxu0 %v6736_v16 }
 0x7ef   :  { %2581 = vmatpush1.bf16.msra.mxu1 %v6744_v46 }
 0x7f0   :  { %2582 = vmatprep.subr.bf16.mxu1 %v6750_v47  ;;  %2746 = vmatpush1.bf16.msra.mxu0 %v6744_v46 }
 0x7f1   :  { %2747 = vmatprep.subr.bf16.mxu0 %v6750_v47 }
 0x7f3   :  { %2583 = vmatpush1.bf16.msra.mxu1 %v6758_v49 }
 0x7f4   :  { %2584 = vmatprep.subr.bf16.mxu1 %v6764_v39  ;;  %2748 = vmatpush1.bf16.msra.mxu0 %v6758_v49 }
 0x7f5   :  { %2749 = vmatprep.subr.bf16.mxu0 %v6764_v39 }
 0x7f7   :  { %2585 = vmatpush1.bf16.msra.mxu1 %v6772_v50 }
 0x7f8   :  { %4529 = vmatprep.subr.bf16.mxu1 %v7581_v48  ;;  %2750 = vmatpush1.bf16.msra.mxu0 %v6772_v50 }
 0x7f9   :  { %2900 = vmatprep.subr.bf16.mxu0 %v6642_v62 }
 0x7fa   :  { %2603 = vmatmul.mubr.bf16.vlgmr.msra.gmra.mrb[64].mxu1 %v7593_v51 }
 0x7fb   :  { %4530 = vmatpush3.bf16.msra.mxu1 %v6781_v35  ;;  %4545 = vmatprep.mubr.msk.bf16.mxu1 %vm5305_vm0, %v7581_v48 }
 0x7fc   :  { %4531 = vmatprep.subr.bf16.mxu1 %v7581_v48 }
 0x7ff   :  { %4532 = vmatpush3.bf16.msra.mxu1 %v6791_v17 }
 0x800   :  { %4533 = vmatprep.subr.bf16.mxu1 %v7581_v48 }
 0x803   :  { %4534 = vmatpush3.bf16.msra.mxu1 %v6800_v3 }
 0x804   :  { %4535 = vmatprep.subr.bf16.mxu1 %v7581_v48 }
 0x807   :  { %4536 = vmatpush3.bf16.msra.mxu1 %v6807_v0 }
 0x808   :  { %4537 = vmatprep.subr.bf16.mxu1 %v7581_v48 }
 0x80b   :  { %4538 = vmatpush3.bf16.msra.mxu1 %v6814_v12 }
 0x80c   :  { %4539 = vmatprep.subr.bf16.mxu1 %v7581_v48 }
 0x80f   :  { %4540 = vmatpush3.bf16.msra.mxu1 %v6821_v18 }
 0x810   :  { %4541 = vmatprep.subr.bf16.mxu1 %v7581_v48 }
 0x813   :  { %4542 = vmatpush3.bf16.msra.mxu1 %v6828_v2 }
 0x814   :  { %4543 = vmatprep.subr.bf16.mxu1 %v7581_v48 }
 0x817   :  { %4544 = vmatpush3.bf16.msra.mxu1 %v6835_v13 }
 0x818   :  { %4549 = vmatprep.subr.bf16.mxu1 %v7581_v48 }
 0x81a   :  { %4546 = vmatmul.mubr.bf16.vlgmr.msra.gmra.mrb[68].mxu1 %v7593_v51 }
 0x81b   :  { %4550 = vmatpush3.bf16.msra.mxu1 %v6781_v35  ;;  %4565 = vmatprep.mubr.msk.bf16.mxu1 %vm5305_vm0, %v7581_v48 }
 0x81c   :  { %4551 = vmatprep.subr.bf16.mxu1 %v7581_v48 }
 0x81f   :  { %4552 = vmatpush3.bf16.msra.mxu1 %v6791_v17 }
 0x820   :  { %4553 = vmatprep.subr.bf16.mxu1 %v7581_v48 }
 0x823   :  { %4554 = vmatpush3.bf16.msra.mxu1 %v6800_v3 }
 0x824   :  { %4555 = vmatprep.subr.bf16.mxu1 %v7581_v48 }
 0x827   :  { %4556 = vmatpush3.bf16.msra.mxu1 %v6807_v0 }
 0x828   :  { %4557 = vmatprep.subr.bf16.mxu1 %v7581_v48 }
 0x82b   :  { %4558 = vmatpush3.bf16.msra.mxu1 %v6814_v12 }
 0x82c   :  { %4559 = vmatprep.subr.bf16.mxu1 %v7581_v48 }
 0x82f   :  { %4560 = vmatpush3.bf16.msra.mxu1 %v6821_v18 }
 0x830   :  { %4561 = vmatprep.subr.bf16.mxu1 %v7581_v48 }
 0x833   :  { %4562 = vmatpush3.bf16.msra.mxu1 %v6828_v2 }
 0x834   :  { %4563 = vmatprep.subr.bf16.mxu1 %v7581_v48 }
 0x837   :  { %4564 = vmatpush3.bf16.msra.mxu1 %v6835_v13 }
 0x838   :  { %4569 = vmatprep.subr.bf16.mxu1 %v7581_v48 }
 0x8ad   :  { %v2256_v34 = vpop.f32.mrb[28].mxu0  ;;  %v2299_v5 = vpop.f32.mrb[60].mxu1 }
 0x8ae   :  { %v4746_v20 = vadd.f32 %v6146_v31, %v2256_v34  ;;  %v2258_v54 = vpop.f32.mrb[29].mxu0  ;;  %v4527_v21 = vpop.f32.mrb[61].mxu1  ;;  %v2300_v60 = vadd.f32 %v2299_v5, %v6155_v37  ;;  %v7596_v5 = vld [vmem:[#allocation47_spill] sm:$0xff] }
 0x8af   :  { %v2260_v30 = vpop.f32.mrb[30].mxu0  ;;  %v2302_v1 = vpop.f32.mrb[62].mxu1  ;;  %v4748_v26 = vadd.f32 %v6148_v36, %v2258_v54 }
 0x8b0   :  { %v4038_v4 = vmul.f32 -1.442695, %v4746_v20  ;;  %v4750_v52 = vadd.f32 %v6146_v31, %v2260_v30  ;;  %v2262_v61 = vpop.f32.mrb[31].mxu0  ;;  %v4528_v9 = vpop.f32.mrb[63].mxu1  ;;  %v2303_v34 = vadd.f32 %v2302_v1, %v6155_v37  ;;  %v7594_v20 = vld [vmem:[#allocation67_spill] sm:$0xff]  ;;  %v7599_v37 = vld [vmem:[#allocation49_spill] sm:$0xff] }
 0x8b1   :  { %v4752_v32 = vadd.f32 %v6148_v36, %v2262_v61  ;;  %v4040_v27 = vmul.f32 -1.442695, %v4748_v26  ;;  %v6886_v54 = vrot.slane %v6878_v19, %v7594_v20  ;;  %v6888_v30 = vpop.permute.xlu1 %3366  ;;  %v7603_v20 = vld [vmem:[#allocation71_spill] sm:$0xff] }
 0x8b2   :  { %5075 = vpow2.f32 %v4038_v4  ;;  %v4039_v10 = vmul.f32 -1.442695, %v4750_v52  ;;  %v7595_v4 = vld [vmem:[#allocation69_spill] sm:$0xff]  ;;  %vm3369_vm13 = vcmp.eq.s32.totalorder %v6888_v30, 1 }
 0x8b3   :  { %v4041_v58 = vmul.f32 -1.442695, %v4752_v32  ;;  %v6892_v52 = vrot.slane %v6878_v19, %v7595_v4  ;;  %v7598_v32 = vld [vmem:[#allocation48_spill] sm:$0xff] }
 0x8b4   :  { %5077 = vpow2.f32 %v4039_v10  ;;  %v7597_v10 = vld [vmem:[#allocation5_spill] sm:$0xff] }
 0x8b5   :  { %5079 = vpow2.f32 %v4040_v27  ;;  %v628_v27 = vadd.f32 %v7598_v32, %v7597_v10  ;;  %v6909_v4 = vpop.permute.xlu1 %3531 }
 0x8b6   :  { %5081 = vpow2.f32 %v4041_v58  ;;  %vm3534_vm15 = vcmp.eq.s32.totalorder %v6909_v4, 1 }
 0x8bc   :  { %v5076_v23 = vpop.eup %5075 }
 0x8bd   :  { %v2314_v31 = vadd.f32 1.0, %v5076_v23 }
 0x8be   :  { %v5078_v59 = vpop.eup %5077 }
 0x8bf   :  { %5083 = vrcp.f32 %v2314_v31  ;;  %v2315_v63 = vadd.f32 1.0, %v5078_v59  ;;  %v5080_v36 = vpop.eup %5079  ;;  %v7600_v31 = vld [vmem:[#allocation23_spill] sm:$0xff]  ;;  %v7601_v59 = vld [vmem:[#allocation68_spill] sm:$0xff] }
 0x8c0   :  { %v5082_v28 = vpop.eup %5081  ;;  %v2328_v24 = vadd.f32 1.0, %v5080_v36  ;;  %v6901_v36 = vpop.permute.xlu0 %3528 }
 0x8c1   :  { %5085 = vrcp.f32 %v2315_v63  ;;  %v2329_v45 = vadd.f32 1.0, %v5082_v28  ;;  %v739_v63 = vadd.f32 %v7601_v59, %v7600_v31  ;;  %vm3533_vm14 = vcmp.eq.s32.totalorder %v6901_v36, 1 }
 0x8c2   :  { %5087 = vrcp.f32 %v2328_v24 }
 0x8c3   :  { %5089 = vrcp.f32 %v2329_v45 }
 0x8c9   :  { %v5084_v44 = vpop.eup %5083 }
 0x8ca   :  { %v2334_v51 = vmul.f32 %v5084_v44, %v2300_v60  ;;  %v7602_v60 = vld [vmem:[#allocation50_spill] sm:$0xff] }
 0x8cb   :  { %v5086_v21 = vpop.eup %5085  ;;  %v632_v45 = vadd.f32 %v7602_v60, %v7597_v10  ;;  %v6912_v10 = vpop.permute.xlu0 %3693 }
 0x8cc   :  { %v2336_v61 = vadd.f32 %v2334_v51, %v7596_v5  ;;  %v2335_v9 = vmul.f32 %v5086_v21, %v2303_v34  ;;  %v743_v21 = vadd.f32 %v7603_v20, %v7600_v31 }
 0x8cd   :  { %v2604_v26 = vpop.f32.mrb[64].mxu1 }
 0x8ce   :  { %5091 = vtanh.f32 %v2336_v61  ;;  %v2337_v1 = vadd.f32 %v2335_v9, %v7599_v37  ;;  %v2605_v58 = vadd.f32 %v2604_v26, %v6886_v54  ;;  %v2606_v23 = vpop.f32.mrb[65].mxu1  ;;  %v5088_v37 = vpop.eup %5087 }
 0x8cf   :  { %v2607_v28 = vadd.f32 %v2606_v23, %v6892_v52  ;;  %v2608_v24 = vpop.f32.mrb[66].mxu1  ;;  %v2357_v60 = vpop.permute.xlu0 %2356 }
 0x8d0   :  { %5093 = vtanh.f32 %v2337_v1  ;;  %v2654_v44 = vadd.f32 %v2605_v58, %v628_v27  ;;  %v2609_v51 = vadd.f32 %v2608_v24, %v6886_v54  ;;  %v2610_v34 = vpop.f32.mrb[67].mxu1  ;;  %v5090_v27 = vpop.eup %5089  ;;  %v2340_v58 = vsub.f32 1.0, %v5088_v37 }
 0x8d1   :  { %v2668_v5 = vadd.f32 %v2607_v28, %v739_v63  ;;  %v2611_v61 = vadd.f32 %v2610_v34, %v6892_v52  ;;  %v6914_v1 = vpop.permute.xlu1 %3696  ;;  %v2344_v24 = vmul.f32 %v5088_v37, %v6659_v7  ;;  %v2341_v63 = vsub.f32 1.0, %v5090_v27 }
 0x8d2   :  { %v4105_v9 = vmul.f32 -1.442695, %v2654_v44  ;;  %v2655_v26 = vadd.f32 %v2609_v51, %v632_v45  ;;  %7604 = vst [vmem:[#allocation4_spill] sm:$0xff] %v6914_v1  ;;  %v2345_v51 = vmul.f32 %v5090_v27, %v6662_v56  ;;  %vm2361_vm7 = vcmp.eq.s32.totalorder %v2357_v60, 1 }
 0x8d3   :  { %v2669_v32 = vadd.f32 %v2611_v61, %v743_v21  ;;  %v4107_v34 = vmul.f32 -1.442695, %v2668_v5 }
 0x8d4   :  { %5095 = vpow2.f32 %v4105_v9  ;;  %v4106_v23 = vmul.f32 -1.442695, %v2655_v26 }
 0x8d5   :  { %v2360_v20 = vpop.permute.xlu1 %2359  ;;  %v4108_v9 = vmul.f32 -1.442695, %v2669_v32  ;;  %v7605_v32 = vld [vmem:[#allocation8_spill] sm:$0xff] }
 0x8d6   :  { %5097 = vpow2.f32 %v4106_v23  ;;  %vm2362_vm8 = vcmp.eq.s32.totalorder %v2360_v20, 1  ;;  %v6926_v27 = vrot.slane %v6878_v19, %v7605_v32  ;;  %v7608_v19 = vld [vmem:[#allocation72_spill] sm:$0xff] }
 0x8d7   :  { %5099 = vpow2.f32 %v4107_v34 }
 0x8d8   :  { %v5092_v59 = vpop.eup %5091  ;;  %5101 = vpow2.f32 %v4108_v9 }
 0x8d9   :  { %v2342_v31 = vmul.f32 %v5092_v59, %v2340_v58 }
 0x8da   :  { %v5094_v28 = vpop.eup %5093 }
 0x8db   :  { %v2346_v44 = vadd.f32 %v2344_v24, %v2342_v31  ;;  %v2343_v45 = vmul.f32 %v5094_v28, %v2341_v63 }
 0x8dd   :  { %v2367_v21 = vsel %vm2361_vm7, %v2346_v44, 0.0  ;;  %v2347_v61 = vadd.f32 %v2345_v51, %v2343_v45  ;;  %v7606_v45 = vld [vmem:[#allocation24_spill] sm:$0xff]  ;;  %v7607_v51 = vld [vmem:[#allocation70_spill] sm:$0xff] }
 0x8de   :  { %v5096_v26 = vpop.eup %5095  ;;  %v4195_v23 = vpack.c.bf16 %v2367_v21, %v2367_v21  ;;  %v741_v34 = vadd.f32 %v7607_v51, %v7606_v45 }
 0x8df   :  { %v2368_v1 = vsel %vm2362_vm8, %v2347_v61, 0.0  ;;  %v2662_v37 = vadd.f32 1.0, %v5096_v26  ;;  %v745_v26 = vadd.f32 %v7608_v19, %v7606_v45 }
 0x8e0   :  { %v5098_v58 = vpop.eup %5097  ;;  %4046 = vst [vmem:[%s7490_s6 + $0x70] sm:$0xf] %v4195_v23  ;;  %v4196_v7 = vpack.c.bf16 %v2368_v1, %v2368_v1 }
 0x8e1   :  { %v2663_v56 = vadd.f32 1.0, %v5098_v58  ;;  %5103 = vrcp.f32 %v2662_v37  ;;  %v5100_v5 = vpop.eup %5099 }
 0x8e2   :  { %4047 = vst [vmem:[%s7490_s6 + $0x78] sm:$0xf] %v4196_v7  ;;  %v5102_v59 = vpop.eup %5101  ;;  %v2676_v31 = vadd.f32 1.0, %v5100_v5 }
 0x8e3   :  { %5105 = vrcp.f32 %v2663_v56  ;;  %v2677_v63 = vadd.f32 1.0, %v5102_v59 }
 0x8e4   :  { %5107 = vrcp.f32 %v2676_v31 }
 0x8e5   :  { %5109 = vrcp.f32 %v2677_v63 }
 0x8eb   :  { %v5104_v60 = vpop.eup %5103 }
 0x8ed   :  { %v2647_v24 = vpop.f32.mrb[68].mxu1  ;;  %v5106_v9 = vpop.eup %5105 }
 0x8ee   :  { %v2648_v1 = vadd.f32 %v2647_v24, %v6926_v27  ;;  %v4547_v28 = vpop.f32.mrb[69].mxu1  ;;  %v5108_v37 = vpop.eup %5107 }
 0x8ef   :  { %v2650_v44 = vpop.f32.mrb[70].mxu1  ;;  %v5110_v56 = vpop.eup %5109  ;;  %v2688_v5 = vsub.f32 1.0, %v5108_v37  ;;  %v2692_v24 = vmul.f32 0.0, %v5108_v37 }
 0x8f0   :  { %v2682_v20 = vmul.f32 %v5104_v60, %v2648_v1  ;;  %v2651_v21 = vadd.f32 %v2650_v44, %v6926_v27  ;;  %v4548_v61 = vpop.f32.mrb[71].mxu1  ;;  %v2689_v59 = vsub.f32 1.0, %v5110_v56  ;;  %v2693_v60 = vmul.f32 0.0, %v5110_v56 }
 0x8f2   :  { %v2684_v23 = vadd.f32 %v2682_v20, %v741_v34  ;;  %v2683_v58 = vmul.f32 %v5106_v9, %v2651_v21  ;;  %v7615_v20 = vld [vmem:[#allocation65_spill] sm:$0xff] }
 0x8f4   :  { %5111 = vtanh.f32 %v2684_v23  ;;  %v2685_v7 = vadd.f32 %v2683_v58, %v745_v26 }
 0x8f6   :  { %5113 = vtanh.f32 %v2685_v7 }
 0x8fe   :  { %v5112_v32 = vpop.eup %5111 }
 0x8ff   :  { %v2690_v31 = vmul.f32 %v5112_v32, %v2688_v5 }
 0x900   :  { %v5114_v1 = vpop.eup %5113 }
 0x901   :  { %v2691_v28 = vmul.f32 %v5114_v1, %v2689_v59  ;;  %v2694_v44 = vadd.f32 %v2692_v24, %v2690_v31  ;;  %v7612_v59 = vld [vmem:[#allocation40_spill] sm:$0xff] }
 0x903   :  { %v2695_v51 = vadd.f32 %v2693_v60, %v2691_v28  ;;  %v6936_v63 = vsel %vm2708_vm1, %v2694_v44, 0.0  ;;  %v7613_v60 = vld [vmem:[#allocation63_spill] sm:$0xff]  ;;  %vm2873_vm1 = vcmp.eq.s32.totalorder %v6863_v8, 1 }
 0x904   :  { %v4197_v45 = vpack.c.bf16 %v6936_v63, %v6936_v63 }
 0x905   :  { %v4220_v34 = vpack.c.bf16 %v2695_v51, %v2694_v44  ;;  %v6942_v21 = vsel %vm2709_vm2, %v2695_v51, 0.0  ;;  %vm2874_vm2 = vcmp.eq.s32.totalorder %v6865_v33, 1 }
 0x906   :  { %v4198_v9 = vpack.c.bf16 %v6942_v21, %v6942_v21  ;;  %4113 = vst [vmem:[%s7490_s6 + $0x74] sm:$0xf] %v4197_v45  ;;  %v7614_v45 = vld [vmem:[#allocation43_spill] sm:$0xff] }
 0x907   :  { %4221 = vmatmul.mubr.msk.bf16.vlgmr.msra.gmra.mrb[64].mxu0 %vm5959_vm3, %v4220_v34  ;;  %4566 = vmatmul.mubr.msk.bf16.vlgmr.msra.gmra.mrb[72].mxu1 %vm5959_vm3, %v4220_v34  ;;  %vm3038_vm3 = vcmp.eq.s32.totalorder %v6867_v6, 1 }
 0x908   :  { %2901 = vmatpush1.bf16.msra.mxu0 %v6667_v25  ;;  %4570 = vmatpush3.bf16.msra.mxu1 %v6781_v35  ;;  %4114 = vst [vmem:[%s7490_s6 + $0x7c] sm:$0xf] %v4198_v9 }
 0x909   :  { %2902 = vmatprep.subr.bf16.mxu0 %v6677_v57  ;;  %4571 = vmatprep.subr.bf16.mxu1 %v7581_v48 }
 0x90a   :  { %2932 = vmatprep.mubr.bf16.mxu0 %v7582_v53  ;;  %4585 = vmatprep.mubr.msk.bf16.mxu1 %vm5305_vm0, %v7581_v48 }
 0x90c   :  { %2903 = vmatpush1.bf16.msra.mxu0 %v6686_v43  ;;  %4572 = vmatpush3.bf16.msra.mxu1 %v6791_v17 }
 0x90d   :  { %2904 = vmatprep.subr.bf16.mxu0 %v6693_v38  ;;  %4573 = vmatprep.subr.bf16.mxu1 %v7581_v48 }
 0x910   :  { %2905 = vmatpush1.bf16.msra.mxu0 %v6702_v40  ;;  %4574 = vmatpush3.bf16.msra.mxu1 %v6800_v3 }
 0x911   :  { %2906 = vmatprep.subr.bf16.mxu0 %v6708_v41  ;;  %4575 = vmatprep.subr.bf16.mxu1 %v7581_v48 }
 0x914   :  { %2907 = vmatpush1.bf16.msra.mxu0 %v6716_v42  ;;  %4576 = vmatpush3.bf16.msra.mxu1 %v6807_v0 }
 0x915   :  { %2908 = vmatprep.subr.bf16.mxu0 %v6722_v55  ;;  %4577 = vmatprep.subr.bf16.mxu1 %v7581_v48 }
 0x918   :  { %2909 = vmatpush1.bf16.msra.mxu0 %v6730_v11  ;;  %4578 = vmatpush3.bf16.msra.mxu1 %v6814_v12 }
 0x919   :  { %2910 = vmatprep.subr.bf16.mxu0 %v6736_v16  ;;  %4579 = vmatprep.subr.bf16.mxu1 %v7581_v48 }
 0x91c   :  { %2911 = vmatpush1.bf16.msra.mxu0 %v6744_v46  ;;  %4580 = vmatpush3.bf16.msra.mxu1 %v6821_v18 }
 0x91d   :  { %2912 = vmatprep.subr.bf16.mxu0 %v6750_v47  ;;  %4581 = vmatprep.subr.bf16.mxu1 %v7581_v48 }
 0x920   :  { %2913 = vmatpush1.bf16.msra.mxu0 %v6758_v49  ;;  %4582 = vmatpush3.bf16.msra.mxu1 %v6828_v2 }
 0x921   :  { %2914 = vmatprep.subr.bf16.mxu0 %v6764_v39  ;;  %4583 = vmatprep.subr.bf16.mxu1 %v7581_v48 }
 0x924   :  { %2915 = vmatpush1.bf16.msra.mxu0 %v6772_v50  ;;  %4584 = vmatpush3.bf16.msra.mxu1 %v6835_v13 }
 0x925   :  { %3065 = vmatprep.subr.bf16.mxu0 %v6642_v62  ;;  %4589 = vmatprep.subr.bf16.mxu1 %v7581_v48 }
 0x9da   :  { %v2769_v26 = vpop.f32.mrb[64].mxu0  ;;  %v2812_v23 = vpop.f32.mrb[72].mxu1 }
 0x9db   :  { %v2770_v58 = vadd.f32 %v2769_v26, %v6886_v54  ;;  %v2771_v7 = vpop.f32.mrb[65].mxu0  ;;  %v4567_v37 = vpop.f32.mrb[73].mxu1 }
 0x9dc   :  { %v2772_v56 = vadd.f32 %v2771_v7, %v6892_v52  ;;  %v2773_v5 = vpop.f32.mrb[66].mxu0  ;;  %v2815_v32 = vpop.f32.mrb[74].mxu1 }
 0x9dd   :  { %v2819_v31 = vadd.f32 %v2770_v58, %v7612_v59  ;;  %v2774_v24 = vadd.f32 %v2773_v5, %v6886_v54  ;;  %v2775_v1 = vpop.f32.mrb[67].mxu0  ;;  %v4568_v28 = vpop.f32.mrb[75].mxu1 }
 0x9de   :  { %v2833_v44 = vadd.f32 %v2772_v56, %v7613_v60  ;;  %v2776_v51 = vadd.f32 %v2775_v1, %v6892_v52 }
 0x9df   :  { %v4115_v61 = vmul.f32 -1.442695, %v2819_v31  ;;  %v2820_v34 = vadd.f32 %v2774_v24, %v7614_v45  ;;  %v2813_v24 = vadd.f32 %v2812_v23, %v6926_v27  ;;  %v7616_v45 = vld [vmem:[#allocation64_spill] sm:$0xff] }
 0x9e0   :  { %v2834_v9 = vadd.f32 %v2776_v51, %v7615_v20  ;;  %v4117_v26 = vmul.f32 -1.442695, %v2833_v44  ;;  %v2816_v44 = vadd.f32 %v2815_v32, %v6926_v27 }
 0x9e1   :  { %5115 = vpow2.f32 %v4115_v61  ;;  %v4116_v19 = vmul.f32 -1.442695, %v2820_v34 }
 0x9e2   :  { %v4118_v7 = vmul.f32 -1.442695, %v2834_v9  ;;  %v7617_v9 = vld [vmem:[#allocation66_spill] sm:$0xff] }
 0x9e3   :  { %5117 = vpow2.f32 %v4116_v19 }
 0x9e4   :  { %5119 = vpow2.f32 %v4117_v26 }
 0x9e5   :  { %5121 = vpow2.f32 %v4118_v7 }
 0x9eb   :  { %v5116_v58 = vpop.eup %5115 }
 0x9ec   :  { %v2827_v37 = vadd.f32 1.0, %v5116_v58 }
 0x9ed   :  { %v5118_v5 = vpop.eup %5117 }
 0x9ee   :  { %5123 = vrcp.f32 %v2827_v37  ;;  %v2828_v59 = vadd.f32 1.0, %v5118_v5  ;;  %v5120_v56 = vpop.eup %5119 }
 0x9ef   :  { %v5122_v1 = vpop.eup %5121  ;;  %v2841_v31 = vadd.f32 1.0, %v5120_v56 }
 0x9f0   :  { %5125 = vrcp.f32 %v2828_v59  ;;  %v2842_v28 = vadd.f32 1.0, %v5122_v1 }
 0x9f1   :  { %5127 = vrcp.f32 %v2841_v31 }
 0x9f2   :  { %5129 = vrcp.f32 %v2842_v28 }
 0x9f8   :  { %v5124_v60 = vpop.eup %5123 }
 0x9f9   :  { %v2847_v51 = vmul.f32 %v5124_v60, %v2813_v24 }
 0x9fa   :  { %v5126_v61 = vpop.eup %5125 }
 0x9fb   :  { %v2849_v34 = vadd.f32 %v2847_v51, %v7616_v45  ;;  %v2848_v20 = vmul.f32 %v5126_v61, %v2816_v44  ;;  %v5128_v26 = vpop.eup %5127 }
 0x9fc   :  { %v5130_v7 = vpop.eup %5129  ;;  %v2853_v58 = vsub.f32 1.0, %v5128_v26  ;;  %v2857_v59 = vmul.f32 %v5128_v26, %v6936_v63 }
 0x9fd   :  { %5131 = vtanh.f32 %v2849_v34  ;;  %v2850_v19 = vadd.f32 %v2848_v20, %v7617_v9  ;;  %v2854_v23 = vsub.f32 1.0, %v5130_v7  ;;  %v2858_v32 = vmul.f32 %v5130_v7, %v6942_v21  ;;  %v7618_v7 = vld [vmem:[#allocation32_spill] sm:$0xff] }
 0x9ff   :  { %5133 = vtanh.f32 %v2850_v19 }
 0xa07   :  { %v5132_v37 = vpop.eup %5131 }
 0xa08   :  { %v2855_v5 = vmul.f32 %v5132_v37, %v2853_v58 }
 0xa09   :  { %v5134_v56 = vpop.eup %5133 }
 0xa0a   :  { %v2856_v1 = vmul.f32 %v5134_v56, %v2854_v23  ;;  %v2859_v31 = vadd.f32 %v2857_v59, %v2855_v5  ;;  %v7619_v59 = vld [vmem:[#allocation59_spill] sm:$0xff] }
 0xa0c   :  { %v2860_v24 = vadd.f32 %v2858_v32, %v2856_v1  ;;  %v7007_v28 = vsel %vm2873_vm1, %v2859_v31, %v6936_v63  ;;  %v2879_v60 = vsel %vm2873_vm1, %v2859_v31, 0.0  ;;  %v7620_v32 = vld [vmem:[#allocation35_spill] sm:$0xff] }
 0xa0d   :  { %v4199_v51 = vpack.c.bf16 %v2879_v60, %v2879_v60 }
 0xa0e   :  { %v7011_v44 = vsel %vm2874_vm2, %v2860_v24, %v6942_v21  ;;  %v2880_v61 = vsel %vm2874_vm2, %v2860_v24, 0.0  ;;  %v7621_v24 = vld [vmem:[#allocation61_spill] sm:$0xff] }
 0xa0f   :  { %v4200_v45 = vpack.c.bf16 %v2880_v61, %v2880_v61  ;;  %4123 = vst [vmem:[%s7490_s6 + $0x64] sm:$0xf] %v4199_v51  ;;  %v2899_v8 = vpack.c.bf16 %v7011_v44, %v7007_v28 }
 0xa11   :  { %4124 = vst [vmem:[%s7490_s6 + $0x6c] sm:$0xf] %v4200_v45  ;;  %2933 = vmatmul.mubr.bf16.vlgmr.msra.gmra.mrb[68].mxu0 %v2899_v8  ;;  %4586 = vmatmul.mubr.bf16.vlgmr.msra.gmra.mrb[76].mxu1 %v2899_v8 }
 0xa12   :  { %3066 = vmatpush1.bf16.msra.mxu0 %v6667_v25  ;;  %4590 = vmatpush3.bf16.msra.mxu1 %v6781_v35 }
 0xa13   :  { %3067 = vmatprep.subr.bf16.mxu0 %v6677_v57  ;;  %4591 = vmatprep.subr.bf16.mxu1 %v7581_v48 }
 0xa14   :  { %3097 = vmatprep.mubr.bf16.mxu0 %v7582_v53  ;;  %4605 = vmatprep.mubr.msk.bf16.mxu1 %vm5305_vm0, %v7581_v48 }
 0xa16   :  { %3068 = vmatpush1.bf16.msra.mxu0 %v6686_v43  ;;  %4592 = vmatpush3.bf16.msra.mxu1 %v6791_v17 }
 0xa17   :  { %3069 = vmatprep.subr.bf16.mxu0 %v6693_v38  ;;  %4593 = vmatprep.subr.bf16.mxu1 %v7581_v48 }
 0xa1a   :  { %3070 = vmatpush1.bf16.msra.mxu0 %v6702_v40  ;;  %4594 = vmatpush3.bf16.msra.mxu1 %v6800_v3 }
 0xa1b   :  { %3071 = vmatprep.subr.bf16.mxu0 %v6708_v41  ;;  %4595 = vmatprep.subr.bf16.mxu1 %v7581_v48 }
 0xa1e   :  { %3072 = vmatpush1.bf16.msra.mxu0 %v6716_v42  ;;  %4596 = vmatpush3.bf16.msra.mxu1 %v6807_v0 }
 0xa1f   :  { %3073 = vmatprep.subr.bf16.mxu0 %v6722_v55  ;;  %4597 = vmatprep.subr.bf16.mxu1 %v7581_v48 }
 0xa22   :  { %3074 = vmatpush1.bf16.msra.mxu0 %v6730_v11  ;;  %4598 = vmatpush3.bf16.msra.mxu1 %v6814_v12 }
 0xa23   :  { %3075 = vmatprep.subr.bf16.mxu0 %v6736_v16  ;;  %4599 = vmatprep.subr.bf16.mxu1 %v7581_v48 }
 0xa26   :  { %3076 = vmatpush1.bf16.msra.mxu0 %v6744_v46  ;;  %4600 = vmatpush3.bf16.msra.mxu1 %v6821_v18 }
 0xa27   :  { %3077 = vmatprep.subr.bf16.mxu0 %v6750_v47  ;;  %4601 = vmatprep.subr.bf16.mxu1 %v7581_v48 }
 0xa2a   :  { %3078 = vmatpush1.bf16.msra.mxu0 %v6758_v49  ;;  %4602 = vmatpush3.bf16.msra.mxu1 %v6828_v2 }
 0xa2b   :  { %3079 = vmatprep.subr.bf16.mxu0 %v6764_v39  ;;  %4603 = vmatprep.subr.bf16.mxu1 %v7581_v48 }
 0xa2e   :  { %3080 = vmatpush1.bf16.msra.mxu0 %v6772_v50  ;;  %4604 = vmatpush3.bf16.msra.mxu1 %v6835_v13 }
 0xa2f   :  { %3230 = vmatprep.subr.bf16.mxu0 %v6642_v62  ;;  %4609 = vmatprep.subr.bf16.mxu1 %v7581_v48 }
 0xae4   :  { %v2934_v33 = vpop.f32.mrb[68].mxu0  ;;  %v2977_v63 = vpop.f32.mrb[76].mxu1 }
 0xae5   :  { %v2935_v21 = vadd.f32 %v2934_v33, %v6886_v54  ;;  %v2936_v34 = vpop.f32.mrb[69].mxu0  ;;  %v4587_v20 = vpop.f32.mrb[77].mxu1 }
 0xae6   :  { %v2937_v9 = vadd.f32 %v2936_v34, %v6892_v52  ;;  %v2938_v19 = vpop.f32.mrb[70].mxu0  ;;  %v2980_v26 = vpop.f32.mrb[78].mxu1 }
 0xae7   :  { %v2984_v58 = vadd.f32 %v2935_v21, %v7618_v7  ;;  %v2939_v37 = vadd.f32 %v2938_v19, %v6886_v54  ;;  %v2940_v23 = vpop.f32.mrb[71].mxu0  ;;  %v4588_v5 = vpop.f32.mrb[79].mxu1  ;;  %v2978_v7 = vadd.f32 %v2977_v63, %v6926_v27 }
 0xae8   :  { %v2998_v62 = vadd.f32 %v2937_v9, %v7619_v59  ;;  %v2941_v56 = vadd.f32 %v2940_v23, %v6892_v52  ;;  %v2981_v5 = vadd.f32 %v2980_v26, %v6926_v27 }
 0xae9   :  { %v4125_v1 = vmul.f32 -1.442695, %v2984_v58  ;;  %v2985_v31 = vadd.f32 %v2939_v37, %v7620_v32  ;;  %v7623_v32 = vld [vmem:[#allocation62_spill] sm:$0xff] }
 0xaea   :  { %v2999_v60 = vadd.f32 %v2941_v56, %v7621_v24  ;;  %v4127_v61 = vmul.f32 -1.442695, %v2998_v62  ;;  %v7622_v62 = vld [vmem:[#allocation60_spill] sm:$0xff] }
 0xaeb   :  { %5135 = vpow2.f32 %v4125_v1  ;;  %v4126_v51 = vmul.f32 -1.442695, %v2985_v31 }
 0xaec   :  { %v4128_v45 = vmul.f32 -1.442695, %v2999_v60 }
 0xaed   :  { %5137 = vpow2.f32 %v4126_v51 }
 0xaee   :  { %5139 = vpow2.f32 %v4127_v61 }
 0xaef   :  { %5141 = vpow2.f32 %v4128_v45 }
 0xaf5   :  { %v5136_v8 = vpop.eup %5135 }
 0xaf6   :  { %v2992_v33 = vadd.f32 1.0, %v5136_v8 }
 0xaf7   :  { %v5138_v21 = vpop.eup %5137 }
 0xaf8   :  { %5143 = vrcp.f32 %v2992_v33  ;;  %v2993_v34 = vadd.f32 1.0, %v5138_v21  ;;  %v5140_v20 = vpop.eup %5139 }
 0xaf9   :  { %v5142_v9 = vpop.eup %5141  ;;  %v3006_v19 = vadd.f32 1.0, %v5140_v20 }
 0xafa   :  { %5145 = vrcp.f32 %v2993_v34  ;;  %v3007_v58 = vadd.f32 1.0, %v5142_v9 }
 0xafb   :  { %5147 = vrcp.f32 %v3006_v19 }
 0xafc   :  { %5149 = vrcp.f32 %v3007_v58 }
 0xb02   :  { %v5144_v37 = vpop.eup %5143 }
 0xb03   :  { %v3012_v23 = vmul.f32 %v5144_v37, %v2978_v7 }
 0xb04   :  { %v5146_v59 = vpop.eup %5145 }
 0xb05   :  { %v3014_v56 = vadd.f32 %v3012_v23, %v7622_v62  ;;  %v3013_v1 = vmul.f32 %v5146_v59, %v2981_v5  ;;  %v5148_v24 = vpop.eup %5147 }
 0xb06   :  { %v5150_v60 = vpop.eup %5149  ;;  %v3018_v51 = vsub.f32 1.0, %v5148_v24  ;;  %v3022_v8 = vmul.f32 %v5148_v24, %v7007_v28 }
 0xb07   :  { %5151 = vtanh.f32 %v3014_v56  ;;  %v3015_v31 = vadd.f32 %v3013_v1, %v7623_v32  ;;  %v3019_v63 = vsub.f32 1.0, %v5150_v60  ;;  %v3023_v26 = vmul.f32 %v5150_v60, %v7011_v44 }
 0xb09   :  { %5153 = vtanh.f32 %v3015_v31 }
 0xb11   :  { %v5152_v61 = vpop.eup %5151 }
 0xb12   :  { %v3020_v45 = vmul.f32 %v5152_v61, %v3018_v51 }
 0xb13   :  { %v5154_v33 = vpop.eup %5153 }
 0xb14   :  { %v3021_v21 = vmul.f32 %v5154_v33, %v3019_v63  ;;  %v3024_v34 = vadd.f32 %v3022_v8, %v3020_v45  ;;  %v7628_v45 = vld [vmem:[#allocation56_spill] sm:$0xff] }
 0xb16   :  { %v3025_v20 = vadd.f32 %v3023_v26, %v3021_v21  ;;  %v7072_v9 = vsel %vm3038_vm3, %v3024_v34, %v7007_v28  ;;  %v3044_v19 = vsel %vm3038_vm3, %v3024_v34, 0.0  ;;  %v7629_v21 = vld [vmem:[#allocation58_spill] sm:$0xff] }
 0xb17   :  { %v4201_v7 = vpack.c.bf16 %v3044_v19, %v3044_v19 }
 0xb18   :  { %v7076_v58 = vsel %vm3039_vm9, %v3025_v20, %v7011_v44  ;;  %v3045_v37 = vsel %vm3039_vm9, %v3025_v20, 0.0 }
 0xb19   :  { %v4202_v23 = vpack.c.bf16 %v3045_v37, %v3045_v37  ;;  %4133 = vst [vmem:[%s7490_s6 + $0x54] sm:$0xf] %v4201_v7  ;;  %v3064_v6 = vpack.c.bf16 %v7076_v58, %v7072_v9 }
 0xb1b   :  { %4134 = vst [vmem:[%s7490_s6 + $0x5c] sm:$0xf] %v4202_v23  ;;  %3098 = vmatmul.mubr.bf16.vlgmr.msra.gmra.mrb[72].mxu0 %v3064_v6  ;;  %4606 = vmatmul.mubr.bf16.vlgmr.msra.gmra.mrb[80].mxu1 %v3064_v6 }
 0xb1c   :  { %3231 = vmatpush1.bf16.msra.mxu0 %v6667_v25  ;;  %4610 = vmatpush3.bf16.msra.mxu1 %v6781_v35  ;;  %v7122_v25 = vld [vmem:[%s7486_s3 + $0xc4] ss:$12 sps:$4 sm:$0xff]  }
 0xb1d   :  { %3232 = vmatprep.subr.bf16.mxu0 %v6677_v57  ;;  %4611 = vmatprep.subr.bf16.mxu1 %v7581_v48 }
 0xb1e   :  { %3262 = vmatprep.mubr.bf16.mxu0 %v7582_v53  ;;  %4625 = vmatprep.mubr.msk.bf16.mxu1 %vm5305_vm0, %v7581_v48 }
 0xb20   :  { %3233 = vmatpush1.bf16.msra.mxu0 %v6686_v43  ;;  %4612 = vmatpush3.bf16.msra.mxu1 %v6791_v17 }
 0xb21   :  { %3234 = vmatprep.subr.bf16.mxu0 %v6693_v38  ;;  %4613 = vmatprep.subr.bf16.mxu1 %v7581_v48 }
 0xb24   :  { %3235 = vmatpush1.bf16.msra.mxu0 %v6702_v40  ;;  %4614 = vmatpush3.bf16.msra.mxu1 %v6800_v3 }
 0xb25   :  { %3236 = vmatprep.subr.bf16.mxu0 %v6708_v41  ;;  %4615 = vmatprep.subr.bf16.mxu1 %v7581_v48 }
 0xb28   :  { %3237 = vmatpush1.bf16.msra.mxu0 %v6716_v42  ;;  %4616 = vmatpush3.bf16.msra.mxu1 %v6807_v0  ;;  %v7626_v0 = vld [vmem:[#allocation27_spill] sm:$0xff] }
 0xb29   :  { %3238 = vmatprep.subr.bf16.mxu0 %v6722_v55  ;;  %4617 = vmatprep.subr.bf16.mxu1 %v7581_v48 }
 0xb2c   :  { %3239 = vmatpush1.bf16.msra.mxu0 %v6730_v11  ;;  %4618 = vmatpush3.bf16.msra.mxu1 %v6814_v12 }
 0xb2d   :  { %3240 = vmatprep.subr.bf16.mxu0 %v6736_v16  ;;  %4619 = vmatprep.subr.bf16.mxu1 %v7581_v48  ;;  %v7624_v16 = vld [vmem:[#allocation25_spill] sm:$0xff] }
 0xb30   :  { %3241 = vmatpush1.bf16.msra.mxu0 %v6744_v46  ;;  %4620 = vmatpush3.bf16.msra.mxu1 %v6821_v18  ;;  %v7627_v18 = vld [vmem:[#allocation57_spill] sm:$0xff] }
 0xb31   :  { %3242 = vmatprep.subr.bf16.mxu0 %v6750_v47  ;;  %4621 = vmatprep.subr.bf16.mxu1 %v7581_v48 }
 0xb34   :  { %3243 = vmatpush1.bf16.msra.mxu0 %v6758_v49  ;;  %4622 = vmatpush3.bf16.msra.mxu1 %v6828_v2 }
 0xb35   :  { %3244 = vmatprep.subr.bf16.mxu0 %v6764_v39  ;;  %4623 = vmatprep.subr.bf16.mxu1 %v7581_v48 }
 0xb38   :  { %3245 = vmatpush1.bf16.msra.mxu0 %v6772_v50  ;;  %4624 = vmatpush3.bf16.msra.mxu1 %v6835_v13  ;;  %v7625_v50 = vld [vmem:[#allocation55_spill] sm:$0xff] }
 0xb39   :  { %3395 = vmatprep.subr.bf16.mxu0 %v7122_v25  ;;  %4629 = vmatprep.subr.bf16.mxu1 %v7581_v48 }
 0xbee   :  { %v3099_v57 = vpop.f32.mrb[72].mxu0  ;;  %v3142_v43 = vpop.f32.mrb[80].mxu1 }
 0xbef   :  { %v3100_v38 = vadd.f32 %v3099_v57, %v6886_v54  ;;  %v3101_v40 = vpop.f32.mrb[73].mxu0  ;;  %v4607_v41 = vpop.f32.mrb[81].mxu1  ;;  %v3143_v31 = vadd.f32 %v3142_v43, %v6926_v27 }
 0xbf0   :  { %v3102_v42 = vadd.f32 %v3101_v40, %v6892_v52  ;;  %v3103_v55 = vpop.f32.mrb[74].mxu0  ;;  %v3145_v11 = vpop.f32.mrb[82].mxu1 }
 0xbf1   :  { %v3149_v46 = vadd.f32 %v3100_v38, %v7624_v16  ;;  %v3104_v47 = vadd.f32 %v3103_v55, %v6886_v54  ;;  %v3105_v49 = vpop.f32.mrb[75].mxu0  ;;  %v4608_v39 = vpop.f32.mrb[83].mxu1  ;;  %v3146_v61 = vadd.f32 %v3145_v11, %v6926_v27 }
 0xbf2   :  { %v3163_v35 = vadd.f32 %v3102_v42, %v7625_v50  ;;  %v3106_v17 = vadd.f32 %v3105_v49, %v6892_v52  ;;  %v7181_v49 = vld [vmem:[%s7486_s3 + $0xd8] ss:$12 sps:$4 sm:$0xff]   ;;  %v7187_v39 = vld [vmem:[%s7486_s3 + $0xe0] ss:$12 sps:$4 sm:$0xff]  }
 0xbf3   :  { %v4135_v3 = vmul.f32 -1.442695, %v3149_v46  ;;  %v3150_v12 = vadd.f32 %v3104_v47, %v7626_v0  ;;  %v7193_v50 = vld [vmem:[%s7486_s3 + $0xf4] ss:$12 sps:$4 sm:$0xff]  }
 0xbf4   :  { %v3164_v2 = vadd.f32 %v3106_v17, %v7627_v18  ;;  %v4137_v14 = vmul.f32 -1.442695, %v3163_v35  ;;  %v7200_v35 = vld [vmem:[%s7486_s3 + $0xf0] ss:$12 sps:$4 sm:$0xff]   ;;  %v7206_v17 = vld [vmem:[%s7486_s3 + $0xf8] ss:$12 sps:$4 sm:$0xff]  }
 0xbf5   :  { %5155 = vpow2.f32 %v4135_v3  ;;  %v4136_v13 = vmul.f32 -1.442695, %v3150_v12  ;;  %v7212_v3 = vld [vmem:[%s7486_s3 + $0x10c] ss:$12 sps:$4 sm:$0xff]   ;;  %v7219_v0 = vld [vmem:[%s7486_s3 + $0x108] ss:$12 sps:$4 sm:$0xff]  }
 0xbf6   :  { %v4138_v28 = vmul.f32 -1.442695, %v3164_v2  ;;  %v7225_v12 = vld [vmem:[%s7486_s3 + $0x110] ss:$12 sps:$4 sm:$0xff]   ;;  %v7238_v2 = vld [vmem:[%s7486_s3 + $0x120] ss:$12 sps:$4 sm:$0xff]  }
 0xbf7   :  { %5157 = vpow2.f32 %v4136_v13  ;;  %v7231_v18 = vld [vmem:[%s7486_s3 + $0x124] ss:$12 sps:$4 sm:$0xff]   ;;  %v7244_v13 = vld [vmem:[%s7486_s3 + $0x128] ss:$12 sps:$4 sm:$0xff]  }
 0xbf8   :  { %5159 = vpow2.f32 %v4137_v14  ;;  %v7250_v14 = vld [vmem:[%s7486_s3 + $0x13c] ss:$12 sps:$4 sm:$0xff]  }
 0xbf9   :  { %5161 = vpow2.f32 %v4138_v28  ;;  %v7257_v28 = vld [vmem:[%s7486_s3 + $0x138] ss:$12 sps:$4 sm:$0xff]  }
 0xbff   :  { %v5156_v44 = vpop.eup %5155 }
 0xc00   :  { %v3157_v5 = vadd.f32 1.0, %v5156_v44  ;;  %v7263_v44 = vld [vmem:[%s7486_s3 + $0x140] ss:$12 sps:$4 sm:$0xff]  }
 0xc01   :  { %v5158_v59 = vpop.eup %5157 }
 0xc02   :  { %5163 = vrcp.f32 %v3157_v5  ;;  %v3158_v62 = vadd.f32 1.0, %v5158_v59  ;;  %v5160_v56 = vpop.eup %5159  ;;  %v7269_v5 = vld [vmem:[%s7486_s3 + $0x154] ss:$12 sps:$4 sm:$0xff]   ;;  %v7276_v59 = vld [vmem:[%s7486_s3 + $0x150] ss:$12 sps:$4 sm:$0xff]  }
 0xc03   :  { %v5162_v1 = vpop.eup %5161  ;;  %v3171_v32 = vadd.f32 1.0, %v5160_v56  ;;  %v7288_v56 = vld [vmem:[%s7486_s3 + $0x16c] ss:$12 sps:$4 sm:$0xff]  }
 0xc04   :  { %5165 = vrcp.f32 %v3158_v62  ;;  %v3172_v24 = vadd.f32 1.0, %v5162_v1  ;;  %v7282_v62 = vld [vmem:[%s7486_s3 + $0x158] ss:$12 sps:$4 sm:$0xff]   ;;  %v7295_v1 = vld [vmem:[%s7486_s3 + $0x168] ss:$12 sps:$4 sm:$0xff]  }
 0xc05   :  { %5167 = vrcp.f32 %v3171_v32  ;;  %v7301_v32 = vld [vmem:[%s7486_s3 + $0x170] ss:$12 sps:$4 sm:$0xff]  }
 0xc06   :  { %5169 = vrcp.f32 %v3172_v24 }
 0xc0c   :  { %v5164_v60 = vpop.eup %5163 }
 0xc0d   :  { %v3177_v51 = vmul.f32 %v5164_v60, %v3143_v31 }
 0xc0e   :  { %v5166_v63 = vpop.eup %5165 }
 0xc0f   :  { %v3179_v8 = vadd.f32 %v3177_v51, %v7628_v45  ;;  %v3178_v33 = vmul.f32 %v5166_v63, %v3146_v61  ;;  %v5168_v34 = vpop.eup %5167 }
 0xc10   :  { %v5170_v20 = vpop.eup %5169  ;;  %v3183_v19 = vsub.f32 1.0, %v5168_v34  ;;  %v3187_v6 = vmul.f32 %v5168_v34, %v7072_v9 }
 0xc11   :  { %5171 = vtanh.f32 %v3179_v8  ;;  %v3180_v26 = vadd.f32 %v3178_v33, %v7629_v21  ;;  %v3184_v37 = vsub.f32 1.0, %v5170_v20  ;;  %v3188_v38 = vmul.f32 %v5170_v20, %v7076_v58  ;;  %v7630_v33 = vld [vmem:[#allocation21_spill] sm:$0xff] }
 0xc13   :  { %5173 = vtanh.f32 %v3180_v26 }
 0xc1b   :  { %v5172_v7 = vpop.eup %5171 }
 0xc1c   :  { %v3185_v23 = vmul.f32 %v5172_v7, %v3183_v19  ;;  %v7631_v19 = vld [vmem:[#allocation51_spill] sm:$0xff] }
 0xc1d   :  { %v5174_v57 = vpop.eup %5173 }
 0xc1e   :  { %v3186_v43 = vmul.f32 %v5174_v57, %v3184_v37  ;;  %v3189_v40 = vadd.f32 %v3187_v6, %v3185_v23  ;;  %v7632_v6 = vld [vmem:[#allocation22_spill] sm:$0xff] }
 0xc20   :  { %v3190_v41 = vadd.f32 %v3188_v38, %v3186_v43  ;;  %v7142_v42 = vsel %vm3203_vm10, %v3189_v40, %v7072_v9  ;;  %v3209_v55 = vsel %vm3203_vm10, %v3189_v40, 0.0  ;;  %v7165_v9 = vld [vmem:[%s7486_s3 + $0xc8] ss:$12 sps:$4 sm:$0xff]  }
 0xc21   :  { %v4203_v11 = vpack.c.bf16 %v3209_v55, %v3209_v55  ;;  %v7633_v43 = vld [vmem:[#allocation53_spill] sm:$0xff] }
 0xc22   :  { %v7146_v16 = vsel %vm3204_vm11, %v3190_v41, %v7076_v58  ;;  %v3210_v46 = vsel %vm3204_vm11, %v3190_v41, 0.0  ;;  %v7171_v58 = vld [vmem:[%s7486_s3 + $0xdc] ss:$12 sps:$4 sm:$0xff]  }
 0xc23   :  { %v4204_v47 = vpack.c.bf16 %v3210_v46, %v3210_v46  ;;  %4143 = vst [vmem:[%s7490_s6 + $0x44] sm:$0xf] %v4203_v11  ;;  %v3229_v22 = vpack.c.bf16 %v7146_v16, %v7142_v42 }
 0xc25   :  { %4144 = vst [vmem:[%s7490_s6 + $0x4c] sm:$0xf] %v4204_v47  ;;  %3263 = vmatmul.mubr.bf16.vlgmr.msra.gmra.mrb[76].mxu0 %v3229_v22  ;;  %4626 = vmatmul.mubr.bf16.vlgmr.msra.gmra.mrb[84].mxu1 %v3229_v22 }
 0xc26   :  { %3396 = vmatpush1.bf16.msra.mxu0 %v7159_v15  ;;  %4630 = vmatpush3.bf16.msra.mxu1 %v7165_v9 }
 0xc27   :  { %3397 = vmatprep.subr.bf16.mxu0 %v7171_v58  ;;  %4631 = vmatprep.subr.bf16.mxu1 %v7581_v48 }
 0xc28   :  { %3427 = vmatprep.mubr.bf16.mxu0 %v7582_v53  ;;  %4645 = vmatprep.mubr.msk.bf16.mxu1 %vm5305_vm0, %v7581_v48 }
 0xc2a   :  { %3398 = vmatpush1.bf16.msra.mxu0 %v7181_v49  ;;  %4632 = vmatpush3.bf16.msra.mxu1 %v7187_v39 }
 0xc2b   :  { %3399 = vmatprep.subr.bf16.mxu0 %v7193_v50  ;;  %4633 = vmatprep.subr.bf16.mxu1 %v7581_v48 }
 0xc2e   :  { %3400 = vmatpush1.bf16.msra.mxu0 %v7200_v35  ;;  %4634 = vmatpush3.bf16.msra.mxu1 %v7206_v17 }
 0xc2f   :  { %3401 = vmatprep.subr.bf16.mxu0 %v7212_v3  ;;  %4635 = vmatprep.subr.bf16.mxu1 %v7581_v48 }
 0xc32   :  { %3402 = vmatpush1.bf16.msra.mxu0 %v7219_v0  ;;  %4636 = vmatpush3.bf16.msra.mxu1 %v7225_v12 }
 0xc33   :  { %3403 = vmatprep.subr.bf16.mxu0 %v7231_v18  ;;  %4637 = vmatprep.subr.bf16.mxu1 %v7581_v48 }
 0xc36   :  { %3404 = vmatpush1.bf16.msra.mxu0 %v7238_v2  ;;  %4638 = vmatpush3.bf16.msra.mxu1 %v7244_v13 }
 0xc37   :  { %3405 = vmatprep.subr.bf16.mxu0 %v7250_v14  ;;  %4639 = vmatprep.subr.bf16.mxu1 %v7581_v48 }
 0xc3a   :  { %3406 = vmatpush1.bf16.msra.mxu0 %v7257_v28  ;;  %4640 = vmatpush3.bf16.msra.mxu1 %v7263_v44 }
 0xc3b   :  { %3407 = vmatprep.subr.bf16.mxu0 %v7269_v5  ;;  %4641 = vmatprep.subr.bf16.mxu1 %v7581_v48 }
 0xc3e   :  { %3408 = vmatpush1.bf16.msra.mxu0 %v7276_v59  ;;  %4642 = vmatpush3.bf16.msra.mxu1 %v7282_v62 }
 0xc3f   :  { %3409 = vmatprep.subr.bf16.mxu0 %v7288_v56  ;;  %4643 = vmatprep.subr.bf16.mxu1 %v7581_v48 }
 0xc42   :  { %3410 = vmatpush1.bf16.msra.mxu0 %v7295_v1  ;;  %4644 = vmatpush3.bf16.msra.mxu1 %v7301_v32 }
 0xc43   :  { %3560 = vmatprep.subr.bf16.mxu0 %v7122_v25  ;;  %4649 = vmatprep.subr.bf16.mxu1 %v7581_v48 }
 0xcf8   :  { %v3264_v31 = vpop.f32.mrb[76].mxu0  ;;  %v3307_v24 = vpop.f32.mrb[84].mxu1 }
 0xcf9   :  { %v3265_v60 = vadd.f32 %v3264_v31, %v6886_v54  ;;  %v3266_v51 = vpop.f32.mrb[77].mxu0  ;;  %v4627_v61 = vpop.f32.mrb[85].mxu1 }
 0xcfa   :  { %v3267_v63 = vadd.f32 %v3266_v51, %v6892_v52  ;;  %v3268_v45 = vpop.f32.mrb[78].mxu0  ;;  %v3310_v8 = vpop.f32.mrb[86].mxu1  ;;  %v3308_v61 = vadd.f32 %v3307_v24, %v6926_v27 }
 0xcfb   :  { %v3314_v21 = vadd.f32 %v3265_v60, %v7630_v33  ;;  %v3269_v26 = vadd.f32 %v3268_v45, %v6886_v54  ;;  %v3270_v34 = vpop.f32.mrb[79].mxu0  ;;  %v4628_v20 = vpop.f32.mrb[87].mxu1 }
 0xcfc   :  { %v3328_v7 = vadd.f32 %v3267_v63, %v7631_v19  ;;  %v3271_v37 = vadd.f32 %v3270_v34, %v6892_v52  ;;  %v7634_v34 = vld [vmem:[#allocation52_spill] sm:$0xff] }
 0xcfd   :  { %v4145_v23 = vmul.f32 -1.442695, %v3314_v21  ;;  %v3315_v57 = vadd.f32 %v3269_v26, %v7632_v6  ;;  %v3311_v21 = vadd.f32 %v3310_v8, %v6926_v27 }
 0xcfe   :  { %v3329_v38 = vadd.f32 %v3271_v37, %v7633_v43  ;;  %v4147_v41 = vmul.f32 -1.442695, %v3328_v7  ;;  %v7635_v7 = vld [vmem:[#allocation54_spill] sm:$0xff] }
 0xcff   :  { %5175 = vpow2.f32 %v4145_v23  ;;  %v4146_v40 = vmul.f32 -1.442695, %v3315_v57 }
 0xd00   :  { %v4148_v55 = vmul.f32 -1.442695, %v3329_v38 }
 0xd01   :  { %5177 = vpow2.f32 %v4146_v40 }
 0xd02   :  { %5179 = vpow2.f32 %v4147_v41 }
 0xd03   :  { %5181 = vpow2.f32 %v4148_v55 }
 0xd09   :  { %v5176_v11 = vpop.eup %5175 }
 0xd0a   :  { %v3322_v46 = vadd.f32 1.0, %v5176_v11 }
 0xd0b   :  { %v5178_v47 = vpop.eup %5177 }
 0xd0c   :  { %5183 = vrcp.f32 %v3322_v46  ;;  %v3323_v22 = vadd.f32 1.0, %v5178_v47  ;;  %v5180_v31 = vpop.eup %5179 }
 0xd0d   :  { %v5182_v60 = vpop.eup %5181  ;;  %v3336_v51 = vadd.f32 1.0, %v5180_v31 }
 0xd0e   :  { %5185 = vrcp.f32 %v3323_v22  ;;  %v3337_v63 = vadd.f32 1.0, %v5182_v60 }
 0xd0f   :  { %5187 = vrcp.f32 %v3336_v51 }
 0xd10   :  { %5189 = vrcp.f32 %v3337_v63 }
 0xd16   :  { %v5184_v45 = vpop.eup %5183 }
 0xd17   :  { %v3342_v33 = vmul.f32 %v5184_v45, %v3308_v61 }
 0xd18   :  { %v5186_v26 = vpop.eup %5185 }
 0xd19   :  { %v3344_v20 = vadd.f32 %v3342_v33, %v7634_v34  ;;  %v3343_v19 = vmul.f32 %v5186_v26, %v3311_v21  ;;  %v5188_v23 = vpop.eup %5187  ;;  %v7636_v34 = vld [vmem:[#allocation18_spill] sm:$0xff] }
 0xd1a   :  { %v5190_v6 = vpop.eup %5189  ;;  %v3348_v57 = vsub.f32 1.0, %v5188_v23  ;;  %v3352_v40 = vmul.f32 %v5188_v23, %v7142_v42  ;;  %v7637_v23 = vld [vmem:[#allocation42_spill] sm:$0xff] }
 0xd1b   :  { %5191 = vtanh.f32 %v3344_v20  ;;  %v3345_v37 = vadd.f32 %v3343_v19, %v7635_v7  ;;  %v3349_v24 = vsub.f32 1.0, %v5190_v6  ;;  %v3353_v8 = vmul.f32 %v5190_v6, %v7146_v16 }
 0xd1d   :  { %5193 = vtanh.f32 %v3345_v37 }
 0xd25   :  { %v5192_v43 = vpop.eup %5191 }
 0xd26   :  { %v3350_v38 = vmul.f32 %v5192_v43, %v3348_v57  ;;  %v7638_v43 = vld [vmem:[#allocation20_spill] sm:$0xff] }
 0xd27   :  { %v5194_v41 = vpop.eup %5193 }
 0xd28   :  { %v3351_v55 = vmul.f32 %v5194_v41, %v3349_v24  ;;  %v3354_v11 = vadd.f32 %v3352_v40, %v3350_v38  ;;  %v7639_v38 = vld [vmem:[#allocation45_spill] sm:$0xff] }
 0xd2a   :  { %v3355_v46 = vadd.f32 %v3353_v8, %v3351_v55  ;;  %v7322_v47 = vsel %vm3368_vm12, %v3354_v11, %v7142_v42  ;;  %v3374_v22 = vsel %vm3368_vm12, %v3354_v11, 0.0 }
 0xd2b   :  { %v4205_v31 = vpack.c.bf16 %v3374_v22, %v3374_v22 }
 0xd2c   :  { %v7326_v60 = vsel %vm3369_vm13, %v3355_v46, %v7146_v16  ;;  %v3375_v51 = vsel %vm3369_vm13, %v3355_v46, 0.0 }
 0xd2d   :  { %v4206_v61 = vpack.c.bf16 %v3375_v51, %v3375_v51  ;;  %4153 = vst [vmem:[%s7490_s6 + $0x34] sm:$0xf] %v4205_v31  ;;  %v3394_v29 = vpack.c.bf16 %v7326_v60, %v7322_v47 }
 0xd2f   :  { %4154 = vst [vmem:[%s7490_s6 + $0x3c] sm:$0xf] %v4206_v61  ;;  %3428 = vmatmul.mubr.bf16.vlgmr.msra.gmra.mrb[80].mxu0 %v3394_v29  ;;  %4646 = vmatmul.mubr.bf16.vlgmr.msra.gmra.mrb[88].mxu1 %v3394_v29 }
 0xd30   :  { %3561 = vmatpush1.bf16.msra.mxu0 %v7159_v15  ;;  %4650 = vmatpush3.bf16.msra.mxu1 %v7165_v9 }
 0xd31   :  { %3562 = vmatprep.subr.bf16.mxu0 %v7171_v58  ;;  %4651 = vmatprep.subr.bf16.mxu1 %v7581_v48 }
 0xd32   :  { %3592 = vmatprep.mubr.bf16.mxu0 %v7582_v53  ;;  %4665 = vmatprep.mubr.msk.bf16.mxu1 %vm5305_vm0, %v7581_v48 }
 0xd34   :  { %3563 = vmatpush1.bf16.msra.mxu0 %v7181_v49  ;;  %4652 = vmatpush3.bf16.msra.mxu1 %v7187_v39 }
 0xd35   :  { %3564 = vmatprep.subr.bf16.mxu0 %v7193_v50  ;;  %4653 = vmatprep.subr.bf16.mxu1 %v7581_v48 }
 0xd38   :  { %3565 = vmatpush1.bf16.msra.mxu0 %v7200_v35  ;;  %4654 = vmatpush3.bf16.msra.mxu1 %v7206_v17 }
 0xd39   :  { %3566 = vmatprep.subr.bf16.mxu0 %v7212_v3  ;;  %4655 = vmatprep.subr.bf16.mxu1 %v7581_v48 }
 0xd3c   :  { %3567 = vmatpush1.bf16.msra.mxu0 %v7219_v0  ;;  %4656 = vmatpush3.bf16.msra.mxu1 %v7225_v12 }
 0xd3d   :  { %3568 = vmatprep.subr.bf16.mxu0 %v7231_v18  ;;  %4657 = vmatprep.subr.bf16.mxu1 %v7581_v48 }
 0xd40   :  { %3569 = vmatpush1.bf16.msra.mxu0 %v7238_v2  ;;  %4658 = vmatpush3.bf16.msra.mxu1 %v7244_v13 }
 0xd41   :  { %3570 = vmatprep.subr.bf16.mxu0 %v7250_v14  ;;  %4659 = vmatprep.subr.bf16.mxu1 %v7581_v48 }
 0xd44   :  { %3571 = vmatpush1.bf16.msra.mxu0 %v7257_v28  ;;  %4660 = vmatpush3.bf16.msra.mxu1 %v7263_v44 }
 0xd45   :  { %3572 = vmatprep.subr.bf16.mxu0 %v7269_v5  ;;  %4661 = vmatprep.subr.bf16.mxu1 %v7581_v48 }
 0xd48   :  { %3573 = vmatpush1.bf16.msra.mxu0 %v7276_v59  ;;  %4662 = vmatpush3.bf16.msra.mxu1 %v7282_v62 }
 0xd49   :  { %3574 = vmatprep.subr.bf16.mxu0 %v7288_v56  ;;  %4663 = vmatprep.subr.bf16.mxu1 %v7581_v48 }
 0xd4c   :  { %3575 = vmatpush1.bf16.msra.mxu0 %v7295_v1  ;;  %4664 = vmatpush3.bf16.msra.mxu1 %v7301_v32 }
 0xd4d   :  { %3725 = vmatprep.subr.bf16.mxu0 %v7122_v25  ;;  %4669 = vmatprep.subr.bf16.mxu1 %v7581_v48 }
 0xe02   :  { %v3429_v30 = vpop.f32.mrb[80].mxu0  ;;  %v3472_v42 = vpop.f32.mrb[88].mxu1 }
 0xe03   :  { %v3430_v16 = vadd.f32 %v3429_v30, %v6886_v54  ;;  %v3431_v63 = vpop.f32.mrb[81].mxu0  ;;  %v4647_v45 = vpop.f32.mrb[89].mxu1  ;;  %v3473_v30 = vadd.f32 %v3472_v42, %v6926_v27 }
 0xe04   :  { %v3432_v33 = vadd.f32 %v3431_v63, %v6892_v52  ;;  %v3433_v21 = vpop.f32.mrb[82].mxu0  ;;  %v3475_v26 = vpop.f32.mrb[90].mxu1 }
 0xe05   :  { %v3479_v20 = vadd.f32 %v3430_v16, %v7636_v34  ;;  %v3434_v19 = vadd.f32 %v3433_v21, %v6886_v54  ;;  %v3435_v7 = vpop.f32.mrb[83].mxu0  ;;  %v4648_v37 = vpop.f32.mrb[91].mxu1  ;;  %v7640_v34 = vld [vmem:[#allocation44_spill] sm:$0xff] }
 0xe06   :  { %v3493_v25 = vadd.f32 %v3432_v33, %v7637_v23  ;;  %v3436_v6 = vadd.f32 %v3435_v7, %v6892_v52  ;;  %v3476_v33 = vadd.f32 %v3475_v26, %v6926_v27  ;;  %v7641_v7 = vld [vmem:[#allocation46_spill] sm:$0xff] }
 0xe07   :  { %v4155_v57 = vmul.f32 -1.442695, %v3479_v20  ;;  %v3480_v24 = vadd.f32 %v3434_v19, %v7638_v43 }
 0xe08   :  { %v3494_v40 = vadd.f32 %v3436_v6, %v7639_v38  ;;  %v4157_v55 = vmul.f32 -1.442695, %v3493_v25 }
 0xe09   :  { %5195 = vpow2.f32 %v4155_v57  ;;  %v4156_v41 = vmul.f32 -1.442695, %v3480_v24 }
 0xe0a   :  { %v4158_v8 = vmul.f32 -1.442695, %v3494_v40 }
 0xe0b   :  { %5197 = vpow2.f32 %v4156_v41 }
 0xe0c   :  { %5199 = vpow2.f32 %v4157_v55 }
 0xe0d   :  { %5201 = vpow2.f32 %v4158_v8 }
 0xe13   :  { %v5196_v11 = vpop.eup %5195 }
 0xe14   :  { %v3487_v46 = vadd.f32 1.0, %v5196_v11 }
 0xe15   :  { %v5198_v22 = vpop.eup %5197 }
 0xe16   :  { %5203 = vrcp.f32 %v3487_v46  ;;  %v3488_v31 = vadd.f32 1.0, %v5198_v22  ;;  %v5200_v51 = vpop.eup %5199 }
 0xe17   :  { %v5202_v61 = vpop.eup %5201  ;;  %v3501_v29 = vadd.f32 1.0, %v5200_v51 }
 0xe18   :  { %5205 = vrcp.f32 %v3488_v31  ;;  %v3502_v16 = vadd.f32 1.0, %v5202_v61 }
 0xe19   :  { %5207 = vrcp.f32 %v3501_v29 }
 0xe1a   :  { %5209 = vrcp.f32 %v3502_v16 }
 0xe20   :  { %v5204_v63 = vpop.eup %5203 }
 0xe21   :  { %v3507_v45 = vmul.f32 %v5204_v63, %v3473_v30 }
 0xe22   :  { %v5206_v21 = vpop.eup %5205 }
 0xe23   :  { %v3509_v20 = vadd.f32 %v3507_v45, %v7640_v34  ;;  %v3508_v19 = vmul.f32 %v5206_v21, %v3476_v33  ;;  %v5208_v23 = vpop.eup %5207 }
 0xe24   :  { %v5210_v25 = vpop.eup %5209  ;;  %v3513_v6 = vsub.f32 1.0, %v5208_v23  ;;  %v3517_v24 = vmul.f32 %v5208_v23, %v7322_v47 }
 0xe25   :  { %5211 = vtanh.f32 %v3509_v20  ;;  %v3510_v37 = vadd.f32 %v3508_v19, %v7641_v7  ;;  %v3514_v42 = vsub.f32 1.0, %v5210_v25  ;;  %v3518_v26 = vmul.f32 %v5210_v25, %v7326_v60  ;;  %v7646_v20 = vld [vmem:[#allocation36_spill] sm:$0xff] }
 0xe27   :  { %5213 = vtanh.f32 %v3510_v37  ;;  %v7647_v37 = vld [vmem:[#allocation38_spill] sm:$0xff] }
 0xe2f   :  { %v5212_v57 = vpop.eup %5211 }
 0xe30   :  { %v3515_v43 = vmul.f32 %v5212_v57, %v3513_v6 }
 0xe31   :  { %v5214_v38 = vpop.eup %5213 }
 0xe32   :  { %v3516_v40 = vmul.f32 %v5214_v38, %v3514_v42  ;;  %v3519_v41 = vadd.f32 %v3517_v24, %v3515_v43 }
 0xe34   :  { %v3520_v55 = vadd.f32 %v3518_v26, %v3516_v40  ;;  %v7387_v8 = vsel %vm3533_vm14, %v3519_v41, %v7322_v47  ;;  %v3539_v11 = vsel %vm3533_vm14, %v3519_v41, 0.0 }
 0xe35   :  { %v4207_v46 = vpack.c.bf16 %v3539_v11, %v3539_v11 }
 0xe36   :  { %v7391_v22 = vsel %vm3534_vm15, %v3520_v55, %v7326_v60  ;;  %v3540_v31 = vsel %vm3534_vm15, %v3520_v55, 0.0 }
 0xe37   :  { %v4208_v51 = vpack.c.bf16 %v3540_v31, %v3540_v31  ;;  %4163 = vst [vmem:[%s7490_s6 + $0x24] sm:$0xf] %v4207_v46  ;;  %v3559_v36 = vpack.c.bf16 %v7391_v22, %v7387_v8 }
 0xe39   :  { %4164 = vst [vmem:[%s7490_s6 + $0x2c] sm:$0xf] %v4208_v51  ;;  %3593 = vmatmul.mubr.bf16.vlgmr.msra.gmra.mrb[84].mxu0 %v3559_v36  ;;  %4666 = vmatmul.mubr.bf16.vlgmr.msra.gmra.mrb[92].mxu1 %v3559_v36  ;;  %v7648_v51 = vld [vmem:[#allocation4_spill] sm:$0xff] }
 0xe3a   :  { %3726 = vmatpush1.bf16.msra.mxu0 %v7159_v15  ;;  %4670 = vmatpush3.bf16.msra.mxu1 %v7165_v9  ;;  %vm3699_vm4 = vcmp.eq.s32.totalorder %v7648_v51, 1 }
 0xe3b   :  { %3727 = vmatprep.subr.bf16.mxu0 %v7171_v58  ;;  %4671 = vmatprep.subr.bf16.mxu1 %v7581_v48 }
 0xe3c   :  { %3757 = vmatprep.mubr.bf16.mxu0 %v7582_v53  ;;  %4685 = vmatprep.mubr.msk.bf16.mxu1 %vm5305_vm0, %v7581_v48  ;;  %vm3698_vm0 = vcmp.eq.s32.totalorder %v6912_v10, 1 }
 0xe3e   :  { %3728 = vmatpush1.bf16.msra.mxu0 %v7181_v49  ;;  %4672 = vmatpush3.bf16.msra.mxu1 %v7187_v39 }
 0xe3f   :  { %3729 = vmatprep.subr.bf16.mxu0 %v7193_v50  ;;  %4673 = vmatprep.subr.bf16.mxu1 %v7581_v48 }
 0xe42   :  { %3730 = vmatpush1.bf16.msra.mxu0 %v7200_v35  ;;  %4674 = vmatpush3.bf16.msra.mxu1 %v7206_v17  ;;  %v7642_v35 = vld [vmem:[#allocation13_spill] sm:$0xff] }
 0xe43   :  { %3731 = vmatprep.subr.bf16.mxu0 %v7212_v3  ;;  %4675 = vmatprep.subr.bf16.mxu1 %v7581_v48 }
 0xe46   :  { %3732 = vmatpush1.bf16.msra.mxu0 %v7219_v0  ;;  %4676 = vmatpush3.bf16.msra.mxu1 %v7225_v12  ;;  %v7643_v12 = vld [vmem:[#allocation34_spill] sm:$0xff] }
 0xe47   :  { %3733 = vmatprep.subr.bf16.mxu0 %v7231_v18  ;;  %4677 = vmatprep.subr.bf16.mxu1 %v7581_v48 }
 0xe4a   :  { %3734 = vmatpush1.bf16.msra.mxu0 %v7238_v2  ;;  %4678 = vmatpush3.bf16.msra.mxu1 %v7244_v13 }
 0xe4b   :  { %3735 = vmatprep.subr.bf16.mxu0 %v7250_v14  ;;  %4679 = vmatprep.subr.bf16.mxu1 %v7581_v48  ;;  %v7644_v14 = vld [vmem:[#allocation14_spill] sm:$0xff] }
 0xe4e   :  { %3736 = vmatpush1.bf16.msra.mxu0 %v7257_v28  ;;  %4680 = vmatpush3.bf16.msra.mxu1 %v7263_v44  ;;  %v7645_v44 = vld [vmem:[#allocation37_spill] sm:$0xff] }
 0xe4f   :  { %3737 = vmatprep.subr.bf16.mxu0 %v7269_v5  ;;  %4681 = vmatprep.subr.bf16.mxu1 %v7581_v48 }
 0xe52   :  { %3738 = vmatpush1.bf16.msra.mxu0 %v7276_v59  ;;  %4682 = vmatpush3.bf16.msra.mxu1 %v7282_v62 }
 0xe53   :  { %3739 = vmatprep.subr.bf16.mxu0 %v7288_v56  ;;  %4683 = vmatprep.subr.bf16.mxu1 %v7581_v48 }
 0xe56   :  { %3740 = vmatpush1.bf16.msra.mxu0 %v7295_v1  ;;  %4684 = vmatpush3.bf16.msra.mxu1 %v7301_v32 }
 0xf0c   :  { %v3594_v53 = vpop.f32.mrb[84].mxu0  ;;  %v3637_v4 = vpop.f32.mrb[92].mxu1 }
 0xf0d   :  { %v3595_v15 = vadd.f32 %v3594_v53, %v6886_v54  ;;  %v3596_v9 = vpop.f32.mrb[85].mxu0  ;;  %v4667_v58 = vpop.f32.mrb[93].mxu1  ;;  %v3638_v16 = vadd.f32 %v3637_v4, %v6926_v27 }
 0xf0e   :  { %v3597_v49 = vadd.f32 %v3596_v9, %v6892_v52  ;;  %v3598_v39 = vpop.f32.mrb[86].mxu0  ;;  %v3640_v50 = vpop.f32.mrb[94].mxu1 }
 0xf0f   :  { %v3644_v17 = vadd.f32 %v3595_v15, %v7642_v35  ;;  %v3599_v3 = vadd.f32 %v3598_v39, %v6886_v54  ;;  %v3600_v0 = vpop.f32.mrb[87].mxu0  ;;  %v4668_v48 = vpop.f32.mrb[95].mxu1  ;;  %v3641_v21 = vadd.f32 %v3640_v50, %v6926_v27 }
 0xf10   :  { %v3658_v18 = vadd.f32 %v3597_v49, %v7643_v12  ;;  %v3601_v2 = vadd.f32 %v3600_v0, %v6892_v52 }
 0xf11   :  { %v4165_v13 = vmul.f32 -1.442695, %v3644_v17  ;;  %v3645_v28 = vadd.f32 %v3599_v3, %v7644_v14  ;;  %v7649_v17 = vld [vmem:[#allocation7_spill] sm:$0xff] }
 0xf12   :  { %v3659_v5 = vadd.f32 %v3601_v2, %v7645_v44  ;;  %v4167_v62 = vmul.f32 -1.442695, %v3658_v18  ;;  %v7650_v18 = vld [vmem:[#allocation26_spill] sm:$0xff] }
 0xf13   :  { %5215 = vpow2.f32 %v4165_v13  ;;  %v4166_v59 = vmul.f32 -1.442695, %v3645_v28  ;;  %v7651_v28 = vld [vmem:[#allocation9_spill] sm:$0xff] }
 0xf14   :  { %v4168_v56 = vmul.f32 -1.442695, %v3659_v5  ;;  %v7652_v5 = vld [vmem:[#allocation29_spill] sm:$0xff] }
 0xf15   :  { %5217 = vpow2.f32 %v4166_v59 }
 0xf16   :  { %5219 = vpow2.f32 %v4167_v62 }
 0xf17   :  { %5221 = vpow2.f32 %v4168_v56 }
 0xf1d   :  { %v5216_v1 = vpop.eup %5215 }
 0xf1e   :  { %v3652_v32 = vadd.f32 1.0, %v5216_v1 }
 0xf1f   :  { %v5218_v47 = vpop.eup %5217 }
 0xf20   :  { %5223 = vrcp.f32 %v3652_v32  ;;  %v3653_v60 = vadd.f32 1.0, %v5218_v47  ;;  %v5220_v61 = vpop.eup %5219 }
 0xf21   :  { %v5222_v29 = vpop.eup %5221  ;;  %v3666_v30 = vadd.f32 1.0, %v5220_v61 }
 0xf22   :  { %5225 = vrcp.f32 %v3653_v60  ;;  %v3667_v63 = vadd.f32 1.0, %v5222_v29 }
 0xf23   :  { %5227 = vrcp.f32 %v3666_v30 }
 0xf24   :  { %5229 = vrcp.f32 %v3667_v63 }
 0xf2a   :  { %v5224_v45 = vpop.eup %5223 }
 0xf2b   :  { %v3672_v33 = vmul.f32 %v5224_v45, %v3638_v16 }
 0xf2c   :  { %v5226_v34 = vpop.eup %5225 }
 0xf2d   :  { %v3674_v19 = vadd.f32 %v3672_v33, %v7646_v20  ;;  %v3673_v7 = vmul.f32 %v5226_v34, %v3641_v21  ;;  %v5228_v25 = vpop.eup %5227  ;;  %v7653_v34 = vld [vmem:[#allocation28_spill] sm:$0xff] }
 0xf2e   :  { %v5230_v6 = vpop.eup %5229  ;;  %v3678_v57 = vsub.f32 1.0, %v5228_v25  ;;  %v3682_v38 = vmul.f32 %v5228_v25, %v7387_v8 }
 0xf2f   :  { %5231 = vtanh.f32 %v3674_v19  ;;  %v3675_v23 = vadd.f32 %v3673_v7, %v7647_v37  ;;  %v3679_v43 = vsub.f32 1.0, %v5230_v6  ;;  %v3683_v41 = vmul.f32 %v5230_v6, %v7391_v22  ;;  %v7654_v7 = vld [vmem:[#allocation30_spill] sm:$0xff] }
 0xf31   :  { %5233 = vtanh.f32 %v3675_v23 }
 0xf39   :  { %v5232_v42 = vpop.eup %5231 }
 0xf3a   :  { %v3680_v24 = vmul.f32 %v5232_v42, %v3678_v57  ;;  %v3859_v42 = vpop.permute.xlu0 %3858 }
 0xf3b   :  { %v5234_v40 = vpop.eup %5233  ;;  %vm3863_vm5 = vcmp.eq.s32.totalorder %v3859_v42, 1 }
 0xf3c   :  { %v3681_v26 = vmul.f32 %v5234_v40, %v3679_v43  ;;  %v3684_v55 = vadd.f32 %v3682_v38, %v3680_v24 }
 0xf3e   :  { %v3685_v11 = vadd.f32 %v3683_v41, %v3681_v26  ;;  %v7450_v46 = vsel %vm3698_vm0, %v3684_v55, %v7387_v8  ;;  %v3704_v31 = vsel %vm3698_vm0, %v3684_v55, 0.0 }
 0xf3f   :  { %v4209_v36 = vpack.c.bf16 %v3704_v31, %v3704_v31 }
 0xf40   :  { %v7454_v53 = vsel %vm3699_vm4, %v3685_v11, %v7391_v22  ;;  %v3705_v4 = vsel %vm3699_vm4, %v3685_v11, 0.0 }
 0xf41   :  { %v4210_v15 = vpack.c.bf16 %v3705_v4, %v3705_v4  ;;  %4173 = vst [vmem:[%s7490_s6 + $0x14] sm:$0xf] %v4209_v36  ;;  %v3724_v10 = vpack.c.bf16 %v7454_v53, %v7450_v46 }
 0xf43   :  { %4174 = vst [vmem:[%s7490_s6 + $0x1c] sm:$0xf] %v4210_v15  ;;  %3758 = vmatmul.mubr.bf16.vlgmr.msra.gmra.mrb[88].mxu0 %v3724_v10  ;;  %4686 = vmatmul.mubr.bf16.vlgmr.msra.gmra.mrb[96].mxu1 %v3724_v10 }
0x1016   :  { %v3759_v8 = vpop.f32.mrb[88].mxu0  ;;  %v3802_v9 = vpop.f32.mrb[96].mxu1 }
0x1017   :  { %v3760_v22 = vadd.f32 %v3759_v8, %v6886_v54  ;;  %v3761_v58 = vpop.f32.mrb[89].mxu0  ;;  %v4687_v49 = vpop.f32.mrb[97].mxu1  ;;  %v3803_v30 = vadd.f32 %v3802_v9, %v6926_v27 }
0x1018   :  { %v3762_v39 = vadd.f32 %v3761_v58, %v6892_v52  ;;  %v3763_v50 = vpop.f32.mrb[90].mxu0  ;;  %v3805_v35 = vpop.f32.mrb[98].mxu1 }
0x1019   :  { %v3809_v3 = vadd.f32 %v3760_v22, %v7649_v17  ;;  %v3764_v0 = vadd.f32 %v3763_v50, %v6886_v54  ;;  %v3765_v48 = vpop.f32.mrb[91].mxu0  ;;  %v4688_v12 = vpop.f32.mrb[99].mxu1  ;;  %v3806_v33 = vadd.f32 %v3805_v35, %v6926_v27 }
0x101a   :  { %v3823_v2 = vadd.f32 %v3762_v39, %v7650_v18  ;;  %v3766_v13 = vadd.f32 %v3765_v48, %v6892_v52  ;;  %v3862_v27 = vpop.permute.xlu1 %3861 }
0x101b   :  { %v4175_v14 = vmul.f32 -1.442695, %v3809_v3  ;;  %v3810_v44 = vadd.f32 %v3764_v0, %v7651_v28  ;;  %vm3864_vm6 = vcmp.eq.s32.totalorder %v3862_v27, 1 }
0x101c   :  { %v3824_v59 = vadd.f32 %v3766_v13, %v7652_v5  ;;  %v4177_v56 = vmul.f32 -1.442695, %v3823_v2 }
0x101d   :  { %5235 = vpow2.f32 %v4175_v14  ;;  %v4176_v62 = vmul.f32 -1.442695, %v3810_v44 }
0x101e   :  { %v4178_v1 = vmul.f32 -1.442695, %v3824_v59 }
0x101f   :  { %5237 = vpow2.f32 %v4176_v62 }
0x1020   :  { %5239 = vpow2.f32 %v4177_v56 }
0x1021   :  { %5241 = vpow2.f32 %v4178_v1 }
0x1027   :  { %v5236_v32 = vpop.eup %5235 }
0x1028   :  { %v3817_v54 = vadd.f32 1.0, %v5236_v32 }
0x1029   :  { %v5238_v47 = vpop.eup %5237 }
0x102a   :  { %5243 = vrcp.f32 %v3817_v54  ;;  %v3818_v60 = vadd.f32 1.0, %v5238_v47  ;;  %v5240_v61 = vpop.eup %5239 }
0x102b   :  { %v5242_v52 = vpop.eup %5241  ;;  %v3831_v29 = vadd.f32 1.0, %v5240_v61 }
0x102c   :  { %5245 = vrcp.f32 %v3818_v60  ;;  %v3832_v16 = vadd.f32 1.0, %v5242_v52 }
0x102d   :  { %5247 = vrcp.f32 %v3831_v29 }
0x102e   :  { %5249 = vrcp.f32 %v3832_v16 }
0x1034   :  { %v5244_v63 = vpop.eup %5243 }
0x1035   :  { %v3837_v45 = vmul.f32 %v5244_v63, %v3803_v30 }
0x1036   :  { %v5246_v21 = vpop.eup %5245 }
0x1037   :  { %v3839_v20 = vadd.f32 %v3837_v45, %v7653_v34  ;;  %v3838_v19 = vmul.f32 %v5246_v21, %v3806_v33  ;;  %v5248_v23 = vpop.eup %5247 }
0x1038   :  { %v5250_v25 = vpop.eup %5249  ;;  %v3843_v6 = vsub.f32 1.0, %v5248_v23  ;;  %v3847_v24 = vmul.f32 %v5248_v23, %v7450_v46 }
0x1039   :  { %5251 = vtanh.f32 %v3839_v20  ;;  %v3840_v37 = vadd.f32 %v3838_v19, %v7654_v7  ;;  %v3844_v38 = vsub.f32 1.0, %v5250_v25  ;;  %v3848_v55 = vmul.f32 %v5250_v25, %v7454_v53 }
0x103b   :  { %5253 = vtanh.f32 %v3840_v37 }
0x1043   :  { %v5252_v57 = vpop.eup %5251 }
0x1044   :  { %v3845_v43 = vmul.f32 %v5252_v57, %v3843_v6 }
0x1045   :  { %v5254_v40 = vpop.eup %5253 }
0x1046   :  { %v3849_v26 = vadd.f32 %v3847_v24, %v3845_v43  ;;  %v3846_v41 = vmul.f32 %v5254_v40, %v3844_v38 }
0x1048   :  { %v3869_v11 = vsel %vm3863_vm5, %v3849_v26, 0.0  ;;  %v3850_v31 = vadd.f32 %v3848_v55, %v3846_v41 }
0x1049   :  { %v4211_v51 = vpack.c.bf16 %v3869_v11, %v3869_v11 }
0x104a   :  { %v3870_v36 = vsel %vm3864_vm6, %v3850_v31, 0.0 }
0x104b   :  { %3879 = vst [vmem:[%s7490_s6 + $0x4] sm:$0xf] %v4211_v51  ;;  %v4212_v4 = vpack.c.bf16 %v3870_v36, %v3870_v36 }
0x104d   :  { %3880 = vst [vmem:[%s7490_s6 + $0xc] sm:$0xf] %v4212_v4 }

// kernel: forward.6
= control target key start
LH: loop header
LB: loop body
LE: loop exit
PB: predicated region body
PF: predicated region fallthrough
CT: control target
= control target key end

     0   :  { %v5882_v1 = vmov 0   ;;  %vm4352_vm8 = vmmov 0   ;;  %s5873_s1 = inlined_call_operand.vmem [shape: bf16[384,768], index: 1, kind: input, shape index: {}]   ;;  %s5874_s0 = inlined_call_operand.vmem [shape: bf16[4,16,384], index: 0, kind: input, shape index: {}]   ;;  %s5875_s3 = inlined_call_operand.vmem [shape: bf16[2,128,384], index: 3, kind: input, shape index: {}]   ;;  %s5876_s5 = inlined_call_operand.vmem [shape: f32[4,16,1], index: 5, kind: input, shape index: {}]   ;;  %s5877_s2 = inlined_call_operand.vmem [shape: f32[1,768], index: 2, kind: input, shape index: {}]   ;;  %s5878_s4 = inlined_call_operand.vmem [shape: f32[2,1,384], index: 4, kind: input, shape index: {}]   ;;  %s5879_s6 = inlined_call_operand.vmem [shape: bf16[4,16,256], index: 6, kind: output, shape index: {}]  }
   0x1   :  { %v3894_v0 = vld [vmem:[%s5873_s1 + $0x4] ss:$24 sps:$4 sm:$0xff]   ;;  %3892 = vset.pattern.permute.xlu0 %v5882_v1  ;;  %3893 = vset.pattern.permute.xlu1 %v5882_v1  ;;  %v3896_v2 = vld [vmem:[%s5873_s1] ss:$24 sps:$4 sm:$0xff]   ;;  %v3897_v3 = vld [vmem:[%s5873_s1 + $0x34] ss:$24 sps:$4 sm:$0xff]  }
   0x2   :  { %1000 = vmatprep.subr.bf16.mxu0 %v3894_v0  ;;  %v3899_v4 = vld [vmem:[%s5873_s1 + $0x30] ss:$24 sps:$4 sm:$0xff]   ;;  %v3900_v5 = vld [vmem:[%s5873_s1 + $0x64] ss:$24 sps:$4 sm:$0xff]   ;;  %v3902_v6 = vld [vmem:[%s5873_s1 + $0x60] ss:$24 sps:$4 sm:$0xff]  }
   0x3   :  { %1001 = vmatpush1.bf16.msra.mxu0 %v3896_v2  ;;  %v3903_v7 = vld [vmem:[%s5873_s1 + $0x94] ss:$24 sps:$4 sm:$0xff]   ;;  %v3905_v8 = vld [vmem:[%s5873_s1 + $0x90] ss:$24 sps:$4 sm:$0xff]   ;;  %v3906_v9 = vld [vmem:[%s5873_s1 + $0xc4] ss:$24 sps:$4 sm:$0xff]  }
   0x4   :  { %1002 = vmatprep.subr.bf16.mxu0 %v3897_v3  ;;  %v3908_v10 = vld [vmem:[%s5873_s1 + $0xc0] ss:$24 sps:$4 sm:$0xff]   ;;  %v3909_v11 = vld [vmem:[%s5873_s1 + $0xf4] ss:$24 sps:$4 sm:$0xff]   ;;  %v3911_v12 = vld [vmem:[%s5873_s1 + $0xf0] ss:$24 sps:$4 sm:$0xff]  }
   0x5   :  { %v3912_v13 = vld [vmem:[%s5873_s1 + $0x124] ss:$24 sps:$4 sm:$0xff]   ;;  %v3914_v15 = vld [vmem:[%s5873_s1 + $0x120] ss:$24 sps:$4 sm:$0xff]   ;;  %v3915_v16 = vld [vmem:[%s5873_s1 + $0x154] ss:$24 sps:$4 sm:$0xff]  }
   0x6   :  { %v4433_v14 = vld [vmem:[%s5874_s0 + $0x4] ss:$12 sps:$4 sm:$0xff]   ;;  %v3920_v19 = vld [vmem:[%s5873_s1 + $0x180] ss:$24 sps:$4 sm:$0xff]   ;;  %v3921_v20 = vld [vmem:[%s5873_s1 + $0x1b4] ss:$24 sps:$4 sm:$0xff]  }
   0x7   :  { %1003 = vmatpush1.bf16.msra.mxu0 %v3899_v4  ;;  %1032 = vmatprep.mubr.bf16.mxu0 %v4433_v14  ;;  %v3917_v17 = vld [vmem:[%s5873_s1 + $0x150] ss:$24 sps:$4 sm:$0xff]   ;;  %v3918_v18 = vld [vmem:[%s5873_s1 + $0x184] ss:$24 sps:$4 sm:$0xff]   ;;  %v3926_v25 = vld [vmem:[%s5873_s1 + $0x1e0] ss:$24 sps:$4 sm:$0xff]  }
   0x8   :  { %1004 = vmatprep.subr.bf16.mxu0 %v3900_v5  ;;  %1178 = vmatprep.mubr.bf16.mxu1 %v4433_v14  ;;  %v3923_v21 = vld [vmem:[%s5873_s1 + $0x1b0] ss:$24 sps:$4 sm:$0xff]   ;;  %v3924_v22 = vld [vmem:[%s5873_s1 + $0x1e4] ss:$24 sps:$4 sm:$0xff]   ;;  %v3927_v26 = vld [vmem:[%s5873_s1 + $0x214] ss:$24 sps:$4 sm:$0xff]  }
   0x9   :  { %v3974_v23 = vld [vmem:[%s5873_s1 + $0xc] ss:$24 sps:$4 sm:$0xff]   ;;  %v3977_v24 = vld [vmem:[%s5873_s1 + $0x8] ss:$24 sps:$4 sm:$0xff]   ;;  %v3981_v27 = vld [vmem:[%s5873_s1 + $0x3c] ss:$24 sps:$4 sm:$0xff]  }
   0xa   :  { %1146 = vmatprep.subr.bf16.mxu1 %v3974_v23  ;;  %v3983_v28 = vld [vmem:[%s5873_s1 + $0x38] ss:$24 sps:$4 sm:$0xff]   ;;  %v3984_v29 = vld [vmem:[%s5873_s1 + $0x6c] ss:$24 sps:$4 sm:$0xff]   ;;  %v3990_v32 = vld [vmem:[%s5873_s1 + $0x68] ss:$24 sps:$4 sm:$0xff]  }
   0xb   :  { %1005 = vmatpush1.bf16.msra.mxu0 %v3902_v6  ;;  %1147 = vmatpush1.bf16.msra.mxu1 %v3977_v24  ;;  %v3929_v30 = vld [vmem:[%s5873_s1 + $0x210] ss:$24 sps:$4 sm:$0xff]   ;;  %v3930_v31 = vld [vmem:[%s5873_s1 + $0x244] ss:$24 sps:$4 sm:$0xff]   ;;  %v3932_v34 = vld [vmem:[%s5873_s1 + $0x240] ss:$24 sps:$4 sm:$0xff]  }
   0xc   :  { %1006 = vmatprep.subr.bf16.mxu0 %v3903_v7  ;;  %1148 = vmatprep.subr.bf16.mxu1 %v3981_v27  ;;  %v3991_v33 = vld [vmem:[%s5873_s1 + $0x9c] ss:$24 sps:$4 sm:$0xff]   ;;  %v3996_v35 = vld [vmem:[%s5873_s1 + $0x98] ss:$24 sps:$4 sm:$0xff]   ;;  %v3997_v37 = vld [vmem:[%s5873_s1 + $0xcc] ss:$24 sps:$4 sm:$0xff]  }
   0xd   :  { %v3933_v36 = vld [vmem:[%s5873_s1 + $0x274] ss:$24 sps:$4 sm:$0xff]   ;;  %v3935_v38 = vld [vmem:[%s5873_s1 + $0x270] ss:$24 sps:$4 sm:$0xff]   ;;  %v3936_v39 = vld [vmem:[%s5873_s1 + $0x2a4] ss:$24 sps:$4 sm:$0xff]  }
   0xe   :  { %v4002_v40 = vld [vmem:[%s5873_s1 + $0xc8] ss:$24 sps:$4 sm:$0xff]   ;;  %v4003_v41 = vld [vmem:[%s5873_s1 + $0xfc] ss:$24 sps:$4 sm:$0xff]   ;;  %v4008_v43 = vld [vmem:[%s5873_s1 + $0xf8] ss:$24 sps:$4 sm:$0xff]  }
   0xf   :  { %1007 = vmatpush1.bf16.msra.mxu0 %v3905_v8  ;;  %1149 = vmatpush1.bf16.msra.mxu1 %v3983_v28  ;;  %v3938_v42 = vld [vmem:[%s5873_s1 + $0x2a0] ss:$24 sps:$4 sm:$0xff]   ;;  %v3939_v44 = vld [vmem:[%s5873_s1 + $0x2d4] ss:$24 sps:$4 sm:$0xff]   ;;  %v3941_v46 = vld [vmem:[%s5873_s1 + $0x2d0] ss:$24 sps:$4 sm:$0xff]  }
  0x10   :  { %1008 = vmatprep.subr.bf16.mxu0 %v3906_v9  ;;  %1150 = vmatprep.subr.bf16.mxu1 %v3984_v29  ;;  %v4009_v45 = vld [vmem:[%s5873_s1 + $0x12c] ss:$24 sps:$4 sm:$0xff]   ;;  %v4014_v48 = vld [vmem:[%s5873_s1 + $0x128] ss:$24 sps:$4 sm:$0xff]   ;;  %v4015_v49 = vld [vmem:[%s5873_s1 + $0x15c] ss:$24 sps:$4 sm:$0xff]  }
  0x11   :  { %v3946_v47 = vld [vmem:[%s5873_s1 + $0x304] ss:$24 sps:$4 sm:$0xff]   ;;  %v3944_v50 = vld [vmem:[%s5873_s1 + $0x300] ss:$24 sps:$4 sm:$0xff]   ;;  %v3950_v53 = vld [vmem:[%s5873_s1 + $0x334] ss:$24 sps:$4 sm:$0xff]  }
  0x12   :  { %v4548_v51 = vld [vmem:[%s5874_s0] ss:$12 sps:$4 sm:$0xff]   ;;  %v4553_v52 = vld [vmem:[%s5874_s0 + $0x1c] ss:$12 sps:$4 sm:$0xff]   ;;  %v4020_v54 = vld [vmem:[%s5873_s1 + $0x158] ss:$24 sps:$4 sm:$0xff]  }
  0x13   :  { %1009 = vmatpush1.bf16.msra.mxu0 %v3908_v10  ;;  %1151 = vmatpush1.bf16.msra.mxu1 %v3990_v32  ;;  %v4021_v55 = vld [vmem:[%s5873_s1 + $0x18c] ss:$24 sps:$4 sm:$0xff]   ;;  %v3948_v56 = vld [vmem:[%s5873_s1 + $0x330] ss:$24 sps:$4 sm:$0xff]   ;;  %v3953_v59 = vld [vmem:[%s5873_s1 + $0x360] ss:$24 sps:$4 sm:$0xff]  }
  0x14   :  { %1010 = vmatprep.subr.bf16.mxu0 %v3909_v11  ;;  %1152 = vmatprep.subr.bf16.mxu1 %v3991_v33  ;;  %v3955_v57 = vld [vmem:[%s5873_s1 + $0x364] ss:$24 sps:$4 sm:$0xff]   ;;  %v4026_v58 = vld [vmem:[%s5873_s1 + $0x188] ss:$24 sps:$4 sm:$0xff]   ;;  %v3959_v62 = vld [vmem:[%s5873_s1 + $0x394] ss:$24 sps:$4 sm:$0xff]  }
  0x15   :  { %v4027_v60 = vld [vmem:[%s5873_s1 + $0x1bc] ss:$24 sps:$4 sm:$0xff]   ;;  %v4584_v61 = vld [vmem:[%s5874_s0 + $0x18] ss:$12 sps:$4 sm:$0xff]   ;;  %v3957_v3 = vld [vmem:[%s5873_s1 + $0x390] ss:$24 sps:$4 sm:$0xff]  }
  0x16   :  { %v4592_v63 = vld [vmem:[%s5874_s0 + $0x34] ss:$12 sps:$4 sm:$0xff]   ;;  %v4032_v0 = vld [vmem:[%s5873_s1 + $0x1b8] ss:$24 sps:$4 sm:$0xff]   ;;  %v4033_v2 = vld [vmem:[%s5873_s1 + $0x1ec] ss:$24 sps:$4 sm:$0xff]  }
  0x17   :  { %1011 = vmatpush1.bf16.msra.mxu0 %v3911_v12  ;;  %1153 = vmatpush1.bf16.msra.mxu1 %v3996_v35  ;;  %v3964_v4 = vld [vmem:[%s5873_s1 + $0x3c4] ss:$24 sps:$4 sm:$0xff]   ;;  %v4038_v5 = vld [vmem:[%s5873_s1 + $0x1e8] ss:$24 sps:$4 sm:$0xff]   ;;  %v3968_v9 = vld [vmem:[%s5873_s1 + $0x3f4] ss:$24 sps:$4 sm:$0xff]  }
  0x18   :  { %1012 = vmatprep.subr.bf16.mxu0 %v3912_v13  ;;  %1154 = vmatprep.subr.bf16.mxu1 %v3997_v37  ;;  %v3962_v6 = vld [vmem:[%s5873_s1 + $0x3c0] ss:$24 sps:$4 sm:$0xff]   ;;  %v4039_v7 = vld [vmem:[%s5873_s1 + $0x21c] ss:$24 sps:$4 sm:$0xff]   ;;  %v4046_v12 = vld [vmem:[%s5873_s1 + $0x24c] ss:$24 sps:$4 sm:$0xff]  }
  0x19   :  { %v4620_v8 = vld [vmem:[%s5874_s0 + $0x30] ss:$12 sps:$4 sm:$0xff]   ;;  %v4628_v10 = vld [vmem:[%s5874_s0 + $0x4c] ss:$12 sps:$4 sm:$0xff]   ;;  %v4684_v27 = vld [vmem:[%s5874_s0 + $0x8] ss:$12 sps:$4 sm:$0xff]  }
  0x1a   :  { %v4044_v11 = vld [vmem:[%s5873_s1 + $0x218] ss:$24 sps:$4 sm:$0xff]   ;;  %v3988_v24 = vld [vmem:[%s5873_s1 + $0x14] ss:$24 sps:$4 sm:$0xff]   ;;  %v3995_v29 = vld [vmem:[%s5873_s1 + $0x44] ss:$24 sps:$4 sm:$0xff]  }
  0x1b   :  { %1013 = vmatpush1.bf16.msra.mxu0 %v3914_v15  ;;  %1155 = vmatpush1.bf16.msra.mxu1 %v4002_v40  ;;  %v3966_v13 = vld [vmem:[%s5873_s1 + $0x3f0] ss:$24 sps:$4 sm:$0xff]   ;;  %v3973_v15 = vld [vmem:[%s5873_s1 + $0x424] ss:$24 sps:$4 sm:$0xff]   ;;  %v3993_v32 = vld [vmem:[%s5873_s1 + $0x40] ss:$24 sps:$4 sm:$0xff]  }
  0x1c   :  { %1014 = vmatprep.subr.bf16.mxu0 %v3915_v16  ;;  %1156 = vmatprep.subr.bf16.mxu1 %v4003_v41  ;;  %v4051_v16 = vld [vmem:[%s5873_s1 + $0x248] ss:$24 sps:$4 sm:$0xff]   ;;  %v4001_v33 = vld [vmem:[%s5873_s1 + $0x74] ss:$24 sps:$4 sm:$0xff]  }
  0x1d   :  { %v3978_v23 = vld [vmem:[%s5873_s1 + $0x450] ss:$24 sps:$4 sm:$0xff]   ;;  %v4080_v35 = vld [vmem:[%s5873_s1 + $0x33c] ss:$24 sps:$4 sm:$0xff]   ;;  %v4086_v40 = vld [vmem:[%s5873_s1 + $0x36c] ss:$24 sps:$4 sm:$0xff]  }
  0x1e   :  { %v3986_v28 = vld [vmem:[%s5873_s1 + $0x10] ss:$24 sps:$4 sm:$0xff]   ;;  %v4005_v41 = vld [vmem:[%s5873_s1 + $0xa0] ss:$24 sps:$4 sm:$0xff]  }
  0x1f   :  { %1015 = vmatpush1.bf16.msra.mxu0 %v3917_v17  ;;  %1157 = vmatpush1.bf16.msra.mxu1 %v4008_v43  ;;  %v4052_v17 = vld [vmem:[%s5873_s1 + $0x27c] ss:$24 sps:$4 sm:$0xff]   ;;  %v3999_v37 = vld [vmem:[%s5873_s1 + $0x70] ss:$24 sps:$4 sm:$0xff]  }
  0x20   :  { %1016 = vmatprep.subr.bf16.mxu0 %v3918_v18  ;;  %1158 = vmatprep.subr.bf16.mxu1 %v4009_v45  ;;  %v4653_v18 = vld [vmem:[%s5874_s0 + $0x48] ss:$12 sps:$4 sm:$0xff]   ;;  %v4748_v45 = vld [vmem:[%s5874_s0 + $0x38] ss:$12 sps:$4 sm:$0xff]  }
  0x21   :  { %v4084_v43 = vld [vmem:[%s5873_s1 + $0x368] ss:$24 sps:$4 sm:$0xff]  }
  0x23   :  { %1017 = vmatpush1.bf16.msra.mxu0 %v3920_v19  ;;  %1159 = vmatpush1.bf16.msra.mxu1 %v4014_v48  ;;  %v3971_v19 = vld [vmem:[%s5873_s1 + $0x420] ss:$24 sps:$4 sm:$0xff]  }
  0x24   :  { %1018 = vmatprep.subr.bf16.mxu0 %v3921_v20  ;;  %1160 = vmatprep.subr.bf16.mxu1 %v4015_v49  ;;  %v3980_v20 = vld [vmem:[%s5873_s1 + $0x454] ss:$24 sps:$4 sm:$0xff]   ;;  %v4090_v48 = vld [vmem:[%s5873_s1 + $0x398] ss:$24 sps:$4 sm:$0xff]  }
  0x25   :  { %v4098_v49 = vld [vmem:[%s5873_s1 + $0x3cc] ss:$24 sps:$4 sm:$0xff]  }
  0x27   :  { %1019 = vmatpush1.bf16.msra.mxu0 %v3923_v21  ;;  %1161 = vmatpush1.bf16.msra.mxu1 %v4020_v54  ;;  %v4057_v21 = vld [vmem:[%s5873_s1 + $0x278] ss:$24 sps:$4 sm:$0xff]   ;;  %v4096_v54 = vld [vmem:[%s5873_s1 + $0x3c8] ss:$24 sps:$4 sm:$0xff]  }
  0x28   :  { %1020 = vmatprep.subr.bf16.mxu0 %v3924_v22  ;;  %1162 = vmatprep.subr.bf16.mxu1 %v4021_v55  ;;  %v4059_v22 = vld [vmem:[%s5873_s1 + $0x2ac] ss:$24 sps:$4 sm:$0xff]   ;;  %v4023_v55 = vld [vmem:[%s5873_s1 + $0x130] ss:$24 sps:$4 sm:$0xff]  }
  0x2b   :  { %1021 = vmatpush1.bf16.msra.mxu0 %v3926_v25  ;;  %1163 = vmatpush1.bf16.msra.mxu1 %v4026_v58  ;;  %v4064_v25 = vld [vmem:[%s5873_s1 + $0x2a8] ss:$24 sps:$4 sm:$0xff]   ;;  %v4031_v58 = vld [vmem:[%s5873_s1 + $0x164] ss:$24 sps:$4 sm:$0xff]  }
  0x2c   :  { %1022 = vmatprep.subr.bf16.mxu0 %v3927_v26  ;;  %1164 = vmatprep.subr.bf16.mxu1 %v4027_v60  ;;  %v4065_v26 = vld [vmem:[%s5873_s1 + $0x2dc] ss:$24 sps:$4 sm:$0xff]   ;;  %v4110_v60 = vld [vmem:[%s5873_s1 + $0x42c] ss:$24 sps:$4 sm:$0xff]  }
  0x2f   :  { %1023 = vmatpush1.bf16.msra.mxu0 %v3929_v30  ;;  %1165 = vmatpush1.bf16.msra.mxu1 %v4032_v0  ;;  %v4070_v30 = vld [vmem:[%s5873_s1 + $0x2d8] ss:$24 sps:$4 sm:$0xff]   ;;  %v4037_v0 = vld [vmem:[%s5873_s1 + $0x194] ss:$24 sps:$4 sm:$0xff]  }
  0x30   :  { %1024 = vmatprep.subr.bf16.mxu0 %v3930_v31  ;;  %1166 = vmatprep.subr.bf16.mxu1 %v4033_v2  ;;  %v4074_v31 = vld [vmem:[%s5873_s1 + $0x30c] ss:$24 sps:$4 sm:$0xff]   ;;  %v4108_v2 = vld [vmem:[%s5873_s1 + $0x428] ss:$24 sps:$4 sm:$0xff]  }
  0x33   :  { %1025 = vmatpush1.bf16.msra.mxu0 %v3932_v34  ;;  %1167 = vmatpush1.bf16.msra.mxu1 %v4038_v5  ;;  %v4072_v34 = vld [vmem:[%s5873_s1 + $0x308] ss:$24 sps:$4 sm:$0xff]   ;;  %v3381_v5 = vld [vmem:[%s5876_s5 + $0x10] sm:$0xff] }
  0x34   :  { %1026 = vmatprep.subr.bf16.mxu0 %v3933_v36  ;;  %1168 = vmatprep.subr.bf16.mxu1 %v4039_v7  ;;  %v4715_v36 = vld [vmem:[%s5874_s0 + $0x20] ss:$12 sps:$4 sm:$0xff]   ;;  %v4035_v7 = vld [vmem:[%s5873_s1 + $0x190] ss:$24 sps:$4 sm:$0xff]   ;;  %vm1974_vm1 = vcmp.gt.f32.partialorder %v3381_v5, 0.0 }
  0x35   :  { %v5066_v5 = vld [vmem:[%s5875_s3 + $0x18] ss:$12 sps:$4 sm:$0xff]  }
  0x37   :  { %1027 = vmatpush1.bf16.msra.mxu0 %v3935_v38  ;;  %1169 = vmatpush1.bf16.msra.mxu1 %v4044_v11  ;;  %v4007_v38 = vld [vmem:[%s5873_s1 + $0xa4] ss:$24 sps:$4 sm:$0xff]  }
  0x38   :  { %1028 = vmatprep.subr.bf16.mxu0 %v3936_v39  ;;  %1170 = vmatprep.subr.bf16.mxu1 %v4046_v12  ;;  %v4078_v39 = vld [vmem:[%s5873_s1 + $0x338] ss:$24 sps:$4 sm:$0xff]   ;;  %v3391_v11 = vld [vmem:[%s5876_s5 + $0x20] sm:$0xff] }
  0x39   :  { %v4114_v12 = vld [vmem:[%s5873_s1 + $0x458] ss:$24 sps:$4 sm:$0xff]   ;;  %vm2144_vm4 = vcmp.gt.f32.partialorder %v3391_v11, 0.0 }
  0x3a   :  { %v5101_v11 = vld [vmem:[%s5875_s3 + $0x64] ss:$12 sps:$4 sm:$0xff]  }
  0x3b   :  { %1029 = vmatpush1.bf16.msra.mxu0 %v3938_v42  ;;  %1171 = vmatpush1.bf16.msra.mxu1 %v4051_v16  ;;  %v4013_v42 = vld [vmem:[%s5873_s1 + $0xd4] ss:$24 sps:$4 sm:$0xff]  }
  0x3c   :  { %1030 = vmatprep.subr.bf16.mxu0 %v3939_v44  ;;  %1172 = vmatprep.subr.bf16.mxu1 %v4052_v17  ;;  %v4092_v44 = vld [vmem:[%s5873_s1 + $0x39c] ss:$24 sps:$4 sm:$0xff]   ;;  %v4846_v17 = vsel %vm1974_vm1, 1, %v5882_v1 }
  0x3d   :  { %v3468_v16 = vld [vmem:[%s5876_s5 + $0x30] sm:$0xff]  ;;  %1979 = vperm.xlu1 %3893, %v4846_v17  }
  0x3e   :  { %vm2661_vm6 = vcmp.gt.f32.partialorder %v3468_v16, 0.0  ;;  %v5139_v16 = vld [vmem:[%s5875_s3 + $0xac] ss:$12 sps:$4 sm:$0xff]  }
  0x3f   :  { %1031 = vmatpush1.bf16.msra.mxu0 %v3941_v46  ;;  %1173 = vmatpush1.bf16.msra.mxu1 %v4057_v21  ;;  %v4011_v46 = vld [vmem:[%s5873_s1 + $0xd0] ss:$24 sps:$4 sm:$0xff]  }
  0x40   :  { %1073 = vmatprep.subr.bf16.mxu0 %v3946_v47  ;;  %1174 = vmatprep.subr.bf16.mxu1 %v4059_v22  ;;  %v4019_v47 = vld [vmem:[%s5873_s1 + $0x104] ss:$24 sps:$4 sm:$0xff]   ;;  %v4860_v21 = vld [vmem:[%s5875_s3 + $0x8] ss:$12 sps:$4 sm:$0xff]  }
  0x42   :  { %1033 = vmatmul.mubr.bf16.vlgmr.msra.gmra.mrb[0].mxu0 %v4548_v51 }
  0x43   :  { %1074 = vmatpush1.bf16.msra.mxu0 %v3944_v50  ;;  %1042 = vmatprep.mubr.bf16.mxu0 %v4553_v52  ;;  %v4017_v50 = vld [vmem:[%s5873_s1 + $0x100] ss:$24 sps:$4 sm:$0xff]  }
  0x44   :  { %1075 = vmatprep.subr.bf16.mxu0 %v3950_v53  ;;  %1175 = vmatpush1.bf16.msra.mxu1 %v4064_v25  ;;  %v4025_v53 = vld [vmem:[%s5873_s1 + $0x134] ss:$24 sps:$4 sm:$0xff]   ;;  %v4048_v25 = vld [vmem:[%s5873_s1 + $0x1f0] ss:$24 sps:$4 sm:$0xff]  }
  0x45   :  { %1176 = vmatprep.subr.bf16.mxu1 %v4065_v26  ;;  %v5884_v26 = vmov 0.0  }
  0x47   :  { %1076 = vmatpush1.bf16.msra.mxu0 %v3948_v56  ;;  %v4104_v56 = vld [vmem:[%s5873_s1 + $0x3fc] ss:$24 sps:$4 sm:$0xff]  }
  0x48   :  { %1077 = vmatprep.subr.bf16.mxu0 %v3955_v57  ;;  %1177 = vmatpush1.bf16.msra.mxu1 %v4070_v30  ;;  %v4784_v57 = vld [vmem:[%s5874_s0 + $0x50] ss:$12 sps:$4 sm:$0xff]  }
  0x49   :  { %1219 = vmatprep.subr.bf16.mxu1 %v4074_v31  ;;  %v3469_v30 = vld [vmem:[%s5876_s5 + $0x38] sm:$0xff]  ;;  %v4883_v31 = vld [vmem:[%s5875_s3 + $0x20] ss:$12 sps:$4 sm:$0xff]  }
  0x4a   :  { %1043 = vmatmul.mubr.bf16.gmra.mrb[4].mxu0 %v4584_v61  ;;  %vm2662_vm7 = vcmp.gt.f32.partialorder %v3469_v30, 0.0 }
  0x4b   :  { %1078 = vmatpush1.bf16.msra.mxu0 %v3953_v59  ;;  %1052 = vmatprep.mubr.bf16.mxu0 %v4592_v63  ;;  %v4102_v59 = vld [vmem:[%s5873_s1 + $0x3f8] ss:$24 sps:$4 sm:$0xff]  }
  0x4c   :  { %1079 = vmatprep.subr.bf16.mxu0 %v3959_v62  ;;  %1179 = vmatmul.mubr.bf16.vlgmr.msra.gmra.mrb[0].mxu1 %v4548_v51  ;;  %v4029_v62 = vld [vmem:[%s5873_s1 + $0x160] ss:$24 sps:$4 sm:$0xff]  }
  0x4d   :  { %1220 = vmatpush1.bf16.msra.mxu1 %v4072_v34  ;;  %1188 = vmatprep.mubr.bf16.mxu1 %v4553_v52  ;;  %v4063_v34 = vld [vmem:[%s5873_s1 + $0x254] ss:$24 sps:$4 sm:$0xff]  }
  0x4e   :  { %1221 = vmatprep.subr.bf16.mxu1 %v4080_v35  ;;  %v4900_v35 = vld [vmem:[%s5875_s3 + $0x38] ss:$12 sps:$4 sm:$0xff]  }
  0x4f   :  { %1080 = vmatpush1.bf16.msra.mxu0 %v3957_v3  ;;  %v4116_v3 = vld [vmem:[%s5873_s1 + $0x45c] ss:$24 sps:$4 sm:$0xff]  }
  0x50   :  { %1081 = vmatprep.subr.bf16.mxu0 %v3964_v4  ;;  %v1803_v4 = vld [vmem:[%s5876_s5] sm:$0xff] }
  0x51   :  { %1222 = vmatpush1.bf16.msra.mxu1 %v4078_v39  ;;  %vm1805_vm0 = vcmp.gt.f32.partialorder %v1803_v4, 0.0  ;;  %v4069_v39 = vld [vmem:[%s5873_s1 + $0x284] ss:$24 sps:$4 sm:$0xff]  }
  0x52   :  { %1053 = vmatmul.mubr.bf16.gmra.mrb[8].mxu0 %v4620_v8  ;;  %1223 = vmatprep.subr.bf16.mxu1 %v4086_v40  ;;  %v4916_v40 = vld [vmem:[%s5875_s3 + $0x50] ss:$12 sps:$4 sm:$0xff]  }
  0x53   :  { %1082 = vmatpush1.bf16.msra.mxu0 %v3962_v6  ;;  %1062 = vmatprep.mubr.bf16.mxu0 %v4628_v10  ;;  %v3382_v6 = vld [vmem:[%s5876_s5 + $0x18] sm:$0xff]  ;;  %v5044_v4 = vld [vmem:[%s5875_s3 + $0x4] ss:$12 sps:$4 sm:$0xff]  }
  0x54   :  { %1083 = vmatprep.subr.bf16.mxu0 %v3968_v9  ;;  %1189 = vmatmul.mubr.bf16.gmra.mrb[4].mxu1 %v4584_v61  ;;  %v4043_v9 = vld [vmem:[%s5873_s1 + $0x1c4] ss:$24 sps:$4 sm:$0xff]   ;;  %vm1975_vm3 = vcmp.gt.f32.partialorder %v3382_v6, 0.0  ;;  %v5073_v6 = vld [vmem:[%s5875_s3 + $0x34] ss:$12 sps:$4 sm:$0xff]  }
  0x55   :  { %1224 = vmatpush1.bf16.msra.mxu1 %v4084_v43  ;;  %1198 = vmatprep.mubr.bf16.mxu1 %v4592_v63  ;;  %v4929_v43 = vld [vmem:[%s5875_s3 + $0x68] ss:$12 sps:$4 sm:$0xff]  }
  0x56   :  { %1225 = vmatprep.subr.bf16.mxu1 %v4092_v44  ;;  %v4075_v44 = vld [vmem:[%s5873_s1 + $0x2b0] ss:$24 sps:$4 sm:$0xff]  }
  0x57   :  { %1084 = vmatpush1.bf16.msra.mxu0 %v3966_v13  ;;  %v4837_v13 = vsel %vm1805_vm0, 1, %v5882_v1 }
  0x58   :  { %1085 = vmatprep.subr.bf16.mxu0 %v3973_v15  ;;  %v3392_v15 = vld [vmem:[%s5876_s5 + $0x28] sm:$0xff]  ;;  %1810 = vperm.xlu0 %3892, %v4837_v13  }
  0x59   :  { %1226 = vmatpush1.bf16.msra.mxu1 %v4090_v48  ;;  %vm2145_vm5 = vcmp.gt.f32.partialorder %v3392_v15, 0.0  ;;  %v4081_v48 = vld [vmem:[%s5873_s1 + $0x2e0] ss:$24 sps:$4 sm:$0xff]  }
  0x5a   :  { %1063 = vmatmul.mubr.bf16.gmra.mrb[12].mxu0 %v4653_v18  ;;  %1227 = vmatprep.subr.bf16.mxu1 %v4098_v49  ;;  %v4089_v49 = vld [vmem:[%s5873_s1 + $0x314] ss:$24 sps:$4 sm:$0xff]  }
  0x5b   :  { %1086 = vmatpush1.bf16.msra.mxu0 %v3971_v19  ;;  %1105 = vmatprep.mubr.bf16.mxu0 %v5882_v1  ;;  %v4041_v19 = vld [vmem:[%s5873_s1 + $0x1c0] ss:$24 sps:$4 sm:$0xff]  }
  0x5c   :  { %1087 = vmatprep.subr.bf16.mxu0 %v3980_v20  ;;  %1199 = vmatmul.mubr.bf16.gmra.mrb[8].mxu1 %v4620_v8  ;;  %v4050_v20 = vld [vmem:[%s5873_s1 + $0x1f4] ss:$24 sps:$4 sm:$0xff]  }
  0x5d   :  { %1228 = vmatpush1.bf16.msra.mxu1 %v4096_v54  ;;  %1208 = vmatprep.mubr.bf16.mxu1 %v4628_v10  ;;  %v4095_v54 = vld [vmem:[%s5873_s1 + $0x344] ss:$24 sps:$4 sm:$0xff]   ;;  %v5127_v15 = vld [vmem:[%s5875_s3 + $0x94] ss:$12 sps:$4 sm:$0xff]  }
  0x5e   :  { %1229 = vmatprep.subr.bf16.mxu1 %v4104_v56  ;;  %v4093_v56 = vld [vmem:[%s5873_s1 + $0x340] ss:$24 sps:$4 sm:$0xff]  }
  0x5f   :  { %1088 = vmatpush1.bf16.msra.mxu0 %v3978_v23  ;;  %v1977_v23 = vsel %vm1975_vm3, 1, %v5882_v1 }
  0x60   :  { %1292 = vmatprep.subr.bf16.mxu0 %v3988_v24  ;;  %v2146_v24 = vsel %vm2144_vm4, 1, %v5882_v1  ;;  %1982 = vperm.xlu1 %3893, %v1977_v23  }
  0x61   :  { %1230 = vmatpush1.bf16.msra.mxu1 %v4102_v59  ;;  %v4107_v59 = vld [vmem:[%s5873_s1 + $0x3a4] ss:$24 sps:$4 sm:$0xff]  }
  0x62   :  { %1106 = vmatmul.mubr.bf16.vlgmr.msra.gmra.mrb[0].mxu0 %v4684_v27  ;;  %1231 = vmatprep.subr.bf16.mxu1 %v4110_v60  ;;  %v4105_v60 = vld [vmem:[%s5873_s1 + $0x3a0] ss:$24 sps:$4 sm:$0xff]  }
  0x63   :  { %1293 = vmatpush1.bf16.msra.mxu0 %v3986_v28  ;;  %1115 = vmatprep.mubr.bf16.mxu0 %v5882_v1  ;;  %v2147_v28 = vsel %vm2145_vm5, 1, %v5882_v1 }
  0x64   :  { %1294 = vmatprep.subr.bf16.mxu0 %v3995_v29  ;;  %1209 = vmatmul.mubr.bf16.gmra.mrb[12].mxu1 %v4653_v18  ;;  %v4056_v29 = vld [vmem:[%s5873_s1 + $0x224] ss:$24 sps:$4 sm:$0xff]  }
  0x65   :  { %1232 = vmatpush1.bf16.msra.mxu1 %v4108_v2  ;;  %1251 = vmatprep.mubr.bf16.mxu1 %v5882_v1  ;;  %v4122_v2 = vld [vmem:[%s5873_s1 + $0x434] ss:$24 sps:$4 sm:$0xff]  }
  0x66   :  { %1233 = vmatprep.subr.bf16.mxu1 %v4116_v3  ;;  %2152 = vperm.xlu1 %3893, %v2147_v28   ;;  %v4125_v3 = vld [vmem:[%s5873_s1 + $0x464] ss:$24 sps:$4 sm:$0xff]  }
  0x67   :  { %1295 = vmatpush1.bf16.msra.mxu0 %v3993_v32  ;;  %v4054_v32 = vld [vmem:[%s5873_s1 + $0x220] ss:$24 sps:$4 sm:$0xff]  }
  0x68   :  { %1296 = vmatprep.subr.bf16.mxu0 %v4001_v33  ;;  %v2663_v33 = vsel %vm2661_vm6, 1, %v5882_v1 }
  0x69   :  { %1234 = vmatpush1.bf16.msra.mxu1 %v4114_v12  ;;  %v5113_v12 = vld [vmem:[%s5875_s3 + $0x7c] ss:$12 sps:$4 sm:$0xff]  }
  0x6a   :  { %1116 = vmatmul.mubr.bf16.gmra.mrb[4].mxu0 %v4715_v36  ;;  %3600 = vmatprep.subr.bf16.mxu1 %v5884_v26 }
  0x6b   :  { %1297 = vmatpush1.bf16.msra.mxu0 %v3999_v37  ;;  %1125 = vmatprep.mubr.bf16.mxu0 %v5882_v1  ;;  %v2664_v37 = vsel %vm2662_vm7, 1, %v5882_v1 }
  0x6c   :  { %1298 = vmatprep.subr.bf16.mxu0 %v4007_v38  ;;  %1252 = vmatmul.mubr.bf16.vlgmr.msra.gmra.mrb[0].mxu1 %v4684_v27  ;;  %v4061_v38 = vld [vmem:[%s5873_s1 + $0x250] ss:$24 sps:$4 sm:$0xff]  }
  0x6d   :  { %1261 = vmatprep.mubr.bf16.mxu1 %v5882_v1  ;;  %3601 = vmatpush3.bf16.msra.mxu1 %v4860_v21 }
  0x6e   :  { %3602 = vmatprep.subr.bf16.mxu1 %v5884_v26  ;;  %2669 = vperm.xlu1 %3893, %v2664_v37  }
  0x6f   :  { %1299 = vmatpush1.bf16.msra.mxu0 %v4005_v41  ;;  %v4067_v41 = vld [vmem:[%s5873_s1 + $0x280] ss:$24 sps:$4 sm:$0xff]  }
  0x70   :  { %1300 = vmatprep.subr.bf16.mxu0 %v4013_v42  ;;  %v4077_v42 = vld [vmem:[%s5873_s1 + $0x2b4] ss:$24 sps:$4 sm:$0xff]  }
  0x71   :  { %3603 = vmatpush3.bf16.msra.mxu1 %v4883_v31 }
  0x72   :  { %1126 = vmatmul.mubr.bf16.gmra.mrb[8].mxu0 %v4748_v45  ;;  %3604 = vmatprep.subr.bf16.mxu1 %v5884_v26 }
  0x73   :  { %1301 = vmatpush1.bf16.msra.mxu0 %v4011_v46  ;;  %1135 = vmatprep.mubr.bf16.mxu0 %v5882_v1  ;;  %v4083_v46 = vld [vmem:[%s5873_s1 + $0x2e4] ss:$24 sps:$4 sm:$0xff]  }
  0x74   :  { %1302 = vmatprep.subr.bf16.mxu0 %v4019_v47  ;;  %1262 = vmatmul.mubr.bf16.gmra.mrb[4].mxu1 %v4715_v36  ;;  %v4945_v47 = vld [vmem:[%s5875_s3 + $0x80] ss:$12 sps:$4 sm:$0xff]  }
  0x75   :  { %1271 = vmatprep.mubr.bf16.mxu1 %v5882_v1  ;;  %3605 = vmatpush3.bf16.msra.mxu1 %v4900_v35 }
  0x76   :  { %3606 = vmatprep.subr.bf16.mxu1 %v5884_v26  ;;  %2834 = vperm.xlu1 %3893, %v2147_v28  }
  0x77   :  { %1303 = vmatpush1.bf16.msra.mxu0 %v4017_v50  ;;  %v4958_v50 = vld [vmem:[%s5875_s3 + $0x98] ss:$12 sps:$4 sm:$0xff]  }
  0x78   :  { %1304 = vmatprep.subr.bf16.mxu0 %v4025_v53  ;;  %v4087_v53 = vld [vmem:[%s5873_s1 + $0x310] ss:$24 sps:$4 sm:$0xff]  }
  0x79   :  { %3607 = vmatpush3.bf16.msra.mxu1 %v4916_v40 }
  0x7a   :  { %1136 = vmatmul.mubr.bf16.gmra.mrb[12].mxu0 %v4784_v57  ;;  %3608 = vmatprep.subr.bf16.mxu1 %v5884_v26 }
  0x7b   :  { %1305 = vmatpush1.bf16.msra.mxu0 %v4023_v55  ;;  %1324 = vmatprep.mubr.bf16.mxu0 %v4433_v14  ;;  %v1804_v14 = vld [vmem:[%s5876_s5 + $0x8] sm:$0xff]  ;;  %v4975_v55 = vld [vmem:[%s5875_s3 + $0xb0] ss:$12 sps:$4 sm:$0xff]  }
  0x7c   :  { %1306 = vmatprep.subr.bf16.mxu0 %v4031_v58  ;;  %vm1806_vm2 = vcmp.gt.f32.partialorder %v1804_v14, 0.0  ;;  %1272 = vmatmul.mubr.bf16.gmra.mrb[8].mxu1 %v4748_v45  ;;  %v4101_v58 = vld [vmem:[%s5873_s1 + $0x374] ss:$24 sps:$4 sm:$0xff]   ;;  %v5057_v14 = vld [vmem:[%s5875_s3 + $0x1c] ss:$12 sps:$4 sm:$0xff]  }
  0x7d   :  { %v4863_v22 = vsel %vm1806_vm2, 1, %v5882_v1  ;;  %1281 = vmatprep.mubr.bf16.mxu1 %v5882_v1  ;;  %3609 = vmatpush3.bf16.msra.mxu1 %v4929_v43 }
  0x7e   :  { %1813 = vperm.xlu0 %3892, %v4863_v22   ;;  %2999 = vperm.xlu1 %3893, %v1977_v23  }
  0x7f   :  { %1307 = vmatpush1.bf16.msra.mxu0 %v4029_v62  ;;  %3610 = vmatprep.subr.bf16.mxu1 %v5884_v26  ;;  %v4113_v62 = vld [vmem:[%s5873_s1 + $0x3d4] ss:$24 sps:$4 sm:$0xff]  }
  0x80   :  { %1308 = vmatprep.subr.bf16.mxu0 %v4037_v0  ;;  %v4119_v0 = vld [vmem:[%s5873_s1 + $0x404] ss:$24 sps:$4 sm:$0xff]  }
  0x81   :  { %3611 = vmatpush3.bf16.msra.mxu1 %v4945_v47 }
  0x82   :  { %2149 = vperm.xlu0 %3892, %v2146_v24   ;;  %2322 = vperm.xlu1 %3893, %v2664_v37  }
  0x83   :  { %1309 = vmatpush1.bf16.msra.mxu0 %v4035_v7  ;;  %3612 = vmatprep.subr.bf16.mxu1 %v5884_v26  ;;  %v5087_v7 = vld [vmem:[%s5875_s3 + $0x4c] ss:$12 sps:$4 sm:$0xff]  }
  0x84   :  { %1310 = vmatprep.subr.bf16.mxu0 %v4043_v9  ;;  %1282 = vmatmul.mubr.bf16.gmra.mrb[12].mxu1 %v4784_v57  ;;  %v5094_v9 = vld [vmem:[%s5875_s3 + $0x48] ss:$12 sps:$4 sm:$0xff]  }
  0x85   :  { %3616 = vmatprep.mubr.msk.bf16.mxu1 %vm4352_vm8, %v5884_v26  ;;  %3613 = vmatpush3.bf16.msra.mxu1 %v4958_v50 }
  0x86   :  { %2666 = vperm.xlu0 %3892, %v2663_v33   ;;  %3164 = vperm.xlu1 %3893, %v4863_v22   ;;  %v5176_v22 = vld [vmem:[%s5877_s2] sm:$0x3f] }
  0x87   :  { %1311 = vmatpush1.bf16.msra.mxu0 %v4041_v19  ;;  %3614 = vmatprep.subr.bf16.mxu1 %v5884_v26 }
  0x88   :  { %1312 = vmatprep.subr.bf16.mxu0 %v4050_v20 }
  0x89   :  { %3615 = vmatpush3.bf16.msra.mxu1 %v4975_v55 }
  0x8a   :  { %2831 = vperm.xlu0 %3892, %v2146_v24   ;;  %3620 = vmatprep.subr.bf16.mxu1 %v5884_v26 }
  0x8b   :  { %1313 = vmatpush1.bf16.msra.mxu0 %v4048_v25 }
  0x8c   :  { %1314 = vmatprep.subr.bf16.mxu0 %v4056_v29 }
  0x8e   :  { %2996 = vperm.xlu0 %3892, %v4846_v17   ;;  %v5146_v17 = vld [vmem:[%s5875_s3 + $0xa8] ss:$12 sps:$4 sm:$0xff]  }
  0x8f   :  { %1315 = vmatpush1.bf16.msra.mxu0 %v4054_v32 }
  0x90   :  { %1316 = vmatprep.subr.bf16.mxu0 %v4063_v34 }
  0x92   :  { %2319 = vperm.xlu0 %3892, %v2663_v33  }
  0x93   :  { %1317 = vmatpush1.bf16.msra.mxu0 %v4061_v38 }
  0x94   :  { %1318 = vmatprep.subr.bf16.mxu0 %v4069_v39 }
  0x96   :  { %3161 = vperm.xlu0 %3892, %v4837_v13   ;;  %v5120_v13 = vld [vmem:[%s5875_s3 + $0x78] ss:$12 sps:$4 sm:$0xff]  }
  0x97   :  { %1319 = vmatpush1.bf16.msra.mxu0 %v4067_v41 }
  0x98   :  { %1320 = vmatprep.subr.bf16.mxu0 %v4077_v42 }
  0x9b   :  { %1321 = vmatpush1.bf16.msra.mxu0 %v4075_v44 }
  0x9c   :  { %1322 = vmatprep.subr.bf16.mxu0 %v4083_v46 }
  0x9f   :  { %1323 = vmatpush1.bf16.msra.mxu0 %v4081_v48 }
  0xa0   :  { %1365 = vmatprep.subr.bf16.mxu0 %v4089_v49 }
  0xa2   :  { %1325 = vmatmul.mubr.bf16.vlgmr.msra.gmra.mrb[16].mxu0 %v4548_v51  ;;  %v4099_v51 = vld [vmem:[%s5873_s1 + $0x370] ss:$24 sps:$4 sm:$0xff]  }
  0xa3   :  { %1366 = vmatpush1.bf16.msra.mxu0 %v4087_v53  ;;  %1334 = vmatprep.mubr.bf16.mxu0 %v4553_v52  ;;  %v5880_v52 = vmov 0.0|0.0  }
  0xa4   :  { %1367 = vmatprep.subr.bf16.mxu0 %v4095_v54  ;;  %3617 = vmatmul.mubr.bf16.vlgmr.msra.gmra.mrb[16].mxu1 %v5880_v52 }
  0xa5   :  { %3621 = vmatpush3.bf16.msra.mxu1 %v4860_v21  ;;  %3636 = vmatprep.mubr.msk.bf16.mxu1 %vm4352_vm8, %v5884_v26 }
  0xa6   :  { %3622 = vmatprep.subr.bf16.mxu1 %v5884_v26 }
  0xa7   :  { %1368 = vmatpush1.bf16.msra.mxu0 %v4093_v56 }
  0xa8   :  { %1369 = vmatprep.subr.bf16.mxu0 %v4101_v58 }
  0xa9   :  { %3623 = vmatpush3.bf16.msra.mxu1 %v4883_v31 }
  0xaa   :  { %1335 = vmatmul.mubr.bf16.gmra.mrb[20].mxu0 %v4584_v61  ;;  %3624 = vmatprep.subr.bf16.mxu1 %v5884_v26  ;;  %v4111_v61 = vld [vmem:[%s5873_s1 + $0x3d0] ss:$24 sps:$4 sm:$0xff]  }
  0xab   :  { %1370 = vmatpush1.bf16.msra.mxu0 %v4099_v51  ;;  %1344 = vmatprep.mubr.bf16.mxu0 %v4592_v63  ;;  %v4117_v63 = vld [vmem:[%s5873_s1 + $0x400] ss:$24 sps:$4 sm:$0xff]  }
  0xac   :  { %1371 = vmatprep.subr.bf16.mxu0 %v4107_v59 }
  0xad   :  { %3625 = vmatpush3.bf16.msra.mxu1 %v4900_v35 }
  0xae   :  { %3626 = vmatprep.subr.bf16.mxu1 %v5884_v26 }
  0xaf   :  { %1372 = vmatpush1.bf16.msra.mxu0 %v4105_v60 }
  0xb0   :  { %1373 = vmatprep.subr.bf16.mxu0 %v4113_v62 }
  0xb1   :  { %3627 = vmatpush3.bf16.msra.mxu1 %v4916_v40 }
  0xb2   :  { %1345 = vmatmul.mubr.bf16.gmra.mrb[24].mxu0 %v4620_v8  ;;  %3628 = vmatprep.subr.bf16.mxu1 %v5884_v26  ;;  %v4120_v8 = vld [vmem:[%s5873_s1 + $0x430] ss:$24 sps:$4 sm:$0xff]  }
  0xb3   :  { %1374 = vmatpush1.bf16.msra.mxu0 %v4111_v61  ;;  %1354 = vmatprep.mubr.bf16.mxu0 %v4628_v10  ;;  %v4123_v10 = vld [vmem:[%s5873_s1 + $0x460] ss:$24 sps:$4 sm:$0xff]  }
  0xb4   :  { %1375 = vmatprep.subr.bf16.mxu0 %v4119_v0 }
  0xb5   :  { %3629 = vmatpush3.bf16.msra.mxu1 %v4929_v43 }
  0xb6   :  { %3630 = vmatprep.subr.bf16.mxu1 %v5884_v26 }
  0xb7   :  { %1376 = vmatpush1.bf16.msra.mxu0 %v4117_v63 }
  0xb8   :  { %1377 = vmatprep.subr.bf16.mxu0 %v4122_v2 }
  0xb9   :  { %3631 = vmatpush3.bf16.msra.mxu1 %v4945_v47 }
  0xba   :  { %1355 = vmatmul.mubr.bf16.gmra.mrb[28].mxu0 %v4653_v18  ;;  %3632 = vmatprep.subr.bf16.mxu1 %v5884_v26  ;;  %v5051_v18 = vld [vmem:[%s5875_s3] ss:$12 sps:$4 sm:$0xff]  }
  0xbb   :  { %1378 = vmatpush1.bf16.msra.mxu0 %v4120_v8  ;;  %1397 = vmatprep.mubr.bf16.mxu0 %v5882_v1 }
  0xbc   :  { %1379 = vmatprep.subr.bf16.mxu0 %v4125_v3 }
  0xbd   :  { %3633 = vmatpush3.bf16.msra.mxu1 %v4958_v50 }
  0xbe   :  { %3634 = vmatprep.subr.bf16.mxu1 %v5884_v26 }
  0xbf   :  { %1380 = vmatpush1.bf16.msra.mxu0 %v4123_v10 }
  0xc0   :  { %1677 = vmatprep.subr.bf16.mxu0 %v5044_v4 }
  0xc1   :  { %3635 = vmatpush3.bf16.msra.mxu1 %v4975_v55 }
  0xc2   :  { %1398 = vmatmul.mubr.bf16.vlgmr.msra.gmra.mrb[16].mxu0 %v4684_v27  ;;  %3640 = vmatprep.subr.bf16.mxu1 %v5884_v26  ;;  %v5081_v27 = vld [vmem:[%s5875_s3 + $0x30] ss:$12 sps:$4 sm:$0xff]  }
  0xc3   :  { %1678 = vmatpush1.bf16.msra.mxu0 %v5051_v18  ;;  %1407 = vmatprep.mubr.bf16.mxu0 %v5882_v1 }
  0xc4   :  { %1679 = vmatprep.subr.bf16.mxu0 %v5057_v14 }
  0xc7   :  { %1680 = vmatpush1.bf16.msra.mxu0 %v5066_v5 }
  0xc8   :  { %1681 = vmatprep.subr.bf16.mxu0 %v5073_v6 }
  0xca   :  { %1408 = vmatmul.mubr.bf16.gmra.mrb[20].mxu0 %v4715_v36  ;;  %v5107_v36 = vld [vmem:[%s5875_s3 + $0x60] ss:$12 sps:$4 sm:$0xff]  }
  0xcb   :  { %1682 = vmatpush1.bf16.msra.mxu0 %v5081_v27  ;;  %1417 = vmatprep.mubr.bf16.mxu0 %v5882_v1 }
  0xcc   :  { %1683 = vmatprep.subr.bf16.mxu0 %v5087_v7 }
  0xcf   :  { %1684 = vmatpush1.bf16.msra.mxu0 %v5094_v9 }
  0xd0   :  { %1685 = vmatprep.subr.bf16.mxu0 %v5101_v11 }
  0xd2   :  { %1418 = vmatmul.mubr.bf16.gmra.mrb[24].mxu0 %v4748_v45  ;;  %v5133_v45 = vld [vmem:[%s5875_s3 + $0x90] ss:$12 sps:$4 sm:$0xff]  }
  0xd3   :  { %1686 = vmatpush1.bf16.msra.mxu0 %v5107_v36  ;;  %1427 = vmatprep.mubr.bf16.mxu0 %v5882_v1 }
  0xd4   :  { %1687 = vmatprep.subr.bf16.mxu0 %v5113_v12 }
  0xd7   :  { %1688 = vmatpush1.bf16.msra.mxu0 %v5120_v13 }
  0xd8   :  { %1689 = vmatprep.subr.bf16.mxu0 %v5127_v15 }
  0xda   :  { %1428 = vmatmul.mubr.bf16.gmra.mrb[28].mxu0 %v4784_v57  ;;  %v186_v57 = vlaneseq }
  0xdb   :  { %1690 = vmatpush1.bf16.msra.mxu0 %v5133_v45  ;;  %1709 = vmatprep.mubr.bf16.mxu0 %v5882_v1 }
  0xdc   :  { %1691 = vmatprep.subr.bf16.mxu0 %v5139_v16  ;;  %v5170_v19 = vshrl.u32 %v186_v57, 7 }
  0xde   :  { %v200_v20 = vsub.s32 3, %v5170_v19  ;;  %v5189_v30 = vsub.s32 2, %v5170_v19 }
  0xdf   :  { %1692 = vmatpush1.bf16.msra.mxu0 %v5146_v17 }
  0xe0   :  { %1845 = vmatprep.subr.bf16.mxu0 %v5044_v4  ;;  %v5179_v23 = vrot.slane %v5176_v22, %v200_v20  ;;  %5890 = vst [vmem:[#allocation5_spill] sm:$0xff] %v5189_v30  ;;  %v5196_v34 = vrot.slane %v5176_v22, %v5189_v30 }
  0xe2   :  { %1710 = vmatmul.mubr.bf16.vlgmr.msra.gmra.mrb[0].mxu0 %v5880_v52 }
  0xe3   :  { %1846 = vmatpush1.bf16.msra.mxu0 %v5051_v18  ;;  %1877 = vmatprep.mubr.bf16.mxu0 %v5882_v1 }
  0xe4   :  { %1847 = vmatprep.subr.bf16.mxu0 %v5057_v14 }
  0xe7   :  { %1848 = vmatpush1.bf16.msra.mxu0 %v5066_v5 }
  0xe8   :  { %1849 = vmatprep.subr.bf16.mxu0 %v5073_v6 }
  0xeb   :  { %1850 = vmatpush1.bf16.msra.mxu0 %v5081_v27 }
  0xec   :  { %1851 = vmatprep.subr.bf16.mxu0 %v5087_v7 }
  0xef   :  { %1852 = vmatpush1.bf16.msra.mxu0 %v5094_v9 }
  0xf0   :  { %1853 = vmatprep.subr.bf16.mxu0 %v5101_v11 }
  0xf3   :  { %1854 = vmatpush1.bf16.msra.mxu0 %v5107_v36 }
  0xf4   :  { %1855 = vmatprep.subr.bf16.mxu0 %v5113_v12 }
  0xf7   :  { %1856 = vmatpush1.bf16.msra.mxu0 %v5120_v13 }
  0xf8   :  { %1857 = vmatprep.subr.bf16.mxu0 %v5127_v15 }
  0xfb   :  { %1858 = vmatpush1.bf16.msra.mxu0 %v5133_v45 }
  0xfc   :  { %1859 = vmatprep.subr.bf16.mxu0 %v5139_v16 }
  0xff   :  { %1860 = vmatpush1.bf16.msra.mxu0 %v5146_v17 }
 0x100   :  { %2015 = vmatprep.subr.bf16.mxu0 %v5044_v4 }
 0x13f   :  { %v5181_v24 = vpop.f32.mrb[0].mxu1 }
 0x140   :  { %v1255_v25 = vpop.f32.mrb[1].mxu1 }
 0x141   :  { %v5184_v28 = vadd.f32 %v1255_v25, %v5179_v23  ;;  %v5186_v29 = vpop.f32.mrb[2].mxu1  ;;  %v204_v25 = vsub.s32 4, %v5170_v19 }
 0x142   :  { %v1259_v32 = vpop.f32.mrb[3].mxu1 }
 0x143   :  { %5889 = vst [vmem:[#allocation4_spill] sm:$0xff] %v5184_v28  ;;  %v5192_v33 = vadd.f32 %v1259_v32, %v5179_v23  ;;  %v208_v32 = vsub.s32 5, %v5170_v19 }
 0x145   :  { %5891 = vst [vmem:[#allocation6_spill] sm:$0xff] %v5192_v33 }
 0x147   :  { %v1263_v37 = vpop.f32.mrb[4].mxu1 }
 0x148   :  { %v5199_v38 = vadd.f32 %v1263_v37, %v5196_v34  ;;  %v1265_v39 = vpop.f32.mrb[5].mxu1  ;;  %v5239_v37 = vrot.slane %v5176_v22, %v204_v25 }
 0x149   :  { %v5202_v41 = vadd.f32 %v1265_v39, %v5179_v23  ;;  %v1267_v42 = vpop.f32.mrb[6].mxu1  ;;  %v5242_v39 = vrot.slane %v5176_v22, %v208_v32 }
 0x14a   :  { %v5205_v44 = vadd.f32 %v1267_v42, %v5196_v34  ;;  %v1269_v46 = vpop.f32.mrb[7].mxu1 }
 0x14b   :  { %5892 = vst [vmem:[#allocation7_spill] sm:$0xff] %v5202_v41  ;;  %v5208_v48 = vadd.f32 %v1269_v46, %v5179_v23  ;;  %5896 = vst [vmem:[#allocation11_spill] sm:$0xff] %v5242_v39 }
 0x14d   :  { %5893 = vst [vmem:[#allocation8_spill] sm:$0xff] %v5208_v48 }
 0x14f   :  { %v1273_v49 = vpop.f32.mrb[8].mxu1 }
 0x150   :  { %v5211_v53 = vadd.f32 %v1273_v49, %v5196_v34  ;;  %v1275_v54 = vpop.f32.mrb[9].mxu1 }
 0x151   :  { %v5214_v56 = vadd.f32 %v1275_v54, %v5179_v23  ;;  %v1277_v58 = vpop.f32.mrb[10].mxu1 }
 0x152   :  { %v5217_v51 = vadd.f32 %v1277_v58, %v5196_v34  ;;  %v1279_v59 = vpop.f32.mrb[11].mxu1 }
 0x153   :  { %5894 = vst [vmem:[#allocation9_spill] sm:$0xff] %v5214_v56  ;;  %v5220_v60 = vadd.f32 %v1279_v59, %v5179_v23 }
 0x155   :  { %5895 = vst [vmem:[#allocation10_spill] sm:$0xff] %v5220_v60 }
 0x157   :  { %v1283_v62 = vpop.f32.mrb[12].mxu1 }
 0x158   :  { %v5223_v61 = vadd.f32 %v1283_v62, %v5196_v34  ;;  %v5225_v0 = vpop.f32.mrb[13].mxu1 }
 0x159   :  { %v1287_v63 = vpop.f32.mrb[14].mxu1 }
 0x15a   :  { %v5228_v2 = vadd.f32 %v1287_v63, %v5196_v34  ;;  %v5230_v8 = vpop.f32.mrb[15].mxu1 }
 0x177   :  { %v5232_v3 = vpop.f32.mrb[16].mxu1 }
 0x178   :  { %v3618_v10 = vpop.f32.mrb[17].mxu1 }
 0x179   :  { %v5234_v57 = vpop.f32.mrb[18].mxu1 }
 0x17a   :  { %v3619_v20 = vpop.f32.mrb[19].mxu1 }
 0x195   :  { %v1399_v42 = vpop.f32.mrb[16].mxu0 }
 0x196   :  { %v5245_v46 = vadd.f32 %v1399_v42, %v5239_v37  ;;  %v1401_v49 = vpop.f32.mrb[17].mxu0 }
 0x197   :  { %v5248_v54 = vadd.f32 %v1401_v49, %v5242_v39  ;;  %v1403_v58 = vpop.f32.mrb[18].mxu0 }
 0x198   :  { %5897 = vst [vmem:[#allocation12_spill] sm:$0xff] %v5245_v46  ;;  %v5251_v59 = vadd.f32 %v1403_v58, %v5239_v37  ;;  %v1405_v62 = vpop.f32.mrb[19].mxu0 }
 0x199   :  { %5898 = vst [vmem:[#allocation13_spill] sm:$0xff] %v5248_v54  ;;  %v5254_v63 = vadd.f32 %v1405_v62, %v5242_v39 }
 0x19a   :  { %5899 = vst [vmem:[#allocation14_spill] sm:$0xff] %v5251_v59  ;;  %v5281_v59 = vsub.s32 0, %v5170_v19 }
 0x19b   :  { %5900 = vst [vmem:[#allocation15_spill] sm:$0xff] %v5254_v63 }
 0x19d   :  { %v1409_v10 = vpop.f32.mrb[20].mxu0 }
 0x19e   :  { %v5257_v20 = vadd.f32 %v1409_v10, %v5239_v37  ;;  %v1411_v25 = vpop.f32.mrb[21].mxu0 }
 0x19f   :  { %v5260_v32 = vadd.f32 %v1411_v25, %v5242_v39  ;;  %v1413_v42 = vpop.f32.mrb[22].mxu0 }
 0x1a0   :  { %5901 = vst [vmem:[#allocation16_spill] sm:$0xff] %v5257_v20  ;;  %v5263_v49 = vadd.f32 %v1413_v42, %v5239_v37  ;;  %v1415_v52 = vpop.f32.mrb[23].mxu0 }
 0x1a1   :  { %5902 = vst [vmem:[#allocation17_spill] sm:$0xff] %v5260_v32  ;;  %v5266_v58 = vadd.f32 %v1415_v52, %v5242_v39 }
 0x1a2   :  { %5903 = vst [vmem:[#allocation18_spill] sm:$0xff] %v5263_v49 }
 0x1a3   :  { %5904 = vst [vmem:[#allocation19_spill] sm:$0xff] %v5266_v58 }
 0x1a5   :  { %v1419_v1 = vpop.f32.mrb[24].mxu0 }
 0x1a6   :  { %v5269_v62 = vadd.f32 %v1419_v1, %v5239_v37  ;;  %v1421_v26 = vpop.f32.mrb[25].mxu0  ;;  %v1518_v1 = vld [vmem:[%s5878_s4] sm:$0x7] }
 0x1a7   :  { %v5272_v10 = vadd.f32 %v1421_v26, %v5242_v39  ;;  %v1423_v63 = vpop.f32.mrb[26].mxu0  ;;  %v5289_v26 = vsub.s32 1, %v5170_v19 }
 0x1a8   :  { %5905 = vst [vmem:[#allocation20_spill] sm:$0xff] %v5269_v62  ;;  %v5275_v25 = vadd.f32 %v1423_v63, %v5239_v37  ;;  %v1425_v54 = vpop.f32.mrb[27].mxu0  ;;  %v189_v63 = vrot.slane %v5176_v22, %v5281_v59 }
 0x1a9   :  { %5906 = vst [vmem:[#allocation21_spill] sm:$0xff] %v5272_v10  ;;  %v5278_v42 = vadd.f32 %v1425_v54, %v5242_v39  ;;  %v1537_v54 = vrot.slane %v1518_v1, %v5281_v59  ;;  %v193_v58 = vrot.slane %v5176_v22, %v5289_v26  ;;  %v1541_v32 = vrot.slane %v1518_v1, %v5289_v26 }
 0x1aa   :  { %5907 = vst [vmem:[#allocation22_spill] sm:$0xff] %v5275_v25 }
 0x1ab   :  { %5908 = vst [vmem:[#allocation23_spill] sm:$0xff] %v5278_v42  ;;  %v5303_v49 = vadd.f32 %v1537_v54, %v189_v63  ;;  %v5305_v48 = vadd.f32 %v1541_v32, %v193_v58 }
 0x1ad   :  { %v5286_v52 = vpop.f32.mrb[28].mxu0 }
 0x1ae   :  { %v5291_v33 = vpop.f32.mrb[29].mxu0 }
 0x1af   :  { %5909 = vst [vmem:[#allocation24_spill] sm:$0xff] %v5291_v33  ;;  %v5296_v46 = vpop.f32.mrb[30].mxu0 }
 0x1b0   :  { %v5298_v28 = vpop.f32.mrb[31].mxu0 }
 0x1b1   :  { %5910 = vst [vmem:[#allocation25_spill] sm:$0xff] %v5298_v28 }
 0x1b5   :  { %v1711_v19 = vpop.f32.mrb[0].mxu0 }
 0x1b6   :  { %v3761_v20 = vadd.f32 %v5303_v49, %v1711_v19  ;;  %v1713_v41 = vpop.f32.mrb[1].mxu0 }
 0x1b7   :  { %v1715_v42 = vpop.f32.mrb[2].mxu0  ;;  %v3763_v62 = vadd.f32 %v5305_v48, %v1713_v41 }
 0x1b8   :  { %v3371_v10 = vmul.f32 -1.442695, %v3761_v20  ;;  %v3765_v25 = vadd.f32 %v5303_v49, %v1715_v42  ;;  %v1717_v60 = vpop.f32.mrb[3].mxu0  ;;  %v5312_v20 = vrot.slane %v1518_v1, %v5189_v30  ;;  %v3794_v1 = vadd.f32 %v5186_v29, %v5196_v34 }
 0x1b9   :  { %v3767_v22 = vadd.f32 %v5305_v48, %v1717_v60  ;;  %v3373_v63 = vmul.f32 -1.442695, %v3763_v62 }
 0x1ba   :  { %4190 = vpow2.f32 %v3371_v10  ;;  %v3372_v56 = vmul.f32 -1.442695, %v3765_v25  ;;  %v1755_v60 = vadd.f32 %v5232_v3, %v5312_v20  ;;  %v3792_v25 = vadd.f32 %v5181_v24, %v5196_v34 }
 0x1bb   :  { %v3374_v54 = vmul.f32 -1.442695, %v3767_v22 }
 0x1bc   :  { %4192 = vpow2.f32 %v3372_v56 }
 0x1bd   :  { %4194 = vpow2.f32 %v3373_v63  ;;  %v1758_v63 = vadd.f32 %v5234_v57, %v5312_v20 }
 0x1be   :  { %4196 = vpow2.f32 %v3374_v54 }
 0x1c4   :  { %v4191_v32 = vpop.eup %4190 }
 0x1c5   :  { %v1769_v58 = vadd.f32 1.0, %v4191_v32 }
 0x1c6   :  { %v4193_v19 = vpop.eup %4192 }
 0x1c7   :  { %4198 = vrcp.f32 %v1769_v58  ;;  %v1770_v28 = vadd.f32 1.0, %v4193_v19  ;;  %v4195_v42 = vpop.eup %4194 }
 0x1c8   :  { %v4197_v41 = vpop.eup %4196  ;;  %v1783_v10 = vadd.f32 1.0, %v4195_v42  ;;  %v1811_v42 = vpop.permute.xlu0 %1810 }
 0x1c9   :  { %4200 = vrcp.f32 %v1770_v28  ;;  %v1784_v56 = vadd.f32 1.0, %v4197_v41  ;;  %vm1815_vm9 = vcmp.eq.s32.totalorder %v1811_v42, 1 }
 0x1ca   :  { %4202 = vrcp.f32 %v1783_v10 }
 0x1cb   :  { %4204 = vrcp.f32 %v1784_v56 }
 0x1cc   :  { %v1814_v29 = vpop.permute.xlu0 %1813 }
 0x1cd   :  { %vm1816_vm10 = vcmp.eq.s32.totalorder %v1814_v29, 1 }
 0x1ce   :  { %vm3516_vm11 = vmpackc.low %vm1816_vm10, %vm1815_vm9 }
 0x1d1   :  { %v4199_v62 = vpop.eup %4198 }
 0x1d2   :  { %v1789_v22 = vmul.f32 %v4199_v62, %v1755_v60 }
 0x1d3   :  { %v4201_v28 = vpop.eup %4200 }
 0x1d4   :  { %v1791_v54 = vadd.f32 %v3792_v25, %v1789_v22  ;;  %v1790_v32 = vmul.f32 %v4201_v28, %v1758_v63  ;;  %v4203_v3 = vpop.eup %4202 }
 0x1d5   :  { %v4205_v19 = vpop.eup %4204  ;;  %v1795_v41 = vsub.f32 1.0, %v4203_v3  ;;  %v1799_v10 = vmul.f32 0.0, %v4203_v3 }
 0x1d6   :  { %4206 = vtanh.f32 %v1791_v54  ;;  %v1792_v58 = vadd.f32 %v3794_v1, %v1790_v32  ;;  %v1796_v60 = vsub.f32 1.0, %v4205_v19  ;;  %v1800_v57 = vmul.f32 0.0, %v4205_v19 }
 0x1d8   :  { %4208 = vtanh.f32 %v1792_v58 }
 0x1e0   :  { %v4207_v24 = vpop.eup %4206 }
 0x1e1   :  { %v1797_v62 = vmul.f32 %v4207_v24, %v1795_v41 }
 0x1e2   :  { %v4209_v33 = vpop.eup %4208 }
 0x1e3   :  { %v1798_v39 = vmul.f32 %v4209_v33, %v1796_v60  ;;  %v1801_v30 = vadd.f32 %v1799_v10, %v1797_v62  ;;  %v5912_v33 = vmov 0  }
 0x1e5   :  { %v1802_v34 = vadd.f32 %v1800_v57, %v1798_v39  ;;  %v5322_v56 = vsel %vm1815_vm9, %v1801_v30, 0.0 }
 0x1e6   :  { %v3500_v25 = vpack.c.bf16 %v5322_v56, %v5322_v56 }
 0x1e7   :  { %v3517_v22 = vpack.c.bf16 %v1802_v34, %v1801_v30  ;;  %v5326_v63 = vsel %vm1816_vm10, %v1802_v34, 0.0  ;;  %v5911_v30 = vmov 0.0  }
 0x1e8   :  { %v3501_v28 = vpack.c.bf16 %v5326_v63, %v5326_v63  ;;  %1831 = vst [vmem:[%s5879_s6] sm:$0xf] %v3500_v25 }
 0x1e9   :  { %3518 = vmatmul.mubr.msk.bf16.vlgmr.msra.gmra.mrb[4].mxu0 %vm3516_vm11, %v3517_v22  ;;  %3637 = vmatmul.mubr.msk.bf16.vlgmr.msra.gmra.mrb[20].mxu1 %vm3516_vm11, %v3517_v22 }
 0x1ea   :  { %2016 = vmatpush1.bf16.msra.mxu0 %v5051_v18  ;;  %3641 = vmatpush3.bf16.msra.mxu1 %v4860_v21  ;;  %1832 = vst [vmem:[%s5879_s6 + $0x8] sm:$0xf] %v3501_v28 }
 0x1eb   :  { %2017 = vmatprep.subr.bf16.mxu0 %v5057_v14  ;;  %3642 = vmatprep.subr.bf16.mxu1 %v5911_v30 }
 0x1ec   :  { %2047 = vmatprep.mubr.bf16.mxu0 %v5912_v33  ;;  %3656 = vmatprep.mubr.msk.bf16.mxu1 %vm4352_vm8, %v5911_v30 }
 0x1ee   :  { %2018 = vmatpush1.bf16.msra.mxu0 %v5066_v5  ;;  %3643 = vmatpush3.bf16.msra.mxu1 %v4883_v31 }
 0x1ef   :  { %2019 = vmatprep.subr.bf16.mxu0 %v5073_v6  ;;  %3644 = vmatprep.subr.bf16.mxu1 %v5911_v30 }
 0x1f2   :  { %2020 = vmatpush1.bf16.msra.mxu0 %v5081_v27  ;;  %3645 = vmatpush3.bf16.msra.mxu1 %v4900_v35 }
 0x1f3   :  { %2021 = vmatprep.subr.bf16.mxu0 %v5087_v7  ;;  %3646 = vmatprep.subr.bf16.mxu1 %v5911_v30 }
 0x1f6   :  { %2022 = vmatpush1.bf16.msra.mxu0 %v5094_v9  ;;  %3647 = vmatpush3.bf16.msra.mxu1 %v4916_v40 }
 0x1f7   :  { %2023 = vmatprep.subr.bf16.mxu0 %v5101_v11  ;;  %3648 = vmatprep.subr.bf16.mxu1 %v5911_v30 }
 0x1fa   :  { %2024 = vmatpush1.bf16.msra.mxu0 %v5107_v36  ;;  %3649 = vmatpush3.bf16.msra.mxu1 %v4929_v43 }
 0x1fb   :  { %2025 = vmatprep.subr.bf16.mxu0 %v5113_v12  ;;  %3650 = vmatprep.subr.bf16.mxu1 %v5911_v30 }
 0x1fe   :  { %2026 = vmatpush1.bf16.msra.mxu0 %v5120_v13  ;;  %3651 = vmatpush3.bf16.msra.mxu1 %v4945_v47 }
 0x1ff   :  { %2027 = vmatprep.subr.bf16.mxu0 %v5127_v15  ;;  %3652 = vmatprep.subr.bf16.mxu1 %v5911_v30 }
 0x202   :  { %2028 = vmatpush1.bf16.msra.mxu0 %v5133_v45  ;;  %3653 = vmatpush3.bf16.msra.mxu1 %v4958_v50 }
 0x203   :  { %2029 = vmatprep.subr.bf16.mxu0 %v5139_v16  ;;  %3654 = vmatprep.subr.bf16.mxu1 %v5911_v30 }
 0x206   :  { %2030 = vmatpush1.bf16.msra.mxu0 %v5146_v17  ;;  %3655 = vmatpush3.bf16.msra.mxu1 %v4975_v55 }
 0x207   :  { %3660 = vmatprep.subr.bf16.mxu1 %v5911_v30  ;;  %2185 = vmatprep.subr.bf16.mxu0 %v5044_v4 }
 0x2bc   :  { %v1879_v39 = vpop.f32.mrb[4].mxu0  ;;  %v1922_v1 = vpop.f32.mrb[20].mxu1 }
 0x2bd   :  { %v3769_v54 = vadd.f32 %v5303_v49, %v1879_v39  ;;  %v1881_v32 = vpop.f32.mrb[5].mxu0  ;;  %v3638_v58 = vpop.f32.mrb[21].mxu1 }
 0x2be   :  { %v1883_v3 = vpop.f32.mrb[6].mxu0  ;;  %v1925_v19 = vpop.f32.mrb[22].mxu1  ;;  %v3771_v60 = vadd.f32 %v5305_v48, %v1881_v32  ;;  %v1923_v32 = vadd.f32 %v1922_v1, %v5312_v20 }
 0x2bf   :  { %v3377_v42 = vmul.f32 -1.442695, %v3769_v54  ;;  %v3773_v41 = vadd.f32 %v5303_v49, %v1883_v3  ;;  %v1885_v24 = vpop.f32.mrb[7].mxu0  ;;  %v3639_v10 = vpop.f32.mrb[23].mxu1 }
 0x2c0   :  { %v3775_v57 = vadd.f32 %v5305_v48, %v1885_v24  ;;  %v3379_v4 = vmul.f32 -1.442695, %v3771_v60  ;;  %v1926_v24 = vadd.f32 %v1925_v19, %v5312_v20 }
 0x2c1   :  { %4210 = vpow2.f32 %v3377_v42  ;;  %v3378_v62 = vmul.f32 -1.442695, %v3773_v41 }
 0x2c2   :  { %v3380_v29 = vmul.f32 -1.442695, %v3775_v57 }
 0x2c3   :  { %4212 = vpow2.f32 %v3378_v62 }
 0x2c4   :  { %4214 = vpow2.f32 %v3379_v4 }
 0x2c5   :  { %4216 = vpow2.f32 %v3380_v29 }
 0x2cb   :  { %v4211_v34 = vpop.eup %4210 }
 0x2cc   :  { %v1937_v25 = vadd.f32 1.0, %v4211_v34  ;;  %v1980_v34 = vpop.permute.xlu1 %1979 }
 0x2cd   :  { %v4213_v22 = vpop.eup %4212  ;;  %vm1984_vm12 = vcmp.eq.s32.totalorder %v1980_v34, 1 }
 0x2ce   :  { %4218 = vrcp.f32 %v1937_v25  ;;  %v1938_v28 = vadd.f32 1.0, %v4213_v22  ;;  %v4215_v39 = vpop.eup %4214 }
 0x2cf   :  { %v4217_v54 = vpop.eup %4216  ;;  %v1951_v58 = vadd.f32 1.0, %v4215_v39 }
 0x2d0   :  { %4220 = vrcp.f32 %v1938_v28  ;;  %v1952_v3 = vadd.f32 1.0, %v4217_v54 }
 0x2d1   :  { %4222 = vrcp.f32 %v1951_v58 }
 0x2d2   :  { %4224 = vrcp.f32 %v1952_v3 }
 0x2d8   :  { %v4219_v42 = vpop.eup %4218 }
 0x2d9   :  { %v1957_v41 = vmul.f32 %v4219_v42, %v1923_v32  ;;  %v1983_v32 = vpop.permute.xlu1 %1982 }
 0x2da   :  { %v4221_v10 = vpop.eup %4220  ;;  %vm1985_vm13 = vcmp.eq.s32.totalorder %v1983_v32, 1 }
 0x2db   :  { %v1959_v60 = vadd.f32 %v5199_v38, %v1957_v41  ;;  %v1958_v62 = vmul.f32 %v4221_v10, %v1926_v24  ;;  %v4223_v4 = vpop.eup %4222 }
 0x2dc   :  { %v4225_v29 = vpop.eup %4224  ;;  %v1963_v25 = vsub.f32 1.0, %v4223_v4  ;;  %v1967_v39 = vmul.f32 %v4223_v4, %v5322_v56 }
 0x2dd   :  { %4226 = vtanh.f32 %v1959_v60  ;;  %v1960_v57 = vadd.f32 %v5205_v44, %v1958_v62  ;;  %v1964_v22 = vsub.f32 1.0, %v4225_v29  ;;  %v1968_v58 = vmul.f32 %v4225_v29, %v5326_v63 }
 0x2df   :  { %4228 = vtanh.f32 %v1960_v57 }
 0x2e7   :  { %v4227_v1 = vpop.eup %4226 }
 0x2e8   :  { %v1965_v28 = vmul.f32 %v4227_v1, %v1963_v25 }
 0x2e9   :  { %v4229_v54 = vpop.eup %4228 }
 0x2ea   :  { %v1966_v19 = vmul.f32 %v4229_v54, %v1964_v22  ;;  %v1969_v38 = vadd.f32 %v1967_v39, %v1965_v28 }
 0x2ec   :  { %v1970_v3 = vadd.f32 %v1968_v58, %v1966_v19  ;;  %v1990_v42 = vsel %vm1984_vm12, %v1969_v38, 0.0  ;;  %v5382_v41 = vsel %vm1984_vm12, %v1969_v38, %v5322_v56 }
 0x2ed   :  { %v3502_v44 = vpack.c.bf16 %v1990_v42, %v1990_v42 }
 0x2ee   :  { %v5385_v24 = vsel %vm1985_vm13, %v1970_v3, %v5326_v63  ;;  %v1991_v10 = vsel %vm1985_vm13, %v1970_v3, 0.0 }
 0x2ef   :  { %v3503_v60 = vpack.c.bf16 %v1991_v10, %v1991_v10  ;;  %3385 = vst [vmem:[%s5879_s6 + $0x10] sm:$0xf] %v3502_v44  ;;  %v2014_v62 = vpack.c.bf16 %v5385_v24, %v5382_v41  ;;  %v2150_v44 = vpop.permute.xlu0 %2149 }
 0x2f0   :  { %vm2154_vm14 = vcmp.eq.s32.totalorder %v2150_v44, 1 }
 0x2f1   :  { %3386 = vst [vmem:[%s5879_s6 + $0x18] sm:$0xf] %v3503_v60  ;;  %2048 = vmatmul.mubr.bf16.vlgmr.msra.gmra.mrb[8].mxu0 %v2014_v62  ;;  %3657 = vmatmul.mubr.bf16.vlgmr.msra.gmra.mrb[24].mxu1 %v2014_v62  ;;  %v2153_v62 = vpop.permute.xlu1 %2152 }
 0x2f2   :  { %3661 = vmatpush3.bf16.msra.mxu1 %v4860_v21  ;;  %2186 = vmatpush1.bf16.msra.mxu0 %v5051_v18  ;;  %v5432_v21 = vld [vmem:[%s5875_s3 + $0xc4] ss:$12 sps:$4 sm:$0xff]   ;;  %vm2155_vm15 = vcmp.eq.s32.totalorder %v2153_v62, 1 }
 0x2f3   :  { %3662 = vmatprep.subr.bf16.mxu1 %v5911_v30  ;;  %2187 = vmatprep.subr.bf16.mxu0 %v5057_v14 }
 0x2f4   :  { %2217 = vmatprep.mubr.bf16.mxu0 %v5912_v33  ;;  %3676 = vmatprep.mubr.msk.bf16.mxu1 %vm4352_vm8, %v5911_v30 }
 0x2f6   :  { %3663 = vmatpush3.bf16.msra.mxu1 %v4883_v31  ;;  %2188 = vmatpush1.bf16.msra.mxu0 %v5066_v5 }
 0x2f7   :  { %3664 = vmatprep.subr.bf16.mxu1 %v5911_v30  ;;  %2189 = vmatprep.subr.bf16.mxu0 %v5073_v6 }
 0x2fa   :  { %3665 = vmatpush3.bf16.msra.mxu1 %v4900_v35  ;;  %2190 = vmatpush1.bf16.msra.mxu0 %v5081_v27 }
 0x2fb   :  { %3666 = vmatprep.subr.bf16.mxu1 %v5911_v30  ;;  %2191 = vmatprep.subr.bf16.mxu0 %v5087_v7 }
 0x2fe   :  { %3667 = vmatpush3.bf16.msra.mxu1 %v4916_v40  ;;  %2192 = vmatpush1.bf16.msra.mxu0 %v5094_v9 }
 0x2ff   :  { %3668 = vmatprep.subr.bf16.mxu1 %v5911_v30  ;;  %2193 = vmatprep.subr.bf16.mxu0 %v5101_v11 }
 0x302   :  { %3669 = vmatpush3.bf16.msra.mxu1 %v4929_v43  ;;  %2194 = vmatpush1.bf16.msra.mxu0 %v5107_v36 }
 0x303   :  { %3670 = vmatprep.subr.bf16.mxu1 %v5911_v30  ;;  %2195 = vmatprep.subr.bf16.mxu0 %v5113_v12 }
 0x306   :  { %3671 = vmatpush3.bf16.msra.mxu1 %v4945_v47  ;;  %2196 = vmatpush1.bf16.msra.mxu0 %v5120_v13 }
 0x307   :  { %3672 = vmatprep.subr.bf16.mxu1 %v5911_v30  ;;  %2197 = vmatprep.subr.bf16.mxu0 %v5127_v15 }
 0x30a   :  { %3673 = vmatpush3.bf16.msra.mxu1 %v4958_v50  ;;  %2198 = vmatpush1.bf16.msra.mxu0 %v5133_v45 }
 0x30b   :  { %3674 = vmatprep.subr.bf16.mxu1 %v5911_v30  ;;  %2199 = vmatprep.subr.bf16.mxu0 %v5139_v16 }
 0x30e   :  { %3675 = vmatpush3.bf16.msra.mxu1 %v4975_v55  ;;  %2200 = vmatpush1.bf16.msra.mxu0 %v5146_v17 }
 0x30f   :  { %3700 = vmatprep.subr.bf16.mxu0 %v5911_v30  ;;  %2533 = vmatprep.subr.bf16.mxu1 %v5432_v21 }
 0x3c4   :  { %v2049_v31 = vpop.f32.mrb[8].mxu0  ;;  %v2092_v35 = vpop.f32.mrb[24].mxu1 }
 0x3c5   :  { %v3777_v40 = vadd.f32 %v5303_v49, %v2049_v31  ;;  %v2051_v43 = vpop.f32.mrb[9].mxu0  ;;  %v3658_v47 = vpop.f32.mrb[25].mxu1  ;;  %v2093_v63 = vadd.f32 %v2092_v35, %v5312_v20 }
 0x3c6   :  { %v2053_v50 = vpop.f32.mrb[10].mxu0  ;;  %v2095_v18 = vpop.f32.mrb[26].mxu1  ;;  %v3779_v27 = vadd.f32 %v5305_v48, %v2051_v43 }
 0x3c7   :  { %v3387_v55 = vmul.f32 -1.442695, %v3777_v40  ;;  %v3781_v14 = vadd.f32 %v5303_v49, %v2053_v50  ;;  %v2055_v5 = vpop.f32.mrb[11].mxu0  ;;  %v3659_v6 = vpop.f32.mrb[27].mxu1  ;;  %v2096_v34 = vadd.f32 %v2095_v18, %v5312_v20  ;;  %v5454_v50 = vld [vmem:[%s5875_s3 + $0xc0] ss:$12 sps:$4 sm:$0xff]  }
 0x3c8   :  { %v3783_v9 = vadd.f32 %v5305_v48, %v2055_v5  ;;  %v3389_v11 = vmul.f32 -1.442695, %v3779_v27  ;;  %v5485_v5 = vld [vmem:[%s5875_s3 + $0xf4] ss:$12 sps:$4 sm:$0xff]   ;;  %v5500_v27 = vld [vmem:[%s5875_s3 + $0xf0] ss:$12 sps:$4 sm:$0xff]  }
 0x3c9   :  { %4230 = vpow2.f32 %v3387_v55  ;;  %v3388_v7 = vmul.f32 -1.442695, %v3781_v14  ;;  %v5478_v14 = vld [vmem:[%s5875_s3 + $0xd8] ss:$12 sps:$4 sm:$0xff]   ;;  %v5494_v6 = vld [vmem:[%s5875_s3 + $0xe0] ss:$12 sps:$4 sm:$0xff]  }
 0x3ca   :  { %v3390_v36 = vmul.f32 -1.442695, %v3783_v9  ;;  %v5513_v9 = vld [vmem:[%s5875_s3 + $0xf8] ss:$12 sps:$4 sm:$0xff]  }
 0x3cb   :  { %4232 = vpow2.f32 %v3388_v7  ;;  %v5506_v7 = vld [vmem:[%s5875_s3 + $0x10c] ss:$12 sps:$4 sm:$0xff]  }
 0x3cc   :  { %4234 = vpow2.f32 %v3389_v11  ;;  %v5519_v11 = vld [vmem:[%s5875_s3 + $0x108] ss:$12 sps:$4 sm:$0xff]  }
 0x3cd   :  { %4236 = vpow2.f32 %v3390_v36  ;;  %v5525_v36 = vld [vmem:[%s5875_s3 + $0x124] ss:$12 sps:$4 sm:$0xff]  }
 0x3d3   :  { %v4231_v12 = vpop.eup %4230 }
 0x3d4   :  { %v2107_v13 = vadd.f32 1.0, %v4231_v12  ;;  %v5532_v12 = vld [vmem:[%s5875_s3 + $0x110] ss:$12 sps:$4 sm:$0xff]  }
 0x3d5   :  { %v4233_v15 = vpop.eup %4232 }
 0x3d6   :  { %4238 = vrcp.f32 %v2107_v13  ;;  %v2108_v45 = vadd.f32 1.0, %v4233_v15  ;;  %v4235_v16 = vpop.eup %4234  ;;  %v5538_v13 = vld [vmem:[%s5875_s3 + $0x120] ss:$12 sps:$4 sm:$0xff]   ;;  %v5544_v15 = vld [vmem:[%s5875_s3 + $0x13c] ss:$12 sps:$4 sm:$0xff]  }
 0x3d7   :  { %v4237_v17 = vpop.eup %4236  ;;  %v2121_v56 = vadd.f32 1.0, %v4235_v16  ;;  %v5557_v16 = vld [vmem:[%s5875_s3 + $0x138] ss:$12 sps:$4 sm:$0xff]  }
 0x3d8   :  { %4240 = vrcp.f32 %v2108_v45  ;;  %v2122_v57 = vadd.f32 1.0, %v4237_v17  ;;  %v5551_v45 = vld [vmem:[%s5875_s3 + $0x128] ss:$12 sps:$4 sm:$0xff]  }
 0x3d9   :  { %4242 = vrcp.f32 %v2121_v56  ;;  %v5563_v17 = vld [vmem:[%s5875_s3 + $0x154] ss:$12 sps:$4 sm:$0xff]  }
 0x3da   :  { %4244 = vrcp.f32 %v2122_v57  ;;  %v5570_v56 = vld [vmem:[%s5875_s3 + $0x140] ss:$12 sps:$4 sm:$0xff]  }
 0x3db   :  { %v5582_v57 = vld [vmem:[%s5875_s3 + $0x16c] ss:$12 sps:$4 sm:$0xff]  }
 0x3e0   :  { %v4239_v4 = vpop.eup %4238 }
 0x3e1   :  { %v2127_v29 = vmul.f32 %v4239_v4, %v2093_v63  ;;  %v5576_v63 = vld [vmem:[%s5875_s3 + $0x150] ss:$12 sps:$4 sm:$0xff]   ;;  %v5589_v4 = vld [vmem:[%s5875_s3 + $0x158] ss:$12 sps:$4 sm:$0xff]  }
 0x3e2   :  { %v4241_v25 = vpop.eup %4240 }
 0x3e3   :  { %v2129_v1 = vadd.f32 %v5211_v53, %v2127_v29  ;;  %v2128_v22 = vmul.f32 %v4241_v25, %v2096_v34  ;;  %v4243_v39 = vpop.eup %4242  ;;  %v5595_v29 = vld [vmem:[%s5875_s3 + $0x168] ss:$12 sps:$4 sm:$0xff]   ;;  %v5603_v34 = vld [vmem:[%s5875_s3 + $0x170] ss:$12 sps:$4 sm:$0xff]   ;;  %v5913_v25 = vmov 0.0|0.0  }
 0x3e4   :  { %v4245_v54 = vpop.eup %4244  ;;  %v2133_v19 = vsub.f32 1.0, %v4243_v39  ;;  %v2137_v3 = vmul.f32 %v4243_v39, %v5382_v41 }
 0x3e5   :  { %4246 = vtanh.f32 %v2129_v1  ;;  %v2130_v28 = vadd.f32 %v5217_v51, %v2128_v22  ;;  %v2134_v38 = vsub.f32 1.0, %v4245_v54  ;;  %v2138_v60 = vmul.f32 %v4245_v54, %v5385_v24 }
 0x3e7   :  { %4248 = vtanh.f32 %v2130_v28 }
 0x3ef   :  { %v4247_v58 = vpop.eup %4246 }
 0x3f0   :  { %v2135_v32 = vmul.f32 %v4247_v58, %v2133_v19 }
 0x3f1   :  { %v4249_v42 = vpop.eup %4248 }
 0x3f2   :  { %v2136_v10 = vmul.f32 %v4249_v42, %v2134_v38  ;;  %v2139_v53 = vadd.f32 %v2137_v3, %v2135_v32 }
 0x3f4   :  { %v2140_v31 = vadd.f32 %v2138_v60, %v2136_v10  ;;  %v2160_v35 = vsel %vm2154_vm14, %v2139_v53, 0.0  ;;  %v5446_v40 = vsel %vm2154_vm14, %v2139_v53, %v5382_v41  ;;  %v5464_v41 = vld [vmem:[%s5875_s3 + $0xdc] ss:$12 sps:$4 sm:$0xff]  }
 0x3f5   :  { %v3504_v51 = vpack.c.bf16 %v2160_v35, %v2160_v35 }
 0x3f6   :  { %v5449_v43 = vsel %vm2155_vm15, %v2140_v31, %v5385_v24  ;;  %v2161_v47 = vsel %vm2155_vm15, %v2140_v31, 0.0  ;;  %v5472_v24 = vld [vmem:[%s5875_s3 + $0xc8] ss:$12 sps:$4 sm:$0xff]  }
 0x3f7   :  { %v3505_v18 = vpack.c.bf16 %v2161_v47, %v2161_v47  ;;  %3395 = vst [vmem:[%s5879_s6 + $0x20] sm:$0xf] %v3504_v51  ;;  %v2184_v55 = vpack.c.bf16 %v5449_v43, %v5446_v40 }
 0x3f9   :  { %3396 = vst [vmem:[%s5879_s6 + $0x28] sm:$0xf] %v3505_v18  ;;  %2218 = vmatmul.mubr.bf16.vlgmr.msra.gmra.mrb[12].mxu0 %v2184_v55  ;;  %3677 = vmatmul.mubr.bf16.vlgmr.msra.gmra.mrb[28].mxu1 %v2184_v55 }
 0x3fa   :  { %2534 = vmatpush1.bf16.msra.mxu1 %v5454_v50  ;;  %2565 = vmatprep.mubr.bf16.mxu1 %v5912_v33 }
 0x3fb   :  { %2535 = vmatprep.subr.bf16.mxu1 %v5464_v41  ;;  %3701 = vmatpush3.bf16.msra.mxu0 %v5472_v24 }
 0x3fc   :  { %3702 = vmatprep.subr.bf16.mxu0 %v5911_v30  ;;  %3716 = vmatprep.mubr.msk.bf16.mxu0 %vm4352_vm8, %v5911_v30 }
 0x3fe   :  { %2536 = vmatpush1.bf16.msra.mxu1 %v5478_v14 }
 0x3ff   :  { %2537 = vmatprep.subr.bf16.mxu1 %v5485_v5  ;;  %3703 = vmatpush3.bf16.msra.mxu0 %v5494_v6 }
 0x400   :  { %3704 = vmatprep.subr.bf16.mxu0 %v5911_v30 }
 0x402   :  { %2538 = vmatpush1.bf16.msra.mxu1 %v5500_v27 }
 0x403   :  { %2539 = vmatprep.subr.bf16.mxu1 %v5506_v7  ;;  %3705 = vmatpush3.bf16.msra.mxu0 %v5513_v9 }
 0x404   :  { %3706 = vmatprep.subr.bf16.mxu0 %v5911_v30 }
 0x406   :  { %2540 = vmatpush1.bf16.msra.mxu1 %v5519_v11 }
 0x407   :  { %2541 = vmatprep.subr.bf16.mxu1 %v5525_v36  ;;  %3707 = vmatpush3.bf16.msra.mxu0 %v5532_v12 }
 0x408   :  { %3708 = vmatprep.subr.bf16.mxu0 %v5911_v30 }
 0x40a   :  { %2542 = vmatpush1.bf16.msra.mxu1 %v5538_v13 }
 0x40b   :  { %2543 = vmatprep.subr.bf16.mxu1 %v5544_v15  ;;  %3709 = vmatpush3.bf16.msra.mxu0 %v5551_v45 }
 0x40c   :  { %3710 = vmatprep.subr.bf16.mxu0 %v5911_v30 }
 0x40e   :  { %2544 = vmatpush1.bf16.msra.mxu1 %v5557_v16 }
 0x40f   :  { %2545 = vmatprep.subr.bf16.mxu1 %v5563_v17  ;;  %3711 = vmatpush3.bf16.msra.mxu0 %v5570_v56 }
 0x410   :  { %3712 = vmatprep.subr.bf16.mxu0 %v5911_v30 }
 0x412   :  { %2546 = vmatpush1.bf16.msra.mxu1 %v5576_v63 }
 0x413   :  { %2547 = vmatprep.subr.bf16.mxu1 %v5582_v57  ;;  %3713 = vmatpush3.bf16.msra.mxu0 %v5589_v4 }
 0x414   :  { %3714 = vmatprep.subr.bf16.mxu0 %v5911_v30 }
 0x416   :  { %2548 = vmatpush1.bf16.msra.mxu1 %v5595_v29 }
 0x417   :  { %3680 = vmatprep.subr.bf16.mxu1 %v5911_v30  ;;  %3715 = vmatpush3.bf16.msra.mxu0 %v5603_v34 }
 0x418   :  { %3720 = vmatprep.subr.bf16.mxu0 %v5911_v30 }
 0x419   :  { %2566 = vmatmul.mubr.bf16.vlgmr.msra.gmra.mrb[32].mxu1 %v5913_v25 }
 0x41a   :  { %3681 = vmatpush3.bf16.msra.mxu1 %v5472_v24  ;;  %3696 = vmatprep.mubr.msk.bf16.mxu1 %vm4352_vm8, %v5911_v30 }
 0x41b   :  { %3682 = vmatprep.subr.bf16.mxu1 %v5911_v30 }
 0x41e   :  { %3683 = vmatpush3.bf16.msra.mxu1 %v5494_v6 }
 0x41f   :  { %3684 = vmatprep.subr.bf16.mxu1 %v5911_v30 }
 0x422   :  { %3685 = vmatpush3.bf16.msra.mxu1 %v5513_v9 }
 0x423   :  { %3686 = vmatprep.subr.bf16.mxu1 %v5911_v30 }
 0x426   :  { %3687 = vmatpush3.bf16.msra.mxu1 %v5532_v12 }
 0x427   :  { %3688 = vmatprep.subr.bf16.mxu1 %v5911_v30 }
 0x42a   :  { %3689 = vmatpush3.bf16.msra.mxu1 %v5551_v45 }
 0x42b   :  { %3690 = vmatprep.subr.bf16.mxu1 %v5911_v30 }
 0x42e   :  { %3691 = vmatpush3.bf16.msra.mxu1 %v5570_v56 }
 0x42f   :  { %3692 = vmatprep.subr.bf16.mxu1 %v5911_v30 }
 0x432   :  { %3693 = vmatpush3.bf16.msra.mxu1 %v5589_v4 }
 0x433   :  { %3694 = vmatprep.subr.bf16.mxu1 %v5911_v30 }
 0x436   :  { %3695 = vmatpush3.bf16.msra.mxu1 %v5603_v34 }
 0x437   :  { %2698 = vmatprep.subr.bf16.mxu1 %v5432_v21 }
 0x439   :  { %3697 = vmatmul.mubr.bf16.vlgmr.msra.gmra.mrb[36].mxu1 %v5913_v25  ;;  %v5653_v25 = vld [vmem:[%s5878_s4 + $0x3] sm:$0x7] }
 0x43a   :  { %2699 = vmatpush1.bf16.msra.mxu1 %v5454_v50  ;;  %2730 = vmatprep.mubr.bf16.mxu1 %v5912_v33 }
 0x43b   :  { %2700 = vmatprep.subr.bf16.mxu1 %v5464_v41 }
 0x43e   :  { %2701 = vmatpush1.bf16.msra.mxu1 %v5478_v14 }
 0x43f   :  { %2702 = vmatprep.subr.bf16.mxu1 %v5485_v5 }
 0x442   :  { %2703 = vmatpush1.bf16.msra.mxu1 %v5500_v27 }
 0x443   :  { %2704 = vmatprep.subr.bf16.mxu1 %v5506_v7 }
 0x446   :  { %2705 = vmatpush1.bf16.msra.mxu1 %v5519_v11 }
 0x447   :  { %2706 = vmatprep.subr.bf16.mxu1 %v5525_v36 }
 0x44a   :  { %2707 = vmatpush1.bf16.msra.mxu1 %v5538_v13 }
 0x44b   :  { %2708 = vmatprep.subr.bf16.mxu1 %v5544_v15 }
 0x44e   :  { %2709 = vmatpush1.bf16.msra.mxu1 %v5557_v16 }
 0x44f   :  { %2710 = vmatprep.subr.bf16.mxu1 %v5563_v17 }
 0x452   :  { %2711 = vmatpush1.bf16.msra.mxu1 %v5576_v63 }
 0x453   :  { %2712 = vmatprep.subr.bf16.mxu1 %v5582_v57 }
 0x456   :  { %2713 = vmatpush1.bf16.msra.mxu1 %v5595_v29 }
 0x457   :  { %2863 = vmatprep.subr.bf16.mxu1 %v5432_v21 }
 0x4cc   :  { %v2219_v1 = vpop.f32.mrb[12].mxu0  ;;  %v2262_v22 = vpop.f32.mrb[28].mxu1 }
 0x4cd   :  { %v3785_v28 = vadd.f32 %v5303_v49, %v2219_v1  ;;  %v2221_v39 = vpop.f32.mrb[13].mxu0  ;;  %v3678_v54 = vpop.f32.mrb[29].mxu1 }
 0x4ce   :  { %v2223_v19 = vpop.f32.mrb[14].mxu0  ;;  %v2265_v58 = vpop.f32.mrb[30].mxu1  ;;  %v3787_v44 = vadd.f32 %v5305_v48, %v2221_v39 }
 0x4cf   :  { %v3397_v38 = vmul.f32 -1.442695, %v3785_v28  ;;  %v3789_v32 = vadd.f32 %v5303_v49, %v2223_v19  ;;  %v2225_v3 = vpop.f32.mrb[15].mxu0  ;;  %v3679_v42 = vpop.f32.mrb[31].mxu1  ;;  %v2266_v19 = vadd.f32 %v2265_v58, %v5312_v20 }
 0x4d0   :  { %v3791_v60 = vadd.f32 %v5305_v48, %v2225_v3  ;;  %v3399_v53 = vmul.f32 -1.442695, %v3787_v44  ;;  %v2263_v48 = vadd.f32 %v2262_v22, %v5312_v20  ;;  %v5656_v39 = vpop.permute.xlu0 %2666  ;;  %v5665_v3 = vrot.slane %v5653_v25, %v5289_v26  ;;  %v5668_v44 = vpop.permute.xlu1 %2669 }
 0x4d1   :  { %4250 = vpow2.f32 %v3397_v38  ;;  %v3398_v10 = vmul.f32 -1.442695, %v3789_v32  ;;  %v5661_v38 = vrot.slane %v5653_v25, %v5281_v59  ;;  %v3820_v26 = vadd.f32 %v5286_v52, %v5239_v37 }
 0x4d2   :  { %v3400_v62 = vmul.f32 -1.442695, %v3791_v60  ;;  %v3805_v60 = vadd.f32 %v5225_v0, %v5179_v23  ;;  %vm2671_vm2 = vcmp.eq.s32.totalorder %v5656_v39, 1  ;;  %vm2672_vm3 = vcmp.eq.s32.totalorder %v5668_v44, 1 }
 0x4d3   :  { %4252 = vpow2.f32 %v3398_v10  ;;  %vm3522_vm4 = vmpackc.low %vm2672_vm3, %vm2671_vm2 }
 0x4d4   :  { %4254 = vpow2.f32 %v3399_v53  ;;  %v5676_v53 = vpop.permute.xlu0 %2831 }
 0x4d5   :  { %4256 = vpow2.f32 %v3400_v62  ;;  %vm2836_vm5 = vcmp.eq.s32.totalorder %v5676_v53, 1 }
 0x4db   :  { %v4251_v31 = vpop.eup %4250 }
 0x4dc   :  { %v2277_v35 = vadd.f32 1.0, %v4251_v31  ;;  %v3807_v31 = vadd.f32 %v5230_v8, %v5179_v23  ;;  %v5687_v23 = vpop.permute.xlu0 %2996 }
 0x4dd   :  { %v4253_v51 = vpop.eup %4252  ;;  %vm3001_vm7 = vcmp.eq.s32.totalorder %v5687_v23, 1 }
 0x4de   :  { %4258 = vrcp.f32 %v2277_v35  ;;  %v2278_v47 = vadd.f32 1.0, %v4253_v51  ;;  %v4255_v49 = vpop.eup %4254 }
 0x4df   :  { %v4257_v18 = vpop.eup %4256  ;;  %v2291_v55 = vadd.f32 1.0, %v4255_v49 }
 0x4e0   :  { %4260 = vrcp.f32 %v2278_v47  ;;  %v2292_v1 = vadd.f32 1.0, %v4257_v18  ;;  %v5684_v47 = vpop.permute.xlu1 %2834 }
 0x4e1   :  { %4262 = vrcp.f32 %v2291_v55  ;;  %vm2837_vm6 = vcmp.eq.s32.totalorder %v5684_v47, 1 }
 0x4e2   :  { %4264 = vrcp.f32 %v2292_v1 }
 0x4e8   :  { %v4259_v28 = vpop.eup %4258 }
 0x4e9   :  { %v2297_v54 = vmul.f32 %v4259_v28, %v2263_v48 }
 0x4ea   :  { %v4261_v32 = vpop.eup %4260 }
 0x4eb   :  { %v2299_v42 = vadd.f32 %v5223_v61, %v2297_v54  ;;  %v2298_v22 = vmul.f32 %v4261_v32, %v2266_v19  ;;  %v4263_v1 = vpop.eup %4262  ;;  %v5689_v54 = vpop.permute.xlu1 %2999 }
 0x4ec   :  { %v2567_v10 = vpop.f32.mrb[32].mxu1  ;;  %v4265_v8 = vpop.eup %4264  ;;  %v2303_v19 = vsub.f32 1.0, %v4263_v1 }
 0x4ed   :  { %4266 = vtanh.f32 %v2299_v42  ;;  %v2300_v20 = vadd.f32 %v5228_v2, %v2298_v22  ;;  %v2568_v59 = vadd.f32 %v2567_v10, %v5661_v38  ;;  %v2569_v58 = vpop.f32.mrb[33].mxu1  ;;  %v3822_v2 = vadd.f32 %v5296_v46, %v5239_v37  ;;  %v2320_v10 = vpop.permute.xlu0 %2319 }
 0x4ee   :  { %v2570_v61 = vadd.f32 %v2569_v58, %v5665_v3  ;;  %v2571_v62 = vpop.f32.mrb[34].mxu1  ;;  %v2307_v46 = vmul.f32 %v4263_v1, %v5446_v40  ;;  %v2304_v42 = vsub.f32 1.0, %v4265_v8  ;;  %vm2324_vm0 = vcmp.eq.s32.totalorder %v2320_v10, 1 }
 0x4ef   :  { %4268 = vtanh.f32 %v2300_v20  ;;  %v2617_v35 = vadd.f32 %v3805_v60, %v2568_v59  ;;  %v2572_v0 = vadd.f32 %v2571_v62, %v5661_v38  ;;  %v2573_v51 = vpop.f32.mrb[35].mxu1  ;;  %v2308_v59 = vmul.f32 %v4265_v8, %v5449_v43 }
 0x4f0   :  { %v2631_v49 = vadd.f32 %v3820_v26, %v2570_v61  ;;  %v2574_v52 = vadd.f32 %v2573_v51, %v5665_v3  ;;  %v2323_v26 = vpop.permute.xlu1 %2322 }
 0x4f1   :  { %v3464_v18 = vmul.f32 -1.442695, %v2617_v35  ;;  %v2618_v55 = vadd.f32 %v3807_v31, %v2572_v0  ;;  %vm2325_vm1 = vcmp.eq.s32.totalorder %v2323_v26, 1 }
 0x4f2   :  { %v2632_v48 = vadd.f32 %v3822_v2, %v2574_v52  ;;  %v3466_v58 = vmul.f32 -1.442695, %v2631_v49 }
 0x4f3   :  { %4270 = vpow2.f32 %v3464_v18  ;;  %v3465_v28 = vmul.f32 -1.442695, %v2618_v55  ;;  %v5914_v18 = vld [vmem:[#allocation5_spill] sm:$0xff] }
 0x4f4   :  { %v3467_v31 = vmul.f32 -1.442695, %v2632_v48  ;;  %v5701_v55 = vrot.slane %v5653_v25, %v5914_v18  ;;  %v5917_v25 = vld [vmem:[#allocation25_spill] sm:$0xff] }
 0x4f5   :  { %4272 = vpow2.f32 %v3465_v28 }
 0x4f6   :  { %4274 = vpow2.f32 %v3466_v58 }
 0x4f7   :  { %v4267_v32 = vpop.eup %4266  ;;  %4276 = vpow2.f32 %v3467_v31 }
 0x4f8   :  { %v2305_v37 = vmul.f32 %v4267_v32, %v2303_v19 }
 0x4f9   :  { %v4269_v22 = vpop.eup %4268 }
 0x4fa   :  { %v2309_v60 = vadd.f32 %v2307_v46, %v2305_v37  ;;  %v2306_v20 = vmul.f32 %v4269_v22, %v2304_v42  ;;  %v5915_v42 = vld [vmem:[#allocation11_spill] sm:$0xff]  ;;  %v5916_v22 = vld [vmem:[#allocation24_spill] sm:$0xff] }
 0x4fb   :  { %v3821_v10 = vadd.f32 %v5916_v22, %v5915_v42  ;;  %v3823_v26 = vadd.f32 %v5917_v25, %v5915_v42 }
 0x4fc   :  { %v2330_v61 = vsel %vm2324_vm0, %v2309_v60, 0.0  ;;  %v2310_v62 = vadd.f32 %v2308_v59, %v2306_v20 }
 0x4fd   :  { %v4271_v35 = vpop.eup %4270  ;;  %v3506_v0 = vpack.c.bf16 %v2330_v61, %v2330_v61 }
 0x4fe   :  { %v2331_v51 = vsel %vm2325_vm1, %v2310_v62, 0.0  ;;  %v2625_v52 = vadd.f32 1.0, %v4271_v35 }
 0x4ff   :  { %v4273_v2 = vpop.eup %4272  ;;  %3405 = vst [vmem:[%s5879_s6 + $0x30] sm:$0xf] %v3506_v0  ;;  %v3507_v40 = vpack.c.bf16 %v2331_v51, %v2331_v51 }
 0x500   :  { %v2626_v43 = vadd.f32 1.0, %v4273_v2  ;;  %4278 = vrcp.f32 %v2625_v52  ;;  %v4275_v49 = vpop.eup %4274 }
 0x501   :  { %3406 = vst [vmem:[%s5879_s6 + $0x38] sm:$0xf] %v3507_v40  ;;  %v4277_v48 = vpop.eup %4276  ;;  %v2639_v1 = vadd.f32 1.0, %v4275_v49 }
 0x502   :  { %4280 = vrcp.f32 %v2626_v43  ;;  %v2640_v8 = vadd.f32 1.0, %v4277_v48 }
 0x503   :  { %4282 = vrcp.f32 %v2639_v1 }
 0x504   :  { %4284 = vrcp.f32 %v2640_v8 }
 0x50a   :  { %v4279_v37 = vpop.eup %4278 }
 0x50c   :  { %v2610_v28 = vpop.f32.mrb[36].mxu1  ;;  %v4281_v58 = vpop.eup %4280 }
 0x50d   :  { %v2611_v19 = vadd.f32 %v2610_v28, %v5701_v55  ;;  %v3698_v32 = vpop.f32.mrb[37].mxu1  ;;  %v4283_v35 = vpop.eup %4282 }
 0x50e   :  { %v2613_v46 = vpop.f32.mrb[38].mxu1  ;;  %v4285_v0 = vpop.eup %4284  ;;  %v2651_v51 = vsub.f32 1.0, %v4283_v35  ;;  %v2655_v43 = vmul.f32 0.0, %v4283_v35 }
 0x50f   :  { %v2645_v60 = vmul.f32 %v4279_v37, %v2611_v19  ;;  %v2614_v20 = vadd.f32 %v2613_v46, %v5701_v55  ;;  %v3699_v59 = vpop.f32.mrb[39].mxu1  ;;  %v2652_v40 = vsub.f32 1.0, %v4285_v0  ;;  %v2656_v48 = vmul.f32 0.0, %v4285_v0 }
 0x511   :  { %v2647_v61 = vadd.f32 %v3821_v10, %v2645_v60  ;;  %v2646_v62 = vmul.f32 %v4281_v58, %v2614_v20  ;;  %v5918_v58 = vld [vmem:[#allocation9_spill] sm:$0xff] }
 0x513   :  { %4286 = vtanh.f32 %v2647_v61  ;;  %v2648_v31 = vadd.f32 %v3823_v26, %v2646_v62 }
 0x515   :  { %4288 = vtanh.f32 %v2648_v31  ;;  %v5919_v31 = vld [vmem:[#allocation20_spill] sm:$0xff] }
 0x51d   :  { %v4287_v2 = vpop.eup %4286 }
 0x51e   :  { %v2653_v52 = vmul.f32 %v4287_v2, %v2651_v51  ;;  %v5920_v51 = vld [vmem:[#allocation10_spill] sm:$0xff] }
 0x51f   :  { %v4289_v49 = vpop.eup %4288 }
 0x520   :  { %v2654_v18 = vmul.f32 %v4289_v49, %v2652_v40  ;;  %v2657_v1 = vadd.f32 %v2655_v43, %v2653_v52  ;;  %v5921_v40 = vld [vmem:[#allocation22_spill] sm:$0xff] }
 0x522   :  { %v2658_v28 = vadd.f32 %v2656_v48, %v2654_v18  ;;  %v5711_v8 = vsel %vm2671_vm2, %v2657_v1, 0.0 }
 0x523   :  { %v3508_v19 = vpack.c.bf16 %v5711_v8, %v5711_v8 }
 0x524   :  { %v3523_v32 = vpack.c.bf16 %v2658_v28, %v2657_v1  ;;  %v5715_v37 = vsel %vm2672_vm3, %v2658_v28, 0.0 }
 0x525   :  { %v3509_v46 = vpack.c.bf16 %v5715_v37, %v5715_v37  ;;  %3472 = vst [vmem:[%s5879_s6 + $0x34] sm:$0xf] %v3508_v19 }
 0x526   :  { %3524 = vmatmul.mubr.msk.bf16.vlgmr.msra.gmra.mrb[40].mxu1 %vm3522_vm4, %v3523_v32  ;;  %3717 = vmatmul.mubr.msk.bf16.vlgmr.msra.gmra.mrb[32].mxu0 %vm3522_vm4, %v3523_v32 }
 0x527   :  { %2864 = vmatpush1.bf16.msra.mxu1 %v5454_v50  ;;  %3721 = vmatpush3.bf16.msra.mxu0 %v5472_v24  ;;  %3473 = vst [vmem:[%s5879_s6 + $0x3c] sm:$0xf] %v3509_v46 }
 0x528   :  { %2865 = vmatprep.subr.bf16.mxu1 %v5464_v41  ;;  %3722 = vmatprep.subr.bf16.mxu0 %v5911_v30 }
 0x529   :  { %2895 = vmatprep.mubr.bf16.mxu1 %v5912_v33  ;;  %3736 = vmatprep.mubr.msk.bf16.mxu0 %vm4352_vm8, %v5911_v30 }
 0x52b   :  { %2866 = vmatpush1.bf16.msra.mxu1 %v5478_v14  ;;  %3723 = vmatpush3.bf16.msra.mxu0 %v5494_v6 }
 0x52c   :  { %2867 = vmatprep.subr.bf16.mxu1 %v5485_v5  ;;  %3724 = vmatprep.subr.bf16.mxu0 %v5911_v30 }
 0x52f   :  { %2868 = vmatpush1.bf16.msra.mxu1 %v5500_v27  ;;  %3725 = vmatpush3.bf16.msra.mxu0 %v5513_v9 }
 0x530   :  { %2869 = vmatprep.subr.bf16.mxu1 %v5506_v7  ;;  %3726 = vmatprep.subr.bf16.mxu0 %v5911_v30 }
 0x533   :  { %2870 = vmatpush1.bf16.msra.mxu1 %v5519_v11  ;;  %3727 = vmatpush3.bf16.msra.mxu0 %v5532_v12 }
 0x534   :  { %2871 = vmatprep.subr.bf16.mxu1 %v5525_v36  ;;  %3728 = vmatprep.subr.bf16.mxu0 %v5911_v30 }
 0x537   :  { %2872 = vmatpush1.bf16.msra.mxu1 %v5538_v13  ;;  %3729 = vmatpush3.bf16.msra.mxu0 %v5551_v45 }
 0x538   :  { %2873 = vmatprep.subr.bf16.mxu1 %v5544_v15  ;;  %3730 = vmatprep.subr.bf16.mxu0 %v5911_v30 }
 0x53b   :  { %2874 = vmatpush1.bf16.msra.mxu1 %v5557_v16  ;;  %3731 = vmatpush3.bf16.msra.mxu0 %v5570_v56 }
 0x53c   :  { %2875 = vmatprep.subr.bf16.mxu1 %v5563_v17  ;;  %3732 = vmatprep.subr.bf16.mxu0 %v5911_v30 }
 0x53f   :  { %2876 = vmatpush1.bf16.msra.mxu1 %v5576_v63  ;;  %3733 = vmatpush3.bf16.msra.mxu0 %v5589_v4 }
 0x540   :  { %2877 = vmatprep.subr.bf16.mxu1 %v5582_v57  ;;  %3734 = vmatprep.subr.bf16.mxu0 %v5911_v30 }
 0x543   :  { %2878 = vmatpush1.bf16.msra.mxu1 %v5595_v29  ;;  %3735 = vmatpush3.bf16.msra.mxu0 %v5603_v34 }
 0x544   :  { %3028 = vmatprep.subr.bf16.mxu1 %v5432_v21  ;;  %3740 = vmatprep.subr.bf16.mxu0 %v5911_v30 }
 0x5f9   :  { %v2732_v39 = vpop.f32.mrb[40].mxu1  ;;  %v2775_v44 = vpop.f32.mrb[32].mxu0 }
 0x5fa   :  { %v2733_v42 = vadd.f32 %v2732_v39, %v5661_v38  ;;  %v2734_v22 = vpop.f32.mrb[41].mxu1  ;;  %v3718_v10 = vpop.f32.mrb[33].mxu0 }
 0x5fb   :  { %v2735_v60 = vadd.f32 %v2734_v22, %v5665_v3  ;;  %v2736_v20 = vpop.f32.mrb[42].mxu1  ;;  %v2778_v59 = vpop.f32.mrb[34].mxu0 }
 0x5fc   :  { %v2782_v25 = vadd.f32 %v5918_v58, %v2733_v42  ;;  %v2737_v26 = vadd.f32 %v2736_v20, %v5661_v38  ;;  %v2738_v61 = vpop.f32.mrb[43].mxu1  ;;  %v3719_v62 = vpop.f32.mrb[35].mxu0  ;;  %v2776_v42 = vadd.f32 %v2775_v44, %v5701_v55  ;;  %v2779_v20 = vadd.f32 %v2778_v59, %v5701_v55 }
 0x5fd   :  { %v2796_v21 = vadd.f32 %v5919_v31, %v2735_v60  ;;  %v2739_v35 = vadd.f32 %v2738_v61, %v5665_v3  ;;  %v5923_v62 = vld [vmem:[#allocation23_spill] sm:$0xff] }
 0x5fe   :  { %v3474_v0 = vmul.f32 -1.442695, %v2782_v25  ;;  %v2783_v2 = vadd.f32 %v5920_v51, %v2737_v26  ;;  %v5922_v25 = vld [vmem:[#allocation21_spill] sm:$0xff] }
 0x5ff   :  { %v2797_v52 = vadd.f32 %v5921_v40, %v2739_v35  ;;  %v3476_v49 = vmul.f32 -1.442695, %v2796_v21 }
 0x600   :  { %4290 = vpow2.f32 %v3474_v0  ;;  %v3475_v43 = vmul.f32 -1.442695, %v2783_v2 }
 0x601   :  { %v3477_v18 = vmul.f32 -1.442695, %v2797_v52 }
 0x602   :  { %4292 = vpow2.f32 %v3475_v43 }
 0x603   :  { %4294 = vpow2.f32 %v3476_v49 }
 0x604   :  { %4296 = vpow2.f32 %v3477_v18 }
 0x60a   :  { %v4291_v48 = vpop.eup %4290 }
 0x60b   :  { %v2790_v1 = vadd.f32 1.0, %v4291_v48 }
 0x60c   :  { %v4293_v28 = vpop.eup %4292 }
 0x60d   :  { %4298 = vrcp.f32 %v2790_v1  ;;  %v2791_v19 = vadd.f32 1.0, %v4293_v28  ;;  %v4295_v32 = vpop.eup %4294 }
 0x60e   :  { %v4297_v46 = vpop.eup %4296  ;;  %v2804_v39 = vadd.f32 1.0, %v4295_v32 }
 0x60f   :  { %4300 = vrcp.f32 %v2791_v19  ;;  %v2805_v22 = vadd.f32 1.0, %v4297_v46 }
 0x610   :  { %4302 = vrcp.f32 %v2804_v39 }
 0x611   :  { %4304 = vrcp.f32 %v2805_v22 }
 0x617   :  { %v4299_v10 = vpop.eup %4298 }
 0x618   :  { %v2810_v60 = vmul.f32 %v4299_v10, %v2776_v42 }
 0x619   :  { %v4301_v58 = vpop.eup %4300 }
 0x61a   :  { %v2812_v26 = vadd.f32 %v5922_v25, %v2810_v60  ;;  %v2811_v61 = vmul.f32 %v4301_v58, %v2779_v20  ;;  %v4303_v21 = vpop.eup %4302 }
 0x61b   :  { %v4305_v35 = vpop.eup %4304  ;;  %v2816_v0 = vsub.f32 1.0, %v4303_v21  ;;  %v2820_v40 = vmul.f32 %v4303_v21, %v5711_v8  ;;  %v5929_v21 = vld [vmem:[#allocation19_spill] sm:$0xff] }
 0x61c   :  { %4306 = vtanh.f32 %v2812_v26  ;;  %v2813_v31 = vadd.f32 %v5923_v62, %v2811_v61  ;;  %v2817_v44 = vsub.f32 1.0, %v4305_v35  ;;  %v2821_v59 = vmul.f32 %v4305_v35, %v5715_v37  ;;  %v5928_v61 = vld [vmem:[#allocation17_spill] sm:$0xff] }
 0x61e   :  { %4308 = vtanh.f32 %v2813_v31 }
 0x626   :  { %v4307_v51 = vpop.eup %4306 }
 0x627   :  { %v2818_v2 = vmul.f32 %v4307_v51, %v2816_v0 }
 0x628   :  { %v4309_v52 = vpop.eup %4308 }
 0x629   :  { %v2819_v43 = vmul.f32 %v4309_v52, %v2817_v44  ;;  %v2822_v49 = vadd.f32 %v2820_v40, %v2818_v2 }
 0x62b   :  { %v2823_v18 = vadd.f32 %v2821_v59, %v2819_v43  ;;  %v5776_v48 = vsel %vm2836_vm5, %v2822_v49, %v5711_v8  ;;  %v2842_v1 = vsel %vm2836_vm5, %v2822_v49, 0.0 }
 0x62c   :  { %v3510_v28 = vpack.c.bf16 %v2842_v1, %v2842_v1 }
 0x62d   :  { %v5780_v19 = vsel %vm2837_vm6, %v2823_v18, %v5715_v37  ;;  %v2843_v32 = vsel %vm2837_vm6, %v2823_v18, 0.0 }
 0x62e   :  { %v3511_v46 = vpack.c.bf16 %v2843_v32, %v2843_v32  ;;  %3482 = vst [vmem:[%s5879_s6 + $0x24] sm:$0xf] %v3510_v28  ;;  %v2862_v53 = vpack.c.bf16 %v5780_v19, %v5776_v48 }
 0x630   :  { %3483 = vst [vmem:[%s5879_s6 + $0x2c] sm:$0xf] %v3511_v46  ;;  %2896 = vmatmul.mubr.bf16.vlgmr.msra.gmra.mrb[44].mxu1 %v2862_v53  ;;  %3737 = vmatmul.mubr.bf16.vlgmr.msra.gmra.mrb[36].mxu0 %v2862_v53 }
 0x631   :  { %3029 = vmatpush1.bf16.msra.mxu1 %v5454_v50  ;;  %3741 = vmatpush3.bf16.msra.mxu0 %v5472_v24 }
 0x632   :  { %3030 = vmatprep.subr.bf16.mxu1 %v5464_v41  ;;  %3742 = vmatprep.subr.bf16.mxu0 %v5911_v30 }
 0x633   :  { %3060 = vmatprep.mubr.bf16.mxu1 %v5912_v33  ;;  %3756 = vmatprep.mubr.msk.bf16.mxu0 %vm4352_vm8, %v5911_v30  ;;  %vm3002_vm8 = vcmp.eq.s32.totalorder %v5689_v54, 1 }
 0x635   :  { %3031 = vmatpush1.bf16.msra.mxu1 %v5478_v14  ;;  %3743 = vmatpush3.bf16.msra.mxu0 %v5494_v6 }
 0x636   :  { %3032 = vmatprep.subr.bf16.mxu1 %v5485_v5  ;;  %3744 = vmatprep.subr.bf16.mxu0 %v5911_v30 }
 0x639   :  { %3033 = vmatpush1.bf16.msra.mxu1 %v5500_v27  ;;  %3745 = vmatpush3.bf16.msra.mxu0 %v5513_v9 }
 0x63a   :  { %3034 = vmatprep.subr.bf16.mxu1 %v5506_v7  ;;  %3746 = vmatprep.subr.bf16.mxu0 %v5911_v30  ;;  %v5924_v7 = vld [vmem:[#allocation7_spill] sm:$0xff] }
 0x63d   :  { %3035 = vmatpush1.bf16.msra.mxu1 %v5519_v11  ;;  %3747 = vmatpush3.bf16.msra.mxu0 %v5532_v12  ;;  %v5925_v12 = vld [vmem:[#allocation16_spill] sm:$0xff] }
 0x63e   :  { %3036 = vmatprep.subr.bf16.mxu1 %v5525_v36  ;;  %3748 = vmatprep.subr.bf16.mxu0 %v5911_v30 }
 0x641   :  { %3037 = vmatpush1.bf16.msra.mxu1 %v5538_v13  ;;  %3749 = vmatpush3.bf16.msra.mxu0 %v5551_v45 }
 0x642   :  { %3038 = vmatprep.subr.bf16.mxu1 %v5544_v15  ;;  %3750 = vmatprep.subr.bf16.mxu0 %v5911_v30 }
 0x645   :  { %3039 = vmatpush1.bf16.msra.mxu1 %v5557_v16  ;;  %3751 = vmatpush3.bf16.msra.mxu0 %v5570_v56  ;;  %v5926_v16 = vld [vmem:[#allocation8_spill] sm:$0xff]  ;;  %v5927_v56 = vld [vmem:[#allocation18_spill] sm:$0xff] }
 0x646   :  { %3040 = vmatprep.subr.bf16.mxu1 %v5563_v17  ;;  %3752 = vmatprep.subr.bf16.mxu0 %v5911_v30 }
 0x649   :  { %3041 = vmatpush1.bf16.msra.mxu1 %v5576_v63  ;;  %3753 = vmatpush3.bf16.msra.mxu0 %v5589_v4 }
 0x64a   :  { %3042 = vmatprep.subr.bf16.mxu1 %v5582_v57  ;;  %3754 = vmatprep.subr.bf16.mxu0 %v5911_v30 }
 0x64d   :  { %3043 = vmatpush1.bf16.msra.mxu1 %v5595_v29  ;;  %3755 = vmatpush3.bf16.msra.mxu0 %v5603_v34 }
 0x703   :  { %v2897_v33 = vpop.f32.mrb[44].mxu1  ;;  %v2940_v50 = vpop.f32.mrb[36].mxu0 }
 0x704   :  { %v2898_v41 = vadd.f32 %v2897_v33, %v5661_v38  ;;  %v2899_v24 = vpop.f32.mrb[45].mxu1  ;;  %v3738_v14 = vpop.f32.mrb[37].mxu0  ;;  %v2941_v10 = vadd.f32 %v2940_v50, %v5701_v55 }
 0x705   :  { %v2900_v5 = vadd.f32 %v2899_v24, %v5665_v3  ;;  %v2901_v6 = vpop.f32.mrb[46].mxu1  ;;  %v2943_v27 = vpop.f32.mrb[38].mxu0 }
 0x706   :  { %v2947_v9 = vadd.f32 %v5924_v7, %v2898_v41  ;;  %v2902_v11 = vadd.f32 %v2901_v6, %v5661_v38  ;;  %v2903_v36 = vpop.f32.mrb[47].mxu1  ;;  %v3739_v30 = vpop.f32.mrb[39].mxu0  ;;  %v2944_v25 = vadd.f32 %v2943_v27, %v5701_v55  ;;  %v5930_v7 = vld [vmem:[#allocation4_spill] sm:$0xff] }
 0x707   :  { %v2961_v13 = vadd.f32 %v5925_v12, %v2900_v5  ;;  %v2904_v15 = vadd.f32 %v2903_v36, %v5665_v3  ;;  %v5931_v12 = vld [vmem:[#allocation12_spill] sm:$0xff] }
 0x708   :  { %v3484_v45 = vmul.f32 -1.442695, %v2947_v9  ;;  %v2948_v17 = vadd.f32 %v5926_v16, %v2902_v11  ;;  %v5932_v16 = vld [vmem:[#allocation6_spill] sm:$0xff] }
 0x709   :  { %v2962_v63 = vadd.f32 %v5927_v56, %v2904_v15  ;;  %v3486_v4 = vmul.f32 -1.442695, %v2961_v13  ;;  %v5933_v56 = vld [vmem:[#allocation14_spill] sm:$0xff] }
 0x70a   :  { %4310 = vpow2.f32 %v3484_v45  ;;  %v3485_v57 = vmul.f32 -1.442695, %v2948_v17 }
 0x70b   :  { %v3487_v29 = vmul.f32 -1.442695, %v2962_v63 }
 0x70c   :  { %4312 = vpow2.f32 %v3485_v57 }
 0x70d   :  { %4314 = vpow2.f32 %v3486_v4 }
 0x70e   :  { %4316 = vpow2.f32 %v3487_v29 }
 0x714   :  { %v4311_v34 = vpop.eup %4310 }
 0x715   :  { %v2955_v47 = vadd.f32 1.0, %v4311_v34 }
 0x716   :  { %v4313_v8 = vpop.eup %4312 }
 0x717   :  { %4318 = vrcp.f32 %v2955_v47  ;;  %v2956_v37 = vadd.f32 1.0, %v4313_v8  ;;  %v4315_v39 = vpop.eup %4314 }
 0x718   :  { %v4317_v42 = vpop.eup %4316  ;;  %v2969_v22 = vadd.f32 1.0, %v4315_v39 }
 0x719   :  { %4320 = vrcp.f32 %v2956_v37  ;;  %v2970_v60 = vadd.f32 1.0, %v4317_v42 }
 0x71a   :  { %4322 = vrcp.f32 %v2969_v22 }
 0x71b   :  { %4324 = vrcp.f32 %v2970_v60 }
 0x721   :  { %v4319_v20 = vpop.eup %4318 }
 0x722   :  { %v2975_v58 = vmul.f32 %v4319_v20, %v2941_v10 }
 0x723   :  { %v4321_v26 = vpop.eup %4320 }
 0x724   :  { %v2977_v62 = vadd.f32 %v5928_v61, %v2975_v58  ;;  %v2976_v31 = vmul.f32 %v4321_v26, %v2944_v25  ;;  %v4323_v0 = vpop.eup %4322  ;;  %v5934_v25 = vld [vmem:[#allocation13_spill] sm:$0xff] }
 0x725   :  { %v4325_v51 = vpop.eup %4324  ;;  %v2981_v44 = vsub.f32 1.0, %v4323_v0  ;;  %v2985_v43 = vmul.f32 %v4323_v0, %v5776_v48 }
 0x726   :  { %4326 = vtanh.f32 %v2977_v62  ;;  %v2978_v35 = vadd.f32 %v5929_v21, %v2976_v31  ;;  %v2982_v40 = vsub.f32 1.0, %v4325_v51  ;;  %v2986_v18 = vmul.f32 %v4325_v51, %v5780_v19  ;;  %v5935_v62 = vld [vmem:[#allocation15_spill] sm:$0xff] }
 0x728   :  { %4328 = vtanh.f32 %v2978_v35 }
 0x730   :  { %v4327_v2 = vpop.eup %4326 }
 0x731   :  { %v2983_v52 = vmul.f32 %v4327_v2, %v2981_v44  ;;  %v3162_v44 = vpop.permute.xlu0 %3161 }
 0x732   :  { %v4329_v59 = vpop.eup %4328  ;;  %vm3166_vm9 = vcmp.eq.s32.totalorder %v3162_v44, 1 }
 0x733   :  { %v2984_v49 = vmul.f32 %v4329_v59, %v2982_v40  ;;  %v2987_v1 = vadd.f32 %v2985_v43, %v2983_v52 }
 0x735   :  { %v2988_v28 = vadd.f32 %v2986_v18, %v2984_v49  ;;  %v5839_v32 = vsel %vm3001_vm7, %v2987_v1, %v5776_v48  ;;  %v3007_v46 = vsel %vm3001_vm7, %v2987_v1, 0.0 }
 0x736   :  { %v3512_v53 = vpack.c.bf16 %v3007_v46, %v3007_v46 }
 0x737   :  { %v5843_v33 = vsel %vm3002_vm8, %v2988_v28, %v5780_v19  ;;  %v3008_v50 = vsel %vm3002_vm8, %v2988_v28, 0.0 }
 0x738   :  { %v3513_v41 = vpack.c.bf16 %v3008_v50, %v3008_v50  ;;  %3492 = vst [vmem:[%s5879_s6 + $0x14] sm:$0xf] %v3512_v53  ;;  %v3027_v23 = vpack.c.bf16 %v5843_v33, %v5839_v32 }
 0x73a   :  { %3493 = vst [vmem:[%s5879_s6 + $0x1c] sm:$0xf] %v3513_v41  ;;  %3061 = vmatmul.mubr.bf16.vlgmr.msra.gmra.mrb[48].mxu1 %v3027_v23  ;;  %3757 = vmatmul.mubr.bf16.vlgmr.msra.gmra.mrb[40].mxu0 %v3027_v23 }
 0x80d   :  { %v3062_v54 = vpop.f32.mrb[48].mxu1  ;;  %v3105_v48 = vpop.f32.mrb[40].mxu0 }
 0x80e   :  { %v3063_v19 = vadd.f32 %v3062_v54, %v5661_v38  ;;  %v3064_v24 = vpop.f32.mrb[49].mxu1  ;;  %v3758_v14 = vpop.f32.mrb[41].mxu0  ;;  %v3106_v42 = vadd.f32 %v3105_v48, %v5701_v55 }
 0x80f   :  { %v3065_v5 = vadd.f32 %v3064_v24, %v5665_v3  ;;  %v3066_v6 = vpop.f32.mrb[50].mxu1  ;;  %v3108_v27 = vpop.f32.mrb[42].mxu0 }
 0x810   :  { %v3112_v9 = vadd.f32 %v5930_v7, %v3063_v19  ;;  %v3067_v11 = vadd.f32 %v3066_v6, %v5661_v38  ;;  %v3068_v36 = vpop.f32.mrb[51].mxu1  ;;  %v3759_v30 = vpop.f32.mrb[43].mxu0  ;;  %v3109_v20 = vadd.f32 %v3108_v27, %v5701_v55 }
 0x811   :  { %v3126_v13 = vadd.f32 %v5931_v12, %v3065_v5  ;;  %v3069_v15 = vadd.f32 %v3068_v36, %v5665_v3  ;;  %v3165_v55 = vpop.permute.xlu1 %3164 }
 0x812   :  { %v3494_v45 = vmul.f32 -1.442695, %v3112_v9  ;;  %v3113_v17 = vadd.f32 %v5932_v16, %v3067_v11  ;;  %vm3167_vm10 = vcmp.eq.s32.totalorder %v3165_v55, 1 }
 0x813   :  { %v3127_v63 = vadd.f32 %v5933_v56, %v3069_v15  ;;  %v3496_v4 = vmul.f32 -1.442695, %v3126_v13 }
 0x814   :  { %4330 = vpow2.f32 %v3494_v45  ;;  %v3495_v57 = vmul.f32 -1.442695, %v3113_v17 }
 0x815   :  { %v3497_v29 = vmul.f32 -1.442695, %v3127_v63 }
 0x816   :  { %4332 = vpow2.f32 %v3495_v57 }
 0x817   :  { %4334 = vpow2.f32 %v3496_v4 }
 0x818   :  { %4336 = vpow2.f32 %v3497_v29 }
 0x81e   :  { %v4331_v34 = vpop.eup %4330 }
 0x81f   :  { %v3120_v38 = vadd.f32 1.0, %v4331_v34 }
 0x820   :  { %v4333_v47 = vpop.eup %4332 }
 0x821   :  { %4338 = vrcp.f32 %v3120_v38  ;;  %v3121_v8 = vadd.f32 1.0, %v4333_v47  ;;  %v4335_v37 = vpop.eup %4334 }
 0x822   :  { %v4337_v3 = vpop.eup %4336  ;;  %v3134_v39 = vadd.f32 1.0, %v4335_v37 }
 0x823   :  { %4340 = vrcp.f32 %v3121_v8  ;;  %v3135_v22 = vadd.f32 1.0, %v4337_v3 }
 0x824   :  { %4342 = vrcp.f32 %v3134_v39 }
 0x825   :  { %4344 = vrcp.f32 %v3135_v22 }
 0x82b   :  { %v4339_v10 = vpop.eup %4338 }
 0x82c   :  { %v3140_v60 = vmul.f32 %v4339_v10, %v3106_v42 }
 0x82d   :  { %v4341_v58 = vpop.eup %4340 }
 0x82e   :  { %v3142_v26 = vadd.f32 %v5934_v25, %v3140_v60  ;;  %v3141_v61 = vmul.f32 %v4341_v58, %v3109_v20  ;;  %v4343_v21 = vpop.eup %4342 }
 0x82f   :  { %v4345_v35 = vpop.eup %4344  ;;  %v3146_v0 = vsub.f32 1.0, %v4343_v21  ;;  %v3150_v40 = vmul.f32 %v4343_v21, %v5839_v32 }
 0x830   :  { %4346 = vtanh.f32 %v3142_v26  ;;  %v3143_v31 = vadd.f32 %v5935_v62, %v3141_v61  ;;  %v3147_v52 = vsub.f32 1.0, %v4345_v35  ;;  %v3151_v18 = vmul.f32 %v4345_v35, %v5843_v33 }
 0x832   :  { %4348 = vtanh.f32 %v3143_v31 }
 0x83a   :  { %v4347_v51 = vpop.eup %4346 }
 0x83b   :  { %v3148_v2 = vmul.f32 %v4347_v51, %v3146_v0 }
 0x83c   :  { %v4349_v43 = vpop.eup %4348 }
 0x83d   :  { %v3152_v59 = vadd.f32 %v3150_v40, %v3148_v2  ;;  %v3149_v49 = vmul.f32 %v4349_v43, %v3147_v52 }
 0x83f   :  { %v3172_v1 = vsel %vm3166_vm9, %v3152_v59, 0.0  ;;  %v3153_v28 = vadd.f32 %v3151_v18, %v3149_v49 }
 0x840   :  { %v3514_v46 = vpack.c.bf16 %v3172_v1, %v3172_v1 }
 0x841   :  { %v3173_v53 = vsel %vm3167_vm10, %v3153_v28, 0.0 }
 0x842   :  { %3182 = vst [vmem:[%s5879_s6 + $0x4] sm:$0xf] %v3514_v46  ;;  %v3515_v50 = vpack.c.bf16 %v3173_v53, %v3173_v53 }
 0x844   :  { %3183 = vst [vmem:[%s5879_s6 + $0xc] sm:$0xf] %v3515_v50 }

</bundles_post_ra>
